<compile_context>
chip_gen: v6e
topology: v6e:2x2x1
jax: 0.10.0
libtpu: 0.0.40
codegen_flags: <defaults>
</compile_context>

<pallas_src>
import functools

import numpy as np
import jax
import jax.numpy as jnp
from jax.experimental import pallas as pl
from jax.experimental.pallas import tpu as pltpu


# ----------------------------------------------------------------------------- host-side constant builders

def _bilinear_matrix(n_in, n_out):
    """1-D bilinear interpolation matrix, align_corners=True."""
    m = np.zeros((n_out, n_in), dtype=np.float32)
    if n_in == 1 or n_out == 1:
        m[:, 0] = 1.0
        return m
    src = np.arange(n_out, dtype=np.float64) * (n_in - 1) / (n_out - 1)
    i0 = np.clip(np.floor(src).astype(np.int64), 0, n_in - 2)
    frac = src - i0
    for o in range(n_out):
        m[o, i0[o]] += 1.0 - frac[o]
        m[o, i0[o] + 1] += frac[o]
    return m


def _conv_band_stacked(w, W):
    """Fold a 3x3 conv (pad=1, correlation) over the width-flattened layout into ONE
    stacked band matrix:  out(rows, W*Cout) = LHS(rows, 3*W*Cin) @ band, where the LHS
    block kh holds the input rows shifted by (kh-1).  w: (3,3,Cin,Cout) -> (3*W*Cin, W*Cout)."""
    _, _, Cin, Cout = w.shape
    band = np.zeros((3, W * Cin, W * Cout), dtype=np.float32)
    for kh in range(3):
        for kw in range(3):
            for wo in range(W):
                j = wo + kw - 1
                if 0 <= j < W:
                    band[kh, j * Cin:(j + 1) * Cin, wo * Cout:(wo + 1) * Cout] = w[kh, kw]
    return band.reshape(3 * W * Cin, W * Cout)


def _sa_rhs_stacked(saw, W):
    """7x7 spatial-attention conv (pad=3) folded into one (7*2*W, W) RHS.  The matching LHS
    block kh holds [avg | max] map rows shifted by (kh-3).  saw: (7,7,2), ch0=avg, ch1=max."""
    rhs = np.zeros((7, 2, W, W), dtype=np.float32)
    for kh in range(7):
        for kw in range(7):
            for m in range(2):
                for wo in range(W):
                    j = wo + kw - 3
                    if 0 <= j < W:
                        rhs[kh, m, j, wo] = saw[kh, kw, m]
    return rhs.reshape(7 * 2 * W, W)


def _derived_constants(params, G, H, W, Hin, Win, Cup, Cs, Cout):
    f32 = np.float32
    A = lambda v: np.asarray(v, dtype=f32)

    mh = _bilinear_matrix(Hin, H)                 # (H, Hin)
    mw = _bilinear_matrix(Win, W)                 # (W, Win)
    eye_w = np.eye(W, dtype=f32)

    wg, bg = A(params["wg"]), A(params["bg"])
    wx, bx = A(params["wx"]), A(params["bx"])
    wp, bp = A(params["wp"]), A(params["bp"])
    w1, t1 = A(params["dc_w1"]), A(params["dc_t1"])
    w2, t2 = A(params["dc_w2"]), A(params["dc_t2"])

    return dict(
        caw1=A(params["ca_w1"]),                                            # (Cs, Cr)
        caw2=A(params["ca_w2"]),                                            # (Cr, Cs)
        ca_tile=np.tile(np.eye(Cs, dtype=f32), (1, W)),                     # (Cs, W*Cs)
        indw=np.tile(eye_w, (G * H, 1)),                                    # (G*H*W, W)
        selh=np.kron(np.eye(G * H, dtype=f32), np.ones((1, W), f32)),       # (G*H, G*H*W)
        sa_rhs=_sa_rhs_stacked(A(params["sa_w"]), W),                       # (14*W, W)
        rep_cs=np.kron(eye_w, np.ones((1, Cs), f32)),                       # (W, W*Cs)
        up_w=np.kron(mw.T, np.eye(Cup, dtype=f32)),                         # (Win*Cup, W*Cup)
        up_h=np.kron(np.eye(G, dtype=f32), mh),                             # (G*H, G*Hin)
        wgx=np.concatenate([np.kron(eye_w, wg), np.kron(eye_w, wx)], 0),    # (W*(Cup+Cs), W*Fint)
        bgx_t=np.tile(bg + bx, W)[None, :],                                 # (1, W*Fint)
        wpk=np.kron(eye_w, wp),                                             # (W*Fint, W)
        bp_t=np.full((1, W), float(bp[0]), f32),                            # (1, W)
        band1x=_conv_band_stacked(w1[:, :, :Cup, :], W),                    # (3*W*Cup, W*Cout)
        band1s=_conv_band_stacked(w1[:, :, Cup:, :], W),                    # (3*W*Cs,  W*Cout)
        band2=_conv_band_stacked(w2, W),                                    # (3*W*Cout, W*Cout)
        t1_t=np.tile(t1, W)[None, :],                                       # (1, W*Cout)
        t2_t=np.tile(t2, W)[None, :],                                       # (1, W*Cout)
    )


# ----------------------------------------------------------------------------- fused kernel

def _decoder_kernel(skip_cl_ref, skip_f_ref, x_ref,
                    caw1_ref, caw2_ref, ca_tile_ref, indw_ref, selh_ref,
                    sa_rhs_ref, rep_cs_ref, up_w_ref, up_h_ref,
                    wgx_ref, bgx_ref, wpk_ref, bp_ref,
                    band1x_ref, band1s_ref, band2_ref, t1_ref, t2_ref,
                    out_ref, *, G, H, W, Cs):
    f32, bf16 = jnp.float32, jnp.bfloat16
    HW = H * W
    WCs = W * Cs

    def mxu(a, b):  # bf16 inputs, f32 accumulation
        return jnp.dot(a.astype(bf16), b.astype(bf16), preferred_element_type=f32)

    def shifted(arr, sh):
        """Rows shifted by `sh` within each H-row batch segment, zero-filled (no halo leak)."""
        if sh == 0:
            return arr
        C = arr.shape[1]
        segs = []
        for g in range(G):
            seg = arr[g * H:(g + 1) * H, :]
            if sh < 0:
                seg = jnp.concatenate(
                    [jnp.zeros((-sh, C), arr.dtype), seg[:H + sh, :]], axis=0)
            else:
                seg = jnp.concatenate(
                    [seg[sh:, :], jnp.zeros((sh, C), arr.dtype)], axis=0)
            segs.append(seg)
        return segs[0] if G == 1 else jnp.concatenate(segs, axis=0)

    def conv3_lhs(arr):
        """3x3 conv LHS: the three height taps folded into the lane/K dimension."""
        return jnp.concatenate([shifted(arr, -1), arr, shifted(arr, 1)], axis=-1)

    skip_f = skip_f_ref[...]          # (G*H, W*Cs)   width-flattened, lane-dense view
    x_in = x_ref[...]                 # (G*Hin, Win*Cup)

    # ---------------- CBAM: channel attention (one stacked MLP pass) ----------------
    avg_rows, max_rows = [], []
    for g in range(G):
        seg = skip_cl_ref[g * HW:(g + 1) * HW, :]                # (H*W, Cs)
        avg_rows.append(jnp.mean(seg, axis=0, keepdims=True))
        max_rows.append(jnp.max(seg, axis=0, keepdims=True))
    pooled = jnp.concatenate(avg_rows + max_rows, axis=0)        # (2G, Cs)
    hid = jnp.maximum(mxu(pooled, caw1_ref[...]), 0.0)
    logits = mxu(hid, caw2_ref[...])                             # (2G, Cs)
    ca = jax.nn.sigmoid(logits[:G, :] + logits[G:, :])           # (G, Cs)

    ca_t = mxu(ca, ca_tile_ref[...])                             # (G, W*Cs)
    if G == 1:
        ca_rows = ca_t
    else:
        ca_rows = jnp.concatenate(
            [jnp.broadcast_to(ca_t[g:g + 1, :], (H, WCs)) for g in range(G)], axis=0)
    xc_f = skip_f * ca_rows                                      # (G*H, W*Cs)

    # ---------------- CBAM: spatial attention (7x7 conv as ONE matmul) ----------------
    avg_parts, max_parts = [], []
    for g in range(G):
        xc_g = skip_cl_ref[g * HW:(g + 1) * HW, :] * ca[g:g + 1, :]      # (H*W, Cs)
        avg_parts.append(jnp.mean(xc_g, axis=1, keepdims=True))
        max_parts.append(jnp.max(xc_g, axis=1, keepdims=True))
    s_avg_cl = avg_parts[0] if G == 1 else jnp.concatenate(avg_parts, axis=0)   # (G*HW, 1)
    s_max_cl = max_parts[0] if G == 1 else jnp.concatenate(max_parts, axis=0)

    # one relayout matmul for both maps: (G*H, G*H*W)@(G*H*W, 2W) -> (G*H, [avg | max])
    combined = jnp.concatenate(
        [s_avg_cl * indw_ref[...], s_max_cl * indw_ref[...]], axis=-1)
    s_both = mxu(selh_ref[...], combined)                        # (G*H, 2W)

    sa_lhs = jnp.concatenate([shifted(s_both, kh - 3) for kh in range(7)], axis=-1)
    sa = jax.nn.sigmoid(mxu(sa_lhs, sa_rhs_ref[...]))            # (G*H, W)
    xcs_f = xc_f * mxu(sa, rep_cs_ref[...])                      # (G*H, W*Cs)  CBAM output

    # ---------------- bilinear 2x upsample (align_corners=True), separable ----------------
    x_up = mxu(up_h_ref[...], mxu(x_in, up_w_ref[...]))          # (G*H, W*Cup)

    # ---------------- attention gate (both 1x1 convs fused into one matmul) ----------------
    gate_lhs = jnp.concatenate([x_up, xcs_f], axis=-1)           # (G*H, W*(Cup+Cs))
    act = jnp.maximum(mxu(gate_lhs, wgx_ref[...]) + bgx_ref[...], 0.0)
    psi = jax.nn.sigmoid(mxu(act, wpk_ref[...]) + bp_ref[...])   # (G*H, W)
    skip_g = xcs_f * mxu(psi, rep_cs_ref[...])                   # (G*H, W*Cs)  gated skip

    # ---------------- DoubleConv: each 3x3 conv = height taps folded into K ----------------
    h1 = jnp.maximum(
        mxu(conv3_lhs(x_up), band1x_ref[...])
        + mxu(conv3_lhs(skip_g), band1s_ref[...])
        + t1_ref[...], 0.0)                                      # (G*H, W*Cout)
    out = jnp.maximum(mxu(conv3_lhs(h1), band2_ref[...]) + t2_ref[...], 0.0)
    out_ref[...] = out.astype(out_ref.dtype)                     # lane-dense (G*H, W*Cout)


# ----------------------------------------------------------------------------- wrapper

def decoder_unit_forward(x, skip, params, *, batch_per_step=None, out_dtype=jnp.float32):
    """x: (B, Hin, Win, Cup) NHWC gating signal; skip: (B, 2*Hin, 2*Win, Cs) NHWC.

    batch_per_step=None  -> fold the whole batch into the MXU M dimension, grid=(1,)
                            (best for single-TensorCore v5e / v6e).
    batch_per_step=1     -> grid=(B,) with "parallel" semantics (v7x megacore sharding).
    """
    B, Hin, Win, Cup = x.shape
    Bs, H, W, Cs = skip.shape
    assert Bs == B and H == 2 * Hin and W == 2 * Win
    Cout = params["dc_t1"].shape[0]

    G = B if batch_per_step is None else int(batch_per_step)
    assert B % G == 0
    steps = B // G

    c = _derived_constants(params, G, H, W, Hin, Win, Cup, Cs, Cout)
    bf = lambda k: jnp.asarray(c[k], jnp.bfloat16)
    fp = lambda k: jnp.asarray(c[k], jnp.float32)

    operands = (
        skip.reshape(B * H * W, Cs),          # channels-in-lanes view (per-pixel reductions)
        skip.reshape(B * H, W * Cs),          # width-flattened, lane-dense view
        x.reshape(B * Hin, Win * Cup),
        bf("caw1"), bf("caw2"), bf("ca_tile"), fp("indw"), bf("selh"),
        bf("sa_rhs"), bf("rep_cs"), bf("up_w"), bf("up_h"),
        bf("wgx"), fp("bgx_t"), bf("wpk"), fp("bp_t"),
        bf("band1x"), bf("band1s"), bf("band2"), fp("t1_t"), fp("t2_t"),
    )

    def row_spec(rows, cols):
        return pl.BlockSpec((rows, cols), lambda i: (i, 0))

    def const_spec(a):
        # Full-array block, constant index map: fetched once, reused across all grid steps.
        # TODO(synk): pipeline_mode=pl.Buffered(1) here when scaling W (halves constant VMEM).
        return pl.BlockSpec(tuple(a.shape), lambda i: (0, 0))

    in_specs = [row_spec(G * H * W, Cs),
                row_spec(G * H, W * Cs),
                row_spec(G * Hin, Win * Cup)] + [const_spec(a) for a in operands[3:]]

    out = pl.pallas_call(
        functools.partial(_decoder_kernel, G=G, H=H, W=W, Cs=Cs),
        out_shape=jax.ShapeDtypeStruct((B * H, W * Cout), out_dtype),
        grid=(steps,),
        in_specs=in_specs,
        out_specs=pl.BlockSpec((G * H, W * Cout), lambda i: (i, 0)),
        compiler_params=pltpu.CompilerParams(
            dimension_semantics=("parallel",),
            vmem_limit_bytes=32 * 1024 * 1024),
    )(*operands)
    return out.reshape(B, H, W, Cout)


# ----------------------------------------------------------------------------- params & pure-JAX reference

def init_params(key, Cup, Cs, Cout, ratio=16):
    Cr = max(Cs // ratio, 1)
    Fint = max(Cs // 2, 1)
    keys = jax.random.split(key, 40)
    it = iter(keys)

    def nrm(shape, scale=0.2):
        return scale * jax.random.normal(next(it), shape, jnp.float32)

    def bn(n):  # eval-mode BatchNorm folded to (scale, shift)
        gamma = 1.0 + 0.1 * jax.random.normal(next(it), (n,), jnp.float32)
        beta = 0.1 * jax.random.normal(next(it), (n,), jnp.float32)
        mean = 0.1 * jax.random.normal(next(it), (n,), jnp.float32)
        var = 1.0 + 0.1 * jnp.abs(jax.random.normal(next(it), (n,), jnp.float32))
        s = gamma / jnp.sqrt(var + 1e-5)
        return s, beta - mean * s

    p = {}
    p["ca_w1"] = nrm((Cs, Cr))
    p["ca_w2"] = nrm((Cr, Cs))
    p["sa_w"] = nrm((7, 7, 2))              # 7x7 taps; ch0 = avg map, ch1 = max map

    sg, tg = bn(Fint)
    p["wg"] = nrm((Cup, Fint)) * sg[None, :]
    p["bg"] = nrm((Fint,)) * sg + tg
    sx, tx = bn(Fint)
    p["wx"] = nrm((Cs, Fint)) * sx[None, :]
    p["bx"] = nrm((Fint,)) * sx + tx
    sp_, tp_ = bn(1)
    p["wp"] = nrm((Fint, 1)) * sp_[None, :]
    p["bp"] = nrm((1,)) * sp_ + tp_

    Cin2 = Cup + Cs
    s1, t1 = bn(Cout)
    p["dc_w1"] = nrm((3, 3, Cin2, Cout)) * s1
    p["dc_t1"] = t1
    s2, t2 = bn(Cout)
    p["dc_w2"] = nrm((3, 3, Cout, Cout)) * s2
    p["dc_t2"] = t2
    return p


def decoder_unit_reference(x, skip, params):
    """Pure-JAX NHWC reference of the PyTorch DecoderUnit forward (inference-mode BN folded)."""
    B, Hin, Win, Cup = x.shape
    _, H, W, Cs = skip.shape
    mh = jnp.asarray(_bilinear_matrix(Hin, H))
    mw = jnp.asarray(_bilinear_matrix(Win, W))

    # CBAM channel attention
    avg = jnp.mean(skip, axis=(1, 2))
    mxv = jnp.max(skip, axis=(1, 2))
    mlp = lambda v: jnp.maximum(v @ params["ca_w1"], 0.0) @ params["ca_w2"]
    ca = jax.nn.sigmoid(mlp(avg) + mlp(mxv))[:, None, None, :]
    xc = skip * ca
    # CBAM spatial attention
    s_avg = jnp.mean(xc, axis=-1)
    s_max = jnp.max(xc, axis=-1)
    maps = jnp.pad(jnp.stack([s_avg, s_max], axis=-1), ((0, 0), (3, 3), (3, 3), (0, 0)))
    logit = jnp.zeros((B, H, W), jnp.float32)
    for kh in range(7):
        for kw in range(7):
            logit = logit + maps[:, kh:kh + H, kw:kw + W, 0] * params["sa_w"][kh, kw, 0] \
                          + maps[:, kh:kh + H, kw:kw + W, 1] * params["sa_w"][kh, kw, 1]
    xcs = xc * jax.nn.sigmoid(logit)[..., None]
    # bilinear upsample (align_corners=True)
    x_up = jnp.einsum("hi,wj,bijc->bhwc", mh, mw, x)
    # attention gate
    a = jnp.maximum(x_up @ params["wg"] + params["bg"] + xcs @ params["wx"] + params["bx"], 0.0)
    psi = jax.nn.sigmoid(a @ params["wp"] + params["bp"])
    y = jnp.concatenate([x_up, xcs * psi], axis=-1)
    # double conv
    def conv_bn_relu(inp, w, t):
        o = jax.lax.conv_general_dilated(inp, w, (1, 1), "SAME",
                                         dimension_numbers=("NHWC", "HWIO", "NHWC"))
        return jnp.maximum(o + t, 0.0)
    h1 = conv_bn_relu(y, params["dc_w1"], params["dc_t1"])
    return conv_bn_relu(h1, params["dc_w2"], params["dc_t2"])


# ----------------------------------------------------------------------------- main

if __name__ == "__main__":
    B = 2
    up_channels, skip_channels, out_channels = 16, 32, 16
    Hin = Win = 8            # gating-signal spatial size
    H = W = 16               # skip spatial size (2x)

    key = jax.random.PRNGKey(0)
    kx, ks, kp = jax.random.split(key, 3)
    x = jax.random.normal(kx, (B, Hin, Win, up_channels), jnp.float32)       # NHWC
    skip = jax.random.normal(ks, (B, H, W, skip_channels), jnp.float32)      # NHWC
    params = init_params(kp, up_channels, skip_channels, out_channels)

    ref = decoder_unit_reference(x, skip, params)

    # v5e / v6e configuration: whole batch folded into the MXU M dimension, grid=(1,)
    out_folded = jax.block_until_ready(decoder_unit_forward(x, skip, params))
    # v7x configuration: one batch element per grid step, "parallel" -> megacore sharding
    out_split = jax.block_until_ready(
        decoder_unit_forward(x, skip, params, batch_per_step=1))

    for out in (out_folded, out_split):
        assert out.shape == (B, H, W, out_channels), out.shape
        assert bool(jnp.all(jnp.isfinite(out)))
        # correctness check vs. pure-JAX f32 reference (kernel uses bf16 MXU inputs)
        err = float(jnp.max(jnp.abs(out - ref)) / (jnp.max(jnp.abs(ref)) + 1e-6))
        assert err < 5e-2, f"numerical mismatch vs reference: rel-to-max err={err:.4f}"

    print("KERNEL_OK")
</pallas_src>

<mosaic_0001>
module attributes {stable_mosaic.version = 11 : i64} {
  func.func @_decoder_kernel(%arg0: i32, %arg1: memref<512x32xf32, #tpu.memory_space<vmem>>, %arg2: memref<32x512xf32, #tpu.memory_space<vmem>>, %arg3: memref<16x128xf32, #tpu.memory_space<vmem>>, %arg4: memref<32x2xbf16, #tpu.memory_space<vmem>>, %arg5: memref<2x32xbf16, #tpu.memory_space<vmem>>, %arg6: memref<32x512xbf16, #tpu.memory_space<vmem>>, %arg7: memref<512x16xf32, #tpu.memory_space<vmem>>, %arg8: memref<32x512xbf16, #tpu.memory_space<vmem>>, %arg9: memref<224x16xbf16, #tpu.memory_space<vmem>>, %arg10: memref<16x512xbf16, #tpu.memory_space<vmem>>, %arg11: memref<128x256xbf16, #tpu.memory_space<vmem>>, %arg12: memref<32x16xbf16, #tpu.memory_space<vmem>>, %arg13: memref<768x256xbf16, #tpu.memory_space<vmem>>, %arg14: memref<1x256xf32, #tpu.memory_space<vmem>>, %arg15: memref<256x16xbf16, #tpu.memory_space<vmem>>, %arg16: memref<1x16xf32, #tpu.memory_space<vmem>>, %arg17: memref<768x256xbf16, #tpu.memory_space<vmem>>, %arg18: memref<1536x256xbf16, #tpu.memory_space<vmem>>, %arg19: memref<768x256xbf16, #tpu.memory_space<vmem>>, %arg20: memref<1x256xf32, #tpu.memory_space<vmem>>, %arg21: memref<1x256xf32, #tpu.memory_space<vmem>>, %arg22: memref<32x256xf32, #tpu.memory_space<vmem>>) attributes {dimension_semantics = [#tpu.dimension_semantics<parallel>], iteration_bounds = array<i64: 1>, scalar_prefetch = 0 : i64, scratch_operands = 0 : i64, tpu.core_type = #tpu.core_type<tc>, window_params = [{transform_indices = @transform_0, window_bounds = array<i64: 512, 32>}, {transform_indices = @transform_1, window_bounds = array<i64: 32, 512>}, {transform_indices = @transform_2, window_bounds = array<i64: 16, 128>}, {pipeline_mode = #tpu.pipeline_mode<synchronous>, transform_indices = @transform_3, window_bounds = array<i64: 32, 2>}, {pipeline_mode = #tpu.pipeline_mode<synchronous>, transform_indices = @transform_4, window_bounds = array<i64: 2, 32>}, {pipeline_mode = #tpu.pipeline_mode<synchronous>, transform_indices = @transform_5, window_bounds = array<i64: 32, 512>}, {pipeline_mode = #tpu.pipeline_mode<synchronous>, transform_indices = @transform_6, window_bounds = array<i64: 512, 16>}, {pipeline_mode = #tpu.pipeline_mode<synchronous>, transform_indices = @transform_7, window_bounds = array<i64: 32, 512>}, {pipeline_mode = #tpu.pipeline_mode<synchronous>, transform_indices = @transform_8, window_bounds = array<i64: 224, 16>}, {pipeline_mode = #tpu.pipeline_mode<synchronous>, transform_indices = @transform_9, window_bounds = array<i64: 16, 512>}, {pipeline_mode = #tpu.pipeline_mode<synchronous>, transform_indices = @transform_10, window_bounds = array<i64: 128, 256>}, {pipeline_mode = #tpu.pipeline_mode<synchronous>, transform_indices = @transform_11, window_bounds = array<i64: 32, 16>}, {pipeline_mode = #tpu.pipeline_mode<synchronous>, transform_indices = @transform_12, window_bounds = array<i64: 768, 256>}, {pipeline_mode = #tpu.pipeline_mode<synchronous>, transform_indices = @transform_13, window_bounds = array<i64: 1, 256>}, {pipeline_mode = #tpu.pipeline_mode<synchronous>, transform_indices = @transform_14, window_bounds = array<i64: 256, 16>}, {pipeline_mode = #tpu.pipeline_mode<synchronous>, transform_indices = @transform_15, window_bounds = array<i64: 1, 16>}, {pipeline_mode = #tpu.pipeline_mode<synchronous>, transform_indices = @transform_16, window_bounds = array<i64: 768, 256>}, {pipeline_mode = #tpu.pipeline_mode<synchronous>, transform_indices = @transform_17, window_bounds = array<i64: 1536, 256>}, {pipeline_mode = #tpu.pipeline_mode<synchronous>, transform_indices = @transform_18, window_bounds = array<i64: 768, 256>}, {pipeline_mode = #tpu.pipeline_mode<synchronous>, transform_indices = @transform_19, window_bounds = array<i64: 1, 256>}, {pipeline_mode = #tpu.pipeline_mode<synchronous>, transform_indices = @transform_20, window_bounds = array<i64: 1, 256>}, {transform_indices = @transform_21, window_bounds = array<i64: 32, 256>}]} {
    %c0 = arith.constant 0 : index
    %c0_0 = arith.constant 0 : index
    %0 = vector.load %arg2[%c0, %c0_0] : memref<32x512xf32, #tpu.memory_space<vmem>>, vector<32x512xf32>
    %c0_1 = arith.constant 0 : index
    %c0_2 = arith.constant 0 : index
    %1 = vector.load %arg3[%c0_1, %c0_2] : memref<16x128xf32, #tpu.memory_space<vmem>>, vector<16x128xf32>
    %c0_3 = arith.constant 0 : index
    %c0_4 = arith.constant 0 : index
    %2 = vector.load %arg1[%c0_3, %c0_4] : memref<512x32xf32, #tpu.memory_space<vmem>>, vector<256x32xf32>
    %cst = arith.constant dense<0.000000e+00> : vector<32xf32>
    %3 = vector.multi_reduction <add>, %2, %cst [0] : vector<256x32xf32> to vector<32xf32>
    %4 = vector.shape_cast %3 : vector<32xf32> to vector<1x32xf32>
    %cst_5 = arith.constant 2.560000e+02 : f32
    %5 = vector.broadcast %cst_5 : f32 to vector<1x32xf32>
    %6 = arith.divf %4, %5 : vector<1x32xf32>
    %cst_6 = arith.constant dense<0xFF800000> : vector<32xf32>
    %7 = vector.multi_reduction <maximumf>, %2, %cst_6 [0] : vector<256x32xf32> to vector<32xf32>
    %8 = vector.shape_cast %7 : vector<32xf32> to vector<1x32xf32>
    %c256 = arith.constant 256 : index
    %c0_7 = arith.constant 0 : index
    %9 = vector.load %arg1[%c256, %c0_7] : memref<512x32xf32, #tpu.memory_space<vmem>>, vector<256x32xf32>
    %cst_8 = arith.constant dense<0.000000e+00> : vector<32xf32>
    %10 = vector.multi_reduction <add>, %9, %cst_8 [0] : vector<256x32xf32> to vector<32xf32>
    %11 = vector.shape_cast %10 : vector<32xf32> to vector<1x32xf32>
    %cst_9 = arith.constant 2.560000e+02 : f32
    %12 = vector.broadcast %cst_9 : f32 to vector<1x32xf32>
    %13 = arith.divf %11, %12 : vector<1x32xf32>
    %cst_10 = arith.constant dense<0xFF800000> : vector<32xf32>
    %14 = vector.multi_reduction <maximumf>, %9, %cst_10 [0] : vector<256x32xf32> to vector<32xf32>
    %15 = vector.shape_cast %14 : vector<32xf32> to vector<1x32xf32>
    %16 = tpu.concatenate %6, %13, %8, %15 in 0 : vector<1x32xf32>, vector<1x32xf32>, vector<1x32xf32>, vector<1x32xf32> -> vector<4x32xf32>
    %c0_11 = arith.constant 0 : index
    %c0_12 = arith.constant 0 : index
    %17 = vector.load %arg4[%c0_11, %c0_12] : memref<32x2xbf16, #tpu.memory_space<vmem>>, vector<32x2xbf16>
    %18 = arith.truncf %16 : vector<4x32xf32> to vector<4x32xbf16>
    %cst_13 = arith.constant dense<0.000000e+00> : vector<4x2xf32>
    %19 = tpu.matmul %18, %17, %cst_13 {dimension_numbers = #tpu.dot_dimension_numbers<[1], [0], [0], [1], [0, 0, 1, 1], [], []>} : vector<4x32xbf16>, vector<32x2xbf16>, vector<4x2xf32> -> vector<4x2xf32>
    %cst_14 = arith.constant 0.000000e+00 : f32
    %20 = vector.broadcast %cst_14 : f32 to vector<4x2xf32>
    %21 = arith.maximumf %19, %20 : vector<4x2xf32>
    %c0_15 = arith.constant 0 : index
    %c0_16 = arith.constant 0 : index
    %22 = vector.load %arg5[%c0_15, %c0_16] : memref<2x32xbf16, #tpu.memory_space<vmem>>, vector<2x32xbf16>
    %23 = arith.truncf %21 : vector<4x2xf32> to vector<4x2xbf16>
    %cst_17 = arith.constant dense<0.000000e+00> : vector<4x32xf32>
    %24 = tpu.matmul %23, %22, %cst_17 {dimension_numbers = #tpu.dot_dimension_numbers<[1], [0], [0], [1], [0, 0, 1, 1], [], []>} : vector<4x2xbf16>, vector<2x32xbf16>, vector<4x32xf32> -> vector<4x32xf32>
    %25 = vector.extract_strided_slice %24 {offsets = [0, 0], sizes = [2, 32], strides = [1, 1]} : vector<4x32xf32> to vector<2x32xf32>
    %26 = vector.extract_strided_slice %24 {offsets = [2, 0], sizes = [2, 32], strides = [1, 1]} : vector<4x32xf32> to vector<2x32xf32>
    %27 = arith.addf %25, %26 : vector<2x32xf32>
    %28 = arith.negf %27 : vector<2x32xf32>
    %29 = math.exp %28 : vector<2x32xf32>
    %cst_18 = arith.constant 1.000000e+00 : f32
    %30 = vector.broadcast %cst_18 : f32 to vector<2x32xf32>
    %31 = arith.addf %30, %29 : vector<2x32xf32>
    %32 = arith.divf %30, %31 : vector<2x32xf32>
    %c0_19 = arith.constant 0 : index
    %c0_20 = arith.constant 0 : index
    %33 = vector.load %arg6[%c0_19, %c0_20] : memref<32x512xbf16, #tpu.memory_space<vmem>>, vector<32x512xbf16>
    %34 = arith.truncf %32 : vector<2x32xf32> to vector<2x32xbf16>
    %cst_21 = arith.constant dense<0.000000e+00> : vector<2x512xf32>
    %35 = tpu.matmul %34, %33, %cst_21 {dimension_numbers = #tpu.dot_dimension_numbers<[1], [0], [0], [1], [0, 0, 1, 1], [], []>} : vector<2x32xbf16>, vector<32x512xbf16>, vector<2x512xf32> -> vector<2x512xf32>
    %36 = vector.extract_strided_slice %35 {offsets = [0, 0], sizes = [1, 512], strides = [1, 1]} : vector<2x512xf32> to vector<1x512xf32>
    %37 = vector.shape_cast %36 : vector<1x512xf32> to vector<1x512xf32>
    %38 = vector.broadcast %37 : vector<1x512xf32> to vector<16x512xf32>
    %39 = vector.extract_strided_slice %35 {offsets = [1, 0], sizes = [1, 512], strides = [1, 1]} : vector<2x512xf32> to vector<1x512xf32>
    %40 = vector.shape_cast %39 : vector<1x512xf32> to vector<1x512xf32>
    %41 = vector.broadcast %40 : vector<1x512xf32> to vector<16x512xf32>
    %42 = tpu.concatenate %38, %41 in 0 : vector<16x512xf32>, vector<16x512xf32> -> vector<32x512xf32>
    %43 = arith.mulf %0, %42 : vector<32x512xf32>
    %c0_22 = arith.constant 0 : index
    %c0_23 = arith.constant 0 : index
    %44 = vector.load %arg1[%c0_22, %c0_23] : memref<512x32xf32, #tpu.memory_space<vmem>>, vector<256x32xf32>
    %45 = vector.extract_strided_slice %32 {offsets = [0, 0], sizes = [1, 32], strides = [1, 1]} : vector<2x32xf32> to vector<1x32xf32>
    %46 = vector.broadcast %45 : vector<1x32xf32> to vector<256x32xf32>
    %47 = arith.mulf %44, %46 : vector<256x32xf32>
    %cst_24 = arith.constant dense<0.000000e+00> : vector<256xf32>
    %48 = vector.multi_reduction <add>, %47, %cst_24 [1] : vector<256x32xf32> to vector<256xf32>
    %49 = vector.shape_cast %48 : vector<256xf32> to vector<256x1xf32>
    %cst_25 = arith.constant 3.200000e+01 : f32
    %50 = vector.broadcast %cst_25 : f32 to vector<256x1xf32>
    %51 = arith.divf %49, %50 : vector<256x1xf32>
    %cst_26 = arith.constant dense<0xFF800000> : vector<256xf32>
    %52 = vector.multi_reduction <maximumf>, %47, %cst_26 [1] : vector<256x32xf32> to vector<256xf32>
    %53 = vector.shape_cast %52 : vector<256xf32> to vector<256x1xf32>
    %c256_27 = arith.constant 256 : index
    %c0_28 = arith.constant 0 : index
    %54 = vector.load %arg1[%c256_27, %c0_28] : memref<512x32xf32, #tpu.memory_space<vmem>>, vector<256x32xf32>
    %55 = vector.extract_strided_slice %32 {offsets = [1, 0], sizes = [1, 32], strides = [1, 1]} : vector<2x32xf32> to vector<1x32xf32>
    %56 = vector.broadcast %55 : vector<1x32xf32> to vector<256x32xf32>
    %57 = arith.mulf %54, %56 : vector<256x32xf32>
    %cst_29 = arith.constant dense<0.000000e+00> : vector<256xf32>
    %58 = vector.multi_reduction <add>, %57, %cst_29 [1] : vector<256x32xf32> to vector<256xf32>
    %59 = vector.shape_cast %58 : vector<256xf32> to vector<256x1xf32>
    %cst_30 = arith.constant 3.200000e+01 : f32
    %60 = vector.broadcast %cst_30 : f32 to vector<256x1xf32>
    %61 = arith.divf %59, %60 : vector<256x1xf32>
    %cst_31 = arith.constant dense<0xFF800000> : vector<256xf32>
    %62 = vector.multi_reduction <maximumf>, %57, %cst_31 [1] : vector<256x32xf32> to vector<256xf32>
    %63 = vector.shape_cast %62 : vector<256xf32> to vector<256x1xf32>
    %64 = tpu.concatenate %51, %61 in 0 : vector<256x1xf32>, vector<256x1xf32> -> vector<512x1xf32>
    %65 = tpu.concatenate %53, %63 in 0 : vector<256x1xf32>, vector<256x1xf32> -> vector<512x1xf32>
    %c0_32 = arith.constant 0 : index
    %c0_33 = arith.constant 0 : index
    %66 = vector.load %arg7[%c0_32, %c0_33] : memref<512x16xf32, #tpu.memory_space<vmem>>, vector<512x16xf32>
    %67 = vector.broadcast %64 : vector<512x1xf32> to vector<512x16xf32>
    %68 = arith.mulf %67, %66 : vector<512x16xf32>
    %c0_34 = arith.constant 0 : index
    %c0_35 = arith.constant 0 : index
    %69 = vector.load %arg7[%c0_34, %c0_35] : memref<512x16xf32, #tpu.memory_space<vmem>>, vector<512x16xf32>
    %70 = vector.broadcast %65 : vector<512x1xf32> to vector<512x16xf32>
    %71 = arith.mulf %70, %69 : vector<512x16xf32>
    %72 = tpu.concatenate %68, %71 in 1 : vector<512x16xf32>, vector<512x16xf32> -> vector<512x32xf32>
    %c0_36 = arith.constant 0 : index
    %c0_37 = arith.constant 0 : index
    %73 = vector.load %arg8[%c0_36, %c0_37] : memref<32x512xbf16, #tpu.memory_space<vmem>>, vector<32x512xbf16>
    %74 = arith.truncf %72 : vector<512x32xf32> to vector<512x32xbf16>
    %cst_38 = arith.constant dense<0.000000e+00> : vector<32x32xf32>
    %75 = tpu.matmul %73, %74, %cst_38 {dimension_numbers = #tpu.dot_dimension_numbers<[1], [0], [0], [1], [0, 0, 1, 1], [], []>} : vector<32x512xbf16>, vector<512x32xbf16>, vector<32x32xf32> -> vector<32x32xf32>
    %76 = vector.extract_strided_slice %75 {offsets = [0, 0], sizes = [16, 32], strides = [1, 1]} : vector<32x32xf32> to vector<16x32xf32>
    %cst_39 = arith.constant 0.000000e+00 : f32
    %77 = vector.broadcast %cst_39 : f32 to vector<3x32xf32>
    %78 = vector.extract_strided_slice %76 {offsets = [0, 0], sizes = [13, 32], strides = [1, 1]} : vector<16x32xf32> to vector<13x32xf32>
    %79 = tpu.concatenate %77, %78 in 0 : vector<3x32xf32>, vector<13x32xf32> -> vector<16x32xf32>
    %80 = vector.extract_strided_slice %75 {offsets = [16, 0], sizes = [16, 32], strides = [1, 1]} : vector<32x32xf32> to vector<16x32xf32>
    %cst_40 = arith.constant 0.000000e+00 : f32
    %81 = vector.broadcast %cst_40 : f32 to vector<3x32xf32>
    %82 = vector.extract_strided_slice %80 {offsets = [0, 0], sizes = [13, 32], strides = [1, 1]} : vector<16x32xf32> to vector<13x32xf32>
    %83 = tpu.concatenate %81, %82 in 0 : vector<3x32xf32>, vector<13x32xf32> -> vector<16x32xf32>
    %84 = tpu.concatenate %79, %83 in 0 : vector<16x32xf32>, vector<16x32xf32> -> vector<32x32xf32>
    %85 = vector.extract_strided_slice %75 {offsets = [0, 0], sizes = [16, 32], strides = [1, 1]} : vector<32x32xf32> to vector<16x32xf32>
    %cst_41 = arith.constant 0.000000e+00 : f32
    %86 = vector.broadcast %cst_41 : f32 to vector<2x32xf32>
    %87 = vector.extract_strided_slice %85 {offsets = [0, 0], sizes = [14, 32], strides = [1, 1]} : vector<16x32xf32> to vector<14x32xf32>
    %88 = tpu.concatenate %86, %87 in 0 : vector<2x32xf32>, vector<14x32xf32> -> vector<16x32xf32>
    %89 = vector.extract_strided_slice %75 {offsets = [16, 0], sizes = [16, 32], strides = [1, 1]} : vector<32x32xf32> to vector<16x32xf32>
    %cst_42 = arith.constant 0.000000e+00 : f32
    %90 = vector.broadcast %cst_42 : f32 to vector<2x32xf32>
    %91 = vector.extract_strided_slice %89 {offsets = [0, 0], sizes = [14, 32], strides = [1, 1]} : vector<16x32xf32> to vector<14x32xf32>
    %92 = tpu.concatenate %90, %91 in 0 : vector<2x32xf32>, vector<14x32xf32> -> vector<16x32xf32>
    %93 = tpu.concatenate %88, %92 in 0 : vector<16x32xf32>, vector<16x32xf32> -> vector<32x32xf32>
    %94 = vector.extract_strided_slice %75 {offsets = [0, 0], sizes = [16, 32], strides = [1, 1]} : vector<32x32xf32> to vector<16x32xf32>
    %cst_43 = arith.constant 0.000000e+00 : f32
    %95 = vector.broadcast %cst_43 : f32 to vector<1x32xf32>
    %96 = vector.extract_strided_slice %94 {offsets = [0, 0], sizes = [15, 32], strides = [1, 1]} : vector<16x32xf32> to vector<15x32xf32>
    %97 = tpu.concatenate %95, %96 in 0 : vector<1x32xf32>, vector<15x32xf32> -> vector<16x32xf32>
    %98 = vector.extract_strided_slice %75 {offsets = [16, 0], sizes = [16, 32], strides = [1, 1]} : vector<32x32xf32> to vector<16x32xf32>
    %cst_44 = arith.constant 0.000000e+00 : f32
    %99 = vector.broadcast %cst_44 : f32 to vector<1x32xf32>
    %100 = vector.extract_strided_slice %98 {offsets = [0, 0], sizes = [15, 32], strides = [1, 1]} : vector<16x32xf32> to vector<15x32xf32>
    %101 = tpu.concatenate %99, %100 in 0 : vector<1x32xf32>, vector<15x32xf32> -> vector<16x32xf32>
    %102 = tpu.concatenate %97, %101 in 0 : vector<16x32xf32>, vector<16x32xf32> -> vector<32x32xf32>
    %103 = vector.extract_strided_slice %75 {offsets = [0, 0], sizes = [16, 32], strides = [1, 1]} : vector<32x32xf32> to vector<16x32xf32>
    %104 = vector.extract_strided_slice %103 {offsets = [1, 0], sizes = [15, 32], strides = [1, 1]} : vector<16x32xf32> to vector<15x32xf32>
    %cst_45 = arith.constant 0.000000e+00 : f32
    %105 = vector.broadcast %cst_45 : f32 to vector<1x32xf32>
    %106 = tpu.concatenate %104, %105 in 0 : vector<15x32xf32>, vector<1x32xf32> -> vector<16x32xf32>
    %107 = vector.extract_strided_slice %75 {offsets = [16, 0], sizes = [16, 32], strides = [1, 1]} : vector<32x32xf32> to vector<16x32xf32>
    %108 = vector.extract_strided_slice %107 {offsets = [1, 0], sizes = [15, 32], strides = [1, 1]} : vector<16x32xf32> to vector<15x32xf32>
    %cst_46 = arith.constant 0.000000e+00 : f32
    %109 = vector.broadcast %cst_46 : f32 to vector<1x32xf32>
    %110 = tpu.concatenate %108, %109 in 0 : vector<15x32xf32>, vector<1x32xf32> -> vector<16x32xf32>
    %111 = tpu.concatenate %106, %110 in 0 : vector<16x32xf32>, vector<16x32xf32> -> vector<32x32xf32>
    %112 = vector.extract_strided_slice %75 {offsets = [0, 0], sizes = [16, 32], strides = [1, 1]} : vector<32x32xf32> to vector<16x32xf32>
    %113 = vector.extract_strided_slice %112 {offsets = [2, 0], sizes = [14, 32], strides = [1, 1]} : vector<16x32xf32> to vector<14x32xf32>
    %cst_47 = arith.constant 0.000000e+00 : f32
    %114 = vector.broadcast %cst_47 : f32 to vector<2x32xf32>
    %115 = tpu.concatenate %113, %114 in 0 : vector<14x32xf32>, vector<2x32xf32> -> vector<16x32xf32>
    %116 = vector.extract_strided_slice %75 {offsets = [16, 0], sizes = [16, 32], strides = [1, 1]} : vector<32x32xf32> to vector<16x32xf32>
    %117 = vector.extract_strided_slice %116 {offsets = [2, 0], sizes = [14, 32], strides = [1, 1]} : vector<16x32xf32> to vector<14x32xf32>
    %cst_48 = arith.constant 0.000000e+00 : f32
    %118 = vector.broadcast %cst_48 : f32 to vector<2x32xf32>
    %119 = tpu.concatenate %117, %118 in 0 : vector<14x32xf32>, vector<2x32xf32> -> vector<16x32xf32>
    %120 = tpu.concatenate %115, %119 in 0 : vector<16x32xf32>, vector<16x32xf32> -> vector<32x32xf32>
    %121 = vector.extract_strided_slice %75 {offsets = [0, 0], sizes = [16, 32], strides = [1, 1]} : vector<32x32xf32> to vector<16x32xf32>
    %122 = vector.extract_strided_slice %121 {offsets = [3, 0], sizes = [13, 32], strides = [1, 1]} : vector<16x32xf32> to vector<13x32xf32>
    %cst_49 = arith.constant 0.000000e+00 : f32
    %123 = vector.broadcast %cst_49 : f32 to vector<3x32xf32>
    %124 = tpu.concatenate %122, %123 in 0 : vector<13x32xf32>, vector<3x32xf32> -> vector<16x32xf32>
    %125 = vector.extract_strided_slice %75 {offsets = [16, 0], sizes = [16, 32], strides = [1, 1]} : vector<32x32xf32> to vector<16x32xf32>
    %126 = vector.extract_strided_slice %125 {offsets = [3, 0], sizes = [13, 32], strides = [1, 1]} : vector<16x32xf32> to vector<13x32xf32>
    %cst_50 = arith.constant 0.000000e+00 : f32
    %127 = vector.broadcast %cst_50 : f32 to vector<3x32xf32>
    %128 = tpu.concatenate %126, %127 in 0 : vector<13x32xf32>, vector<3x32xf32> -> vector<16x32xf32>
    %129 = tpu.concatenate %124, %128 in 0 : vector<16x32xf32>, vector<16x32xf32> -> vector<32x32xf32>
    %130 = tpu.concatenate %84, %93, %102, %75, %111, %120, %129 in 1 : vector<32x32xf32>, vector<32x32xf32>, vector<32x32xf32>, vector<32x32xf32>, vector<32x32xf32>, vector<32x32xf32>, vector<32x32xf32> -> vector<32x224xf32>
    %c0_51 = arith.constant 0 : index
    %c0_52 = arith.constant 0 : index
    %131 = vector.load %arg9[%c0_51, %c0_52] : memref<224x16xbf16, #tpu.memory_space<vmem>>, vector<224x16xbf16>
    %132 = arith.truncf %130 : vector<32x224xf32> to vector<32x224xbf16>
    %cst_53 = arith.constant dense<0.000000e+00> : vector<32x16xf32>
    %133 = tpu.matmul %132, %131, %cst_53 {dimension_numbers = #tpu.dot_dimension_numbers<[1], [0], [0], [1], [0, 0, 1, 1], [], []>} : vector<32x224xbf16>, vector<224x16xbf16>, vector<32x16xf32> -> vector<32x16xf32>
    %134 = arith.negf %133 : vector<32x16xf32>
    %135 = math.exp %134 : vector<32x16xf32>
    %cst_54 = arith.constant 1.000000e+00 : f32
    %136 = vector.broadcast %cst_54 : f32 to vector<32x16xf32>
    %137 = arith.addf %136, %135 : vector<32x16xf32>
    %138 = arith.divf %136, %137 : vector<32x16xf32>
    %c0_55 = arith.constant 0 : index
    %c0_56 = arith.constant 0 : index
    %139 = vector.load %arg10[%c0_55, %c0_56] : memref<16x512xbf16, #tpu.memory_space<vmem>>, vector<16x512xbf16>
    %140 = arith.truncf %138 : vector<32x16xf32> to vector<32x16xbf16>
    %cst_57 = arith.constant dense<0.000000e+00> : vector<32x512xf32>
    %141 = tpu.matmul %140, %139, %cst_57 {dimension_numbers = #tpu.dot_dimension_numbers<[1], [0], [0], [1], [0, 0, 1, 1], [], []>} : vector<32x16xbf16>, vector<16x512xbf16>, vector<32x512xf32> -> vector<32x512xf32>
    %142 = arith.mulf %43, %141 : vector<32x512xf32>
    %c0_58 = arith.constant 0 : index
    %c0_59 = arith.constant 0 : index
    %143 = vector.load %arg12[%c0_58, %c0_59] : memref<32x16xbf16, #tpu.memory_space<vmem>>, vector<32x16xbf16>
    %c0_60 = arith.constant 0 : index
    %c0_61 = arith.constant 0 : index
    %144 = vector.load %arg11[%c0_60, %c0_61] : memref<128x256xbf16, #tpu.memory_space<vmem>>, vector<128x256xbf16>
    %145 = arith.truncf %1 : vector<16x128xf32> to vector<16x128xbf16>
    %cst_62 = arith.constant dense<0.000000e+00> : vector<16x256xf32>
    %146 = tpu.matmul %145, %144, %cst_62 {dimension_numbers = #tpu.dot_dimension_numbers<[1], [0], [0], [1], [0, 0, 1, 1], [], []>} : vector<16x128xbf16>, vector<128x256xbf16>, vector<16x256xf32> -> vector<16x256xf32>
    %147 = arith.truncf %146 : vector<16x256xf32> to vector<16x256xbf16>
    %cst_63 = arith.constant dense<0.000000e+00> : vector<32x256xf32>
    %148 = tpu.matmul %143, %147, %cst_63 {dimension_numbers = #tpu.dot_dimension_numbers<[1], [0], [0], [1], [0, 0, 1, 1], [], []>} : vector<32x16xbf16>, vector<16x256xbf16>, vector<32x256xf32> -> vector<32x256xf32>
    %149 = tpu.concatenate %148, %142 in 1 : vector<32x256xf32>, vector<32x512xf32> -> vector<32x768xf32>
    %c0_64 = arith.constant 0 : index
    %c0_65 = arith.constant 0 : index
    %150 = vector.load %arg13[%c0_64, %c0_65] : memref<768x256xbf16, #tpu.memory_space<vmem>>, vector<768x256xbf16>
    %151 = arith.truncf %149 : vector<32x768xf32> to vector<32x768xbf16>
    %cst_66 = arith.constant dense<0.000000e+00> : vector<32x256xf32>
    %152 = tpu.matmul %151, %150, %cst_66 {dimension_numbers = #tpu.dot_dimension_numbers<[1], [0], [0], [1], [0, 0, 1, 1], [], []>} : vector<32x768xbf16>, vector<768x256xbf16>, vector<32x256xf32> -> vector<32x256xf32>
    %c0_67 = arith.constant 0 : index
    %c0_68 = arith.constant 0 : index
    %153 = vector.load %arg14[%c0_67, %c0_68] : memref<1x256xf32, #tpu.memory_space<vmem>>, vector<1x256xf32>
    %154 = vector.broadcast %153 : vector<1x256xf32> to vector<32x256xf32>
    %155 = arith.addf %152, %154 : vector<32x256xf32>
    %cst_69 = arith.constant 0.000000e+00 : f32
    %156 = vector.broadcast %cst_69 : f32 to vector<32x256xf32>
    %157 = arith.maximumf %155, %156 : vector<32x256xf32>
    %c0_70 = arith.constant 0 : index
    %c0_71 = arith.constant 0 : index
    %158 = vector.load %arg15[%c0_70, %c0_71] : memref<256x16xbf16, #tpu.memory_space<vmem>>, vector<256x16xbf16>
    %159 = arith.truncf %157 : vector<32x256xf32> to vector<32x256xbf16>
    %cst_72 = arith.constant dense<0.000000e+00> : vector<32x16xf32>
    %160 = tpu.matmul %159, %158, %cst_72 {dimension_numbers = #tpu.dot_dimension_numbers<[1], [0], [0], [1], [0, 0, 1, 1], [], []>} : vector<32x256xbf16>, vector<256x16xbf16>, vector<32x16xf32> -> vector<32x16xf32>
    %c0_73 = arith.constant 0 : index
    %c0_74 = arith.constant 0 : index
    %161 = vector.load %arg16[%c0_73, %c0_74] : memref<1x16xf32, #tpu.memory_space<vmem>>, vector<1x16xf32>
    %162 = vector.broadcast %161 : vector<1x16xf32> to vector<32x16xf32>
    %163 = arith.addf %160, %162 : vector<32x16xf32>
    %164 = arith.negf %163 : vector<32x16xf32>
    %165 = math.exp %164 : vector<32x16xf32>
    %cst_75 = arith.constant 1.000000e+00 : f32
    %166 = vector.broadcast %cst_75 : f32 to vector<32x16xf32>
    %167 = arith.addf %166, %165 : vector<32x16xf32>
    %168 = arith.divf %166, %167 : vector<32x16xf32>
    %c0_76 = arith.constant 0 : index
    %c0_77 = arith.constant 0 : index
    %169 = vector.load %arg10[%c0_76, %c0_77] : memref<16x512xbf16, #tpu.memory_space<vmem>>, vector<16x512xbf16>
    %170 = arith.truncf %168 : vector<32x16xf32> to vector<32x16xbf16>
    %cst_78 = arith.constant dense<0.000000e+00> : vector<32x512xf32>
    %171 = tpu.matmul %170, %169, %cst_78 {dimension_numbers = #tpu.dot_dimension_numbers<[1], [0], [0], [1], [0, 0, 1, 1], [], []>} : vector<32x16xbf16>, vector<16x512xbf16>, vector<32x512xf32> -> vector<32x512xf32>
    %172 = arith.mulf %142, %171 : vector<32x512xf32>
    %173 = vector.extract_strided_slice %148 {offsets = [0, 0], sizes = [16, 256], strides = [1, 1]} : vector<32x256xf32> to vector<16x256xf32>
    %cst_79 = arith.constant 0.000000e+00 : f32
    %174 = vector.broadcast %cst_79 : f32 to vector<1x256xf32>
    %175 = vector.extract_strided_slice %173 {offsets = [0, 0], sizes = [15, 256], strides = [1, 1]} : vector<16x256xf32> to vector<15x256xf32>
    %176 = tpu.concatenate %174, %175 in 0 : vector<1x256xf32>, vector<15x256xf32> -> vector<16x256xf32>
    %177 = vector.extract_strided_slice %148 {offsets = [16, 0], sizes = [16, 256], strides = [1, 1]} : vector<32x256xf32> to vector<16x256xf32>
    %cst_80 = arith.constant 0.000000e+00 : f32
    %178 = vector.broadcast %cst_80 : f32 to vector<1x256xf32>
    %179 = vector.extract_strided_slice %177 {offsets = [0, 0], sizes = [15, 256], strides = [1, 1]} : vector<16x256xf32> to vector<15x256xf32>
    %180 = tpu.concatenate %178, %179 in 0 : vector<1x256xf32>, vector<15x256xf32> -> vector<16x256xf32>
    %181 = tpu.concatenate %176, %180 in 0 : vector<16x256xf32>, vector<16x256xf32> -> vector<32x256xf32>
    %182 = vector.extract_strided_slice %148 {offsets = [0, 0], sizes = [16, 256], strides = [1, 1]} : vector<32x256xf32> to vector<16x256xf32>
    %183 = vector.extract_strided_slice %182 {offsets = [1, 0], sizes = [15, 256], strides = [1, 1]} : vector<16x256xf32> to vector<15x256xf32>
    %cst_81 = arith.constant 0.000000e+00 : f32
    %184 = vector.broadcast %cst_81 : f32 to vector<1x256xf32>
    %185 = tpu.concatenate %183, %184 in 0 : vector<15x256xf32>, vector<1x256xf32> -> vector<16x256xf32>
    %186 = vector.extract_strided_slice %148 {offsets = [16, 0], sizes = [16, 256], strides = [1, 1]} : vector<32x256xf32> to vector<16x256xf32>
    %187 = vector.extract_strided_slice %186 {offsets = [1, 0], sizes = [15, 256], strides = [1, 1]} : vector<16x256xf32> to vector<15x256xf32>
    %cst_82 = arith.constant 0.000000e+00 : f32
    %188 = vector.broadcast %cst_82 : f32 to vector<1x256xf32>
    %189 = tpu.concatenate %187, %188 in 0 : vector<15x256xf32>, vector<1x256xf32> -> vector<16x256xf32>
    %190 = tpu.concatenate %185, %189 in 0 : vector<16x256xf32>, vector<16x256xf32> -> vector<32x256xf32>
    %191 = tpu.concatenate %181, %148, %190 in 1 : vector<32x256xf32>, vector<32x256xf32>, vector<32x256xf32> -> vector<32x768xf32>
    %c0_83 = arith.constant 0 : index
    %c0_84 = arith.constant 0 : index
    %192 = vector.load %arg17[%c0_83, %c0_84] : memref<768x256xbf16, #tpu.memory_space<vmem>>, vector<768x256xbf16>
    %193 = arith.truncf %191 : vector<32x768xf32> to vector<32x768xbf16>
    %cst_85 = arith.constant dense<0.000000e+00> : vector<32x256xf32>
    %194 = tpu.matmul %193, %192, %cst_85 {dimension_numbers = #tpu.dot_dimension_numbers<[1], [0], [0], [1], [0, 0, 1, 1], [], []>} : vector<32x768xbf16>, vector<768x256xbf16>, vector<32x256xf32> -> vector<32x256xf32>
    %195 = vector.extract_strided_slice %172 {offsets = [0, 0], sizes = [16, 512], strides = [1, 1]} : vector<32x512xf32> to vector<16x512xf32>
    %cst_86 = arith.constant 0.000000e+00 : f32
    %196 = vector.broadcast %cst_86 : f32 to vector<1x512xf32>
    %197 = vector.extract_strided_slice %195 {offsets = [0, 0], sizes = [15, 512], strides = [1, 1]} : vector<16x512xf32> to vector<15x512xf32>
    %198 = tpu.concatenate %196, %197 in 0 : vector<1x512xf32>, vector<15x512xf32> -> vector<16x512xf32>
    %199 = vector.extract_strided_slice %172 {offsets = [16, 0], sizes = [16, 512], strides = [1, 1]} : vector<32x512xf32> to vector<16x512xf32>
    %cst_87 = arith.constant 0.000000e+00 : f32
    %200 = vector.broadcast %cst_87 : f32 to vector<1x512xf32>
    %201 = vector.extract_strided_slice %199 {offsets = [0, 0], sizes = [15, 512], strides = [1, 1]} : vector<16x512xf32> to vector<15x512xf32>
    %202 = tpu.concatenate %200, %201 in 0 : vector<1x512xf32>, vector<15x512xf32> -> vector<16x512xf32>
    %203 = tpu.concatenate %198, %202 in 0 : vector<16x512xf32>, vector<16x512xf32> -> vector<32x512xf32>
    %204 = vector.extract_strided_slice %172 {offsets = [0, 0], sizes = [16, 512], strides = [1, 1]} : vector<32x512xf32> to vector<16x512xf32>
    %205 = vector.extract_strided_slice %204 {offsets = [1, 0], sizes = [15, 512], strides = [1, 1]} : vector<16x512xf32> to vector<15x512xf32>
    %cst_88 = arith.constant 0.000000e+00 : f32
    %206 = vector.broadcast %cst_88 : f32 to vector<1x512xf32>
    %207 = tpu.concatenate %205, %206 in 0 : vector<15x512xf32>, vector<1x512xf32> -> vector<16x512xf32>
    %208 = vector.extract_strided_slice %172 {offsets = [16, 0], sizes = [16, 512], strides = [1, 1]} : vector<32x512xf32> to vector<16x512xf32>
    %209 = vector.extract_strided_slice %208 {offsets = [1, 0], sizes = [15, 512], strides = [1, 1]} : vector<16x512xf32> to vector<15x512xf32>
    %cst_89 = arith.constant 0.000000e+00 : f32
    %210 = vector.broadcast %cst_89 : f32 to vector<1x512xf32>
    %211 = tpu.concatenate %209, %210 in 0 : vector<15x512xf32>, vector<1x512xf32> -> vector<16x512xf32>
    %212 = tpu.concatenate %207, %211 in 0 : vector<16x512xf32>, vector<16x512xf32> -> vector<32x512xf32>
    %213 = tpu.concatenate %203, %172, %212 in 1 : vector<32x512xf32>, vector<32x512xf32>, vector<32x512xf32> -> vector<32x1536xf32>
    %c0_90 = arith.constant 0 : index
    %c0_91 = arith.constant 0 : index
    %214 = vector.load %arg18[%c0_90, %c0_91] : memref<1536x256xbf16, #tpu.memory_space<vmem>>, vector<1536x256xbf16>
    %215 = arith.truncf %213 : vector<32x1536xf32> to vector<32x1536xbf16>
    %cst_92 = arith.constant dense<0.000000e+00> : vector<32x256xf32>
    %216 = tpu.matmul %215, %214, %cst_92 {dimension_numbers = #tpu.dot_dimension_numbers<[1], [0], [0], [1], [0, 0, 1, 1], [], []>} : vector<32x1536xbf16>, vector<1536x256xbf16>, vector<32x256xf32> -> vector<32x256xf32>
    %217 = arith.addf %194, %216 : vector<32x256xf32>
    %c0_93 = arith.constant 0 : index
    %c0_94 = arith.constant 0 : index
    %218 = vector.load %arg20[%c0_93, %c0_94] : memref<1x256xf32, #tpu.memory_space<vmem>>, vector<1x256xf32>
    %219 = vector.broadcast %218 : vector<1x256xf32> to vector<32x256xf32>
    %220 = arith.addf %217, %219 : vector<32x256xf32>
    %cst_95 = arith.constant 0.000000e+00 : f32
    %221 = vector.broadcast %cst_95 : f32 to vector<32x256xf32>
    %222 = arith.maximumf %220, %221 : vector<32x256xf32>
    %223 = vector.extract_strided_slice %222 {offsets = [0, 0], sizes = [16, 256], strides = [1, 1]} : vector<32x256xf32> to vector<16x256xf32>
    %cst_96 = arith.constant 0.000000e+00 : f32
    %224 = vector.broadcast %cst_96 : f32 to vector<1x256xf32>
    %225 = vector.extract_strided_slice %223 {offsets = [0, 0], sizes = [15, 256], strides = [1, 1]} : vector<16x256xf32> to vector<15x256xf32>
    %226 = tpu.concatenate %224, %225 in 0 : vector<1x256xf32>, vector<15x256xf32> -> vector<16x256xf32>
    %227 = vector.extract_strided_slice %222 {offsets = [16, 0], sizes = [16, 256], strides = [1, 1]} : vector<32x256xf32> to vector<16x256xf32>
    %cst_97 = arith.constant 0.000000e+00 : f32
    %228 = vector.broadcast %cst_97 : f32 to vector<1x256xf32>
    %229 = vector.extract_strided_slice %227 {offsets = [0, 0], sizes = [15, 256], strides = [1, 1]} : vector<16x256xf32> to vector<15x256xf32>
    %230 = tpu.concatenate %228, %229 in 0 : vector<1x256xf32>, vector<15x256xf32> -> vector<16x256xf32>
    %231 = tpu.concatenate %226, %230 in 0 : vector<16x256xf32>, vector<16x256xf32> -> vector<32x256xf32>
    %232 = vector.extract_strided_slice %222 {offsets = [0, 0], sizes = [16, 256], strides = [1, 1]} : vector<32x256xf32> to vector<16x256xf32>
    %233 = vector.extract_strided_slice %232 {offsets = [1, 0], sizes = [15, 256], strides = [1, 1]} : vector<16x256xf32> to vector<15x256xf32>
    %cst_98 = arith.constant 0.000000e+00 : f32
    %234 = vector.broadcast %cst_98 : f32 to vector<1x256xf32>
    %235 = tpu.concatenate %233, %234 in 0 : vector<15x256xf32>, vector<1x256xf32> -> vector<16x256xf32>
    %236 = vector.extract_strided_slice %222 {offsets = [16, 0], sizes = [16, 256], strides = [1, 1]} : vector<32x256xf32> to vector<16x256xf32>
    %237 = vector.extract_strided_slice %236 {offsets = [1, 0], sizes = [15, 256], strides = [1, 1]} : vector<16x256xf32> to vector<15x256xf32>
    %cst_99 = arith.constant 0.000000e+00 : f32
    %238 = vector.broadcast %cst_99 : f32 to vector<1x256xf32>
    %239 = tpu.concatenate %237, %238 in 0 : vector<15x256xf32>, vector<1x256xf32> -> vector<16x256xf32>
    %240 = tpu.concatenate %235, %239 in 0 : vector<16x256xf32>, vector<16x256xf32> -> vector<32x256xf32>
    %241 = tpu.concatenate %231, %222, %240 in 1 : vector<32x256xf32>, vector<32x256xf32>, vector<32x256xf32> -> vector<32x768xf32>
    %c0_100 = arith.constant 0 : index
    %c0_101 = arith.constant 0 : index
    %242 = vector.load %arg19[%c0_100, %c0_101] : memref<768x256xbf16, #tpu.memory_space<vmem>>, vector<768x256xbf16>
    %243 = arith.truncf %241 : vector<32x768xf32> to vector<32x768xbf16>
    %cst_102 = arith.constant dense<0.000000e+00> : vector<32x256xf32>
    %244 = tpu.matmul %243, %242, %cst_102 {dimension_numbers = #tpu.dot_dimension_numbers<[1], [0], [0], [1], [0, 0, 1, 1], [], []>} : vector<32x768xbf16>, vector<768x256xbf16>, vector<32x256xf32> -> vector<32x256xf32>
    %c0_103 = arith.constant 0 : index
    %c0_104 = arith.constant 0 : index
    %245 = vector.load %arg21[%c0_103, %c0_104] : memref<1x256xf32, #tpu.memory_space<vmem>>, vector<1x256xf32>
    %246 = vector.broadcast %245 : vector<1x256xf32> to vector<32x256xf32>
    %247 = arith.addf %244, %246 : vector<32x256xf32>
    %cst_105 = arith.constant 0.000000e+00 : f32
    %248 = vector.broadcast %cst_105 : f32 to vector<32x256xf32>
    %249 = arith.maximumf %247, %248 : vector<32x256xf32>
    %c0_106 = arith.constant 0 : index
    %c0_107 = arith.constant 0 : index
    %250 = vector.load %arg22[%c0_106, %c0_107] : memref<32x256xf32, #tpu.memory_space<vmem>>, vector<32x256xf32>
    tpu.vector_store %arg22[%c0_106, %c0_107], %249 {strides = array<i32>} : memref<32x256xf32, #tpu.memory_space<vmem>>, vector<32x256xf32>,
    return
  }
  func.func @transform_0(%arg0: i32) -> (i32, i32) {
    %c0_i32 = arith.constant 0 : i32
    %c0_i32_0 = arith.constant 0 : i32
    return %arg0, %c0_i32 : i32, i32
  }
  func.func @transform_1(%arg0: i32) -> (i32, i32) {
    %c0_i32 = arith.constant 0 : i32
    %c0_i32_0 = arith.constant 0 : i32
    return %arg0, %c0_i32 : i32, i32
  }
  func.func @transform_2(%arg0: i32) -> (i32, i32) {
    %c0_i32 = arith.constant 0 : i32
    %c0_i32_0 = arith.constant 0 : i32
    return %arg0, %c0_i32 : i32, i32
  }
  func.func @transform_3(%arg0: i32) -> (i32, i32) {
    %c0_i32 = arith.constant 0 : i32
    %c0_i32_0 = arith.constant 0 : i32
    %c0_i32_1 = arith.constant 0 : i32
    return %c0_i32, %c0_i32_0 : i32, i32
  }
  func.func @transform_4(%arg0: i32) -> (i32, i32) {
    %c0_i32 = arith.constant 0 : i32
    %c0_i32_0 = arith.constant 0 : i32
    %c0_i32_1 = arith.constant 0 : i32
    return %c0_i32, %c0_i32_0 : i32, i32
  }
  func.func @transform_5(%arg0: i32) -> (i32, i32) {
    %c0_i32 = arith.constant 0 : i32
    %c0_i32_0 = arith.constant 0 : i32
    %c0_i32_1 = arith.constant 0 : i32
    return %c0_i32, %c0_i32_0 : i32, i32
  }
  func.func @transform_6(%arg0: i32) -> (i32, i32) {
    %c0_i32 = arith.constant 0 : i32
    %c0_i32_0 = arith.constant 0 : i32
    %c0_i32_1 = arith.constant 0 : i32
    return %c0_i32, %c0_i32_0 : i32, i32
  }
  func.func @transform_7(%arg0: i32) -> (i32, i32) {
    %c0_i32 = arith.constant 0 : i32
    %c0_i32_0 = arith.constant 0 : i32
    %c0_i32_1 = arith.constant 0 : i32
    return %c0_i32, %c0_i32_0 : i32, i32
  }
  func.func @transform_8(%arg0: i32) -> (i32, i32) {
    %c0_i32 = arith.constant 0 : i32
    %c0_i32_0 = arith.constant 0 : i32
    %c0_i32_1 = arith.constant 0 : i32
    return %c0_i32, %c0_i32_0 : i32, i32
  }
  func.func @transform_9(%arg0: i32) -> (i32, i32) {
    %c0_i32 = arith.constant 0 : i32
    %c0_i32_0 = arith.constant 0 : i32
    %c0_i32_1 = arith.constant 0 : i32
    return %c0_i32, %c0_i32_0 : i32, i32
  }
  func.func @transform_10(%arg0: i32) -> (i32, i32) {
    %c0_i32 = arith.constant 0 : i32
    %c0_i32_0 = arith.constant 0 : i32
    %c0_i32_1 = arith.constant 0 : i32
    return %c0_i32, %c0_i32_0 : i32, i32
  }
  func.func @transform_11(%arg0: i32) -> (i32, i32) {
    %c0_i32 = arith.constant 0 : i32
    %c0_i32_0 = arith.constant 0 : i32
    %c0_i32_1 = arith.constant 0 : i32
    return %c0_i32, %c0_i32_0 : i32, i32
  }
  func.func @transform_12(%arg0: i32) -> (i32, i32) {
    %c0_i32 = arith.constant 0 : i32
    %c0_i32_0 = arith.constant 0 : i32
    %c0_i32_1 = arith.constant 0 : i32
    return %c0_i32, %c0_i32_0 : i32, i32
  }
  func.func @transform_13(%arg0: i32) -> (i32, i32) {
    %c0_i32 = arith.constant 0 : i32
    %c0_i32_0 = arith.constant 0 : i32
    %c0_i32_1 = arith.constant 0 : i32
    return %c0_i32, %c0_i32_0 : i32, i32
  }
  func.func @transform_14(%arg0: i32) -> (i32, i32) {
    %c0_i32 = arith.constant 0 : i32
    %c0_i32_0 = arith.constant 0 : i32
    %c0_i32_1 = arith.constant 0 : i32
    return %c0_i32, %c0_i32_0 : i32, i32
  }
  func.func @transform_15(%arg0: i32) -> (i32, i32) {
    %c0_i32 = arith.constant 0 : i32
    %c0_i32_0 = arith.constant 0 : i32
    %c0_i32_1 = arith.constant 0 : i32
    return %c0_i32, %c0_i32_0 : i32, i32
  }
  func.func @transform_16(%arg0: i32) -> (i32, i32) {
    %c0_i32 = arith.constant 0 : i32
    %c0_i32_0 = arith.constant 0 : i32
    %c0_i32_1 = arith.constant 0 : i32
    return %c0_i32, %c0_i32_0 : i32, i32
  }
  func.func @transform_17(%arg0: i32) -> (i32, i32) {
    %c0_i32 = arith.constant 0 : i32
    %c0_i32_0 = arith.constant 0 : i32
    %c0_i32_1 = arith.constant 0 : i32
    return %c0_i32, %c0_i32_0 : i32, i32
  }
  func.func @transform_18(%arg0: i32) -> (i32, i32) {
    %c0_i32 = arith.constant 0 : i32
    %c0_i32_0 = arith.constant 0 : i32
    %c0_i32_1 = arith.constant 0 : i32
    return %c0_i32, %c0_i32_0 : i32, i32
  }
  func.func @transform_19(%arg0: i32) -> (i32, i32) {
    %c0_i32 = arith.constant 0 : i32
    %c0_i32_0 = arith.constant 0 : i32
    %c0_i32_1 = arith.constant 0 : i32
    return %c0_i32, %c0_i32_0 : i32, i32
  }
  func.func @transform_20(%arg0: i32) -> (i32, i32) {
    %c0_i32 = arith.constant 0 : i32
    %c0_i32_0 = arith.constant 0 : i32
    %c0_i32_1 = arith.constant 0 : i32
    return %c0_i32, %c0_i32_0 : i32, i32
  }
  func.func @transform_21(%arg0: i32) -> (i32, i32) {
    %c0_i32 = arith.constant 0 : i32
    %c0_i32_0 = arith.constant 0 : i32
    return %arg0, %c0_i32 : i32, i32
  }
}

</mosaic_0001>

<bundles_post_ra>
// kernel: tpu_custom_call.1
= control target key start
LH: loop header
LB: loop body
LE: loop exit
PB: predicated region body
PF: predicated region fallthrough
CT: control target
= control target key end

     0   :  { %s13905_s0 = inlined_call_operand.vmem [shape: f32[512,32], index: 0, kind: input, shape index: {}]   ;;  %s13906_s1 = inlined_call_operand.hbm [shape: f32[32,512], index: 1, kind: input, shape index: {}]   ;;  %s13907_s2 = inlined_call_operand.vmem [shape: f32[16,128], index: 2, kind: input, shape index: {}]   ;;  %s13908_s3 = inlined_call_operand.vmem [shape: bf16[32,2], index: 3, kind: input, shape index: {}]   ;;  %s13909_s4 = inlined_call_operand.vmem [shape: bf16[2,32], index: 4, kind: input, shape index: {}]   ;;  %s13910_s5 = inlined_call_operand.hbm [shape: bf16[32,512], index: 5, kind: input, shape index: {}]   ;;  %s13911_s6 = inlined_call_operand.vmem [shape: f32[512,16], index: 6, kind: input, shape index: {}]   ;;  %s13912_s7 = inlined_call_operand.hbm [shape: bf16[32,512], index: 7, kind: input, shape index: {}]   ;;  %s13913_s8 = inlined_call_operand.vmem [shape: bf16[224,16], index: 8, kind: input, shape index: {}]   ;;  %s13914_s9 = inlined_call_operand.hbm [shape: bf16[16,512], index: 9, kind: input, shape index: {}]   ;;  %s13915_s10 = inlined_call_operand.hbm [shape: bf16[128,256], index: 10, kind: input, shape index: {}]   ;;  %s13916_s11 = inlined_call_operand.vmem [shape: bf16[32,16], index: 11, kind: input, shape index: {}]   ;;  %s13917_s12 = inlined_call_operand.hbm [shape: bf16[768,256], index: 12, kind: input, shape index: {}]   ;;  %s13918_s13 = inlined_call_operand.vmem [shape: f32[1,256], index: 13, kind: input, shape index: {}]   ;;  %s13919_s14 = inlined_call_operand.vmem [shape: bf16[256,16], index: 14, kind: input, shape index: {}]   ;;  %s13920_s15 = inlined_call_operand.vmem [shape: f32[1,16], index: 15, kind: input, shape index: {}]   ;;  %s13921_s16 = inlined_call_operand.hbm [shape: bf16[768,256], index: 16, kind: input, shape index: {}]   ;;  %s13922_s17 = inlined_call_operand.vmem [shape: bf16[1536,256], index: 17, kind: input, shape index: {}]   ;;  %s13923_s18 = inlined_call_operand.hbm [shape: bf16[768,256], index: 18, kind: input, shape index: {}]   ;;  %s13924_s19 = inlined_call_operand.vmem [shape: f32[1,256], index: 19, kind: input, shape index: {}]   ;;  %s13925_s20 = inlined_call_operand.vmem [shape: f32[1,256], index: 20, kind: input, shape index: {}]   ;;  %s13926_s21 = inlined_call_operand.hbm [shape: f32[32,256], index: 21, kind: output, shape index: {}]  }
   0x1   :  { %14006 = sst [smem:[#allocation105_spill]] %s13905_s0 }
   0x2   :  { %14007 = sst [smem:[#allocation106_spill]] %s13906_s1 }
   0x3   :  { %14008 = sst [smem:[#allocation107_spill]] %s13907_s2 }
   0x4   :  { %14009 = sst [smem:[#allocation108_spill]] %s13908_s3 }
   0x5   :  { %14010 = sst [smem:[#allocation109_spill]] %s13909_s4 }
   0x6   :  { %14011 = sst [smem:[#allocation110_spill]] %s13910_s5 }
   0x7   :  { %26 = vsyncpa [#allocation3], 0 }
   0x8   :  { %27 = vsyncpa [#allocation6], 0 }
   0x9   :  { %28 = vsyncpa [#allocation9], 0 }
   0xa   :  { %29 = vsyncpa [#allocation12], 0 }
   0xb   :  { %30 = vsyncpa [#allocation15], 0 }
   0xc   :  { %31 = vsyncpa [#allocation4], 0  ;;  %s9947_s2 = smov [#allocation5]  }
   0xd   :  { %s57_s25 = sshll.u32 %s9947_s2, 4  ;;  %s58_s25 = int_to_ptr.vmem [resolvable:$true] %s57_s25 }
   0xe   :  { %s9763_s26 = scalar_lea.vmem %s58_s25, 1024  ;;  %p9768_p1 = scmp.lt.s32.totalorder %s58_s25, %s58_s25 }
   0xf   :  { %p9764_p0 = scmp.ne.s32.totalorder %s58_s25, %s9763_s26  ;;  %p9769_p2 = scmp.lt.s32.totalorder %s9763_s26, %s9763_s26 }
  0x11   :  { %p9770_p3 = por %p9769_p2, %p9768_p1 }
  0x13   :  { %p9771_p4 = pnand %p9770_p3, %p9764_p0 }
  0x15   :  { %9774 = shalt.err (!%p9771_p4)
}
  0x16   :  { %s13930_s27 = smov 256   ;;  %s13932_s3 = smov 16  }
  0x17   :  { %s14012_s0 = sld [smem:[#allocation110_spill]]  ;;  %s9950_s4 = smov [#allocation8]  }
  0x18   :  { %s85_s30 = sshll.u32 %s9950_s4, 4  ;;  %s86_s30 = int_to_ptr.vmem [resolvable:$true] %s85_s30 }
  0x19   :  { %s9783_s5 = scalar_lea.vmem %s86_s30, 512  ;;  %p9788_p6 = scmp.lt.s32.totalorder %s86_s30, %s86_s30 }
  0x1a   :  { %p9784_p5 = scmp.ne.s32.totalorder %s86_s30, %s9783_s5  ;;  %p9789_p7 = scmp.lt.s32.totalorder %s9783_s5, %s9783_s5 }
  0x1c   :  { %p9790_p8 = por %p9789_p7, %p9788_p6 }
  0x1d   :  { %63 = dma.hbm_to_vmem [thread:$0]  %s14012_s0, 1024, %s58_s25, [#allocation6], %s13930_s27, %s13930_s27, %s13932_s3  }
  0x1e   :  { %p9791_p9 = pnand %p9790_p8, %p9784_p5 }
  0x20   :  { %9794 = shalt.err (!%p9791_p9)
}
  0x21   :  { %91 = dma.hbm_to_vmem [thread:$0]  %s13914_s9, 512, %s86_s30, [#allocation9], %s13930_s27, %s13930_s27, %s13932_s3  }
  0x22   :  { %s9951_s1 = smov [#allocation11]   ;;  %s9952_s2 = smov [#allocation2]  }
  0x23   :  { %s111_s24 = sshll.u32 %s9951_s1, 4  ;;  %s39_s25 = sshll.u32 %s9952_s2, 4  ;;  %s112_s24 = int_to_ptr.vmem [resolvable:$true] %s111_s24  ;;  %s40_s25 = int_to_ptr.vmem [resolvable:$true] %s39_s25 }
  0x24   :  { %s9803_s26 = scalar_lea.vmem %s112_s24, 12288  ;;  %p9808_p11 = scmp.lt.s32.totalorder %s112_s24, %s112_s24 }
  0x25   :  { %p9804_p10 = scmp.ne.s32.totalorder %s112_s24, %s9803_s26  ;;  %p9809_p12 = scmp.lt.s32.totalorder %s9803_s26, %s9803_s26 }
  0x27   :  { %p9810_p13 = por %p9809_p12, %p9808_p11 }
  0x29   :  { %p9811_p0 = pnand %p9810_p13, %p9804_p10 }
  0x2b   :  { %9814 = shalt.err (!%p9811_p0)
}
  0x2c   :  { %s9953_s28 = smov 128   ;;  %s9954_s29 = smov 8  }
  0x2d   :  { %117 = dma.hbm_to_vmem [thread:$0]  %s13917_s12, 12288, %s112_s24, [#allocation12], %s9953_s28, %s9953_s28, %s9954_s29  }
  0x2e   :  { %s9823_s4 = scalar_lea.vmem %s40_s25, 2048  ;;  %p9828_p2 = scmp.lt.s32.totalorder %s40_s25, %s40_s25 }
  0x2f   :  { %p9824_p1 = scmp.ne.s32.totalorder %s40_s25, %s9823_s4  ;;  %p9829_p3 = scmp.lt.s32.totalorder %s9823_s4, %s9823_s4 }
  0x31   :  { %p9830_p4 = por %p9829_p3, %p9828_p2 }
  0x33   :  { %p9831_p5 = pnand %p9830_p4, %p9824_p1 }
  0x35   :  { %9834 = shalt.err (!%p9831_p5)
}
  0x36   :  { %s9955_s30 = smov 512   ;;  %s9956_s5 = smov 32  }
  0x37   :  { %s14013_s1 = sld [smem:[#allocation106_spill]]  ;;  %s9957_s2 = smov [#allocation7]  }
  0x38   :  { %s71_s26 = sshll.u32 %s9957_s2, 4  ;;  %s9958_s27 = smov [#allocation10]   ;;  %s72_s26 = int_to_ptr.vmem [resolvable:$true] %s71_s26 }
  0x39   :  { %s97_s3 = sshll.u32 %s9958_s27, 4  ;;  %s9843_s12 = scalar_lea.vmem %s72_s26, 1024  ;;  %s98_s3 = int_to_ptr.vmem [resolvable:$true] %s97_s3 }
  0x3a   :  { %p9844_p6 = scmp.ne.s32.totalorder %s72_s26, %s9843_s12  ;;  %p9848_p7 = scmp.lt.s32.totalorder %s72_s26, %s72_s26 }
  0x3b   :  { %p9849_p8 = scmp.lt.s32.totalorder %s9843_s12, %s9843_s12 }
  0x3d   :  { %45 = dma.hbm_to_vmem [thread:$0]  %s14013_s1, 2048, %s40_s25, [#allocation3], %s9955_s30, %s9955_s30, %s9956_s5  }
  0x3e   :  { %p9850_p9 = por %p9849_p8, %p9848_p7 }
  0x40   :  { %p9851_p10 = pnand %p9850_p9, %p9844_p6 }
  0x42   :  { %9854 = shalt.err (!%p9851_p10)
}
  0x43   :  { %s14014_s24 = smov 16   ;;  %s14015_s0 = smov 256  }
  0x44   :  { %77 = dma.hbm_to_vmem [thread:$0]  %s13912_s7, 1024, %s72_s26, [#allocation6], %s14015_s0, %s14015_s0, %s14014_s24  }
  0x45   :  { %s9863_s25 = scalar_lea.vmem %s98_s3, 2048  ;;  %p9868_p12 = scmp.lt.s32.totalorder %s98_s3, %s98_s3 }
  0x46   :  { %p9864_p11 = scmp.ne.s32.totalorder %s98_s3, %s9863_s25  ;;  %p9869_p13 = scmp.lt.s32.totalorder %s9863_s25, %s9863_s25 }
  0x48   :  { %p9870_p0 = por %p9869_p13, %p9868_p12 }
  0x4a   :  { %p9871_p1 = pnand %p9870_p0, %p9864_p11 }
  0x4c   :  { %9874 = shalt.err (!%p9871_p1)
}
  0x4d   :  { %103 = dma.hbm_to_vmem [thread:$0]  %s13915_s10, 2048, %s98_s3, [#allocation9], %s9953_s28, %s9953_s28, %s9954_s29  }
  0x4e   :  { %s9959_s22 = smov [#allocation13]   ;;  %s9960_s1 = smov [#allocation14]  }
  0x4f   :  { %s129_s23 = sshll.u32 %s9959_s22, 4  ;;  %s143_s2 = sshll.u32 %s9960_s1, 4  ;;  %s130_s23 = int_to_ptr.vmem [resolvable:$true] %s129_s23  ;;  %s144_s2 = int_to_ptr.vmem [resolvable:$true] %s143_s2 }
  0x50   :  { %s9883_s7 = scalar_lea.vmem %s130_s23, 12288  ;;  %p9888_p3 = scmp.lt.s32.totalorder %s130_s23, %s130_s23 }
  0x51   :  { %p9884_p2 = scmp.ne.s32.totalorder %s130_s23, %s9883_s7  ;;  %p9889_p4 = scmp.lt.s32.totalorder %s9883_s7, %s9883_s7 }
  0x53   :  { %p9890_p5 = por %p9889_p4, %p9888_p3 }
  0x55   :  { %p9891_p6 = pnand %p9890_p5, %p9884_p2 }
  0x57   :  { %9894 = shalt.err (!%p9891_p6)
}
  0x58   :  { %135 = dma.hbm_to_vmem [thread:$0]  %s13921_s16, 12288, %s130_s23, [#allocation12], %s9953_s28, %s9953_s28, %s9954_s29  }
  0x59   :  { %s9903_s10 = scalar_lea.vmem %s144_s2, 12288  ;;  %p9908_p8 = scmp.lt.s32.totalorder %s144_s2, %s144_s2 }
  0x5a   :  { %p9904_p7 = scmp.ne.s32.totalorder %s144_s2, %s9903_s10  ;;  %p9909_p9 = scmp.lt.s32.totalorder %s9903_s10, %s9903_s10 }
  0x5c   :  { %p9910_p10 = por %p9909_p9, %p9908_p8 }
  0x5e   :  { %p9911_p11 = pnand %p9910_p10, %p9904_p7 }
  0x60   :  { %9914 = shalt.err (!%p9911_p11)
}
  0x61   :  { %149 = dma.hbm_to_vmem [thread:$0]  %s13923_s18, 12288, %s144_s2, [#allocation15], %s9953_s28, %s9953_s28, %s9954_s29  }
  0x62   :  { %9935 = dma.done.wait [#allocation3], 2048  }
  0x63   :  { %9936 = vsyncadd [#allocation3], 4294965248 }
  0x64   :  { %9937 = dma.done.wait [#allocation6], 2048  }
  0x65   :  { %9938 = vsyncadd [#allocation6], 4294965248 }
  0x66   :  { %9939 = dma.done.wait [#allocation9], 2560  }
  0x67   :  { %9940 = vsyncadd [#allocation9], 4294964736 }
  0x68   :  { %9941 = dma.done.wait [#allocation12], 24576  }
  0x69   :  { %9942 = vsyncadd [#allocation12], 4294942720 }
  0x6a   :  { %9943 = dma.done.wait [#allocation15], 12288  }
  0x6b   :  { %9944 = vsyncadd [#allocation15], 4294955008  ;;  %v9961_v0 = vmov 0.0   ;;  %vm9962_vm0 = vmmov 0   ;;  %s14016_s25 = sld [smem:[#allocation108_spill]]  ;;  %vm229_vm1 = vcmask 261120  }
  0x6c   :  { %8597 = vmatprep.subr.bf16.mxu0 %v9961_v0  ;;  %8601 = vmatprep.mubr.msk.bf16.mxu0 %vm9962_vm0, %v9961_v0  ;;  %s14017_s30 = sld [smem:[#allocation105_spill]]  ;;  %vm541_vm2 = vcmask 1040384   ;;  %vm543_vm3 = vcmask 1041408   ;;  %vm545_vm4 = vcmask 1042432   ;;  %vm610_vm5 = vcmask 15360  }
  0x6d   :  { %8605 = vmatprep.subr.bf16.mxu1 %v9961_v0  ;;  %8607 = vmatprep.mubr.msk.bf16.mxu1 %vm9962_vm0, %v9961_v0  ;;  %s14018_s9 = sld [smem:[#allocation109_spill]]  ;;  %vm2458_vm6 = vcmask 130048   ;;  %vm2750_vm7 = vcmask 1045504   ;;  %vm2761_vm8 = vcmask 1044480   ;;  %vm2737_vm9 = vcmask 1046528   ;;  %vm8204_vm12 = vmneg %vm541_vm2 }
  0x6e   :  { %vm2844_vm10 = vcmask 523264   ;;  %vm2849_vm11 = vcmask 785408   ;;  %s14242_s18 = sld [smem:[#allocation107_spill]]  ;;  %vm9966_vm13 = vmmov 1  }
  0x6f   :  { %vm13203_vm14 = vmpackc.low %vm9966_vm13, %vm8204_vm12 }
  0x70   :  { %vm13521_vm15 = vmpackc.low %vm2737_vm9, %vm9966_vm13 }
  0x71   :  { %v8844_v1 = vld [vmem:[%s14016_s25 + $0x8] sm:$0xff]   ;;  %v8845_v2 = vld [vmem:[%s14016_s25] sm:$0xff]  }
  0x72   :  { %8598 = vmatpush3.bf16.msra.mxu0 %v8844_v1  ;;  %v197_v3 = vld [vmem:[%s14017_s30] sm:$0xff]  ;;  %v198_v4 = vld [vmem:[%s14017_s30 + $0x8] sm:$0xff]  ;;  %v199_v5 = vld [vmem:[%s14017_s30 + $0x10] sm:$0xff] }
  0x73   :  { %8599 = vmatprep.subr.bf16.mxu0 %v9961_v0  ;;  %v200_v6 = vld [vmem:[%s14017_s30 + $0x18] sm:$0xff]  ;;  %v230_v7 = vsel %vm229_vm1, %v197_v3, 0.0  ;;  %v231_v8 = vsel %vm229_vm1, %v198_v4, 0.0  ;;  %v233_v9 = vsel %vm229_vm1, %v199_v5, 0.0  ;;  %v201_v10 = vld [vmem:[%s14017_s30 + $0x20] sm:$0xff]  ;;  %v202_v13 = vld [vmem:[%s14017_s30 + $0x28] sm:$0xff] }
  0x74   :  { %v232_v11 = vadd.f32 %v231_v8, %v230_v7  ;;  %v235_v12 = vsel %vm229_vm1, %v200_v6, 0.0  ;;  %v237_v15 = vsel %vm229_vm1, %v201_v10, 0.0  ;;  %v203_v16 = vld [vmem:[%s14017_s30 + $0x30] sm:$0xff]  ;;  %v239_v18 = vsel %vm229_vm1, %v202_v13, 0.0  ;;  %v204_v19 = vld [vmem:[%s14017_s30 + $0x38] sm:$0xff]  ;;  %v205_v22 = vld [vmem:[%s14017_s30 + $0x40] sm:$0xff] }
  0x75   :  { %v241_v21 = vsel %vm229_vm1, %v203_v16, 0.0  ;;  %v206_v23 = vld [vmem:[%s14017_s30 + $0x48] sm:$0xff]  ;;  %v207_v25 = vld [vmem:[%s14017_s30 + $0x50] sm:$0xff]  ;;  %v208_v26 = vld [vmem:[%s14017_s30 + $0x58] sm:$0xff]  ;;  %v243_v28 = vsel %vm229_vm1, %v204_v19, 0.0  ;;  %v301_v31 = vsel %vm229_vm1, %v197_v3, -inf }
  0x76   :  { %8600 = vmatpush3.bf16.msra.mxu0 %v8845_v2  ;;  %v234_v14 = vadd.f32 %v233_v9, %v232_v11  ;;  %v209_v27 = vld [vmem:[%s14017_s30 + $0x60] sm:$0xff]  ;;  %v210_v29 = vld [vmem:[%s14017_s30 + $0x68] sm:$0xff]  ;;  %v305_v32 = vsel %vm229_vm1, %v201_v10, -inf  ;;  %v245_v33 = vsel %vm229_vm1, %v205_v22, 0.0  ;;  %v247_v34 = vsel %vm229_vm1, %v206_v23, 0.0  ;;  %v211_v37 = vld [vmem:[%s14017_s30 + $0x70] sm:$0xff] }
  0x77   :  { %v302_v35 = vsel %vm229_vm1, %v198_v4, -inf  ;;  %v307_v36 = vsel %vm229_vm1, %v202_v13, -inf  ;;  %v212_v38 = vld [vmem:[%s14017_s30 + $0x78] sm:$0xff]  ;;  %v249_v40 = vsel %vm229_vm1, %v207_v25, 0.0  ;;  %v251_v41 = vsel %vm229_vm1, %v208_v26, 0.0  ;;  %v213_v43 = vld [vmem:[%s14017_s30 + $0x80] sm:$0xff] }
  0x78   :  { %v236_v17 = vadd.f32 %v235_v12, %v234_v14  ;;  %v253_v42 = vsel %vm229_vm1, %v209_v27, 0.0  ;;  %v214_v44 = vld [vmem:[%s14017_s30 + $0x88] sm:$0xff]  ;;  %v10204_v45 = vld [vmem:[%s14017_s30 + $0x90] sm:$0xff]  ;;  %v255_v46 = vsel %vm229_vm1, %v210_v29, 0.0  ;;  %v303_v47 = vsel %vm229_vm1, %v199_v5, -inf  ;;  %v10212_v50 = vld [vmem:[%s14017_s30 + $0x98] sm:$0xff] }
  0x79   :  { %v304_v48 = vsel %vm229_vm1, %v200_v6, -inf  ;;  %v306_v49 = vmax.f32 %v301_v31, %v305_v32  ;;  %v308_v52 = vmax.f32 %v302_v35, %v307_v36  ;;  %v309_v53 = vsel %vm229_vm1, %v203_v16, -inf  ;;  %v217_v59 = vld [vmem:[%s14017_s30 + $0xa0] sm:$0xff]  ;;  %v218_v0 = vld [vmem:[%s14017_s30 + $0xa8] sm:$0xff]  ;;  %v10241_v1 = vld [vmem:[%s14017_s30 + $0xb0] sm:$0xff] }
  0x7a   :  { %v238_v20 = vadd.f32 %v237_v15, %v236_v17  ;;  %v311_v54 = vsel %vm229_vm1, %v204_v19, -inf  ;;  %v257_v55 = vsel %vm229_vm1, %v211_v37, 0.0  ;;  %v10218_v56 = vsel %vm229_vm1, %v212_v38, 0.0  ;;  %v10246_v2 = vld [vmem:[%s14017_s30 + $0xb8] sm:$0xff]  ;;  %v10256_v7 = vld [vmem:[%s14017_s30 + $0xc0] sm:$0xff]  ;;  %v10262_v12 = vld [vmem:[%s14017_s30 + $0xc8] sm:$0xff] }
  0x7b   :  { %v313_v57 = vsel %vm229_vm1, %v205_v22, -inf  ;;  %v315_v58 = vsel %vm229_vm1, %v206_v23, -inf  ;;  %v10226_v61 = vsel %vm229_vm1, %v213_v43, 0.0  ;;  %v10229_v62 = vsel %vm229_vm1, %v214_v44, 0.0  ;;  %v10267_v13 = vld [vmem:[%s14017_s30 + $0xd0] sm:$0xff]  ;;  %v10272_v14 = vld [vmem:[%s14017_s30 + $0xd8] sm:$0xff] }
  0x7c   :  { %v240_v24 = vadd.f32 %v239_v18, %v238_v20  ;;  %v10233_v63 = vsel %vm229_vm1, %v10204_v45, 0.0  ;;  %v10250_v3 = vsel %vm229_vm1, %v10212_v50, 0.0  ;;  %v310_v4 = vmax.f32 %v303_v47, %v309_v53  ;;  %v10282_v18 = vld [vmem:[%s14017_s30 + $0xe0] sm:$0xff]  ;;  %v10309_v32 = vld [vmem:[%s14017_s30 + $0x108] sm:$0xff] }
  0x7d   :  { %v312_v5 = vmax.f32 %v304_v48, %v311_v54  ;;  %v317_v6 = vsel %vm229_vm1, %v207_v25, -inf  ;;  %v314_v9 = vmax.f32 %v306_v49, %v313_v57  ;;  %v316_v10 = vmax.f32 %v308_v52, %v315_v58  ;;  %v10358_v54 = vld [vmem:[%s14017_s30 + $0x120] sm:$0xff] }
  0x7e   :  { %v242_v30 = vadd.f32 %v241_v21, %v240_v24  ;;  %v319_v11 = vsel %vm229_vm1, %v208_v26, -inf  ;;  %v10275_v15 = vsel %vm229_vm1, %v217_v59, 0.0  ;;  %v321_v16 = vsel %vm229_vm1, %v209_v27, -inf  ;;  %v10303_v27 = vld [vmem:[%s14017_s30 + $0x100] sm:$0xff] }
  0x7f   :  { %v323_v17 = vsel %vm229_vm1, %v210_v29, -inf  ;;  %v10285_v20 = vsel %vm229_vm1, %v218_v0, 0.0  ;;  %v10289_v21 = vsel %vm229_vm1, %v10241_v1, 0.0  ;;  %v10293_v22 = vsel %vm229_vm1, %v10246_v2, 0.0 }
  0x80   :  { %v244_v39 = vadd.f32 %v243_v28, %v242_v30  ;;  %v10297_v23 = vsel %vm229_vm1, %v10256_v7, 0.0  ;;  %v318_v24 = vmax.f32 %v310_v4, %v317_v6  ;;  %v320_v25 = vmax.f32 %v312_v5, %v319_v11  ;;  %v375_v6 = vld [vmem:[%s14017_s30 + $0x128] sm:$0xff] }
  0x81   :  { %v325_v26 = vsel %vm229_vm1, %v211_v37, -inf  ;;  %v322_v29 = vmax.f32 %v314_v9, %v321_v16  ;;  %v324_v30 = vmax.f32 %v316_v10, %v323_v17  ;;  %v327_v31 = vsel %vm229_vm1, %v212_v38, -inf  ;;  %v10325_v37 = vld [vmem:[%s14017_s30 + $0xe8] sm:$0xff]  ;;  %v10330_v38 = vld [vmem:[%s14017_s30 + $0xf0] sm:$0xff] }
  0x82   :  { %v246_v51 = vadd.f32 %v245_v33, %v244_v39  ;;  %v10314_v33 = vld [vmem:[%s14017_s30 + $0x110] sm:$0xff]  ;;  %v329_v35 = vsel %vm229_vm1, %v213_v43, -inf  ;;  %v331_v36 = vsel %vm229_vm1, %v214_v44, -inf  ;;  %v326_v43 = vmax.f32 %v318_v24, %v325_v26 }
  0x83   :  { %v328_v44 = vmax.f32 %v320_v25, %v327_v31  ;;  %v333_v47 = vsel %vm229_vm1, %v10204_v45, -inf  ;;  %v402_v48 = vsel %vm229_vm1, %v10303_v27, 0.0  ;;  %v332_v52 = vmax.f32 %v324_v30, %v331_v36  ;;  %v376_v24 = vld [vmem:[%s14017_s30 + $0x130] sm:$0xff] }
  0x84   :  { %v248_v60 = vadd.f32 %v247_v34, %v246_v51  ;;  %v10318_v34 = vsel %vm229_vm1, %v10262_v12, 0.0  ;;  %v330_v51 = vmax.f32 %v322_v29, %v329_v35  ;;  %v335_v53 = vsel %vm229_vm1, %v10212_v50, -inf  ;;  %v379_v29 = vld [vmem:[%s14017_s30 + $0x148] sm:$0xff] }
  0x85   :  { %v337_v45 = vsel %vm229_vm1, %v217_v59, -inf  ;;  %v339_v57 = vsel %vm229_vm1, %v218_v0, -inf  ;;  %v403_v58 = vsel %vm229_vm1, %v10309_v32, 0.0  ;;  %v10374_v5 = vsel %vm229_vm1, %v10325_v37, 0.0 }
  0x86   :  { %v250_v8 = vadd.f32 %v249_v40, %v248_v60  ;;  %v10334_v40 = vsel %vm229_vm1, %v10267_v13, 0.0  ;;  %v10369_v60 = vld [vmem:[%s14017_s30 + $0xf8] sm:$0xff]  ;;  %v404_v4 = vadd.f32 %v403_v58, %v402_v48  ;;  %v10378_v59 = vsel %vm229_vm1, %v10330_v38, 0.0 }
  0x87   :  { %v334_v0 = vmax.f32 %v326_v43, %v333_v47  ;;  %v338_v10 = vmax.f32 %v330_v51, %v337_v45  ;;  %v340_v16 = vmax.f32 %v332_v52, %v339_v57  ;;  %v341_v17 = vsel %vm229_vm1, %v10241_v1, -inf  ;;  %v377_v1 = vld [vmem:[%s14017_s30 + $0x138] sm:$0xff]  ;;  %v382_v43 = vld [vmem:[%s14017_s30 + $0x160] sm:$0xff]  ;;  %v383_v51 = vld [vmem:[%s14017_s30 + $0x168] sm:$0xff] }
  0x88   :  { %v252_v19 = vadd.f32 %v251_v41, %v250_v8  ;;  %v10338_v41 = vsel %vm229_vm1, %v10272_v14, 0.0  ;;  %v409_v25 = vsel %vm229_vm1, %v10358_v54, 0.0  ;;  %v411_v31 = vsel %vm229_vm1, %v375_v6, 0.0 }
  0x89   :  { %v342_v36 = vmax.f32 %v334_v0, %v341_v17  ;;  %v413_v52 = vsel %vm229_vm1, %v376_v24, 0.0  ;;  %v351_v45 = vsel %vm229_vm1, %v10272_v14, -inf  ;;  %v10442_v57 = vsel %vm229_vm1, %v10282_v18, -inf }
  0x8a   :  { %v254_v28 = vadd.f32 %v253_v42, %v252_v19  ;;  %v10342_v42 = vsel %vm229_vm1, %v10282_v18, 0.0  ;;  %v343_v19 = vsel %vm229_vm1, %v10246_v2, -inf  ;;  %v378_v2 = vld [vmem:[%s14017_s30 + $0x140] sm:$0xff]  ;;  %v415_v58 = vsel %vm229_vm1, %v377_v1, 0.0 }
  0x8b   :  { %v10454_v18 = vsel %vm229_vm1, %v383_v51, 0.0  ;;  %v474_v17 = vsel %vm229_vm1, %v10314_v33, -inf }
  0x8c   :  { %v256_v39 = vadd.f32 %v255_v46, %v254_v28  ;;  %v10349_v46 = vld [vmem:[%s14017_s30 + $0x118] sm:$0xff]  ;;  %v347_v28 = vsel %vm229_vm1, %v10262_v12, -inf }
  0x8d   :  { %v407_v8 = vsel %vm229_vm1, %v10349_v46, 0.0  ;;  %v381_v12 = vld [vmem:[%s14017_s30 + $0x158] sm:$0xff]  ;;  %v10426_v48 = vmax.f32 %v340_v16, %v347_v28 }
  0x8e   :  { %v258_v49 = vadd.f32 %v257_v55, %v256_v39  ;;  %v405_v55 = vsel %vm229_vm1, %v10314_v33, 0.0  ;;  %v423_v14 = vsel %vm229_vm1, %v381_v12, 0.0  ;;  %v482_v33 = vsel %vm229_vm1, %v377_v1, -inf  ;;  %v385_v1 = vld [vmem:[%s14017_s30 + $0x178] sm:$0xff] }
  0x8f   :  { %v406_v11 = vadd.f32 %v405_v55, %v404_v4  ;;  %v417_v55 = vsel %vm229_vm1, %v378_v2, 0.0 }
  0x90   :  { %v260_v50 = vadd.f32 %v10218_v56, %v258_v49  ;;  %v336_v56 = vmax.f32 %v328_v44, %v335_v53  ;;  %v349_v49 = vsel %vm229_vm1, %v10267_v13, -inf }
  0x91   :  { %v408_v30 = vadd.f32 %v407_v8, %v406_v11  ;;  %v10449_v8 = vmax.f32 %v342_v36, %v349_v49 }
  0x92   :  { %v262_v9 = vadd.f32 %v10226_v61, %v260_v50  ;;  %v345_v61 = vsel %vm229_vm1, %v10256_v7, -inf  ;;  %v380_v7 = vld [vmem:[%s14017_s30 + $0x150] sm:$0xff]  ;;  %v344_v39 = vmax.f32 %v336_v56, %v343_v19  ;;  %v419_v50 = vsel %vm229_vm1, %v379_v29, 0.0 }
  0x93   :  { %v410_v44 = vadd.f32 %v409_v25, %v408_v30  ;;  %v10424_v47 = vmax.f32 %v338_v10, %v345_v61  ;;  %v421_v4 = vsel %vm229_vm1, %v380_v7, 0.0  ;;  %v472_v10 = vsel %vm229_vm1, %v10303_v27, -inf }
  0x94   :  { %v264_v26 = vadd.f32 %v10229_v62, %v262_v9  ;;  %v10411_v62 = vsel %vm229_vm1, %v10369_v60, 0.0  ;;  %v425_v9 = vsel %vm229_vm1, %v382_v43, 0.0  ;;  %v475_v19 = vsel %vm229_vm1, %v10349_v46, -inf }
  0x95   :  { %v412_v13 = vadd.f32 %v411_v31, %v410_v44  ;;  %v476_v25 = vsel %vm229_vm1, %v10358_v54, -inf  ;;  %v480_v61 = vsel %vm229_vm1, %v376_v24, -inf  ;;  %v483_v54 = vmax.f32 %v475_v19, %v482_v33  ;;  %v10548_v33 = vld [vmem:[%s14017_s30 + $0x1d0] sm:$0xff] }
  0x96   :  { %v266_v35 = vadd.f32 %v10233_v63, %v264_v26  ;;  %v384_v63 = vld [vmem:[%s14017_s30 + $0x170] sm:$0xff]  ;;  %v478_v26 = vsel %vm229_vm1, %v375_v6, -inf  ;;  %v477_v30 = vmax.f32 %v472_v10, %v476_v25  ;;  %v481_v31 = vmax.f32 %v474_v17, %v480_v61 }
  0x97   :  { %v10457_v56 = vsel %vm229_vm1, %v384_v63, 0.0  ;;  %v486_v6 = vsel %vm229_vm1, %v379_v29, -inf  ;;  %v488_v24 = vsel %vm229_vm1, %v380_v7, -inf  ;;  %v388_v29 = vld [vmem:[%s14017_s30 + $0x190] sm:$0xff] }
  0x98   :  { %v268_v53 = vadd.f32 %v10250_v3, %v266_v35  ;;  %v414_v3 = vadd.f32 %v413_v52, %v412_v13  ;;  %v484_v35 = vsel %vm229_vm1, %v378_v2, -inf  ;;  %v387_v2 = vld [vmem:[%s14017_s30 + $0x188] sm:$0xff] }
  0x99   :  { %v485_v44 = vmax.f32 %v477_v30, %v484_v35 }
  0x9a   :  { %v270_v0 = vadd.f32 %v10275_v15, %v268_v53  ;;  %v416_v16 = vadd.f32 %v415_v58, %v414_v3  ;;  %v473_v15 = vsel %vm229_vm1, %v10309_v32, -inf  ;;  %v494_v53 = vsel %vm229_vm1, %v383_v51, -inf  ;;  %v10501_v58 = vld [vmem:[%s14017_s30 + $0x198] sm:$0xff] }
  0x9b   :  { %v479_v32 = vmax.f32 %v473_v15, %v478_v26  ;;  %v498_v3 = vsel %vm229_vm1, %v385_v1, -inf  ;;  %v506_v26 = vsel %vm229_vm1, %v10501_v58, -inf }
  0x9c   :  { %v272_v11 = vadd.f32 %v10285_v20, %v270_v0  ;;  %v10473_v20 = vmax.f32 %v344_v39, %v351_v45  ;;  %v418_v28 = vadd.f32 %v417_v55, %v416_v16  ;;  %v492_v39 = vsel %vm229_vm1, %v382_v43, -inf  ;;  %v10506_v55 = vld [vmem:[%s14017_s30 + $0x1a0] sm:$0xff]  ;;  %v10526_v16 = vld [vmem:[%s14017_s30 + $0x1b8] sm:$0xff] }
  0x9d   :  { %v489_v43 = vmax.f32 %v481_v31, %v488_v24  ;;  %v493_v52 = vmax.f32 %v485_v44, %v492_v39  ;;  %v496_v45 = vsel %vm229_vm1, %v384_v63, -inf  ;;  %v502_v63 = vsel %vm229_vm1, %v387_v2, -inf }
  0x9e   :  { %v274_v27 = vadd.f32 %v10289_v21, %v272_v11  ;;  %v420_v36 = vadd.f32 %v419_v50, %v418_v28  ;;  %v490_v21 = vsel %vm229_vm1, %v381_v12, -inf  ;;  %v487_v12 = vmax.f32 %v479_v32, %v486_v6  ;;  %v10516_v11 = vld [vmem:[%s14017_s30 + $0x1a8] sm:$0xff]  ;;  %v10536_v28 = vld [vmem:[%s14017_s30 + $0x1c0] sm:$0xff] }
  0x9f   :  { %v497_v0 = vmax.f32 %v489_v43, %v496_v45  ;;  %v508_v61 = vsel %vm229_vm1, %v10506_v55, -inf  ;;  %v431_v32 = vsel %vm229_vm1, %v385_v1, 0.0  ;;  %v510_v35 = vsel %vm229_vm1, %v10516_v11, -inf }
  0xa0   :  { %v276_v46 = vadd.f32 %v10293_v22, %v274_v27  ;;  %v386_v22 = vld [vmem:[%s14017_s30 + $0x180] sm:$0xff]  ;;  %v422_v7 = vadd.f32 %v421_v4, %v420_v36  ;;  %v495_v4 = vmax.f32 %v487_v12, %v494_v53  ;;  %v514_v36 = vsel %vm229_vm1, %v10526_v16, -inf }
  0xa1   :  { %v500_v51 = vsel %vm229_vm1, %v386_v22, -inf  ;;  %v516_v1 = vsel %vm229_vm1, %v10536_v28, -inf  ;;  %v520_v43 = vsel %vm229_vm1, %v10548_v33, -inf  ;;  %v435_v53 = vsel %vm229_vm1, %v387_v2, 0.0 }
  0xa2   :  { %v278_v49 = vadd.f32 %v10297_v23, %v276_v46  ;;  %v491_v23 = vmax.f32 %v483_v54, %v490_v21  ;;  %v424_v50 = vadd.f32 %v423_v14, %v422_v7  ;;  %v10521_v14 = vld [vmem:[%s14017_s30 + $0x1b0] sm:$0xff]  ;;  %v501_v19 = vmax.f32 %v493_v52, %v500_v51  ;;  %v10561_v54 = vld [vmem:[%s14017_s30 + $0x1d8] sm:$0xff]  ;;  %v398_v7 = vld [vmem:[%s14017_s30 + $0x1e0] sm:$0xff] }
  0xa3   :  { %v503_v25 = vmax.f32 %v495_v4, %v502_v63  ;;  %v512_v46 = vsel %vm229_vm1, %v10521_v14, -inf  ;;  %v10567_v21 = vld [vmem:[%s14017_s30 + $0x1f8] sm:$0xff]  ;;  %v359_v52 = vsel %vm229_vm1, %v10369_v60, -inf  ;;  %v522_v45 = vsel %vm229_vm1, %v10561_v54, -inf }
  0xa4   :  { %v280_v13 = vadd.f32 %v10318_v34, %v278_v49  ;;  %v504_v34 = vsel %vm229_vm1, %v388_v29, -inf  ;;  %v426_v15 = vadd.f32 %v425_v9, %v424_v50  ;;  %v499_v17 = vmax.f32 %v491_v23, %v498_v3  ;;  %v10541_v9 = vld [vmem:[%s14017_s30 + $0x1c8] sm:$0xff] }
  0xa5   :  { %v509_v6 = vmax.f32 %v501_v19, %v508_v61  ;;  %v511_v24 = vmax.f32 %v503_v25, %v510_v35  ;;  %v357_v23 = vsel %vm229_vm1, %v10330_v38, -inf  ;;  %v437_v50 = vsel %vm229_vm1, %v388_v29, 0.0 }
  0xa6   :  { %v282_v10 = vadd.f32 %v10334_v40, %v280_v13  ;;  %v505_v40 = vmax.f32 %v497_v0, %v504_v34  ;;  %v428_v30 = vadd.f32 %v10454_v18, %v426_v15  ;;  %v507_v31 = vmax.f32 %v499_v17, %v506_v26 }
  0xa7   :  { %v517_v38 = vmax.f32 %v509_v6, %v516_v1  ;;  %v524_v51 = vsel %vm229_vm1, %v398_v7, -inf  ;;  %v530_v2 = vsel %vm229_vm1, %v10567_v21, -inf  ;;  %v354_v15 = vmax.f32 %v10424_v47, %v10442_v57 }
  0xa8   :  { %v284_v27 = vadd.f32 %v10338_v41, %v282_v10  ;;  %v433_v41 = vsel %vm229_vm1, %v386_v22, 0.0  ;;  %v430_v44 = vadd.f32 %v10457_v56, %v428_v30  ;;  %v513_v39 = vmax.f32 %v505_v40, %v512_v46 }
  0xa9   :  { %v515_v49 = vmax.f32 %v507_v31, %v514_v36  ;;  %v355_v56 = vsel %vm229_vm1, %v10325_v37, -inf  ;;  %v400_v37 = vld [vmem:[%s14017_s30 + $0x1f0] sm:$0xff]  ;;  %v358_v17 = vmax.f32 %v10449_v8, %v357_v23  ;;  %v360_v19 = vmax.f32 %v10473_v20, %v359_v52 }
  0xaa   :  { %v286_v18 = vadd.f32 %v10342_v42, %v284_v27  ;;  %v518_v42 = vsel %vm229_vm1, %v10541_v9, -inf  ;;  %v432_v12 = vadd.f32 %v431_v32, %v430_v44  ;;  %v521_v0 = vmax.f32 %v513_v39, %v520_v43 }
  0xab   :  { %v519_v4 = vmax.f32 %v511_v24, %v518_v42  ;;  %v523_v3 = vmax.f32 %v515_v49, %v522_v45  ;;  %v528_v10 = vsel %vm229_vm1, %v400_v37, -inf  ;;  %v356_v29 = vmax.f32 %v10426_v48, %v355_v56 }
  0xac   :  { %v288_v22 = vadd.f32 %v10374_v5, %v286_v18  ;;  %v399_v5 = vld [vmem:[%s14017_s30 + $0x1e8] sm:$0xff]  ;;  %v434_v13 = vadd.f32 %v433_v41, %v432_v12  ;;  %v441_v40 = vsel %vm229_vm1, %v10506_v55, 0.0  ;;  %v525_v26 = vmax.f32 %v517_v38, %v524_v51 }
  0xad   :  { %v526_v34 = vsel %vm229_vm1, %v399_v5, -inf  ;;  %v529_v30 = vmax.f32 %v521_v0, %v528_v10  ;;  %v531_v32 = vmax.f32 %v523_v3, %v530_v2  ;;  %v443_v48 = vsel %vm229_vm1, %v10516_v11, 0.0 }
  0xae   :  { %v290_v60 = vadd.f32 %v10378_v59, %v288_v22  ;;  %v436_v63 = vadd.f32 %v435_v53, %v434_v13  ;;  %v439_v59 = vsel %vm229_vm1, %v10501_v58, 0.0  ;;  %v527_v27 = vmax.f32 %v519_v4, %v526_v34 }
  0xaf   :  { %v361_v57 = vmax.f32 %v354_v15, %v356_v29  ;;  %v362_v8 = vmax.f32 %v358_v17, %v360_v19  ;;  %v445_v20 = vsel %vm229_vm1, %v10521_v14, 0.0  ;;  %v533_v35 = vmax.f32 %v529_v30, %v531_v32 }
  0xb0   :  { %v438_v25 = vadd.f32 %v437_v50, %v436_v63  ;;  %v292_v61 = vadd.f32 %v10411_v62, %v290_v60  ;;  %v532_v41 = vmax.f32 %v525_v26, %v527_v27  ;;  %v447_v62 = vsel %vm229_vm1, %v10526_v16, 0.0 }
  0xb1   :  { %v363_v46 = vmax.f32 %v361_v57, %v362_v8  ;;  %v449_v44 = vsel %vm229_vm1, %v10536_v28, 0.0  ;;  %v451_v24 = vsel %vm229_vm1, %v10541_v9, 0.0  ;;  %v453_v1 = vsel %vm229_vm1, %v10548_v33, 0.0 }
  0xb2   :  { %v440_v47 = vadd.f32 %v439_v59, %v438_v25  ;;  %v293_v58 = vrot.slane %v292_v61, 4  ;;  %v534_v11 = vmax.f32 %v532_v41, %v533_v35  ;;  %v455_v16 = vsel %vm229_vm1, %v10561_v54, 0.0  ;;  %v8849_v41 = vld [vmem:[#allocation5 + $0x28] ss:$16 sps:$4 sm:$0xff]   ;;  %v8854_v35 = vld [vmem:[#allocation5 + $0x4] ss:$16 sps:$4 sm:$0xff]  }
  0xb3   :  { %v364_v39 = vrot.slane %v363_v46, 4  ;;  %v457_v28 = vsel %vm229_vm1, %v398_v7, 0.0  ;;  %v459_v9 = vsel %vm229_vm1, %v399_v5, 0.0  ;;  %v461_v13 = vsel %vm229_vm1, %v400_v37, 0.0 }
  0xb4   :  { %v442_v31 = vadd.f32 %v441_v40, %v440_v47  ;;  %v294_v18 = vadd.f32 %v293_v58, %v292_v61  ;;  %v535_v42 = vrot.slane %v534_v11, 4  ;;  %v463_v33 = vsel %vm229_vm1, %v10567_v21, 0.0  ;;  %v608_v61 = vld [vmem:[%s14018_s9] sm:$0x1]  ;;  %v8851_v58 = vld [vmem:[#allocation5 + $0x2c] ss:$16 sps:$4 sm:$0xff]  }
  0xb5   :  { %v365_v56 = vmax.f32 %v363_v46, %v364_v39  ;;  %v615_v27 = vsel %vm541_vm2, %v608_v61, 0  ;;  %772 = vmatprep.subr.bf16.mxu0 %v8851_v58  ;;  %v8855_v46 = vld [vmem:[#allocation5 + $0x8] ss:$16 sps:$4 sm:$0xff]   ;;  %s9964_s9 = smov 96  }
  0xb6   :  { %v444_v55 = vadd.f32 %v443_v48, %v442_v31  ;;  %v295_v14 = vrot.slane %v294_v18, 2  ;;  %v536_v23 = vmax.f32 %v534_v11, %v535_v42  ;;  %8606 = vmatpush3.bf16.msra.mxu1 %v615_v27  ;;  %v8848_v31 = vld [vmem:[#allocation5 + $0x24] ss:$16 sps:$4 sm:$0xff]   ;;  %v801_v42 = vlaneseq  ;;  %v9698_v61 = vld [vmem:[%s14017_s30 + $0x1e8] sm:$0xff] }
  0xb7   :  { %v366_v53 = vrot.slane %v365_v56, 2  ;;  %731 = vmatprep.subr.bf16.mxu1 %v8848_v31  ;;  %v9701_v31 = vld [vmem:[%s14017_s30 + $0x60] sm:$0xff] }
  0xb8   :  { %v446_v36 = vadd.f32 %v445_v20, %v444_v55  ;;  %v296_v43 = vadd.f32 %v295_v14, %v294_v18  ;;  %v537_v38 = vrot.slane %v536_v23, 2  ;;  %v8846_v20 = vld [vmem:[#allocation5 + $0x20] ss:$16 sps:$4 sm:$0xff]   ;;  %v8857_v55 = vld [vmem:[#allocation5 + $0xc] ss:$16 sps:$4 sm:$0xff]  }
  0xb9   :  { %v367_v51 = vmax.f32 %v365_v56, %v366_v53  ;;  %v9689_v53 = vld [vmem:[%s14017_s30 + $0xf0] sm:$0xff] }
  0xba   :  { %v448_v6 = vadd.f32 %v447_v62, %v446_v36  ;;  %v297_v50 = vrot.slane %v296_v43, 1  ;;  %v538_v63 = vmax.f32 %v536_v23, %v537_v38  ;;  %v8852_v62 = vld [vmem:[#allocation5] ss:$16 sps:$4 sm:$0xff]   ;;  %v13934_v36 = vmov 0  }
  0xbb   :  { %v368_v5 = vrot.slane %v367_v51, 1  ;;  %8633 = vset.pattern.permute.xlu1 %v13934_v36  ;;  %8632 = vset.pattern.permute.xlu0 %v13934_v36 }
  0xbc   :  { %v450_v49 = vadd.f32 %v449_v44, %v448_v6  ;;  %v298_v34 = vadd.f32 %v297_v50, %v296_v43  ;;  %v539_v15 = vrot.slane %v538_v63, 1  ;;  %v9690_v50 = vld [vmem:[%s14017_s30 + $0x1f8] sm:$0xff] }
  0xbd   :  { %v369_v17 = vmax.f32 %v367_v51, %v368_v5  ;;  %v9694_v5 = vld [vmem:[%s14017_s30 + $0x178] sm:$0xff] }
  0xbe   :  { %v452_v22 = vadd.f32 %v451_v24, %v450_v49  ;;  %v300_v29 = vmul.f32 0.00390625, %v298_v34  ;;  %v540_v59 = vmax.f32 %v538_v63, %v539_v15  ;;  %v9695_v15 = vld [vmem:[%s14017_s30 + $0x170] sm:$0xff] }
  0xc0   :  { %v454_v12 = vadd.f32 %v453_v1, %v452_v22  ;;  %v802_v22 = vshrl.u32 %v801_v42, 7 }
  0xc2   :  { %v456_v52 = vadd.f32 %v455_v16, %v454_v12  ;;  %v10642_v16 = vsub.s32 0, %v802_v22  ;;  %v10644_v56 = vsub.s32 1, %v802_v22  ;;  %v9707_v22 = vld [vmem:[%s14017_s30 + $0x1d0] sm:$0xff] }
  0xc4   :  { %v458_v45 = vadd.f32 %v457_v28, %v456_v52  ;;  %14019 = vst [vmem:[#allocation23_spill] sm:$0xff] %v10642_v16  ;;  %14020 = vst [vmem:[#allocation24_spill] sm:$0xff] %v10644_v56  ;;  %v9688_v52 = vld [vmem:[%s14017_s30 + $0x1f0] sm:$0xff] }
  0xc6   :  { %v460_v4 = vadd.f32 %v459_v9, %v458_v45 }
  0xc8   :  { %v462_v54 = vadd.f32 %v461_v13, %v460_v4  ;;  %v9691_v4 = vld [vmem:[%s14017_s30 + $0xf8] sm:$0xff] }
  0xca   :  { %v464_v60 = vadd.f32 %v463_v33, %v462_v54 }
  0xcc   :  { %v465_v0 = vrot.slane %v464_v60, 4 }
  0xce   :  { %v466_v3 = vadd.f32 %v465_v0, %v464_v60 }
  0xd0   :  { %v467_v7 = vrot.slane %v466_v3, 2 }
  0xd2   :  { %v468_v10 = vadd.f32 %v467_v7, %v466_v3  ;;  %v9692_v3 = vld [vmem:[%s14017_s30 + $0x78] sm:$0xff]  ;;  %v9693_v7 = vld [vmem:[%s14017_s30 + $0x70] sm:$0xff] }
  0xd4   :  { %v469_v2 = vrot.slane %v468_v10, 1 }
  0xd6   :  { %v470_v37 = vadd.f32 %v469_v2, %v468_v10 }
  0xd8   :  { %v471_v21 = vmul.f32 0.00390625, %v470_v37 }
  0xda   :  { %v542_v19 = vsel %vm541_vm2, %v300_v29, %v471_v21  ;;  %v9696_v21 = vld [vmem:[%s14017_s30 + $0xe8] sm:$0xff] }
  0xdb   :  { %v544_v25 = vsel %vm543_vm3, %v542_v19, %v369_v17  ;;  %v9697_v19 = vld [vmem:[%s14017_s30 + $0xe0] sm:$0xff] }
  0xdc   :  { %v546_v40 = vsel %vm545_vm4, %v544_v25, %v540_v59 }
  0xdd   :  { %v551_v26 = vpack.c.bf16 %v546_v40, %v546_v40 }
  0xdf   :  { %8602 = vmatmul.mubr.msk.bf16.vlgmr.msra.gmra.mxu0 %vm229_vm1, %v551_v26 }
  0xe0   :  { %773 = vmatpush1.bf16.msra.mxu0 %v8849_v41  ;;  %792 = vmatprep.mubr.bf16.mxu0 %v13934_v36 }
  0xe1   :  { %774 = vmatprep.subr.bf16.mxu0 %v8857_v55 }
  0xe4   :  { %775 = vmatpush1.bf16.msra.mxu0 %v8855_v46 }
 0x19f   :  { %v601_v30 = vpop.f32.mrf.mxu0 }
 0x1a0   :  { %v607_v32 = vmax.f32 %v601_v30, 0.0  ;;  %v9699_v30 = vld [vmem:[%s14017_s30 + $0x1e0] sm:$0xff] }
 0x1a1   :  { %v8603_v47 = vpop.f32.mrf.mxu0 }
 0x1a2   :  { %v609_v48 = vpack.c.bf16 %v607_v32, %v607_v32 }
 0x1a3   :  { %v604_v57 = vpop.f32.mrf.mxu0 }
 0x1a4   :  { %8608 = vmatmul.mubr.msk.bf16.vlgmr.msra.gmra.mxu1 %vm610_vm5, %v609_v48  ;;  %v9700_v57 = vld [vmem:[%s14017_s30 + $0x68] sm:$0xff] }
 0x1a5   :  { %v8604_v8 = vpop.f32.mrf.mxu0  ;;  %732 = vmatpush1.bf16.msra.mxu1 %v8846_v20  ;;  %751 = vmatprep.mubr.bf16.mxu1 %v13934_v36 }
 0x1a6   :  { %733 = vmatprep.subr.bf16.mxu1 %v8854_v35  ;;  %v9702_v35 = vld [vmem:[%s14017_s30 + $0x168] sm:$0xff] }
 0x1a9   :  { %734 = vmatpush1.bf16.msra.mxu1 %v8852_v62  ;;  %v9703_v62 = vld [vmem:[%s14017_s30 + $0x160] sm:$0xff] }
 0x264   :  { %v651_v18 = vpop.f32.mrf.mxu1 }
 0x265   :  { %v658_v44 = vrot.slane %v651_v18, 2 }
 0x266   :  { %v8609_v11 = vpop.f32.mrf.mxu1 }
 0x267   :  { %v660_v6 = vadd.f32 %v658_v44, %v651_v18  ;;  %v9704_v11 = vld [vmem:[%s14017_s30 + $0xd8] sm:$0xff] }
 0x268   :  { %v654_v24 = vpop.f32.mrf.mxu1 }
 0x269   :  { %v7824_v39 = vmul.f32 -1.442695, %v660_v6  ;;  %v9705_v24 = vld [vmem:[%s14017_s30 + $0xd0] sm:$0xff] }
 0x26a   :  { %v8610_v49 = vpop.f32.mrf.mxu1 }
 0x26b   :  { %9652 = vpow2.f32 %v7824_v39 }
 0x278   :  { %v9653_v14 = vpop.eup %9652 }
 0x279   :  { %v664_v1 = vadd.f32 1.0, %v9653_v14 }
 0x27b   :  { %9654 = vrcp.f32 %v664_v1  ;;  %v9706_v1 = vld [vmem:[%s14017_s30 + $0x1d8] sm:$0xff] }
 0x288   :  { %v9655_v12 = vpop.eup %9654 }
 0x289   :  { %v10647_v43 = vrot.slane %v9655_v12, %v10642_v16  ;;  %v10650_v28 = vrot.slane %v9655_v12, %v10644_v56  ;;  %v675_v23 = vpack.c.bf16 %v9655_v12, %v9655_v12 }
 0x28b   :  { %7833 = vmatmul.mubr.msk.bf16.vlgmr.msra.gmra.mxu1 %vm229_vm1, %v675_v23  ;;  %7834 = vmatmul.mubr.msk.bf16.vlgmr.msra.gmra.mxu0 %vm229_vm1, %v675_v23  ;;  %v10658_v9 = vmul.f32 %v9688_v52, %v10650_v28  ;;  %v10664_v45 = vmul.f32 %v9689_v53, %v10647_v43  ;;  %v10674_v38 = vmul.f32 %v9690_v50, %v10650_v28  ;;  %v9708_v53 = vld [vmem:[%s14017_s30 + $0x58] sm:$0xff] }
 0x28c   :  { %v10680_v54 = vmul.f32 %v9691_v4, %v10647_v43  ;;  %v10690_v51 = vmul.f32 %v9692_v3, %v10647_v43  ;;  %v10696_v63 = vmul.f32 %v9693_v7, %v10647_v43  ;;  %v10706_v2 = vmul.f32 %v9694_v5, %v10650_v28  ;;  %v9711_v7 = vld [vmem:[%s14017_s30 + $0x150] sm:$0xff] }
 0x28d   :  { %v1364_v13 = vsel %vm229_vm1, %v10658_v9, -inf  ;;  %v1104_v33 = vsel %vm229_vm1, %v10664_v45, -inf  ;;  %v1367_v60 = vsel %vm229_vm1, %v10674_v38, -inf  ;;  %v10712_v29 = vmul.f32 %v9695_v15, %v10650_v28  ;;  %v9712_v15 = vld [vmem:[%s14017_s30 + $0xc8] sm:$0xff] }
 0x28e   :  { %1365 = vmax.xlane.f32.xlu1 %v1364_v13  ;;  %1105 = vmax.xlane.f32.xlu0 %v1104_v33  ;;  %v1107_v0 = vsel %vm229_vm1, %v10680_v54, -inf  ;;  %v1059_v34 = vsel %vm229_vm1, %v10690_v51, -inf  ;;  %v1056_v10 = vsel %vm229_vm1, %v10696_v63, -inf  ;;  %v1319_v37 = vsel %vm229_vm1, %v10706_v2, -inf  ;;  %v9709_v33 = vld [vmem:[%s14017_s30 + $0x50] sm:$0xff] }
 0x28f   :  { %v1316_v17 = vsel %vm229_vm1, %v10712_v29, -inf  ;;  %v10722_v59 = vmul.f32 %v9696_v21, %v10647_v43  ;;  %v10728_v25 = vmul.f32 %v9697_v19, %v10647_v43  ;;  %v10738_v27 = vmul.f32 %v9698_v61, %v10650_v28 }
 0x290   :  { %v10744_v32 = vmul.f32 %v9699_v30, %v10650_v28  ;;  %v10754_v8 = vmul.f32 %v9700_v57, %v10647_v43  ;;  %v10760_v58 = vmul.f32 %v9701_v31, %v10647_v43  ;;  %v10770_v55 = vmul.f32 %v9702_v35, %v10650_v28  ;;  %v9715_v30 = vld [vmem:[%s14017_s30 + $0x1c0] sm:$0xff]  ;;  %v9716_v31 = vld [vmem:[%s14017_s30 + $0x48] sm:$0xff] }
 0x291   :  { %v1101_v40 = vsel %vm229_vm1, %v10722_v59, -inf  ;;  %v1098_v26 = vsel %vm229_vm1, %v10728_v25, -inf  ;;  %v1361_v47 = vsel %vm229_vm1, %v10738_v27, -inf  ;;  %v10776_v46 = vmul.f32 %v9703_v62, %v10650_v28 }
 0x292   :  { %1368 = vmax.xlane.f32.xlu1 %v1367_v60  ;;  %1108 = vmax.xlane.f32.xlu0 %v1107_v0  ;;  %v1358_v48 = vsel %vm229_vm1, %v10744_v32, -inf  ;;  %v1053_v20 = vsel %vm229_vm1, %v10754_v8, -inf  ;;  %v1050_v41 = vsel %vm229_vm1, %v10760_v58, -inf  ;;  %v1313_v18 = vsel %vm229_vm1, %v10770_v55, -inf  ;;  %v9710_v0 = vld [vmem:[%s14017_s30 + $0x158] sm:$0xff] }
 0x293   :  { %v1310_v44 = vsel %vm229_vm1, %v10776_v46, -inf  ;;  %v10786_v6 = vmul.f32 %v9704_v11, %v10647_v43  ;;  %v10792_v39 = vmul.f32 %v9705_v24, %v10647_v43  ;;  %v10802_v42 = vmul.f32 %v9706_v1, %v10650_v28  ;;  %v9719_v24 = vld [vmem:[%s14017_s30 + $0x140] sm:$0xff] }
 0x294   :  { %v10808_v12 = vmul.f32 %v9707_v22, %v10650_v28  ;;  %v10818_v13 = vmul.f32 %v9708_v53, %v10647_v43  ;;  %v10824_v50 = vmul.f32 %v9709_v33, %v10647_v43  ;;  %v10834_v3 = vmul.f32 %v9710_v0, %v10650_v28  ;;  %v9720_v22 = vld [vmem:[%s14017_s30 + $0xb8] sm:$0xff] }
 0x295   :  { %v1095_v49 = vsel %vm229_vm1, %v10786_v6, -inf  ;;  %v1092_v14 = vsel %vm229_vm1, %v10792_v39, -inf  ;;  %v1355_v23 = vsel %vm229_vm1, %v10802_v42, -inf }
 0x296   :  { %1060 = vmax.xlane.f32.xlu1 %v1059_v34  ;;  %1057 = vmax.xlane.f32.xlu0 %v1056_v10  ;;  %v1352_v52 = vsel %vm229_vm1, %v10808_v12, -inf  ;;  %v1047_v4 = vsel %vm229_vm1, %v10818_v13, -inf  ;;  %v1044_v60 = vsel %vm229_vm1, %v10824_v50, -inf  ;;  %v10840_v34 = vmul.f32 %v9711_v7, %v10650_v28  ;;  %v9723_v7 = vld [vmem:[%s14017_s30 + $0x1b0] sm:$0xff] }
 0x297   :  { %v1307_v10 = vsel %vm229_vm1, %v10834_v3, -inf }
 0x298   :  { %v1304_v5 = vsel %vm229_vm1, %v10840_v34, -inf }
 0x29a   :  { %1320 = vmax.xlane.f32.xlu1 %v1319_v37  ;;  %1317 = vmax.xlane.f32.xlu0 %v1316_v17  ;;  %v10850_v37 = vmul.f32 %v9712_v15, %v10647_v43  ;;  %v9713_v17 = vld [vmem:[%s14017_s30 + $0xc0] sm:$0xff] }
 0x29b   :  { %v10856_v21 = vmul.f32 %v9713_v17, %v10647_v43  ;;  %v9724_v17 = vld [vmem:[%s14017_s30 + $0x38] sm:$0xff] }
 0x29c   :  { %v1089_v19 = vsel %vm229_vm1, %v10850_v37, -inf }
 0x29e   :  { %1102 = vmax.xlane.f32.xlu1 %v1101_v40  ;;  %1099 = vmax.xlane.f32.xlu0 %v1098_v26  ;;  %v1086_v40 = vsel %vm229_vm1, %v10856_v21, -inf  ;;  %v9714_v26 = vld [vmem:[%s14017_s30 + $0x1c8] sm:$0xff] }
 0x29f   :  { %v10866_v61 = vmul.f32 %v9714_v26, %v10650_v28 }
 0x2a2   :  { %1362 = vmax.xlane.f32.xlu1 %v1361_v47  ;;  %1359 = vmax.xlane.f32.xlu0 %v1358_v48  ;;  %v10872_v47 = vmul.f32 %v9715_v30, %v10650_v28  ;;  %v1349_v48 = vsel %vm229_vm1, %v10866_v61, -inf }
 0x2a4   :  { %v1346_v57 = vsel %vm229_vm1, %v10872_v47, -inf }
 0x2a6   :  { %1054 = vmax.xlane.f32.xlu1 %v1053_v20  ;;  %1051 = vmax.xlane.f32.xlu0 %v1050_v41  ;;  %v10882_v20 = vmul.f32 %v9716_v31, %v10647_v43  ;;  %v9717_v41 = vld [vmem:[%s14017_s30 + $0x40] sm:$0xff] }
 0x2a7   :  { %v10888_v35 = vmul.f32 %v9717_v41, %v10647_v43  ;;  %v9727_v41 = vld [vmem:[%s14017_s30 + $0x130] sm:$0xff] }
 0x2a8   :  { %v1041_v62 = vsel %vm229_vm1, %v10882_v20, -inf }
 0x2aa   :  { %1314 = vmax.xlane.f32.xlu1 %v1313_v18  ;;  %1311 = vmax.xlane.f32.xlu0 %v1310_v44  ;;  %v1038_v18 = vsel %vm229_vm1, %v10888_v35, -inf  ;;  %v9718_v44 = vld [vmem:[%s14017_s30 + $0x148] sm:$0xff] }
 0x2ab   :  { %v10898_v11 = vmul.f32 %v9718_v44, %v10650_v28 }
 0x2ae   :  { %1096 = vmax.xlane.f32.xlu1 %v1095_v49  ;;  %1093 = vmax.xlane.f32.xlu0 %v1092_v14  ;;  %v10904_v49 = vmul.f32 %v9719_v24, %v10650_v28  ;;  %v1301_v14 = vsel %vm229_vm1, %v10898_v11, -inf  ;;  %v9728_v24 = vld [vmem:[%s14017_s30 + $0xa8] sm:$0xff] }
 0x2b0   :  { %v1298_v1 = vsel %vm229_vm1, %v10904_v49, -inf }
 0x2b2   :  { %1356 = vmax.xlane.f32.xlu1 %v1355_v23  ;;  %1353 = vmax.xlane.f32.xlu0 %v1352_v52  ;;  %v10914_v23 = vmul.f32 %v9720_v22, %v10647_v43  ;;  %v9721_v52 = vld [vmem:[%s14017_s30 + $0xb0] sm:$0xff] }
 0x2b3   :  { %v10920_v53 = vmul.f32 %v9721_v52, %v10647_v43 }
 0x2b4   :  { %v1083_v33 = vsel %vm229_vm1, %v10914_v23, -inf }
 0x2b6   :  { %1048 = vmax.xlane.f32.xlu1 %v1047_v4  ;;  %1045 = vmax.xlane.f32.xlu0 %v1044_v60  ;;  %v1080_v4 = vsel %vm229_vm1, %v10920_v53, -inf  ;;  %v9722_v60 = vld [vmem:[%s14017_s30 + $0x1b8] sm:$0xff] }
 0x2b7   :  { %v10930_v0 = vmul.f32 %v9722_v60, %v10650_v28 }
 0x2ba   :  { %1308 = vmax.xlane.f32.xlu1 %v1307_v10  ;;  %1305 = vmax.xlane.f32.xlu0 %v1304_v5  ;;  %v10936_v10 = vmul.f32 %v9723_v7, %v10650_v28  ;;  %v1343_v5 = vsel %vm229_vm1, %v10930_v0, -inf  ;;  %v9731_v7 = vld [vmem:[%s14017_s30 + $0x1a0] sm:$0xff] }
 0x2bc   :  { %v1340_v15 = vsel %vm229_vm1, %v10936_v10, -inf }
 0x2be   :  { %1090 = vmax.xlane.f32.xlu1 %v1089_v19  ;;  %1087 = vmax.xlane.f32.xlu0 %v1086_v40  ;;  %v10946_v19 = vmul.f32 %v9724_v17, %v10647_v43  ;;  %v9725_v40 = vld [vmem:[%s14017_s30 + $0x30] sm:$0xff] }
 0x2bf   :  { %v10952_v26 = vmul.f32 %v9725_v40, %v10647_v43  ;;  %v9732_v40 = vld [vmem:[%s14017_s30 + $0x28] sm:$0xff] }
 0x2c0   :  { %v1035_v30 = vsel %vm229_vm1, %v10946_v19, -inf }
 0x2c2   :  { %1350 = vmax.xlane.f32.xlu1 %v1349_v48  ;;  %1347 = vmax.xlane.f32.xlu0 %v1346_v57  ;;  %v1032_v48 = vsel %vm229_vm1, %v10952_v26, -inf  ;;  %v9726_v57 = vld [vmem:[%s14017_s30 + $0x138] sm:$0xff] }
 0x2c3   :  { %v10962_v31 = vmul.f32 %v9726_v57, %v10650_v28 }
 0x2c6   :  { %1042 = vmax.xlane.f32.xlu1 %v1041_v62  ;;  %1039 = vmax.xlane.f32.xlu0 %v1038_v18  ;;  %v10968_v62 = vmul.f32 %v9727_v41, %v10650_v28  ;;  %v1295_v18 = vsel %vm229_vm1, %v10962_v31, -inf }
 0x2c8   :  { %v1292_v44 = vsel %vm229_vm1, %v10968_v62, -inf }
 0x2ca   :  { %1302 = vmax.xlane.f32.xlu1 %v1301_v14  ;;  %1299 = vmax.xlane.f32.xlu0 %v1298_v1  ;;  %v10978_v14 = vmul.f32 %v9728_v24, %v10647_v43  ;;  %v9729_v1 = vld [vmem:[%s14017_s30 + $0xa0] sm:$0xff] }
 0x2cb   :  { %v10984_v22 = vmul.f32 %v9729_v1, %v10647_v43  ;;  %v9735_v1 = vld [vmem:[%s14017_s30 + $0x120] sm:$0xff] }
 0x2cc   :  { %v1077_v52 = vsel %vm229_vm1, %v10978_v14, -inf }
 0x2ce   :  { %1084 = vmax.xlane.f32.xlu1 %v1083_v33  ;;  %1081 = vmax.xlane.f32.xlu0 %v1080_v4  ;;  %v1074_v33 = vsel %vm229_vm1, %v10984_v22, -inf  ;;  %v9730_v4 = vld [vmem:[%s14017_s30 + $0x1a8] sm:$0xff] }
 0x2cf   :  { %v10994_v60 = vmul.f32 %v9730_v4, %v10650_v28 }
 0x2d2   :  { %1344 = vmax.xlane.f32.xlu1 %v1343_v5  ;;  %1341 = vmax.xlane.f32.xlu0 %v1340_v15  ;;  %v11000_v5 = vmul.f32 %v9731_v7, %v10650_v28  ;;  %v1337_v15 = vsel %vm229_vm1, %v10994_v60, -inf  ;;  %v9736_v7 = vld [vmem:[%s14017_s30 + $0x98] sm:$0xff] }
 0x2d4   :  { %v1334_v17 = vsel %vm229_vm1, %v11000_v5, -inf }
 0x2d6   :  { %1036 = vmax.xlane.f32.xlu1 %v1035_v30  ;;  %1033 = vmax.xlane.f32.xlu0 %v1032_v48  ;;  %v11010_v30 = vmul.f32 %v9732_v40, %v10647_v43  ;;  %v9733_v48 = vld [vmem:[%s14017_s30 + $0x20] sm:$0xff] }
 0x2d7   :  { %v11016_v57 = vmul.f32 %v9733_v48, %v10647_v43 }
 0x2d8   :  { %v1029_v41 = vsel %vm229_vm1, %v11010_v30, -inf }
 0x2da   :  { %1296 = vmax.xlane.f32.xlu1 %v1295_v18  ;;  %1293 = vmax.xlane.f32.xlu0 %v1292_v44  ;;  %v1026_v18 = vsel %vm229_vm1, %v11016_v57, -inf  ;;  %v9734_v44 = vld [vmem:[%s14017_s30 + $0x128] sm:$0xff] }
 0x2db   :  { %v11026_v24 = vmul.f32 %v9734_v44, %v10650_v28 }
 0x2de   :  { %1078 = vmax.xlane.f32.xlu1 %v1077_v52  ;;  %1075 = vmax.xlane.f32.xlu0 %v1074_v33  ;;  %v11032_v52 = vmul.f32 %v9735_v1, %v10650_v28  ;;  %v1289_v33 = vsel %vm229_vm1, %v11026_v24, -inf  ;;  %v9739_v1 = vld [vmem:[%s14017_s30 + $0x190] sm:$0xff] }
 0x2e0   :  { %v1286_v4 = vsel %vm229_vm1, %v11032_v52, -inf }
 0x2e2   :  { %1338 = vmax.xlane.f32.xlu1 %v1337_v15  ;;  %1335 = vmax.xlane.f32.xlu0 %v1334_v17  ;;  %v11042_v15 = vmul.f32 %v9736_v7, %v10647_v43  ;;  %v9737_v17 = vld [vmem:[%s14017_s30 + $0x90] sm:$0xff] }
 0x2e3   :  { %v11048_v40 = vmul.f32 %v9737_v17, %v10647_v43  ;;  %v9740_v17 = vld [vmem:[%s14017_s30 + $0x18] sm:$0xff] }
 0x2e4   :  { %v1071_v48 = vsel %vm229_vm1, %v11042_v15, -inf }
 0x2e6   :  { %1030 = vmax.xlane.f32.xlu1 %v1029_v41  ;;  %1027 = vmax.xlane.f32.xlu0 %v1026_v18  ;;  %v1068_v41 = vsel %vm229_vm1, %v11048_v40, -inf  ;;  %v9738_v18 = vld [vmem:[%s14017_s30 + $0x198] sm:$0xff] }
 0x2e7   :  { %v11058_v44 = vmul.f32 %v9738_v18, %v10650_v28  ;;  %v11074_v18 = vmul.f32 %v9740_v17, %v10647_v43  ;;  %v9742_v17 = vld [vmem:[%s14017_s30 + $0x118] sm:$0xff] }
 0x2e8   :  { %v11090_v56 = vmul.f32 %v9742_v17, %v10650_v28  ;;  %v9744_v17 = vld [vmem:[%s14017_s30 + $0x88] sm:$0xff] }
 0x2ea   :  { %1290 = vmax.xlane.f32.xlu1 %v1289_v33  ;;  %1287 = vmax.xlane.f32.xlu0 %v1286_v4  ;;  %v11064_v33 = vmul.f32 %v9739_v1, %v10650_v28  ;;  %v1331_v4 = vsel %vm229_vm1, %v11058_v44, -inf  ;;  %v9741_v1 = vld [vmem:[%s14017_s30 + $0x10] sm:$0xff]  ;;  %14022 = vst [vmem:[#allocation26_spill] sm:$0xff] %v11090_v56 }
 0x2ec   :  { %v1328_v7 = vsel %vm229_vm1, %v11064_v33, -inf }
 0x2ee   :  { %1072 = vmax.xlane.f32.xlu1 %v1071_v48  ;;  %1069 = vmax.xlane.f32.xlu0 %v1068_v41  ;;  %v11080_v48 = vmul.f32 %v9741_v1, %v10647_v43  ;;  %v1023_v41 = vsel %vm229_vm1, %v11074_v18, -inf  ;;  %v9743_v1 = vld [vmem:[%s14017_s30 + $0x110] sm:$0xff] }
 0x2f0   :  { %14021 = vst [vmem:[#allocation25_spill] sm:$0xff] %v11080_v48  ;;  %v1020_v36 = vsel %vm229_vm1, %v11080_v48, -inf  ;;  %v11106_v48 = vmul.f32 %v9744_v17, %v10647_v43  ;;  %v9746_v17 = vld [vmem:[%s14017_s30 + $0x188] sm:$0xff] }
 0x2f2   :  { %1332 = vmax.xlane.f32.xlu1 %v1331_v4  ;;  %1329 = vmax.xlane.f32.xlu0 %v1328_v7  ;;  %v11096_v4 = vmul.f32 %v9743_v1, %v10650_v28  ;;  %v1283_v7 = vsel %vm229_vm1, %v11090_v56, -inf  ;;  %14024 = vst [vmem:[#allocation28_spill] sm:$0xff] %v11106_v48  ;;  %v9745_v1 = vld [vmem:[%s14017_s30 + $0x80] sm:$0xff]  ;;  %v11122_v56 = vmul.f32 %v9746_v17, %v10650_v28  ;;  %v9748_v17 = vld [vmem:[%s14017_s30 + $0x8] sm:$0xff] }
 0x2f4   :  { %14023 = vst [vmem:[#allocation27_spill] sm:$0xff] %v11096_v4  ;;  %v1280_v16 = vsel %vm229_vm1, %v11096_v4, -inf  ;;  %14026 = vst [vmem:[#allocation30_spill] sm:$0xff] %v11122_v56 }
 0x2f6   :  { %1024 = vmax.xlane.f32.xlu1 %v1023_v41  ;;  %1021 = vmax.xlane.f32.xlu0 %v1020_v36  ;;  %v11112_v41 = vmul.f32 %v9745_v1, %v10647_v43  ;;  %v1065_v36 = vsel %vm229_vm1, %v11106_v48, -inf  ;;  %v9747_v1 = vld [vmem:[%s14017_s30 + $0x180] sm:$0xff] }
 0x2f8   :  { %14025 = vst [vmem:[#allocation29_spill] sm:$0xff] %v11112_v41  ;;  %v1062_v4 = vsel %vm229_vm1, %v11112_v41, -inf  ;;  %v11138_v41 = vmul.f32 %v9748_v17, %v10647_v43  ;;  %v9750_v17 = vld [vmem:[%s14017_s30 + $0x108] sm:$0xff] }
 0x2fa   :  { %1284 = vmax.xlane.f32.xlu1 %v1283_v7  ;;  %1281 = vmax.xlane.f32.xlu0 %v1280_v16  ;;  %v11128_v7 = vmul.f32 %v9747_v1, %v10650_v28  ;;  %v1325_v16 = vsel %vm229_vm1, %v11122_v56, -inf  ;;  %v9749_v1 = vld [vmem:[%s14017_s30] sm:$0xff]  ;;  %v11154_v56 = vmul.f32 %v9750_v17, %v10650_v28  ;;  %v978_v17 = vsel %vm229_vm1, %v10680_v54, 0.0 }
 0x2fc   :  { %14027 = vst [vmem:[#allocation31_spill] sm:$0xff] %v11128_v7  ;;  %v1322_v48 = vsel %vm229_vm1, %v11128_v7, -inf }
 0x2fe   :  { %1066 = vmax.xlane.f32.xlu1 %v1065_v36  ;;  %1063 = vmax.xlane.f32.xlu0 %v1062_v4  ;;  %v11144_v36 = vmul.f32 %v9749_v1, %v10647_v43  ;;  %v1017_v4 = vsel %vm229_vm1, %v11138_v41, -inf  ;;  %v9751_v43 = vld [vmem:[%s14017_s30 + $0x100] sm:$0xff] }
 0x300   :  { %14028 = vst [vmem:[#allocation32_spill] sm:$0xff] %v11144_v36  ;;  %v1014_v7 = vsel %vm229_vm1, %v11144_v36, -inf  ;;  %v975_v36 = vsel %vm229_vm1, %v10664_v45, 0.0 }
 0x302   :  { %1326 = vmax.xlane.f32.xlu1 %v1325_v16  ;;  %1323 = vmax.xlane.f32.xlu0 %v1322_v48  ;;  %v11160_v16 = vmul.f32 %v9751_v43, %v10650_v28  ;;  %v1277_v48 = vsel %vm229_vm1, %v11154_v56, -inf  ;;  %v1239_v28 = vsel %vm229_vm1, %v10674_v38, 0.0  ;;  %v927_v43 = vsel %vm229_vm1, %v10696_v63, 0.0 }
 0x303   :  { %v1191_v38 = vsel %vm229_vm1, %v10706_v2, 0.0  ;;  %v972_v63 = vsel %vm229_vm1, %v10722_v59, 0.0 }
 0x304   :  { %v1274_v1 = vsel %vm229_vm1, %v11160_v16, -inf }
 0x306   :  { %1018 = vmax.xlane.f32.xlu1 %v1017_v4  ;;  %1015 = vmax.xlane.f32.xlu0 %v1014_v7  ;;  %v1236_v7 = vsel %vm229_vm1, %v10658_v9, 0.0  ;;  %v930_v4 = vsel %vm229_vm1, %v10690_v51, 0.0  ;;  %v1188_v9 = vsel %vm229_vm1, %v10712_v29, 0.0  ;;  %v1233_v29 = vsel %vm229_vm1, %v10738_v27, 0.0 }
 0x30a   :  { %1278 = vmax.xlane.f32.xlu1 %v1277_v48  ;;  %1275 = vmax.xlane.f32.xlu0 %v1274_v1  ;;  %v969_v48 = vsel %vm229_vm1, %v10728_v25, 0.0  ;;  %v924_v25 = vsel %vm229_vm1, %v10754_v8, 0.0 }
 0x30e   :  { %979 = vadd.xlane.f32.xlu1 %v978_v17  ;;  %976 = vadd.xlane.f32.xlu0 %v975_v36  ;;  %v1230_v17 = vsel %vm229_vm1, %v10744_v32, 0.0  ;;  %v1185_v32 = vsel %vm229_vm1, %v10770_v55, 0.0 }
 0x312   :  { %1240 = vadd.xlane.f32.xlu1 %v1239_v28  ;;  %1237 = vadd.xlane.f32.xlu0 %v1236_v7  ;;  %v921_v7 = vsel %vm229_vm1, %v10760_v58, 0.0  ;;  %v966_v58 = vsel %vm229_vm1, %v10786_v6, 0.0 }
 0x316   :  { %931 = vadd.xlane.f32.xlu1 %v930_v4  ;;  %928 = vadd.xlane.f32.xlu0 %v927_v43  ;;  %v1182_v43 = vsel %vm229_vm1, %v10776_v46, 0.0  ;;  %v1227_v46 = vsel %vm229_vm1, %v10802_v42, 0.0 }
 0x317   :  { %v11178_v54 = vpop.xlane.xlu1 %1365  ;;  %v11180_v45 = vpop.xlane.xlu0 %1105 }
 0x31a   :  { %1192 = vadd.xlane.f32.xlu1 %v1191_v38  ;;  %1189 = vadd.xlane.f32.xlu0 %v1188_v9  ;;  %v963_v9 = vsel %vm229_vm1, %v10792_v39, 0.0  ;;  %v918_v39 = vsel %vm229_vm1, %v10818_v13, 0.0 }
 0x31b   :  { %v11186_v36 = vpop.xlane.xlu1 %1368  ;;  %v11188_v51 = vpop.xlane.xlu0 %1108 }
 0x31e   :  { %973 = vadd.xlane.f32.xlu1 %v972_v63  ;;  %970 = vadd.xlane.f32.xlu0 %v969_v48  ;;  %v1224_v48 = vsel %vm229_vm1, %v10808_v12, 0.0  ;;  %v1179_v12 = vsel %vm229_vm1, %v10834_v3, 0.0 }
 0x31f   :  { %v11194_v1 = vpop.xlane.xlu1 %1060  ;;  %v11196_v2 = vpop.xlane.xlu0 %1057 }
 0x322   :  { %1234 = vadd.xlane.f32.xlu1 %v1233_v29  ;;  %1231 = vadd.xlane.f32.xlu0 %v1230_v17  ;;  %v915_v17 = vsel %vm229_vm1, %v10824_v50, 0.0  ;;  %v960_v50 = vsel %vm229_vm1, %v10850_v37, 0.0 }
 0x323   :  { %v11202_v28 = vpop.xlane.xlu1 %1320  ;;  %v11204_v59 = vpop.xlane.xlu0 %1317 }
 0x326   :  { %925 = vadd.xlane.f32.xlu1 %v924_v25  ;;  %922 = vadd.xlane.f32.xlu0 %v921_v7  ;;  %v1176_v7 = vsel %vm229_vm1, %v10840_v34, 0.0  ;;  %v1221_v34 = vsel %vm229_vm1, %v10866_v61, 0.0 }
 0x327   :  { %v11210_v4 = vpop.xlane.xlu1 %1102  ;;  %v11212_v27 = vpop.xlane.xlu0 %1099 }
 0x32a   :  { %1186 = vadd.xlane.f32.xlu1 %v1185_v32  ;;  %1183 = vadd.xlane.f32.xlu0 %v1182_v43  ;;  %v957_v43 = vsel %vm229_vm1, %v10856_v21, 0.0  ;;  %v912_v21 = vsel %vm229_vm1, %v10882_v20, 0.0 }
 0x32b   :  { %v11218_v38 = vpop.xlane.xlu1 %1362  ;;  %v11220_v8 = vpop.xlane.xlu0 %1359 }
 0x32e   :  { %967 = vadd.xlane.f32.xlu1 %v966_v58  ;;  %964 = vadd.xlane.f32.xlu0 %v963_v9  ;;  %v1218_v9 = vsel %vm229_vm1, %v10872_v47, 0.0  ;;  %v1173_v47 = vsel %vm229_vm1, %v10898_v11, 0.0 }
 0x32f   :  { %v11226_v63 = vpop.xlane.xlu1 %1054  ;;  %v11228_v55 = vpop.xlane.xlu0 %1051 }
 0x332   :  { %1228 = vadd.xlane.f32.xlu1 %v1227_v46  ;;  %1225 = vadd.xlane.f32.xlu0 %v1224_v48  ;;  %v909_v48 = vsel %vm229_vm1, %v10888_v35, 0.0 }
 0x333   :  { %v11234_v29 = vpop.xlane.xlu1 %1314  ;;  %v11236_v6 = vpop.xlane.xlu0 %1311 }
 0x336   :  { %919 = vadd.xlane.f32.xlu1 %v918_v39  ;;  %916 = vadd.xlane.f32.xlu0 %v915_v17  ;;  %v1170_v17 = vsel %vm229_vm1, %v10904_v49, 0.0 }
 0x337   :  { %v11242_v25 = vpop.xlane.xlu1 %1096  ;;  %v11244_v42 = vpop.xlane.xlu0 %1093 }
 0x33a   :  { %1180 = vadd.xlane.f32.xlu1 %v1179_v12  ;;  %1177 = vadd.xlane.f32.xlu0 %v1176_v7 }
 0x33b   :  { %v11250_v32 = vpop.xlane.xlu1 %1356  ;;  %v11252_v13 = vpop.xlane.xlu0 %1353 }
 0x33e   :  { %961 = vadd.xlane.f32.xlu1 %v960_v50  ;;  %958 = vadd.xlane.f32.xlu0 %v957_v43  ;;  %v951_v50 = vsel %vm229_vm1, %v10920_v53, 0.0  ;;  %v954_v43 = vsel %vm229_vm1, %v10914_v23, 0.0  ;;  %v1212_v53 = vsel %vm229_vm1, %v10936_v10, 0.0  ;;  %v1167_v10 = vsel %vm229_vm1, %v10962_v31, 0.0 }
 0x33f   :  { %v11258_v58 = vpop.xlane.xlu1 %1048  ;;  %v11260_v3 = vpop.xlane.xlu0 %1045 }
 0x342   :  { %1222 = vadd.xlane.f32.xlu1 %v1221_v34  ;;  %1219 = vadd.xlane.f32.xlu0 %v1218_v9 }
 0x343   :  { %v11266_v46 = vpop.xlane.xlu1 %1308  ;;  %v11268_v37 = vpop.xlane.xlu0 %1305 }
 0x346   :  { %913 = vadd.xlane.f32.xlu1 %v912_v21  ;;  %910 = vadd.xlane.f32.xlu0 %v909_v48 }
 0x347   :  { %v11274_v39 = vpop.xlane.xlu1 %1090  ;;  %v11276_v61 = vpop.xlane.xlu0 %1087 }
 0x34a   :  { %1174 = vadd.xlane.f32.xlu1 %v1173_v47  ;;  %1171 = vadd.xlane.f32.xlu0 %v1170_v17  ;;  %v1215_v47 = vsel %vm229_vm1, %v10930_v0, 0.0 }
 0x34b   :  { %v11282_v12 = vpop.xlane.xlu1 %1350  ;;  %v11284_v20 = vpop.xlane.xlu0 %1347 }
 0x34c   :  { %v11286_v7 = vpop.f32.mrf.mxu1  ;;  %v11288_v35 = vpop.f32.mrf.mxu0 }
 0x34d   :  { %14029 = vst [vmem:[#allocation33_spill] sm:$0xff] %v11286_v7  ;;  %14030 = vst [vmem:[#allocation34_spill] sm:$0xff] %v11288_v35 }
 0x34e   :  { %v11294_v11 = vpop.f32.mrf.mxu1  ;;  %v11296_v34 = vpop.f32.mrf.mxu0  ;;  %952 = vadd.xlane.f32.xlu1 %v951_v50  ;;  %955 = vadd.xlane.f32.xlu0 %v954_v43  ;;  %v906_v43 = vsel %vm229_vm1, %v10946_v19, 0.0 }
 0x34f   :  { %14031 = vst [vmem:[#allocation35_spill] sm:$0xff] %v11294_v11  ;;  %14032 = vst [vmem:[#allocation36_spill] sm:$0xff] %v11296_v34  ;;  %v11298_v49 = vpop.xlane.xlu1 %1042  ;;  %v11300_v9 = vpop.xlane.xlu0 %1039  ;;  %v14038_v11 = vld [vmem:[#allocation29_spill] sm:$0xff] }
 0x350   :  { %v757_v21 = vpop.f32.mrf.mxu1  ;;  %v798_v48 = vpop.f32.mrf.mxu0 }
 0x351   :  { %v903_v21 = vsel %vm229_vm1, %v10952_v26, 0.0  ;;  %v945_v26 = vsel %vm229_vm1, %v10984_v22, 0.0 }
 0x352   :  { %v758_v17 = vpop.f32.mrf.mxu1  ;;  %v799_v23 = vpop.f32.mrf.mxu0  ;;  %1216 = vadd.xlane.f32.xlu1 %v1215_v47  ;;  %1213 = vadd.xlane.f32.xlu0 %v1212_v53  ;;  %v1164_v47 = vsel %vm229_vm1, %v10968_v62, 0.0  ;;  %v1209_v62 = vsel %vm229_vm1, %v10994_v60, 0.0 }
 0x353   :  { %v11306_v35 = vpop.xlane.xlu1 %1302  ;;  %v11308_v50 = vpop.xlane.xlu0 %1299  ;;  %v948_v17 = vsel %vm229_vm1, %v10978_v14, 0.0  ;;  %v900_v14 = vsel %vm229_vm1, %v11010_v30, 0.0 }
 0x356   :  { %907 = vadd.xlane.f32.xlu1 %v906_v43  ;;  %904 = vadd.xlane.f32.xlu0 %v903_v21  ;;  %v1206_v43 = vsel %vm229_vm1, %v11000_v5, 0.0  ;;  %v1161_v5 = vsel %vm229_vm1, %v11026_v24, 0.0 }
 0x357   :  { %v11314_v0 = vpop.xlane.xlu1 %1084  ;;  %v11316_v48 = vpop.xlane.xlu0 %1081 }
 0x35a   :  { %1168 = vadd.xlane.f32.xlu1 %v1167_v10  ;;  %1165 = vadd.xlane.f32.xlu0 %v1164_v47  ;;  %v897_v10 = vsel %vm229_vm1, %v11016_v57, 0.0  ;;  %v939_v57 = vsel %vm229_vm1, %v11048_v40, 0.0 }
 0x35b   :  { %v11322_v53 = vpop.xlane.xlu1 %1344  ;;  %v11324_v19 = vpop.xlane.xlu0 %1341 }
 0x35e   :  { %946 = vadd.xlane.f32.xlu1 %v945_v26  ;;  %949 = vadd.xlane.f32.xlu0 %v948_v17  ;;  %v1158_v26 = vsel %vm229_vm1, %v11032_v52, 0.0  ;;  %v1203_v52 = vsel %vm229_vm1, %v11058_v44, 0.0 }
 0x35f   :  { %v11330_v23 = vpop.xlane.xlu1 %1036  ;;  %v11332_v31 = vpop.xlane.xlu0 %1033 }
 0x362   :  { %1210 = vadd.xlane.f32.xlu1 %v1209_v62  ;;  %1207 = vadd.xlane.f32.xlu0 %v1206_v43  ;;  %v942_v62 = vsel %vm229_vm1, %v11042_v15, 0.0  ;;  %v894_v15 = vsel %vm229_vm1, %v11074_v18, 0.0 }
 0x363   :  { %v11338_v21 = vpop.xlane.xlu1 %1296  ;;  %v11340_v22 = vpop.xlane.xlu0 %1293 }
 0x366   :  { %901 = vadd.xlane.f32.xlu1 %v900_v14  ;;  %898 = vadd.xlane.f32.xlu0 %v897_v10  ;;  %v1200_v14 = vsel %vm229_vm1, %v11064_v33, 0.0 }
 0x367   :  { %v11346_v47 = vpop.xlane.xlu1 %1078  ;;  %v11348_v60 = vpop.xlane.xlu0 %1075 }
 0x36a   :  { %1162 = vadd.xlane.f32.xlu1 %v1161_v5  ;;  %1159 = vadd.xlane.f32.xlu0 %v1158_v26  ;;  %v14033_v5 = vld [vmem:[#allocation25_spill] sm:$0xff] }
 0x36b   :  { %v11354_v17 = vpop.xlane.xlu1 %1338  ;;  %v11356_v30 = vpop.xlane.xlu0 %1335  ;;  %v891_v26 = vsel %vm229_vm1, %v14033_v5, 0.0  ;;  %v14039_v5 = vld [vmem:[#allocation28_spill] sm:$0xff] }
 0x36e   :  { %940 = vadd.xlane.f32.xlu1 %v939_v57  ;;  %943 = vadd.xlane.f32.xlu0 %v942_v62  ;;  %v14035_v62 = vld [vmem:[#allocation26_spill] sm:$0xff] }
 0x36f   :  { %v11362_v43 = vpop.xlane.xlu1 %1030  ;;  %v11364_v24 = vpop.xlane.xlu0 %1027  ;;  %v1155_v33 = vsel %vm229_vm1, %v14035_v62, 0.0 }
 0x372   :  { %1204 = vadd.xlane.f32.xlu1 %v1203_v52  ;;  %1201 = vadd.xlane.f32.xlu0 %v1200_v14  ;;  %v14036_v52 = vld [vmem:[#allocation27_spill] sm:$0xff] }
 0x373   :  { %v11370_v10 = vpop.xlane.xlu1 %1290  ;;  %v11372_v40 = vpop.xlane.xlu0 %1287  ;;  %v1152_v14 = vsel %vm229_vm1, %v14036_v52, 0.0  ;;  %v14042_v52 = vld [vmem:[#allocation31_spill] sm:$0xff] }
 0x376   :  { %895 = vadd.xlane.f32.xlu1 %v894_v15  ;;  %892 = vadd.xlane.f32.xlu0 %v891_v26  ;;  %v933_v15 = vsel %vm229_vm1, %v14038_v11, 0.0  ;;  %v936_v26 = vsel %vm229_vm1, %v14039_v5, 0.0  ;;  %v14044_v5 = vld [vmem:[#allocation32_spill] sm:$0xff] }
 0x377   :  { %v11378_v57 = vpop.xlane.xlu1 %1072  ;;  %v11380_v44 = vpop.xlane.xlu0 %1069 }
 0x378   :  { %14034 = vst [vmem:[#allocation25_spill] sm:$0xff] %v11380_v44  ;;  %v14041_v44 = vld [vmem:[#allocation30_spill] sm:$0xff] }
 0x37a   :  { %1156 = vadd.xlane.f32.xlu1 %v1155_v33  ;;  %1153 = vadd.xlane.f32.xlu0 %v1152_v14  ;;  %v1197_v33 = vsel %vm229_vm1, %v14041_v44, 0.0  ;;  %v1194_v14 = vsel %vm229_vm1, %v14042_v52, 0.0  ;;  %v1146_v52 = vsel %vm229_vm1, %v11160_v16, 0.0 }
 0x37b   :  { %v11386_v34 = vpop.xlane.xlu1 %1332  ;;  %v11388_v18 = vpop.xlane.xlu0 %1329 }
 0x37c   :  { %14037 = vst [vmem:[#allocation26_spill] sm:$0xff] %v11388_v18 }
 0x37e   :  { %934 = vadd.xlane.f32.xlu1 %v933_v15  ;;  %937 = vadd.xlane.f32.xlu0 %v936_v26  ;;  %v888_v15 = vsel %vm229_vm1, %v11138_v41, 0.0  ;;  %v885_v26 = vsel %vm229_vm1, %v14044_v5, 0.0 }
 0x37f   :  { %v11394_v7 = vpop.xlane.xlu1 %1024  ;;  %v11396_v62 = vpop.xlane.xlu0 %1021 }
 0x380   :  { %14040 = vst [vmem:[#allocation27_spill] sm:$0xff] %v11396_v62 }
 0x382   :  { %1198 = vadd.xlane.f32.xlu1 %v1197_v33  ;;  %1195 = vadd.xlane.f32.xlu0 %v1194_v14  ;;  %v1149_v33 = vsel %vm229_vm1, %v11154_v56, 0.0 }
 0x383   :  { %v11402_v18 = vpop.xlane.xlu1 %1284  ;;  %v11404_v11 = vpop.xlane.xlu0 %1281 }
 0x384   :  { %14043 = vst [vmem:[#allocation29_spill] sm:$0xff] %v11404_v11 }
 0x386   :  { %889 = vadd.xlane.f32.xlu1 %v888_v15  ;;  %886 = vadd.xlane.f32.xlu0 %v885_v26 }
 0x387   :  { %v11410_v62 = vpop.xlane.xlu1 %1066  ;;  %v11412_v44 = vpop.xlane.xlu0 %1063 }
 0x388   :  { %14045 = vst [vmem:[#allocation28_spill] sm:$0xff] %v11410_v62  ;;  %14046 = vst [vmem:[#allocation30_spill] sm:$0xff] %v11412_v44 }
 0x38a   :  { %1150 = vadd.xlane.f32.xlu1 %v1149_v33  ;;  %1147 = vadd.xlane.f32.xlu0 %v1146_v52 }
 0x38b   :  { %v11418_v14 = vpop.xlane.xlu1 %1326  ;;  %v11420_v41 = vpop.xlane.xlu0 %1323 }
 0x38f   :  { %v11422_v11 = vpop.xlane.xlu1 %1018  ;;  %v11424_v15 = vpop.xlane.xlu0 %1015 }
 0x390   :  { %14047 = vst [vmem:[#allocation31_spill] sm:$0xff] %v11424_v15 }
 0x393   :  { %v11426_v5 = vpop.xlane.xlu1 %1278  ;;  %v11428_v26 = vpop.xlane.xlu0 %1275 }
 0x394   :  { %14048 = vst [vmem:[#allocation32_spill] sm:$0xff] %v11428_v26 }
 0x397   :  { %v11430_v44 = vpop.xlane.xlu1 %979  ;;  %v11432_v56 = vpop.xlane.xlu0 %976 }
 0x398   :  { %14049 = vst [vmem:[#allocation37_spill] sm:$0xff] %v11432_v56 }
 0x39b   :  { %v11434_v62 = vpop.xlane.xlu1 %1240  ;;  %1975 = vperm.xlu1 %8633, %v11188_v51   ;;  %v11437_v16 = vpop.xlane.xlu0 %1237 }
 0x39f   :  { %v11439_v33 = vpop.xlane.xlu1 %931  ;;  %2130 = vperm.xlu1 %8633, %v11178_v54   ;;  %v11442_v52 = vpop.xlane.xlu0 %928 }
 0x3a0   :  { %1970 = vperm.xlu0 %8632, %v11180_v45  }
 0x3a3   :  { %v11445_v15 = vpop.xlane.xlu1 %1192  ;;  %2135 = vperm.xlu1 %8633, %v11186_v36   ;;  %v11448_v26 = vpop.xlane.xlu0 %1189 }
 0x3a4   :  { %1960 = vperm.xlu0 %8632, %v11212_v27  }
 0x3a7   :  { %v11451_v56 = vpop.xlane.xlu1 %973  ;;  %1890 = vperm.xlu1 %8633, %v11196_v2   ;;  %v11454_v51 = vpop.xlane.xlu0 %970 }
 0x3a8   :  { %2125 = vperm.xlu0 %8632, %v11218_v38  }
 0x3ab   :  { %v11457_v54 = vpop.xlane.xlu1 %1234  ;;  %1895 = vperm.xlu1 %8633, %v11194_v1   ;;  %v11460_v45 = vpop.xlane.xlu0 %1231 }
 0x3ac   :  { %1885 = vperm.xlu0 %8632, %v11226_v63  }
 0x3af   :  { %v11463_v36 = vpop.xlane.xlu1 %925  ;;  %2050 = vperm.xlu1 %8633, %v11204_v59   ;;  %v11466_v27 = vpop.xlane.xlu0 %922 }
 0x3b0   :  { %2045 = vperm.xlu0 %8632, %v11234_v29  }
 0x3b3   :  { %v11469_v2 = vpop.xlane.xlu1 %1186  ;;  %2055 = vperm.xlu1 %8633, %v11202_v28   ;;  %v11472_v38 = vpop.xlane.xlu0 %1183 }
 0x3b4   :  { %1950 = vperm.xlu0 %8632, %v11244_v42  }
 0x3b7   :  { %v11475_v1 = vpop.xlane.xlu1 %967  ;;  %1965 = vperm.xlu1 %8633, %v11210_v4   ;;  %v11478_v63 = vpop.xlane.xlu0 %964 }
 0x3b8   :  { %2115 = vperm.xlu0 %8632, %v11250_v32  }
 0x3bb   :  { %v11481_v59 = vpop.xlane.xlu1 %1228  ;;  %2120 = vperm.xlu1 %8633, %v11220_v8   ;;  %v11484_v29 = vpop.xlane.xlu0 %1225 }
 0x3bc   :  { %1875 = vperm.xlu0 %8632, %v11258_v58  }
 0x3bf   :  { %v11487_v28 = vpop.xlane.xlu1 %919  ;;  %1880 = vperm.xlu1 %8633, %v11228_v55   ;;  %v11490_v42 = vpop.xlane.xlu0 %916 }
 0x3c0   :  { %2035 = vperm.xlu0 %8632, %v11266_v46  }
 0x3c3   :  { %v11493_v4 = vpop.xlane.xlu1 %1180  ;;  %2040 = vperm.xlu1 %8633, %v11236_v6   ;;  %v11496_v32 = vpop.xlane.xlu0 %1177 }
 0x3c4   :  { %1940 = vperm.xlu0 %8632, %v11276_v61  }
 0x3c7   :  { %v11499_v8 = vpop.xlane.xlu1 %961  ;;  %1955 = vperm.xlu1 %8633, %v11242_v25   ;;  %v11502_v58 = vpop.xlane.xlu0 %958 }
 0x3c8   :  { %2105 = vperm.xlu0 %8632, %v11282_v12  }
 0x3cb   :  { %v11505_v55 = vpop.xlane.xlu1 %1222  ;;  %2110 = vperm.xlu1 %8633, %v11252_v13   ;;  %v11508_v46 = vpop.xlane.xlu0 %1219 }
 0x3cc   :  { %1865 = vperm.xlu0 %8632, %v11298_v49  }
 0x3cf   :  { %v11511_v6 = vpop.xlane.xlu1 %913  ;;  %1870 = vperm.xlu1 %8633, %v11260_v3   ;;  %v11514_v61 = vpop.xlane.xlu0 %910 }
 0x3d0   :  { %2025 = vperm.xlu0 %8632, %v11306_v35  }
 0x3d3   :  { %v11517_v25 = vpop.xlane.xlu1 %1174  ;;  %2030 = vperm.xlu1 %8633, %v11268_v37   ;;  %v11520_v12 = vpop.xlane.xlu0 %1171 }
 0x3d4   :  { %1930 = vperm.xlu0 %8632, %v11316_v48  }
 0x3d7   :  { %v11523_v13 = vpop.xlane.xlu1 %952  ;;  %1945 = vperm.xlu1 %8633, %v11274_v39   ;;  %v11526_v49 = vpop.xlane.xlu0 %955 }
 0x3d8   :  { %2095 = vperm.xlu0 %8632, %v11322_v53  }
 0x3db   :  { %v11529_v3 = vpop.xlane.xlu1 %1216  ;;  %2100 = vperm.xlu1 %8633, %v11284_v20   ;;  %v11532_v35 = vpop.xlane.xlu0 %1213 }
 0x3dc   :  { %1855 = vperm.xlu0 %8632, %v11330_v23  }
 0x3df   :  { %v11535_v37 = vpop.xlane.xlu1 %907  ;;  %1860 = vperm.xlu1 %8633, %v11300_v9   ;;  %v11538_v48 = vpop.xlane.xlu0 %904 }
 0x3e0   :  { %2015 = vperm.xlu0 %8632, %v11338_v21  }
 0x3e3   :  { %v11541_v39 = vpop.xlane.xlu1 %1168  ;;  %2020 = vperm.xlu1 %8633, %v11308_v50   ;;  %v11544_v53 = vpop.xlane.xlu0 %1165 }
 0x3e4   :  { %1925 = vperm.xlu0 %8632, %v11346_v47  }
 0x3e7   :  { %v11547_v20 = vpop.xlane.xlu1 %946  ;;  %1935 = vperm.xlu1 %8633, %v11314_v0   ;;  %v11550_v23 = vpop.xlane.xlu0 %949 }
 0x3e8   :  { %2085 = vperm.xlu0 %8632, %v11354_v17  }
 0x3eb   :  { %v11553_v9 = vpop.xlane.xlu1 %1210  ;;  %2090 = vperm.xlu1 %8633, %v11324_v19   ;;  %v11556_v21 = vpop.xlane.xlu0 %1207 }
 0x3ec   :  { %1845 = vperm.xlu0 %8632, %v11362_v43  }
 0x3ef   :  { %v11559_v50 = vpop.xlane.xlu1 %901  ;;  %1850 = vperm.xlu1 %8633, %v11332_v31   ;;  %v11562_v47 = vpop.xlane.xlu0 %898 }
 0x3f0   :  { %2005 = vperm.xlu0 %8632, %v11370_v10  }
 0x3f3   :  { %v11565_v0 = vpop.xlane.xlu1 %1162  ;;  %2010 = vperm.xlu1 %8633, %v11340_v22   ;;  %v11568_v17 = vpop.xlane.xlu0 %1159 }
 0x3f4   :  { %1915 = vperm.xlu0 %8632, %v11378_v57  }
 0x3f7   :  { %v11571_v19 = vpop.xlane.xlu1 %940  ;;  %1920 = vperm.xlu1 %8633, %v11348_v60   ;;  %v11574_v43 = vpop.xlane.xlu0 %943 }
 0x3f8   :  { %14050 = vst [vmem:[#allocation38_spill] sm:$0xff] %v11571_v19  ;;  %2075 = vperm.xlu0 %8632, %v11386_v34   ;;  %v14054_v19 = vld [vmem:[#allocation28_spill] sm:$0xff] }
 0x3fb   :  { %v11577_v31 = vpop.xlane.xlu1 %1204  ;;  %2080 = vperm.xlu1 %8633, %v11356_v30   ;;  %v11580_v10 = vpop.xlane.xlu0 %1201 }
 0x3fc   :  { %14051 = vst [vmem:[#allocation39_spill] sm:$0xff] %v11580_v10  ;;  %1835 = vperm.xlu0 %8632, %v11394_v7   ;;  %v14056_v10 = vld [vmem:[#allocation25_spill] sm:$0xff] }
 0x3ff   :  { %v11583_v22 = vpop.xlane.xlu1 %895  ;;  %1840 = vperm.xlu1 %8633, %v11364_v24   ;;  %v11586_v57 = vpop.xlane.xlu0 %892 }
 0x400   :  { %14052 = vst [vmem:[#allocation40_spill] sm:$0xff] %v11586_v57  ;;  %1995 = vperm.xlu0 %8632, %v11402_v18   ;;  %v14057_v57 = vld [vmem:[#allocation26_spill] sm:$0xff] }
 0x403   :  { %v11589_v60 = vpop.xlane.xlu1 %1156  ;;  %2000 = vperm.xlu1 %8633, %v11372_v40   ;;  %v11592_v34 = vpop.xlane.xlu0 %1153  ;;  %v14059_v40 = vld [vmem:[#allocation27_spill] sm:$0xff] }
 0x404   :  { %14053 = vst [vmem:[#allocation41_spill] sm:$0xff] %v11592_v34  ;;  %1905 = vperm.xlu0 %8632, %v14054_v19  }
 0x407   :  { %v11595_v30 = vpop.xlane.xlu1 %934  ;;  %1910 = vperm.xlu1 %8633, %v14056_v10   ;;  %v11598_v7 = vpop.xlane.xlu0 %937  ;;  %v1013_v10 = vmul.f32 0.03125, %v11430_v44 }
 0x408   :  { %14055 = vst [vmem:[#allocation28_spill] sm:$0xff] %v11595_v30  ;;  %2065 = vperm.xlu0 %8632, %v11418_v14   ;;  %v14061_v30 = vld [vmem:[#allocation29_spill] sm:$0xff] }
 0x40b   :  { %v11601_v24 = vpop.xlane.xlu1 %1198  ;;  %2070 = vperm.xlu1 %8633, %v14057_v57   ;;  %v11604_v18 = vpop.xlane.xlu0 %1195  ;;  %v1273_v57 = vmul.f32 0.03125, %v11434_v62  ;;  %v14066_v62 = vld [vmem:[#allocation31_spill] sm:$0xff] }
 0x40c   :  { %14058 = vst [vmem:[#allocation25_spill] sm:$0xff] %v11604_v18  ;;  %1825 = vperm.xlu0 %8632, %v11422_v11   ;;  %v14063_v11 = vld [vmem:[#allocation30_spill] sm:$0xff] }
 0x40f   :  { %1830 = vperm.xlu1 %8633, %v14059_v40   ;;  %v11608_v34 = vpop.xlane.xlu1 %889  ;;  %v11611_v19 = vpop.xlane.xlu0 %886 }
 0x410   :  { %1985 = vperm.xlu0 %8632, %v11426_v5   ;;  %14060 = vst [vmem:[#allocation26_spill] sm:$0xff] %v11611_v19  ;;  %v997_v5 = vmul.f32 0.03125, %v11439_v33  ;;  %v14068_v33 = vld [vmem:[#allocation32_spill] sm:$0xff] }
 0x413   :  { %1990 = vperm.xlu1 %8633, %v14061_v30   ;;  %v11615_v14 = vpop.xlane.xlu1 %1150  ;;  %v11618_v18 = vpop.xlane.xlu0 %1147  ;;  %v1257_v30 = vmul.f32 0.03125, %v11445_v15  ;;  %v1271_v15 = vmul.f32 0.03125, %v11457_v54  ;;  %v1255_v54 = vmul.f32 0.03125, %v11469_v2  ;;  %v1269_v2 = vmul.f32 0.03125, %v11481_v59 }
 0x414   :  { %1591 = vperm.xlu0 %8632, %v1013_v10   ;;  %14062 = vst [vmem:[#allocation27_spill] sm:$0xff] %v11618_v18  ;;  %v1253_v59 = vmul.f32 0.03125, %v11493_v4  ;;  %v1267_v4 = vmul.f32 0.03125, %v11505_v55  ;;  %v1251_v55 = vmul.f32 0.03125, %v11517_v25  ;;  %v1265_v25 = vmul.f32 0.03125, %v11529_v3 }
 0x415   :  { %v1249_v3 = vmul.f32 0.03125, %v11541_v39  ;;  %v1263_v39 = vmul.f32 0.03125, %v11553_v9  ;;  %v1247_v9 = vmul.f32 0.03125, %v11565_v0  ;;  %v1261_v0 = vmul.f32 0.03125, %v11577_v31 }
 0x416   :  { %v1245_v31 = vmul.f32 0.03125, %v11589_v60  ;;  %v1259_v60 = vmul.f32 0.03125, %v11601_v24  ;;  %v14077_v24 = vld [vmem:[#allocation40_spill] sm:$0xff] }
 0x417   :  { %1900 = vperm.xlu1 %8633, %v14063_v11   ;;  %v11621_v40 = vpop.permute.xlu1 %1975 }
 0x418   :  { %14064 = vst [vmem:[#allocation29_spill] sm:$0xff] %v11621_v40  ;;  %1751 = vperm.xlu0 %8632, %v1273_v57   ;;  %v1011_v57 = vmul.f32 0.03125, %v11451_v56  ;;  %v14069_v40 = vld [vmem:[#allocation37_spill] sm:$0xff]  ;;  %v995_v56 = vmul.f32 0.03125, %v11463_v36  ;;  %v1009_v36 = vmul.f32 0.03125, %v11475_v1  ;;  %v993_v1 = vmul.f32 0.03125, %v11487_v28 }
 0x419   :  { %v1007_v28 = vmul.f32 0.03125, %v11499_v8  ;;  %v991_v8 = vmul.f32 0.03125, %v11511_v6  ;;  %v1005_v6 = vmul.f32 0.03125, %v11526_v49  ;;  %v989_v49 = vmul.f32 0.03125, %v11535_v37 }
 0x41a   :  { %v1003_v37 = vmul.f32 0.03125, %v11550_v23  ;;  %v987_v23 = vmul.f32 0.03125, %v11559_v50  ;;  %v1001_v50 = vmul.f32 0.03125, %v11574_v43  ;;  %v985_v43 = vmul.f32 0.03125, %v11583_v22 }
 0x41b   :  { %2060 = vperm.xlu1 %8633, %v11420_v41   ;;  %v11625_v19 = vpop.permute.xlu1 %2130  ;;  %v11627_v44 = vpop.permute.xlu0 %1970  ;;  %v999_v22 = vmul.f32 0.03125, %v11598_v7  ;;  %v983_v7 = vmul.f32 0.03125, %v11608_v34  ;;  %v1243_v34 = vmul.f32 0.03125, %v11615_v14  ;;  %v11826_v14 = vld [vmem:[%s13911_s6 + $0x170] sm:$0xff] }
 0x41c   :  { %14065 = vst [vmem:[#allocation30_spill] sm:$0xff] %v11627_v44  ;;  %1511 = vperm.xlu0 %8632, %v997_v5   ;;  %v1012_v5 = vmul.f32 0.03125, %v14069_v40  ;;  %v996_v40 = vmul.f32 0.03125, %v11442_v52  ;;  %v1010_v52 = vmul.f32 0.03125, %v11454_v51  ;;  %v994_v51 = vmul.f32 0.03125, %v11466_v27 }
 0x41d   :  { %v1008_v27 = vmul.f32 0.03125, %v11478_v63  ;;  %v992_v63 = vmul.f32 0.03125, %v11490_v42  ;;  %v1006_v42 = vmul.f32 0.03125, %v11502_v58  ;;  %v990_v58 = vmul.f32 0.03125, %v11514_v61 }
 0x41e   :  { %v1004_v61 = vmul.f32 0.03125, %v11523_v13  ;;  %v988_v13 = vmul.f32 0.03125, %v11538_v48  ;;  %v1002_v48 = vmul.f32 0.03125, %v11547_v20  ;;  %v986_v20 = vmul.f32 0.03125, %v11562_v47 }
 0x41f   :  { %v11630_v10 = vpop.permute.xlu1 %2135  ;;  %1820 = vperm.xlu1 %8633, %v14066_v62   ;;  %v11633_v18 = vpop.permute.xlu0 %1960 }
 0x420   :  { %14067 = vst [vmem:[#allocation31_spill] sm:$0xff] %v11633_v18  ;;  %1671 = vperm.xlu0 %8632, %v1257_v30   ;;  %v1272_v30 = vmul.f32 0.03125, %v11437_v16  ;;  %v1256_v16 = vmul.f32 0.03125, %v11448_v26  ;;  %v1270_v26 = vmul.f32 0.03125, %v11460_v45  ;;  %v1254_v45 = vmul.f32 0.03125, %v11472_v38 }
 0x421   :  { %v1268_v38 = vmul.f32 0.03125, %v11484_v29  ;;  %v1252_v29 = vmul.f32 0.03125, %v11496_v32  ;;  %v1266_v32 = vmul.f32 0.03125, %v11508_v46  ;;  %v1250_v46 = vmul.f32 0.03125, %v11520_v12 }
 0x422   :  { %v1264_v12 = vmul.f32 0.03125, %v11532_v35  ;;  %v1248_v35 = vmul.f32 0.03125, %v11544_v53  ;;  %v1262_v53 = vmul.f32 0.03125, %v11556_v21  ;;  %v1246_v21 = vmul.f32 0.03125, %v11568_v17 }
 0x423   :  { %v11636_v11 = vpop.permute.xlu1 %1890  ;;  %1980 = vperm.xlu1 %8633, %v14068_v33   ;;  %v11639_v41 = vpop.permute.xlu0 %2125 }
 0x424   :  { %1581 = vperm.xlu0 %8632, %v1011_v57  }
 0x427   :  { %v11643_v44 = vpop.permute.xlu1 %1895  ;;  %1586 = vperm.xlu1 %8633, %v1012_v5   ;;  %v11645_v62 = vpop.permute.xlu0 %1885 }
 0x428   :  { %1741 = vperm.xlu0 %8632, %v1271_v15  }
 0x42b   :  { %v11649_v18 = vpop.permute.xlu1 %2050  ;;  %1746 = vperm.xlu1 %8633, %v1272_v30   ;;  %v11651_v33 = vpop.permute.xlu0 %2045 }
 0x42c   :  { %1501 = vperm.xlu0 %8632, %v995_v56  }
 0x42f   :  { %v11655_v57 = vpop.permute.xlu1 %2055  ;;  %1506 = vperm.xlu1 %8633, %v996_v40   ;;  %v11657_v5 = vpop.permute.xlu0 %1950 }
 0x430   :  { %1661 = vperm.xlu0 %8632, %v1255_v54  }
 0x433   :  { %v11661_v15 = vpop.permute.xlu1 %1965  ;;  %1666 = vperm.xlu1 %8633, %v1256_v16   ;;  %v11663_v30 = vpop.permute.xlu0 %2115 }
 0x434   :  { %1571 = vperm.xlu0 %8632, %v1009_v36  }
 0x437   :  { %v11667_v56 = vpop.permute.xlu1 %2120  ;;  %1576 = vperm.xlu1 %8633, %v1010_v52   ;;  %v11669_v40 = vpop.permute.xlu0 %1875 }
 0x438   :  { %1731 = vperm.xlu0 %8632, %v1269_v2  }
 0x43b   :  { %v11673_v54 = vpop.permute.xlu1 %1880  ;;  %1736 = vperm.xlu1 %8633, %v1270_v26   ;;  %v11675_v16 = vpop.permute.xlu0 %2035 }
 0x43c   :  { %1491 = vperm.xlu0 %8632, %v993_v1  }
 0x43f   :  { %v11679_v36 = vpop.permute.xlu1 %2040  ;;  %1496 = vperm.xlu1 %8633, %v994_v51   ;;  %v11681_v52 = vpop.permute.xlu0 %1940 }
 0x440   :  { %1651 = vperm.xlu0 %8632, %v1253_v59  }
 0x443   :  { %v11685_v2 = vpop.permute.xlu1 %1955  ;;  %1656 = vperm.xlu1 %8633, %v1254_v45   ;;  %v11687_v26 = vpop.permute.xlu0 %2105 }
 0x444   :  { %1561 = vperm.xlu0 %8632, %v1007_v28  }
 0x447   :  { %v11691_v1 = vpop.permute.xlu1 %2110  ;;  %1566 = vperm.xlu1 %8633, %v1008_v27   ;;  %v11693_v51 = vpop.permute.xlu0 %1865 }
 0x448   :  { %1721 = vperm.xlu0 %8632, %v1267_v4  }
 0x44b   :  { %v11697_v59 = vpop.permute.xlu1 %1870  ;;  %1726 = vperm.xlu1 %8633, %v1268_v38   ;;  %v11699_v45 = vpop.permute.xlu0 %2025 }
 0x44c   :  { %1481 = vperm.xlu0 %8632, %v991_v8  }
 0x44f   :  { %v11703_v28 = vpop.permute.xlu1 %2030  ;;  %1486 = vperm.xlu1 %8633, %v992_v63   ;;  %v11705_v27 = vpop.permute.xlu0 %1930 }
 0x450   :  { %1641 = vperm.xlu0 %8632, %v1251_v55  }
 0x453   :  { %v11709_v4 = vpop.permute.xlu1 %1945  ;;  %1646 = vperm.xlu1 %8633, %v1252_v29   ;;  %v11711_v38 = vpop.permute.xlu0 %2095 }
 0x454   :  { %1551 = vperm.xlu0 %8632, %v1005_v6  }
 0x457   :  { %v11715_v8 = vpop.permute.xlu1 %2100  ;;  %1556 = vperm.xlu1 %8633, %v1006_v42   ;;  %v11717_v63 = vpop.permute.xlu0 %1855 }
 0x458   :  { %1711 = vperm.xlu0 %8632, %v1265_v25  }
 0x45b   :  { %v11721_v55 = vpop.permute.xlu1 %1860  ;;  %1716 = vperm.xlu1 %8633, %v1266_v32   ;;  %v11723_v29 = vpop.permute.xlu0 %2015 }
 0x45c   :  { %1471 = vperm.xlu0 %8632, %v989_v49  }
 0x45f   :  { %v11727_v6 = vpop.permute.xlu1 %2020  ;;  %1476 = vperm.xlu1 %8633, %v990_v58   ;;  %v11729_v42 = vpop.permute.xlu0 %1925 }
 0x460   :  { %1631 = vperm.xlu0 %8632, %v1249_v3  }
 0x463   :  { %v11733_v25 = vpop.permute.xlu1 %1935  ;;  %1636 = vperm.xlu1 %8633, %v1250_v46   ;;  %v11735_v32 = vpop.permute.xlu0 %2085 }
 0x464   :  { %1541 = vperm.xlu0 %8632, %v1003_v37  }
 0x467   :  { %v11739_v49 = vpop.permute.xlu1 %2090  ;;  %1546 = vperm.xlu1 %8633, %v1004_v61   ;;  %v11741_v58 = vpop.permute.xlu0 %1845 }
 0x468   :  { %1701 = vperm.xlu0 %8632, %v1263_v39  }
 0x46b   :  { %v11745_v3 = vpop.permute.xlu1 %1850  ;;  %1706 = vperm.xlu1 %8633, %v1264_v12   ;;  %v11747_v46 = vpop.permute.xlu0 %2005 }
 0x46c   :  { %1461 = vperm.xlu0 %8632, %v987_v23  }
 0x46f   :  { %v11751_v37 = vpop.permute.xlu1 %2010  ;;  %1466 = vperm.xlu1 %8633, %v988_v13   ;;  %v11753_v61 = vpop.permute.xlu0 %1915 }
 0x470   :  { %1621 = vperm.xlu0 %8632, %v1247_v9  }
 0x473   :  { %v11757_v39 = vpop.permute.xlu1 %1920  ;;  %1626 = vperm.xlu1 %8633, %v1248_v35   ;;  %v11759_v12 = vpop.permute.xlu0 %2075 }
 0x474   :  { %1531 = vperm.xlu0 %8632, %v1001_v50  }
 0x477   :  { %v11763_v23 = vpop.permute.xlu1 %2080  ;;  %1536 = vperm.xlu1 %8633, %v1002_v48   ;;  %v11765_v13 = vpop.permute.xlu0 %1835 }
 0x478   :  { %14070 = vst [vmem:[#allocation32_spill] sm:$0xff] %v11765_v13  ;;  %1691 = vperm.xlu0 %8632, %v1261_v0  }
 0x47b   :  { %v11769_v9 = vpop.permute.xlu1 %1840  ;;  %1696 = vperm.xlu1 %8633, %v1262_v53   ;;  %v11771_v35 = vpop.permute.xlu0 %1995 }
 0x47c   :  { %1451 = vperm.xlu0 %8632, %v985_v43   ;;  %v14072_v43 = vld [vmem:[#allocation38_spill] sm:$0xff] }
 0x47d   :  { %v1000_v47 = vmul.f32 0.03125, %v14072_v43 }
 0x47f   :  { %v11775_v50 = vpop.permute.xlu1 %2000  ;;  %1456 = vperm.xlu1 %8633, %v986_v20   ;;  %v11777_v48 = vpop.permute.xlu0 %1905 }
 0x480   :  { %14071 = vst [vmem:[#allocation37_spill] sm:$0xff] %v11777_v48  ;;  %1611 = vperm.xlu0 %8632, %v1245_v31   ;;  %v14074_v31 = vld [vmem:[#allocation39_spill] sm:$0xff]  ;;  %v14081_v48 = vld [vmem:[#allocation41_spill] sm:$0xff] }
 0x481   :  { %v1260_v17 = vmul.f32 0.03125, %v14074_v31  ;;  %14082 = vst [vmem:[#allocation41_spill] sm:$0xff] %v11826_v14 }
 0x483   :  { %v11781_v0 = vpop.permute.xlu1 %1910  ;;  %1616 = vperm.xlu1 %8633, %v1246_v21   ;;  %v11783_v53 = vpop.permute.xlu0 %2065  ;;  %v11796_v21 = vld [vmem:[%s13911_s6 + $0x1f8] sm:$0xff] }
 0x484   :  { %1521 = vperm.xlu0 %8632, %v999_v22   ;;  %14075 = vst [vmem:[#allocation39_spill] sm:$0xff] %v11796_v21  ;;  %v2201_v31 = vmul.f32 %v11630_v10, %v11796_v21 }
 0x487   :  { %v11787_v13 = vpop.permute.xlu1 %2070  ;;  %1526 = vperm.xlu1 %8633, %v1000_v47   ;;  %v11789_v20 = vpop.permute.xlu0 %1825  ;;  %v984_v47 = vmul.f32 0.03125, %v14077_v24 }
 0x488   :  { %14073 = vst [vmem:[#allocation38_spill] sm:$0xff] %v11789_v20  ;;  %1681 = vperm.xlu0 %8632, %v1259_v60   ;;  %v11806_v60 = vld [vmem:[%s13911_s6 + $0x1f0] sm:$0xff]  ;;  %v11814_v20 = vld [vmem:[%s13911_s6 + $0x178] sm:$0xff] }
 0x489   :  { %14078 = vst [vmem:[#allocation40_spill] sm:$0xff] %v11806_v60  ;;  %14079 = vst [vmem:[#allocation43_spill] sm:$0xff] %v11814_v20  ;;  %v2200_v24 = vmul.f32 %v11625_v19, %v11806_v60  ;;  %v2185_v21 = vmul.f32 %v11655_v57, %v11814_v20  ;;  %v11846_v57 = vld [vmem:[%s13911_s6 + $0x1e8] sm:$0xff] }
 0x48b   :  { %v11798_v22 = vpop.permute.xlu1 %1830  ;;  %1686 = vperm.xlu1 %8633, %v1260_v17   ;;  %v11800_v43 = vpop.permute.xlu0 %1985  ;;  %v8639_v10 = vpack.i.bf16 %v2201_v31, %v2200_v24 }
 0x48c   :  { %14076 = vst [vmem:[#allocation42_spill] sm:$0xff] %v11798_v22  ;;  %1441 = vperm.xlu0 %8632, %v983_v7   ;;  %v1244_v22 = vmul.f32 0.03125, %v14081_v48  ;;  %v2184_v48 = vmul.f32 %v11649_v18, %v11826_v14 }
 0x48e   :  { %v8649_v24 = vpack.i.bf16 %v2185_v21, %v2184_v48 }
 0x48f   :  { %v11816_v17 = vpop.permute.xlu1 %1990  ;;  %1446 = vperm.xlu1 %8633, %v984_v47   ;;  %v11818_v7 = vpop.permute.xlu0 %1591  ;;  %v11833_v47 = vld [vmem:[%s13911_s6 + $0x1e0] sm:$0xff] }
 0x490   :  { %14080 = vst [vmem:[#allocation44_spill] sm:$0xff] %v11818_v7  ;;  %1601 = vperm.xlu0 %8632, %v1243_v34   ;;  %14083 = vst [vmem:[#allocation45_spill] sm:$0xff] %v11833_v47  ;;  %v14084_v34 = vld [vmem:[#allocation28_spill] sm:$0xff]  ;;  %v2198_v20 = vmul.f32 %v11667_v56, %v11833_v47 }
 0x491   :  { %v998_v31 = vmul.f32 0.03125, %v14084_v34  ;;  %14085 = vst [vmem:[#allocation28_spill] sm:$0xff] %v11846_v57  ;;  %v14088_v34 = vld [vmem:[#allocation25_spill] sm:$0xff]  ;;  %v11866_v56 = vld [vmem:[%s13911_s6 + $0x168] sm:$0xff] }
 0x492   :  { %v1258_v21 = vmul.f32 0.03125, %v14088_v34  ;;  %14089 = vst [vmem:[#allocation25_spill] sm:$0xff] %v11866_v56  ;;  %v14091_v34 = vld [vmem:[#allocation26_spill] sm:$0xff] }
 0x493   :  { %v11835_v7 = vpop.permute.xlu1 %1900  ;;  %1606 = vperm.xlu1 %8633, %v1244_v22   ;;  %v11837_v19 = vpop.permute.xlu0 %1751  ;;  %v11853_v22 = vld [vmem:[%s13911_s6 + $0x160] sm:$0xff] }
 0x494   :  { %8640 = vrot.lane.b32.xlu0 %v8639_v10, %s14014_s24  ;;  %14086 = vst [vmem:[#allocation46_spill] sm:$0xff] %v11853_v22  ;;  %v2199_v10 = vmul.f32 %v11639_v41, %v11846_v57  ;;  %v2182_v47 = vmul.f32 %v11679_v36, %v11853_v22  ;;  %v11886_v36 = vld [vmem:[%s13911_s6 + $0x1d8] sm:$0xff] }
 0x495   :  { %14092 = vst [vmem:[#allocation26_spill] sm:$0xff] %v11886_v36 }
 0x496   :  { %v8659_v48 = vpack.i.bf16 %v2199_v10, %v2198_v20  ;;  %v982_v20 = vmul.f32 0.03125, %v14091_v34  ;;  %v11891_v10 = vld [vmem:[%s13911_s6 + $0xf0] sm:$0xff] }
 0x497   :  { %v11855_v60 = vpop.permute.xlu1 %2060  ;;  %1516 = vperm.xlu1 %8633, %v998_v31   ;;  %v11857_v18 = vpop.permute.xlu0 %1511  ;;  %v11873_v31 = vld [vmem:[%s13911_s6 + $0x1d0] sm:$0xff]  ;;  %14093 = vst [vmem:[#allocation49_spill] sm:$0xff] %v11891_v10 }
 0x498   :  { %14087 = vst [vmem:[#allocation47_spill] sm:$0xff] %v11857_v18  ;;  %8650 = vrot.lane.b32.xlu0 %v8649_v24, %s14014_s24  ;;  %14090 = vst [vmem:[#allocation48_spill] sm:$0xff] %v11873_v31  ;;  %v2183_v24 = vmul.f32 %v11651_v33, %v11866_v56  ;;  %v2196_v22 = vmul.f32 %v11691_v1, %v11873_v31  ;;  %v11898_v33 = vld [vmem:[%s13911_s6 + $0x150] sm:$0xff]  ;;  %v11907_v56 = vld [vmem:[%s13911_s6 + $0xf8] sm:$0xff] }
 0x499   :  { %14094 = vst [vmem:[#allocation50_spill] sm:$0xff] %v11898_v33  ;;  %14096 = vst [vmem:[#allocation52_spill] sm:$0xff] %v11907_v56  ;;  %v14097_v1 = vld [vmem:[#allocation27_spill] sm:$0xff]  ;;  %v14098_v31 = vld [vmem:[#allocation30_spill] sm:$0xff] }
 0x49a   :  { %v2168_v57 = vmul.f32 %v14098_v31, %v11891_v10  ;;  %v11932_v31 = vld [vmem:[%s13911_s6 + $0x1c0] sm:$0xff] }
 0x49b   :  { %v11875_v18 = vpop.permute.xlu1 %1820  ;;  %1676 = vperm.xlu1 %8633, %v1258_v21   ;;  %v11877_v41 = vpop.permute.xlu0 %1671  ;;  %v8669_v21 = vpack.i.bf16 %v2183_v24, %v2182_v47  ;;  %v2197_v47 = vmul.f32 %v11663_v30, %v11886_v36  ;;  %v1242_v24 = vmul.f32 0.03125, %v14097_v1  ;;  %v2180_v30 = vmul.f32 %v11703_v28, %v11898_v33  ;;  %14100 = vst [vmem:[#allocation27_spill] sm:$0xff] %v11932_v31 }
 0x49c   :  { %8660 = vrot.lane.b32.xlu0 %v8659_v48, %s14014_s24 }
 0x49d   :  { %v8679_v14 = vpack.i.bf16 %v2197_v47, %v2196_v22  ;;  %v11941_v22 = vld [vmem:[%s13911_s6 + $0x70] sm:$0xff] }
 0x49f   :  { %v11900_v48 = vpop.permute.xlu1 %1980  ;;  %1436 = vperm.xlu1 %8633, %v982_v20   ;;  %v11902_v34 = vpop.permute.xlu0 %1581  ;;  %v11918_v20 = vld [vmem:[%s13911_s6 + $0x158] sm:$0xff] }
 0x4a0   :  { %14095 = vst [vmem:[#allocation51_spill] sm:$0xff] %v11902_v34  ;;  %8670 = vrot.lane.b32.xlu0 %v8669_v21, %s14014_s24  ;;  %v11923_v34 = vld [vmem:[%s13911_s6 + $0x78] sm:$0xff]  ;;  %v14099_v21 = vld [vmem:[#allocation29_spill] sm:$0xff]  ;;  %v2181_v28 = vmul.f32 %v11675_v16, %v11918_v20  ;;  %v2152_v16 = vmul.f32 %v11636_v11, %v11941_v22 }
 0x4a1   :  { %v2169_v1 = vmul.f32 %v14099_v21, %v11907_v56  ;;  %v2153_v21 = vmul.f32 %v11643_v44, %v11923_v34  ;;  %v11958_v56 = vld [vmem:[%s13911_s6 + $0xe8] sm:$0xff]  ;;  %v11965_v44 = vld [vmem:[%s13911_s6 + $0x140] sm:$0xff] }
 0x4a2   :  { %v8689_v33 = vpack.i.bf16 %v2181_v28, %v2180_v30  ;;  %14102 = vst [vmem:[#allocation29_spill] sm:$0xff] %v11965_v44  ;;  %v2167_v28 = vmul.f32 %v11661_v15, %v11958_v56 }
 0x4a3   :  { %v11934_v10 = vpop.permute.xlu1 %1586  ;;  %1596 = vperm.xlu1 %8633, %v1242_v24   ;;  %v11936_v36 = vpop.permute.xlu0 %1741  ;;  %v8634_v47 = vpack.i.bf16 %v2169_v1, %v2168_v57  ;;  %v11951_v24 = vld [vmem:[%s13911_s6 + $0x1c8] sm:$0xff]  ;;  %v8644_v11 = vpack.i.bf16 %v2153_v21, %v2152_v16  ;;  %v11999_v16 = vld [vmem:[%s13911_s6 + $0x1b0] sm:$0xff] }
 0x4a4   :  { %14101 = vst [vmem:[#allocation30_spill] sm:$0xff] %v11934_v10  ;;  %8680 = vrot.lane.b32.xlu0 %v8679_v14, %s14014_s24  ;;  %v2194_v10 = vmul.f32 %v11715_v8, %v11932_v31  ;;  %v11975_v8 = vld [vmem:[%s13911_s6 + $0xe0] sm:$0xff]  ;;  %v2195_v30 = vmul.f32 %v11687_v26, %v11951_v24  ;;  %v11983_v1 = vld [vmem:[%s13911_s6 + $0x148] sm:$0xff]  ;;  %v2178_v26 = vmul.f32 %v11727_v6, %v11965_v44 }
 0x4a5   :  { %14104 = vst [vmem:[#allocation54_spill] sm:$0xff] %v11983_v1  ;;  %v12011_v6 = vld [vmem:[%s13911_s6 + $0x68] sm:$0xff] }
 0x4a7   :  { %v11967_v14 = vpop.permute.xlu1 %1746  ;;  %8635 = vrot.lane.b32.xlu1 %v8634_v47, %s14014_s24  ;;  %v11970_v57 = vpop.permute.xlu0 %1501  ;;  %v11990_v47 = vld [vmem:[%s13911_s6 + $0x60] sm:$0xff] }
 0x4a8   :  { %14103 = vst [vmem:[#allocation53_spill] sm:$0xff] %v11970_v57  ;;  %8690 = vrot.lane.b32.xlu0 %v8689_v33, %s14014_s24  ;;  %14105 = vst [vmem:[#allocation55_spill] sm:$0xff] %v11990_v47  ;;  %v8699_v57 = vpack.i.bf16 %v2195_v30, %v2194_v10  ;;  %v14106_v33 = vld [vmem:[#allocation31_spill] sm:$0xff]  ;;  %v2179_v10 = vmul.f32 %v11699_v45, %v11983_v1  ;;  %v2150_v30 = vmul.f32 %v11673_v54, %v11990_v47  ;;  %v12026_v1 = vld [vmem:[%s13911_s6 + $0xd8] sm:$0xff] }
 0x4a9   :  { %v2166_v21 = vmul.f32 %v14106_v33, %v11975_v8  ;;  %14107 = vst [vmem:[#allocation31_spill] sm:$0xff] %v11999_v16  ;;  %v12019_v33 = vld [vmem:[%s13911_s6 + $0x1b8] sm:$0xff]  ;;  %v2192_v45 = vmul.f32 %v11739_v49, %v11999_v16  ;;  %v2151_v54 = vmul.f32 %v11645_v62, %v12011_v6  ;;  %v12043_v49 = vld [vmem:[%s13911_s6 + $0xd0] sm:$0xff]  ;;  %v12067_v16 = vld [vmem:[%s13911_s6 + $0x1a0] sm:$0xff] }
 0x4aa   :  { %14108 = vst [vmem:[#allocation56_spill] sm:$0xff] %v12019_v33  ;;  %v8709_v44 = vpack.i.bf16 %v2179_v10, %v2178_v26  ;;  %v2193_v26 = vmul.f32 %v11711_v38, %v12019_v33  ;;  %v12051_v62 = vld [vmem:[%s13911_s6 + $0x138] sm:$0xff]  ;;  %14111 = vst [vmem:[#allocation59_spill] sm:$0xff] %v12067_v16 }
 0x4ab   :  { %v12001_v31 = vpop.permute.xlu1 %1506  ;;  %8645 = vrot.lane.b32.xlu1 %v8644_v11, %s14014_s24  ;;  %v12004_v15 = vpop.permute.xlu0 %1661  ;;  %v8654_v11 = vpack.i.bf16 %v2167_v28, %v2166_v21  ;;  %v2165_v21 = vmul.f32 %v11685_v2, %v12026_v1  ;;  %v8664_v10 = vpack.i.bf16 %v2151_v54, %v2150_v30  ;;  %v2177_v30 = vmul.f32 %v11723_v29, %v12051_v62  ;;  %v12092_v29 = vld [vmem:[%s13911_s6 + $0xc8] sm:$0xff] }
 0x4ac   :  { %8700 = vrot.lane.b32.xlu0 %v8699_v57, %s14014_s24  ;;  %v12031_v57 = vld [vmem:[%s13911_s6 + $0x130] sm:$0xff]  ;;  %14112 = vst [vmem:[#allocation60_spill] sm:$0xff] %v12092_v29 }
 0x4ad   :  { %v2176_v38 = vmul.f32 %v11751_v37, %v12031_v57 }
 0x4af   :  { %v12035_v47 = vpop.permute.xlu1 %1666  ;;  %8655 = vrot.lane.b32.xlu1 %v8654_v11, %s14014_s24  ;;  %v12038_v28 = vpop.permute.xlu0 %1571  ;;  %v12058_v11 = vld [vmem:[%s13911_s6 + $0x50] sm:$0xff] }
 0x4b0   :  { %14109 = vst [vmem:[#allocation57_spill] sm:$0xff] %v12038_v28  ;;  %8710 = vrot.lane.b32.xlu0 %v8709_v44, %s14014_s24  ;;  %14110 = vst [vmem:[#allocation58_spill] sm:$0xff] %v12058_v11  ;;  %v8719_v28 = vpack.i.bf16 %v2193_v26, %v2192_v45  ;;  %v2164_v44 = vmul.f32 %v11657_v5, %v12043_v49  ;;  %v12080_v5 = vld [vmem:[%s13911_s6 + $0x58] sm:$0xff]  ;;  %v2148_v37 = vmul.f32 %v11697_v59, %v12058_v11  ;;  %v12087_v45 = vld [vmem:[%s13911_s6 + $0x1a8] sm:$0xff] }
 0x4b1   :  { %v2190_v26 = vmul.f32 %v11763_v23, %v12067_v16  ;;  %v2191_v23 = vmul.f32 %v11735_v32, %v12087_v45  ;;  %v12126_v16 = vld [vmem:[%s13911_s6 + $0x40] sm:$0xff] }
 0x4b2   :  { %v8674_v54 = vpack.i.bf16 %v2165_v21, %v2164_v44  ;;  %v2149_v21 = vmul.f32 %v11669_v40, %v12080_v5  ;;  %14114 = vst [vmem:[#allocation62_spill] sm:$0xff] %v12126_v16 }
 0x4b3   :  { %v12069_v33 = vpop.permute.xlu1 %1576  ;;  %8665 = vrot.lane.b32.xlu1 %v8664_v10, %s14014_s24  ;;  %v12072_v2 = vpop.permute.xlu0 %1731  ;;  %v12099_v10 = vld [vmem:[%s13911_s6 + $0x120] sm:$0xff]  ;;  %v8739_v11 = vpack.i.bf16 %v2191_v23, %v2190_v26  ;;  %v12145_v26 = vld [vmem:[%s13911_s6 + $0x48] sm:$0xff]  ;;  %v12155_v23 = vld [vmem:[%s13911_s6 + $0x198] sm:$0xff] }
 0x4b4   :  { %8720 = vrot.lane.b32.xlu0 %v8719_v28, %s14014_s24  ;;  %v8729_v28 = vpack.i.bf16 %v2177_v30, %v2176_v38  ;;  %14113 = vst [vmem:[#allocation61_spill] sm:$0xff] %v12099_v10  ;;  %v12111_v38 = vld [vmem:[%s13911_s6 + $0xc0] sm:$0xff]  ;;  %v2163_v30 = vmul.f32 %v11709_v4, %v12092_v29  ;;  %v8684_v40 = vpack.i.bf16 %v2149_v21, %v2148_v37  ;;  %v12135_v4 = vld [vmem:[%s13911_s6 + $0x190] sm:$0xff]  ;;  %14116 = vst [vmem:[#allocation64_spill] sm:$0xff] %v12155_v23 }
 0x4b5   :  { %v2174_v32 = vmul.f32 %v11775_v50, %v12099_v10  ;;  %14115 = vst [vmem:[#allocation63_spill] sm:$0xff] %v12135_v4  ;;  %v2146_v21 = vmul.f32 %v11721_v55, %v12126_v16  ;;  %v12169_v55 = vld [vmem:[%s13911_s6 + $0x110] sm:$0xff] }
 0x4b6   :  { %14118 = vst [vmem:[#allocation66_spill] sm:$0xff] %v12169_v55 }
 0x4b7   :  { %v12101_v59 = vpop.permute.xlu1 %1736  ;;  %8675 = vrot.lane.b32.xlu1 %v8674_v54, %s14014_s24  ;;  %v12106_v44 = vpop.permute.xlu0 %1491  ;;  %v12121_v54 = vld [vmem:[%s13911_s6 + $0x128] sm:$0xff] }
 0x4b8   :  { %8730 = vrot.lane.b32.xlu0 %v8729_v28, %s14014_s24  ;;  %v2162_v28 = vmul.f32 %v11681_v52, %v12111_v38  ;;  %v2175_v50 = vmul.f32 %v11747_v46, %v12121_v54  ;;  %v2188_v46 = vmul.f32 %v11787_v13, %v12135_v4  ;;  %v2189_v13 = vmul.f32 %v11759_v12, %v12155_v23  ;;  %v12194_v4 = vld [vmem:[%s13911_s6 + $0x30] sm:$0xff]  ;;  %v14167_v23 = vld [vmem:[#allocation43_spill] sm:$0xff] }
 0x4b9   :  { %14121 = vst [vmem:[#allocation69_spill] sm:$0xff] %v12194_v4  ;;  %v2172_v12 = vmul.f32 %v11816_v17, %v12169_v55  ;;  %v12228_v55 = vld [vmem:[%s13911_s6 + $0xa0] sm:$0xff] }
 0x4ba   :  { %v8694_v52 = vpack.i.bf16 %v2163_v30, %v2162_v28  ;;  %v8749_v10 = vpack.i.bf16 %v2175_v50, %v2174_v32  ;;  %v12179_v32 = vld [vmem:[%s13911_s6 + $0xb0] sm:$0xff]  ;;  %v8759_v16 = vpack.i.bf16 %v2189_v13, %v2188_v46  ;;  %v12213_v46 = vld [vmem:[%s13911_s6 + $0x38] sm:$0xff]  ;;  %v2144_v13 = vmul.f32 %v11745_v3, %v12194_v4  ;;  %14125 = vst [vmem:[#allocation73_spill] sm:$0xff] %v12228_v55  ;;  %v12237_v3 = vld [vmem:[%s13911_s6 + $0x100] sm:$0xff] }
 0x4bb   :  { %v12137_v29 = vpop.permute.xlu1 %1496  ;;  %8685 = vrot.lane.b32.xlu1 %v8684_v40, %s14014_s24  ;;  %v12140_v37 = vpop.permute.xlu0 %1651  ;;  %v12160_v40 = vld [vmem:[%s13911_s6 + $0xb8] sm:$0xff]  ;;  %14119 = vst [vmem:[#allocation67_spill] sm:$0xff] %v12179_v32  ;;  %14123 = vst [vmem:[#allocation71_spill] sm:$0xff] %v12213_v46 }
 0x4bc   :  { %8740 = vrot.lane.b32.xlu0 %v8739_v11, %s14014_s24  ;;  %14117 = vst [vmem:[#allocation65_spill] sm:$0xff] %v12160_v40  ;;  %v2147_v11 = vmul.f32 %v11693_v51, %v12145_v26  ;;  %v2161_v50 = vmul.f32 %v11733_v25, %v12160_v40  ;;  %v12203_v25 = vld [vmem:[%s13911_s6 + $0x180] sm:$0xff]  ;;  %14126 = vst [vmem:[#allocation74_spill] sm:$0xff] %v12237_v3 }
 0x4bd   :  { %14122 = vst [vmem:[#allocation70_spill] sm:$0xff] %v12203_v25 }
 0x4be   :  { %v8704_v51 = vpack.i.bf16 %v2147_v11, %v2146_v21 }
 0x4bf   :  { %v12171_v30 = vpop.permute.xlu1 %1656  ;;  %8695 = vrot.lane.b32.xlu1 %v8694_v52, %s14014_s24  ;;  %v12174_v28 = vpop.permute.xlu0 %1561  ;;  %v12189_v52 = vld [vmem:[%s13911_s6 + $0x118] sm:$0xff] }
 0x4c0   :  { %8750 = vrot.lane.b32.xlu0 %v8749_v10, %s14014_s24  ;;  %14120 = vst [vmem:[#allocation68_spill] sm:$0xff] %v12189_v52  ;;  %v2160_v10 = vmul.f32 %v11705_v27, %v12179_v32  ;;  %v2173_v17 = vmul.f32 %v11771_v35, %v12189_v52  ;;  %v2186_v35 = vmul.f32 %v11855_v60, %v12203_v25  ;;  %v12262_v25 = vld [vmem:[%s13911_s6 + $0x20] sm:$0xff] }
 0x4c1   :  { %14130 = vst [vmem:[#allocation78_spill] sm:$0xff] %v12262_v25 }
 0x4c2   :  { %v8714_v27 = vpack.i.bf16 %v2161_v50, %v2160_v10  ;;  %v8769_v32 = vpack.i.bf16 %v2173_v17, %v2172_v12  ;;  %v12247_v12 = vld [vmem:[%s13911_s6 + $0xa8] sm:$0xff]  ;;  %v2158_v17 = vmul.f32 %v11757_v39, %v12228_v55 }
 0x4c3   :  { %v12205_v21 = vpop.permute.xlu1 %1566  ;;  %8705 = vrot.lane.b32.xlu1 %v8704_v51, %s14014_s24  ;;  %v12208_v11 = vpop.permute.xlu0 %1721  ;;  %v12223_v51 = vld [vmem:[%s13911_s6 + $0x188] sm:$0xff]  ;;  %14128 = vst [vmem:[#allocation76_spill] sm:$0xff] %v12247_v12 }
 0x4c4   :  { %8760 = vrot.lane.b32.xlu0 %v8759_v16, %s14014_s24  ;;  %14124 = vst [vmem:[#allocation72_spill] sm:$0xff] %v12223_v51  ;;  %v2145_v16 = vmul.f32 %v11717_v63, %v12213_v46  ;;  %v2187_v60 = vmul.f32 %v11783_v53, %v12223_v51  ;;  %v2170_v53 = vmul.f32 %v11900_v48, %v12237_v3 }
 0x4c6   :  { %v8724_v63 = vpack.i.bf16 %v2145_v16, %v2144_v13  ;;  %v8779_v4 = vpack.i.bf16 %v2187_v60, %v2186_v35  ;;  %v12276_v16 = vld [vmem:[%s13911_s6 + $0x28] sm:$0xff]  ;;  %v12286_v60 = vld [vmem:[%s13911_s6 + $0x90] sm:$0xff] }
 0x4c7   :  { %v12239_v50 = vpop.permute.xlu1 %1726  ;;  %8715 = vrot.lane.b32.xlu1 %v8714_v27, %s14014_s24  ;;  %v12242_v10 = vpop.permute.xlu0 %1481  ;;  %v12257_v27 = vld [vmem:[%s13911_s6 + $0x108] sm:$0xff]  ;;  %14131 = vst [vmem:[#allocation79_spill] sm:$0xff] %v12276_v16  ;;  %14132 = vst [vmem:[#allocation80_spill] sm:$0xff] %v12286_v60  ;;  %v2143_v3 = vmul.f32 %v11741_v58, %v12276_v16  ;;  %v12306_v58 = vld [vmem:[%s13911_s6 + $0x10] sm:$0xff] }
 0x4c8   :  { %14127 = vst [vmem:[#allocation75_spill] sm:$0xff] %v12242_v10  ;;  %8770 = vrot.lane.b32.xlu0 %v8769_v32, %s14014_s24  ;;  %14129 = vst [vmem:[#allocation77_spill] sm:$0xff] %v12257_v27  ;;  %v2159_v32 = vmul.f32 %v11729_v42, %v12247_v12  ;;  %v2171_v35 = vmul.f32 %v11800_v43, %v12257_v27  ;;  %v2142_v42 = vmul.f32 %v11769_v9, %v12262_v25 }
 0x4c9   :  { %14135 = vst [vmem:[#allocation83_spill] sm:$0xff] %v12306_v58 }
 0x4ca   :  { %v8734_v48 = vpack.i.bf16 %v2159_v32, %v2158_v17  ;;  %v8744_v9 = vpack.i.bf16 %v2143_v3, %v2142_v42  ;;  %v2156_v17 = vmul.f32 %v11781_v0, %v12286_v60  ;;  %v12318_v3 = vld [vmem:[%s13911_s6 + $0x18] sm:$0xff] }
 0x4cb   :  { %v12268_v13 = vpop.permute.xlu1 %1486  ;;  %8725 = vrot.lane.b32.xlu1 %v8724_v63, %s14014_s24  ;;  %v12271_v39 = vpop.permute.xlu0 %1641  ;;  %v8789_v63 = vpack.i.bf16 %v2171_v35, %v2170_v53  ;;  %14136 = vst [vmem:[#allocation84_spill] sm:$0xff] %v12318_v3 }
 0x4cc   :  { %8780 = vrot.lane.b32.xlu0 %v8779_v4, %s14014_s24  ;;  %v12298_v4 = vld [vmem:[%s13911_s6 + $0x98] sm:$0xff] }
 0x4cd   :  { %14134 = vst [vmem:[#allocation82_spill] sm:$0xff] %v12298_v4  ;;  %v2157_v53 = vmul.f32 %v11753_v61, %v12298_v4  ;;  %v14139_v61 = vld [vmem:[#allocation32_spill] sm:$0xff] }
 0x4ce   :  { %v2141_v60 = vmul.f32 %v14139_v61, %v12318_v3  ;;  %v14143_v61 = vld [vmem:[#allocation37_spill] sm:$0xff] }
 0x4cf   :  { %v12290_v55 = vpop.permute.xlu1 %1646  ;;  %8735 = vrot.lane.b32.xlu1 %v8734_v48, %s14014_s24  ;;  %v12293_v43 = vpop.permute.xlu0 %1551  ;;  %v8754_v0 = vpack.i.bf16 %v2157_v53, %v2156_v17  ;;  %v14137_v48 = vld [vmem:[#allocation42_spill] sm:$0xff]  ;;  %v12337_v17 = vld [vmem:[%s13911_s6 + $0x88] sm:$0xff] }
 0x4d0   :  { %14133 = vst [vmem:[#allocation81_spill] sm:$0xff] %v12293_v43  ;;  %8790 = vrot.lane.b32.xlu0 %v8789_v63, %s14014_s24  ;;  %v2140_v42 = vmul.f32 %v14137_v48, %v12306_v58  ;;  %v12325_v63 = vld [vmem:[%s13911_s6 + $0x80] sm:$0xff]  ;;  %14141 = vst [vmem:[#allocation85_spill] sm:$0xff] %v12337_v17  ;;  %v2155_v3 = vmul.f32 %v14143_v61, %v12337_v17 }
 0x4d1   :  { %14138 = vst [vmem:[#allocation42_spill] sm:$0xff] %v12325_v63  ;;  %v2154_v48 = vmul.f32 %v11835_v7, %v12325_v63  ;;  %v12344_v58 = vld [vmem:[%s13911_s6] sm:$0xff]  ;;  %v14146_v63 = vld [vmem:[#allocation38_spill] sm:$0xff] }
 0x4d2   :  { %v8764_v53 = vpack.i.bf16 %v2141_v60, %v2140_v42  ;;  %14142 = vst [vmem:[#allocation86_spill] sm:$0xff] %v12344_v58  ;;  %v12356_v60 = vld [vmem:[%s13911_s6 + $0x8] sm:$0xff]  ;;  %v2138_v42 = vmul.f32 %v11875_v18, %v12344_v58 }
 0x4d3   :  { %v12310_v32 = vpop.permute.xlu1 %1556  ;;  %8745 = vrot.lane.b32.xlu1 %v8744_v9, %s14014_s24  ;;  %v12313_v35 = vpop.permute.xlu0 %1711  ;;  %14145 = vst [vmem:[#allocation87_spill] sm:$0xff] %v12356_v60  ;;  %v8774_v7 = vpack.i.bf16 %v2155_v3, %v2154_v48  ;;  %v2139_v16 = vmul.f32 %v14146_v63, %v12356_v60  ;;  %v8860_v3 = vld [vmem:[#allocation7 + $0xc] ss:$16 sps:$4 sm:$0xff]   ;;  %v8863_v48 = vld [vmem:[#allocation7 + $0x4] ss:$16 sps:$4 sm:$0xff]  }
 0x4d4   :  { %2684 = vmatprep.mubr.bf16.mxu0 %v8860_v3  ;;  %2635 = vmatprep.mubr.bf16.mxu1 %v8863_v48 }
 0x4d7   :  { %v12329_v9 = vpop.permute.xlu1 %1716  ;;  %8755 = vrot.lane.b32.xlu1 %v8754_v0, %s14014_s24  ;;  %v12332_v4 = vpop.permute.xlu0 %1471 }
 0x4d8   :  { %14140 = vst [vmem:[#allocation32_spill] sm:$0xff] %v12332_v4 }
 0x4db   :  { %v12348_v0 = vpop.permute.xlu1 %1476  ;;  %8765 = vrot.lane.b32.xlu1 %v8764_v53, %s14014_s24  ;;  %v12351_v25 = vpop.permute.xlu0 %1631  ;;  %v8784_v53 = vpack.i.bf16 %v2139_v16, %v2138_v42 }
 0x4dc   :  { %14144 = vst [vmem:[#allocation37_spill] sm:$0xff] %v12348_v0  ;;  %v14168_v0 = vld [vmem:[#allocation41_spill] sm:$0xff] }
 0x4dd   :  { %v1800_v10 = vmul.f32 %v12035_v47, %v14168_v0 }
 0x4df   :  { %v12362_v27 = vpop.permute.xlu1 %1636  ;;  %8775 = vrot.lane.b32.xlu1 %v8774_v7, %s14014_s24  ;;  %v12365_v61 = vpop.permute.xlu0 %1541 }
 0x4e0   :  { %14147 = vst [vmem:[#allocation38_spill] sm:$0xff] %v12365_v61 }
 0x4e3   :  { %v12367_v17 = vpop.permute.xlu1 %1546  ;;  %8785 = vrot.lane.b32.xlu1 %v8784_v53, %s14014_s24  ;;  %v12370_v12 = vpop.permute.xlu0 %1701 }
 0x4e4   :  { %14148 = vst [vmem:[#allocation88_spill] sm:$0xff] %v12367_v17 }
 0x4e7   :  { %v12372_v18 = vpop.permute.xlu1 %1706  ;;  %v12374_v58 = vpop.permute.xlu0 %1461 }
 0x4e8   :  { %14149 = vst [vmem:[#allocation89_spill] sm:$0xff] %v12374_v58 }
 0x4eb   :  { %v12376_v63 = vpop.permute.xlu1 %1466  ;;  %v12378_v7 = vpop.permute.xlu0 %1621 }
 0x4ec   :  { %14150 = vst [vmem:[#allocation90_spill] sm:$0xff] %v12376_v63 }
 0x4ef   :  { %v12380_v60 = vpop.permute.xlu1 %1626  ;;  %v12382_v16 = vpop.permute.xlu0 %1531 }
 0x4f0   :  { %14151 = vst [vmem:[#allocation91_spill] sm:$0xff] %v12382_v16 }
 0x4f3   :  { %v12384_v42 = vpop.permute.xlu1 %1536  ;;  %v12386_v53 = vpop.permute.xlu0 %1691 }
 0x4f4   :  { %14152 = vst [vmem:[#allocation92_spill] sm:$0xff] %v12384_v42  ;;  %14153 = vst [vmem:[#allocation93_spill] sm:$0xff] %v12386_v53 }
 0x4f7   :  { %v12388_v61 = vpop.permute.xlu1 %1696  ;;  %v12390_v3 = vpop.permute.xlu0 %1451 }
 0x4f8   :  { %14154 = vst [vmem:[#allocation94_spill] sm:$0xff] %v12390_v3 }
 0x4fb   :  { %v12392_v51 = vpop.permute.xlu1 %1456  ;;  %v12394_v58 = vpop.permute.xlu0 %1611 }
 0x4fc   :  { %14155 = vst [vmem:[#allocation95_spill] sm:$0xff] %v12392_v51  ;;  %14156 = vst [vmem:[#allocation96_spill] sm:$0xff] %v12394_v58  ;;  %v14165_v58 = vld [vmem:[#allocation39_spill] sm:$0xff] }
 0x4fd   :  { %v1817_v43 = vmul.f32 %v11837_v19, %v14165_v58 }
 0x4ff   :  { %v12396_v48 = vpop.permute.xlu1 %1616  ;;  %v12398_v63 = vpop.permute.xlu0 %1521 }
 0x500   :  { %14157 = vst [vmem:[#allocation97_spill] sm:$0xff] %v12398_v63  ;;  %v14166_v63 = vld [vmem:[#allocation40_spill] sm:$0xff] }
 0x503   :  { %v12400_v4 = vpop.permute.xlu1 %1526  ;;  %v12402_v46 = vpop.permute.xlu0 %1681 }
 0x504   :  { %14158 = vst [vmem:[#allocation98_spill] sm:$0xff] %v12400_v4  ;;  %14159 = vst [vmem:[#allocation99_spill] sm:$0xff] %v12402_v46  ;;  %v1816_v4 = vmul.f32 %v11967_v14, %v14166_v63 }
 0x507   :  { %v12404_v16 = vpop.permute.xlu1 %1686  ;;  %v12406_v42 = vpop.permute.xlu0 %1441 }
 0x508   :  { %14160 = vst [vmem:[#allocation100_spill] sm:$0xff] %v12404_v16  ;;  %14161 = vst [vmem:[#allocation101_spill] sm:$0xff] %v12406_v42 }
 0x50b   :  { %v12408_v52 = vpop.permute.xlu1 %1446  ;;  %v12410_v17 = vpop.permute.xlu0 %1601 }
 0x50c   :  { %14162 = vst [vmem:[#allocation102_spill] sm:$0xff] %v12408_v52  ;;  %14163 = vst [vmem:[#allocation103_spill] sm:$0xff] %v12410_v17 }
 0x50f   :  { %v12412_v3 = vpop.permute.xlu1 %1606  ;;  %v8641_v51 = vpop.permute.xlu0 %8640 }
 0x510   :  { %14164 = vst [vmem:[#allocation104_spill] sm:$0xff] %v12412_v3  ;;  %v8643_v40 = vunpack.i.h.bf16 %v8641_v51  ;;  %v8642_v46 = vunpack.i.l.bf16 %v8641_v51  ;;  %v1801_v3 = vmul.f32 %v11877_v41, %v14167_v23 }
 0x512   :  { %v2521_v16 = vsel %vm2458_vm6, %v1816_v4, %v8642_v46  ;;  %v2522_v42 = vsel %vm2458_vm6, %v1817_v43, %v8643_v40  ;;  %v14169_v43 = vld [vmem:[#allocation28_spill] sm:$0xff] }
 0x513   :  { %v12420_v53 = vpop.permute.xlu1 %1516  ;;  %v8651_v52 = vpop.permute.xlu0 %8650  ;;  %v2562_v17 = vpack.c.bf16 %v2522_v42, %v2521_v16  ;;  %v1815_v63 = vmul.f32 %v11936_v36, %v14169_v43  ;;  %v14170_v16 = vld [vmem:[#allocation45_spill] sm:$0xff] }
 0x514   :  { %v8653_v19 = vunpack.i.h.bf16 %v8651_v52  ;;  %v8652_v58 = vunpack.i.l.bf16 %v8651_v52  ;;  %v1814_v41 = vmul.f32 %v12101_v59, %v14170_v16  ;;  %v14173_v16 = vld [vmem:[#allocation26_spill] sm:$0xff] }
 0x515   :  { %8541 = vmatprep.subr.bf16.mxu0 %v2562_v17 }
 0x516   :  { %v2506_v14 = vsel %vm2458_vm6, %v1801_v3, %v8653_v19  ;;  %v2505_v51 = vsel %vm2458_vm6, %v1800_v10, %v8652_v58  ;;  %v14171_v3 = vld [vmem:[#allocation25_spill] sm:$0xff]  ;;  %v14172_v58 = vld [vmem:[#allocation46_spill] sm:$0xff] }
 0x517   :  { %v2554_v46 = vpack.c.bf16 %v2506_v14, %v2505_v51  ;;  %v12428_v4 = vpop.permute.xlu1 %1676  ;;  %v8661_v40 = vpop.permute.xlu0 %8660  ;;  %v1799_v19 = vmul.f32 %v12004_v15, %v14171_v3  ;;  %v1798_v36 = vmul.f32 %v12171_v30, %v14172_v58  ;;  %v14175_v30 = vld [vmem:[#allocation52_spill] sm:$0xff]  ;;  %v14178_v58 = vld [vmem:[#allocation30_spill] sm:$0xff] }
 0x518   :  { %v8663_v23 = vunpack.i.h.bf16 %v8661_v40  ;;  %v8662_v42 = vunpack.i.l.bf16 %v8661_v40 }
 0x519   :  { %8542 = vmatpush3.bf16.msra.mxu0 %v2554_v46 }
 0x51a   :  { %v2519_v47 = vsel %vm2458_vm6, %v1814_v41, %v8662_v42  ;;  %v2520_v52 = vsel %vm2458_vm6, %v1815_v63, %v8663_v23  ;;  %v1813_v41 = vmul.f32 %v12072_v2, %v14173_v16  ;;  %v14174_v23 = vld [vmem:[#allocation48_spill] sm:$0xff]  ;;  %v14179_v2 = vld [vmem:[#allocation50_spill] sm:$0xff] }
 0x51b   :  { %v12436_v17 = vpop.permute.xlu1 %1436  ;;  %v8671_v10 = vpop.permute.xlu0 %8670  ;;  %v2561_v0 = vpack.c.bf16 %v2520_v52, %v2519_v47  ;;  %v1812_v15 = vmul.f32 %v12239_v50, %v14174_v23  ;;  %v14176_v52 = vld [vmem:[#allocation44_spill] sm:$0xff] }
 0x51c   :  { %v8673_v14 = vunpack.i.h.bf16 %v8671_v10  ;;  %v8672_v51 = vunpack.i.l.bf16 %v8671_v10  ;;  %v1785_v10 = vmul.f32 %v14176_v52, %v14175_v30  ;;  %v1811_v30 = vmul.f32 %v12208_v11, %v11951_v24  ;;  %v14181_v52 = vld [vmem:[#allocation27_spill] sm:$0xff] }
 0x51d   :  { %8543 = vmatprep.subr.bf16.mxu0 %v2561_v0 }
 0x51e   :  { %v2504_v59 = vsel %vm2458_vm6, %v1799_v19, %v8673_v14  ;;  %v2503_v46 = vsel %vm2458_vm6, %v1798_v36, %v8672_v51  ;;  %v14177_v19 = vld [vmem:[#allocation49_spill] sm:$0xff]  ;;  %v1797_v14 = vmul.f32 %v12140_v37, %v11918_v20  ;;  %v1796_v51 = vmul.f32 %v12290_v55, %v14179_v2 }
 0x51f   :  { %v2553_v40 = vpack.c.bf16 %v2504_v59, %v2503_v46  ;;  %v12444_v43 = vpop.permute.xlu1 %1596  ;;  %v8681_v63 = vpop.permute.xlu0 %8680  ;;  %v1784_v36 = vmul.f32 %v14178_v58, %v14177_v19 }
 0x520   :  { %v8683_v42 = vunpack.i.h.bf16 %v8681_v63  ;;  %v8682_v47 = vunpack.i.l.bf16 %v8681_v63 }
 0x521   :  { %8544 = vmatpush3.bf16.msra.mxu0 %v2553_v40 }
 0x522   :  { %v2517_v0 = vsel %vm2458_vm6, %v1812_v15, %v8682_v47  ;;  %v2518_v3 = vsel %vm2458_vm6, %v1813_v41, %v8683_v42  ;;  %v14180_v15 = vld [vmem:[#allocation47_spill] sm:$0xff]  ;;  %v1768_v41 = vmul.f32 %v12001_v31, %v11941_v22 }
 0x523   :  { %v8636_v50 = vpop.permute.xlu1 %8635  ;;  %v8691_v59 = vpop.permute.xlu0 %8690  ;;  %v2560_v46 = vpack.c.bf16 %v2518_v3, %v2517_v0  ;;  %v1769_v47 = vmul.f32 %v14180_v15, %v11923_v34  ;;  %v1810_v0 = vmul.f32 %v12329_v9, %v14181_v52 }
 0x524   :  { %v8638_v40 = vunpack.i.h.bf16 %v8636_v50  ;;  %v8637_v63 = vunpack.i.l.bf16 %v8636_v50  ;;  %v8693_v16 = vunpack.i.h.bf16 %v8691_v59  ;;  %v8692_v23 = vunpack.i.l.bf16 %v8691_v59  ;;  %v14183_v59 = vld [vmem:[#allocation54_spill] sm:$0xff] }
 0x525   :  { %8545 = vmatprep.subr.bf16.mxu0 %v2560_v46  ;;  %v1795_v46 = vmul.f32 %v12271_v39, %v14183_v59  ;;  %v1792_v59 = vmul.f32 %v12380_v60, %v12031_v57 }
 0x526   :  { %v2502_v42 = vsel %vm2458_vm6, %v1797_v14, %v8693_v16  ;;  %v2501_v20 = vsel %vm2458_vm6, %v1796_v51, %v8692_v23  ;;  %v2489_v37 = vsel %vm2458_vm6, %v1784_v36, %v8637_v63  ;;  %v2490_v55 = vsel %vm2458_vm6, %v1785_v10, %v8638_v40  ;;  %v14182_v51 = vld [vmem:[#allocation51_spill] sm:$0xff]  ;;  %v14184_v40 = vld [vmem:[#allocation29_spill] sm:$0xff] }
 0x527   :  { %v2552_v3 = vpack.c.bf16 %v2502_v42, %v2501_v20  ;;  %v8646_v34 = vpop.permute.xlu1 %8645  ;;  %v8701_v19 = vpop.permute.xlu0 %8700  ;;  %v2546_v58 = vpack.c.bf16 %v2490_v55, %v2489_v37  ;;  %v1783_v50 = vmul.f32 %v14182_v51, %v11958_v56  ;;  %v1782_v10 = vmul.f32 %v12069_v33, %v11975_v8  ;;  %v14186_v37 = vld [vmem:[#allocation55_spill] sm:$0xff] }
 0x528   :  { %v8648_v31 = vunpack.i.h.bf16 %v8646_v34  ;;  %v8647_v22 = vunpack.i.l.bf16 %v8646_v34  ;;  %v8703_v2 = vunpack.i.h.bf16 %v8701_v19  ;;  %v8702_v14 = vunpack.i.l.bf16 %v8701_v19  ;;  %v14188_v34 = vld [vmem:[#allocation31_spill] sm:$0xff] }
 0x529   :  { %8513 = vmatprep.subr.bf16.mxu1 %v2546_v58  ;;  %8546 = vmatpush3.bf16.msra.mxu0 %v2552_v3  ;;  %v1794_v63 = vmul.f32 %v12362_v27, %v14184_v40  ;;  %v1766_v55 = vmul.f32 %v12137_v29, %v14186_v37  ;;  %v1808_v19 = vmul.f32 %v12372_v18, %v14188_v34  ;;  %v14193_v34 = vld [vmem:[#allocation61_spill] sm:$0xff] }
 0x52a   :  { %v2473_v24 = vsel %vm2458_vm6, %v1768_v41, %v8647_v22  ;;  %v2474_v11 = vsel %vm2458_vm6, %v1769_v47, %v8648_v31  ;;  %v2515_v9 = vsel %vm2458_vm6, %v1810_v0, %v8702_v14  ;;  %v2516_v36 = vsel %vm2458_vm6, %v1811_v30, %v8703_v2  ;;  %v14185_v47 = vld [vmem:[#allocation53_spill] sm:$0xff]  ;;  %v14187_v0 = vld [vmem:[#allocation56_spill] sm:$0xff] }
 0x52b   :  { %v2538_v56 = vpack.c.bf16 %v2474_v11, %v2473_v24  ;;  %v8656_v16 = vpop.permute.xlu1 %8655  ;;  %v8711_v23 = vpop.permute.xlu0 %8710  ;;  %v2559_v8 = vpack.c.bf16 %v2516_v36, %v2515_v9  ;;  %v1767_v20 = vmul.f32 %v14185_v47, %v12011_v6  ;;  %v1809_v3 = vmul.f32 %v12313_v35, %v14187_v0  ;;  %v14189_v24 = vld [vmem:[#allocation57_spill] sm:$0xff] }
 0x52c   :  { %v8658_v33 = vunpack.i.h.bf16 %v8656_v16  ;;  %v8657_v15 = vunpack.i.l.bf16 %v8656_v16  ;;  %v8713_v42 = vunpack.i.h.bf16 %v8711_v23  ;;  %v8712_v41 = vunpack.i.l.bf16 %v8711_v23 }
 0x52d   :  { %8514 = vmatpush3.bf16.msra.mxu1 %v2538_v56  ;;  %8547 = vmatprep.subr.bf16.mxu0 %v2559_v8  ;;  %v1781_v11 = vmul.f32 %v14189_v24, %v12026_v1  ;;  %v1793_v36 = vmul.f32 %v12351_v25, %v12051_v62  ;;  %v1765_v23 = vmul.f32 %v12106_v44, %v12080_v5  ;;  %v14190_v8 = vld [vmem:[#allocation58_spill] sm:$0xff]  ;;  %v14196_v24 = vld [vmem:[#allocation37_spill] sm:$0xff] }
 0x52e   :  { %v2500_v39 = vsel %vm2458_vm6, %v1795_v46, %v8713_v42  ;;  %v2499_v27 = vsel %vm2458_vm6, %v1794_v63, %v8712_v41  ;;  %v2487_v30 = vsel %vm2458_vm6, %v1782_v10, %v8657_v15  ;;  %v2488_v52 = vsel %vm2458_vm6, %v1783_v50, %v8658_v33  ;;  %v14191_v42 = vld [vmem:[#allocation59_spill] sm:$0xff] }
 0x52f   :  { %v2551_v6 = vpack.c.bf16 %v2500_v39, %v2499_v27  ;;  %v8666_v58 = vpop.permute.xlu1 %8665  ;;  %v8721_v31 = vpop.permute.xlu0 %8720  ;;  %v2545_v29 = vpack.c.bf16 %v2488_v52, %v2487_v30  ;;  %v1780_v50 = vmul.f32 %v12205_v21, %v12043_v49  ;;  %v1764_v33 = vmul.f32 %v12268_v13, %v14190_v8  ;;  %v14192_v27 = vld [vmem:[#allocation60_spill] sm:$0xff] }
 0x530   :  { %v8668_v22 = vunpack.i.h.bf16 %v8666_v58  ;;  %v8667_v2 = vunpack.i.l.bf16 %v8666_v58  ;;  %v8723_v14 = vunpack.i.h.bf16 %v8721_v31  ;;  %v8722_v51 = vunpack.i.l.bf16 %v8721_v31 }
 0x531   :  { %8515 = vmatprep.subr.bf16.mxu1 %v2545_v29  ;;  %8548 = vmatpush3.bf16.msra.mxu0 %v2551_v6  ;;  %v1807_v15 = vmul.f32 %v12370_v12, %v12087_v45  ;;  %v1806_v41 = vmul.f32 %v12388_v61, %v14191_v42  ;;  %v1779_v30 = vmul.f32 %v12174_v28, %v14192_v27 }
 0x532   :  { %v2471_v35 = vsel %vm2458_vm6, %v1766_v55, %v8667_v2  ;;  %v2472_v18 = vsel %vm2458_vm6, %v1767_v20, %v8668_v22  ;;  %v2513_v10 = vsel %vm2458_vm6, %v1808_v19, %v8722_v51  ;;  %v2514_v9 = vsel %vm2458_vm6, %v1809_v3, %v8723_v14  ;;  %v14194_v2 = vld [vmem:[#allocation75_spill] sm:$0xff]  ;;  %v14195_v51 = vld [vmem:[#allocation62_spill] sm:$0xff] }
 0x533   :  { %v2537_v1 = vpack.c.bf16 %v2472_v18, %v2471_v35  ;;  %v8676_v46 = vpop.permute.xlu1 %8675  ;;  %v8731_v40 = vpop.permute.xlu0 %8730  ;;  %v2558_v49 = vpack.c.bf16 %v2514_v9, %v2513_v10  ;;  %v1778_v52 = vmul.f32 %v12310_v32, %v12111_v38  ;;  %v1791_v3 = vmul.f32 %v12378_v7, %v12121_v54  ;;  %v14197_v35 = vld [vmem:[#allocation64_spill] sm:$0xff]  ;;  %v14198_v18 = vld [vmem:[#allocation93_spill] sm:$0xff]  ;;  %v14199_v9 = vld [vmem:[#allocation63_spill] sm:$0xff] }
 0x534   :  { %v8678_v21 = vunpack.i.h.bf16 %v8676_v46  ;;  %v8677_v63 = vunpack.i.l.bf16 %v8676_v46  ;;  %v8733_v56 = vunpack.i.h.bf16 %v8731_v40  ;;  %v8732_v16 = vunpack.i.l.bf16 %v8731_v40 }
 0x535   :  { %8516 = vmatpush3.bf16.msra.mxu1 %v2537_v1  ;;  %8549 = vmatprep.subr.bf16.mxu0 %v2558_v49  ;;  %v1790_v19 = vmul.f32 %v12396_v48, %v14193_v34  ;;  %v1763_v14 = vmul.f32 %v14194_v2, %v12145_v26  ;;  %v1805_v10 = vmul.f32 %v14198_v18, %v14197_v35  ;;  %v14211_v34 = vld [vmem:[#allocation69_spill] sm:$0xff]  ;;  %v14215_v2 = vld [vmem:[#allocation70_spill] sm:$0xff]  ;;  %v14216_v18 = vld [vmem:[#allocation76_spill] sm:$0xff] }
 0x536   :  { %v2498_v62 = vsel %vm2458_vm6, %v1793_v36, %v8733_v56  ;;  %v2497_v57 = vsel %vm2458_vm6, %v1792_v59, %v8732_v16  ;;  %v2485_v25 = vsel %vm2458_vm6, %v1780_v50, %v8677_v63  ;;  %v2486_v60 = vsel %vm2458_vm6, %v1781_v11, %v8678_v21  ;;  %v14200_v36 = vld [vmem:[#allocation100_spill] sm:$0xff]  ;;  %v14201_v16 = vld [vmem:[#allocation65_spill] sm:$0xff] }
 0x537   :  { %v2550_v5 = vpack.c.bf16 %v2498_v62, %v2497_v57  ;;  %v8686_v44 = vpop.permute.xlu1 %8685  ;;  %v8741_v47 = vpop.permute.xlu0 %8740  ;;  %v2544_v13 = vpack.c.bf16 %v2486_v60, %v2485_v25  ;;  %v1762_v11 = vmul.f32 %v14196_v24, %v14195_v51  ;;  %v1804_v59 = vmul.f32 %v14200_v36, %v14199_v9  ;;  %v14204_v62 = vld [vmem:[#allocation88_spill] sm:$0xff]  ;;  %v14218_v36 = vld [vmem:[#allocation73_spill] sm:$0xff] }
 0x538   :  { %v8688_v20 = vunpack.i.h.bf16 %v8686_v44  ;;  %v8687_v37 = vunpack.i.l.bf16 %v8686_v44  ;;  %v8743_v55 = vunpack.i.h.bf16 %v8741_v47  ;;  %v8742_v39 = vunpack.i.l.bf16 %v8741_v47  ;;  %v14207_v47 = vld [vmem:[#allocation66_spill] sm:$0xff] }
 0x539   :  { %8517 = vmatprep.subr.bf16.mxu1 %v2544_v13  ;;  %8550 = vmatpush3.bf16.msra.mxu0 %v2550_v5  ;;  %v14206_v5 = vld [vmem:[#allocation96_spill] sm:$0xff] }
 0x53a   :  { %v2469_v45 = vsel %vm2458_vm6, %v1764_v33, %v8687_v37  ;;  %v2470_v12 = vsel %vm2458_vm6, %v1765_v23, %v8688_v20  ;;  %v2511_v61 = vsel %vm2458_vm6, %v1806_v41, %v8742_v39  ;;  %v2512_v0 = vsel %vm2458_vm6, %v1807_v15, %v8743_v55  ;;  %v14202_v23 = vld [vmem:[#allocation81_spill] sm:$0xff]  ;;  %v14203_v33 = vld [vmem:[#allocation67_spill] sm:$0xff]  ;;  %v14205_v41 = vld [vmem:[#allocation68_spill] sm:$0xff] }
 0x53b   :  { %v2536_v28 = vpack.c.bf16 %v2470_v12, %v2469_v45  ;;  %v8696_v6 = vpop.permute.xlu1 %8695  ;;  %v8751_v58 = vpop.permute.xlu0 %8750  ;;  %v2557_v38 = vpack.c.bf16 %v2512_v0, %v2511_v61  ;;  %v1777_v8 = vmul.f32 %v14202_v23, %v14201_v16  ;;  %v1776_v57 = vmul.f32 %v14204_v62, %v14203_v33  ;;  %v14208_v13 = vld [vmem:[#allocation104_spill] sm:$0xff]  ;;  %v14209_v61 = vld [vmem:[#allocation71_spill] sm:$0xff] }
 0x53c   :  { %v8698_v32 = vunpack.i.h.bf16 %v8696_v6  ;;  %v8697_v31 = vunpack.i.l.bf16 %v8696_v6  ;;  %v8753_v29 = vunpack.i.h.bf16 %v8751_v58  ;;  %v8752_v22 = vunpack.i.l.bf16 %v8751_v58  ;;  %v14210_v0 = vld [vmem:[#allocation32_spill] sm:$0xff] }
 0x53d   :  { %8518 = vmatpush3.bf16.msra.mxu1 %v2536_v28  ;;  %8551 = vmatprep.subr.bf16.mxu0 %v2557_v38  ;;  %v1789_v44 = vmul.f32 %v14206_v5, %v14205_v41  ;;  %v1788_v20 = vmul.f32 %v14208_v13, %v14207_v47 }
 0x53e   :  { %v2496_v54 = vsel %vm2458_vm6, %v1791_v3, %v8753_v29  ;;  %v2495_v7 = vsel %vm2458_vm6, %v1790_v19, %v8752_v22  ;;  %v2483_v48 = vsel %vm2458_vm6, %v1778_v52, %v8697_v31  ;;  %v2484_v50 = vsel %vm2458_vm6, %v1779_v30, %v8698_v32  ;;  %v14212_v19 = vld [vmem:[#allocation90_spill] sm:$0xff]  ;;  %v14213_v31 = vld [vmem:[#allocation72_spill] sm:$0xff]  ;;  %v14214_v29 = vld [vmem:[#allocation99_spill] sm:$0xff] }
 0x53f   :  { %v2549_v26 = vpack.c.bf16 %v2496_v54, %v2495_v7  ;;  %v8706_v1 = vpop.permute.xlu1 %8705  ;;  %v8761_v46 = vpop.permute.xlu0 %8760  ;;  %v2543_v40 = vpack.c.bf16 %v2484_v50, %v2483_v48  ;;  %v1761_v3 = vmul.f32 %v14210_v0, %v14209_v61  ;;  %v1760_v28 = vmul.f32 %v14212_v19, %v14211_v34  ;;  %v8864_v61 = vld [vmem:[#allocation7 + $0x2c] ss:$16 sps:$4 sm:$0xff]  }
 0x540   :  { %v8708_v49 = vunpack.i.h.bf16 %v8706_v1  ;;  %v8707_v21 = vunpack.i.l.bf16 %v8706_v1  ;;  %v8763_v63 = vunpack.i.h.bf16 %v8761_v46  ;;  %v8762_v56 = vunpack.i.l.bf16 %v8761_v46 }
 0x541   :  { %8519 = vmatprep.subr.bf16.mxu1 %v2543_v40  ;;  %8552 = vmatpush3.bf16.msra.mxu0 %v2549_v26  ;;  %v1803_v22 = vmul.f32 %v14214_v29, %v14213_v31 }
 0x542   :  { %v2467_v25 = vsel %vm2458_vm6, %v1762_v11, %v8707_v21  ;;  %v2468_v60 = vsel %vm2458_vm6, %v1763_v14, %v8708_v49  ;;  %v2509_v15 = vsel %vm2458_vm6, %v1804_v59, %v8762_v56  ;;  %v2510_v42 = vsel %vm2458_vm6, %v1805_v10, %v8763_v63  ;;  %v14217_v10 = vld [vmem:[#allocation38_spill] sm:$0xff]  ;;  %v14219_v59 = vld [vmem:[#allocation92_spill] sm:$0xff]  ;;  %v14220_v49 = vld [vmem:[#allocation77_spill] sm:$0xff] }
 0x543   :  { %v2535_v37 = vpack.c.bf16 %v2468_v60, %v2467_v25  ;;  %v8716_v55 = vpop.permute.xlu1 %8715  ;;  %v8771_v39 = vpop.permute.xlu0 %8770  ;;  %v2556_v27 = vpack.c.bf16 %v2510_v42, %v2509_v15  ;;  %v1802_v14 = vmul.f32 %v12428_v4, %v14215_v2  ;;  %v1775_v9 = vmul.f32 %v14217_v10, %v14216_v18  ;;  %v14221_v21 = vld [vmem:[#allocation103_spill] sm:$0xff]  ;;  %v14222_v56 = vld [vmem:[#allocation74_spill] sm:$0xff] }
 0x544   :  { %v8718_v30 = vunpack.i.h.bf16 %v8716_v55  ;;  %v8717_v52 = vunpack.i.l.bf16 %v8716_v55  ;;  %v8773_v45 = vunpack.i.h.bf16 %v8771_v39  ;;  %v8772_v12 = vunpack.i.l.bf16 %v8771_v39  ;;  %v14225_v39 = vld [vmem:[#allocation78_spill] sm:$0xff] }
 0x545   :  { %8520 = vmatpush3.bf16.msra.mxu1 %v2535_v37  ;;  %8553 = vmatprep.subr.bf16.mxu0 %v2556_v27  ;;  %v1774_v26 = vmul.f32 %v14219_v59, %v14218_v36  ;;  %v1787_v63 = vmul.f32 %v14221_v21, %v14220_v49  ;;  %v1786_v16 = vmul.f32 %v12444_v43, %v14222_v56  ;;  %v14224_v37 = vld [vmem:[#allocation89_spill] sm:$0xff]  ;;  %v14226_v27 = vld [vmem:[#allocation95_spill] sm:$0xff]  ;;  %v14237_v49 = vld [vmem:[#allocation42_spill] sm:$0xff] }
 0x546   :  { %v2494_v6 = vsel %vm2458_vm6, %v1789_v44, %v8773_v45  ;;  %v2493_v58 = vsel %vm2458_vm6, %v1788_v20, %v8772_v12  ;;  %v2481_v38 = vsel %vm2458_vm6, %v1776_v57, %v8717_v52  ;;  %v2482_v32 = vsel %vm2458_vm6, %v1777_v8, %v8718_v30  ;;  %v14223_v20 = vld [vmem:[#allocation79_spill] sm:$0xff]  ;;  %v8858_v12 = vld [vmem:[#allocation7 + $0x8] ss:$16 sps:$4 sm:$0xff]  }
 0x547   :  { %v2548_v51 = vpack.c.bf16 %v2494_v6, %v2493_v58  ;;  %v8726_v24 = vpop.permute.xlu1 %8725  ;;  %v8781_v11 = vpop.permute.xlu0 %8780  ;;  %v2542_v54 = vpack.c.bf16 %v2482_v32, %v2481_v38  ;;  %v1759_v55 = vmul.f32 %v14224_v37, %v14223_v20  ;;  %v1758_v30 = vmul.f32 %v14226_v27, %v14225_v39  ;;  %v14228_v6 = vld [vmem:[#allocation91_spill] sm:$0xff]  ;;  %v14229_v38 = vld [vmem:[#allocation80_spill] sm:$0xff]  ;;  %v14230_v32 = vld [vmem:[#allocation98_spill] sm:$0xff] }
 0x548   :  { %v8728_v7 = vunpack.i.h.bf16 %v8726_v24  ;;  %v8727_v48 = vunpack.i.l.bf16 %v8726_v24  ;;  %v8783_v50 = vunpack.i.h.bf16 %v8781_v11  ;;  %v8782_v35 = vunpack.i.l.bf16 %v8781_v11  ;;  %v14231_v11 = vld [vmem:[#allocation84_spill] sm:$0xff]  ;;  %v8869_v20 = vld [vmem:[#allocation7 + $0x20] ss:$16 sps:$4 sm:$0xff]   ;;  %v8874_v27 = vld [vmem:[%s13913_s8 + $0x18] sm:$0xff]  }
 0x549   :  { %8521 = vmatprep.subr.bf16.mxu1 %v2542_v54  ;;  %8554 = vmatpush3.bf16.msra.mxu0 %v2548_v51  ;;  %v1772_v31 = vmul.f32 %v14230_v32, %v14229_v38  ;;  %v14232_v54 = vld [vmem:[#allocation94_spill] sm:$0xff]  ;;  %v1770_v21 = vmul.f32 %v12420_v53, %v14237_v49  ;;  %v8871_v37 = vld [vmem:[%s13913_s8 + $0x30] sm:$0xff]   ;;  %v8873_v39 = vld [vmem:[%s13913_s8 + $0x20] sm:$0xff]  }
 0x54a   :  { %v2465_v1 = vsel %vm2458_vm6, %v1760_v28, %v8727_v48  ;;  %v2466_v4 = vsel %vm2458_vm6, %v1761_v3, %v8728_v7  ;;  %v2507_v46 = vsel %vm2458_vm6, %v1802_v14, %v8782_v35  ;;  %v2508_v40 = vsel %vm2458_vm6, %v1803_v22, %v8783_v50  ;;  %v14227_v28 = vld [vmem:[#allocation82_spill] sm:$0xff]  ;;  %v14233_v48 = vld [vmem:[#allocation83_spill] sm:$0xff] }
 0x54b   :  { %v2534_v23 = vpack.c.bf16 %v2466_v4, %v2465_v1  ;;  %v8736_v8 = vpop.permute.xlu1 %8735  ;;  %v8791_v33 = vpop.permute.xlu0 %8790  ;;  %v2555_v62 = vpack.c.bf16 %v2508_v40, %v2507_v46  ;;  %v1773_v58 = vmul.f32 %v14228_v6, %v14227_v28  ;;  %v1757_v7 = vmul.f32 %v14232_v54, %v14231_v11  ;;  %v14234_v50 = vld [vmem:[#allocation102_spill] sm:$0xff]  ;;  %v14235_v4 = vld [vmem:[#allocation85_spill] sm:$0xff] }
 0x54c   :  { %v8738_v57 = vunpack.i.h.bf16 %v8736_v8  ;;  %v8737_v25 = vunpack.i.l.bf16 %v8736_v8  ;;  %v8793_v60 = vunpack.i.h.bf16 %v8791_v33  ;;  %v8792_v15 = vunpack.i.l.bf16 %v8791_v33  ;;  %v14236_v46 = vld [vmem:[#allocation97_spill] sm:$0xff] }
 0x54d   :  { %8522 = vmatpush3.bf16.msra.mxu1 %v2534_v23  ;;  %8555 = vmatprep.subr.bf16.mxu0 %v2555_v62  ;;  %v1756_v35 = vmul.f32 %v14234_v50, %v14233_v48  ;;  %v1771_v40 = vmul.f32 %v14236_v46, %v14235_v4  ;;  %v8882_v4 = vld [vmem:[%s13913_s8 + $0x48] sm:$0xff]  }
 0x54e   :  { %v2492_v42 = vsel %vm2458_vm6, %v1787_v63, %v8793_v60  ;;  %v2491_v41 = vsel %vm2458_vm6, %v1786_v16, %v8792_v15  ;;  %v2479_v5 = vsel %vm2458_vm6, %v1774_v26, %v8737_v25  ;;  %v2480_v44 = vsel %vm2458_vm6, %v1775_v9, %v8738_v57  ;;  %v8866_v9 = vld [vmem:[#allocation7 + $0x28] ss:$16 sps:$4 sm:$0xff]   ;;  %v14239_v57 = vld [vmem:[#allocation87_spill] sm:$0xff]  ;;  %v14240_v25 = vld [vmem:[#allocation101_spill] sm:$0xff] }
 0x54f   :  { %v2547_v47 = vpack.c.bf16 %v2492_v42, %v2491_v41  ;;  %v8746_v43 = vpop.permute.xlu1 %8745  ;;  %v2541_v13 = vpack.c.bf16 %v2480_v44, %v2479_v5  ;;  %v14238_v16 = vmov 0   ;;  %v1755_v60 = vmul.f32 %v14240_v25, %v14239_v57  ;;  %v14241_v15 = vld [vmem:[#allocation86_spill] sm:$0xff] }
 0x550   :  { %v8748_v52 = vunpack.i.h.bf16 %v8746_v43  ;;  %v8747_v45 = vunpack.i.l.bf16 %v8746_v43  ;;  %v1754_v42 = vmul.f32 %v12436_v17, %v14241_v15  ;;  %v8861_v43 = vld [vmem:[#allocation7] ss:$16 sps:$4 sm:$0xff]   ;;  %v8870_v17 = vld [vmem:[%s13913_s8 + $0x38] sm:$0xff]  }
 0x551   :  { %8523 = vmatprep.subr.bf16.mxu1 %v2541_v13  ;;  %8556 = vmatpush3.bf16.msra.mxu0 %v2547_v47  ;;  %v8867_v13 = vld [vmem:[#allocation7 + $0x24] ss:$16 sps:$4 sm:$0xff]  }
 0x552   :  { %v2463_v0 = vsel %vm2458_vm6, %v1758_v30, %v8747_v45  ;;  %v2464_v3 = vsel %vm2458_vm6, %v1759_v55, %v8748_v52  ;;  %v8872_v55 = vld [vmem:[%s13913_s8 + $0x28] sm:$0xff]   ;;  %v8875_v30 = vld [vmem:[%s13913_s8 + $0x10] sm:$0xff]   ;;  %v8877_v45 = vld [vmem:[%s13913_s8] sm:$0xff]  }
 0x553   :  { %v2533_v34 = vpack.c.bf16 %v2464_v3, %v2463_v0  ;;  %v8756_v19 = vpop.permute.xlu1 %8755  ;;  %v8876_v52 = vld [vmem:[%s13913_s8 + $0x8] sm:$0xff]   ;;  %v8880_v0 = vld [vmem:[%s13913_s8 + $0x58] sm:$0xff]   ;;  %v8883_v15 = vld [vmem:[%s13913_s8 + $0x40] sm:$0xff]  }
 0x554   :  { %v8758_v29 = vunpack.i.h.bf16 %v8756_v19  ;;  %v8757_v22 = vunpack.i.l.bf16 %v8756_v19  ;;  %2685 = vmatmul.mubr.bf16.vlgmr.msra.gmra.mxu0 %v8858_v12  ;;  %v8878_v12 = vld [vmem:[%s13913_s8 + $0x68] sm:$0xff]  }
 0x555   :  { %8524 = vmatpush3.bf16.msra.mxu1 %v2533_v34  ;;  %2692 = vmatprep.mubr.bf16.mxu0 %v8864_v61  ;;  %v8879_v61 = vld [vmem:[%s13913_s8 + $0x60] sm:$0xff]  }
 0x556   :  { %v2477_v2 = vsel %vm2458_vm6, %v1772_v31, %v8757_v22  ;;  %v2478_v14 = vsel %vm2458_vm6, %v1773_v58, %v8758_v29 }
 0x557   :  { %v8766_v51 = vpop.permute.xlu1 %8765  ;;  %v2540_v24 = vpack.c.bf16 %v2478_v14, %v2477_v2 }
 0x558   :  { %v8768_v18 = vunpack.i.h.bf16 %v8766_v51  ;;  %v8767_v10 = vunpack.i.l.bf16 %v8766_v51  ;;  %v8881_v51 = vld [vmem:[%s13913_s8 + $0x50] sm:$0xff]   ;;  %s9965_s8 = smov 64  }
 0x559   :  { %8525 = vmatprep.subr.bf16.mxu1 %v2540_v24 }
 0x55a   :  { %v2461_v36 = vsel %vm2458_vm6, %v1756_v35, %v8767_v10  ;;  %v2462_v59 = vsel %vm2458_vm6, %v1757_v7, %v8768_v18 }
 0x55b   :  { %v2532_v26 = vpack.c.bf16 %v2462_v59, %v2461_v36  ;;  %v8776_v1 = vpop.permute.xlu1 %8775 }
 0x55c   :  { %v8778_v63 = vunpack.i.h.bf16 %v8776_v1  ;;  %v8777_v56 = vunpack.i.l.bf16 %v8776_v1  ;;  %2693 = vmatmul.mubr.bf16.gmra.mxu0 %v8866_v9 }
 0x55d   :  { %8526 = vmatpush3.bf16.msra.mxu1 %v2532_v26  ;;  %3121 = vmatprep.mubr.bf16.mxu0 %v14238_v16 }
 0x55e   :  { %v2475_v23 = vsel %vm2458_vm6, %v1770_v21, %v8777_v56  ;;  %v2476_v8 = vsel %vm2458_vm6, %v1771_v40, %v8778_v63 }
 0x55f   :  { %v8786_v33 = vpop.permute.xlu1 %8785  ;;  %v2539_v62 = vpack.c.bf16 %v2476_v8, %v2475_v23 }
 0x560   :  { %v8788_v41 = vunpack.i.h.bf16 %v8786_v33  ;;  %v8787_v53 = vunpack.i.l.bf16 %v8786_v33 }
 0x561   :  { %8527 = vmatprep.subr.bf16.mxu1 %v2539_v62 }
 0x562   :  { %v2459_v5 = vsel %vm2458_vm6, %v1754_v42, %v8787_v53  ;;  %v2460_v44 = vsel %vm2458_vm6, %v1755_v60, %v8788_v41 }
 0x563   :  { %v2531_v47 = vpack.c.bf16 %v2460_v44, %v2459_v5 }
 0x565   :  { %8528 = vmatpush3.bf16.msra.mxu1 %v2531_v47 }
 0x566   :  { %2984 = vmatprep.subr.bf16.mxu1 %v14238_v16 }
 0x568   :  { %2636 = vmatmul.mubr.bf16.vlgmr.msra.gmra.mxu1 %v8861_v43 }
 0x569   :  { %2643 = vmatprep.mubr.bf16.mxu1 %v8867_v13  ;;  %2985 = vmatpush1.bf16.msra.mxu1 %v8870_v17 }
 0x56a   :  { %2986 = vmatprep.subr.bf16.mxu1 %v14238_v16 }
 0x56d   :  { %2987 = vmatpush1.bf16.msra.mxu1 %v8871_v37 }
 0x56e   :  { %2988 = vmatprep.subr.bf16.mxu1 %v14238_v16 }
 0x570   :  { %2644 = vmatmul.mubr.bf16.gmra.mxu1 %v8869_v20 }
 0x571   :  { %2989 = vmatpush1.bf16.msra.mxu1 %v8872_v55 }
 0x572   :  { %2990 = vmatprep.subr.bf16.mxu1 %v14238_v16 }
 0x575   :  { %2991 = vmatpush1.bf16.msra.mxu1 %v8873_v39 }
 0x576   :  { %2992 = vmatprep.subr.bf16.mxu1 %v14238_v16 }
 0x579   :  { %2993 = vmatpush1.bf16.msra.mxu1 %v8874_v27 }
 0x57a   :  { %2994 = vmatprep.subr.bf16.mxu1 %v14238_v16 }
 0x57d   :  { %2995 = vmatpush1.bf16.msra.mxu1 %v8875_v30 }
 0x57e   :  { %2996 = vmatprep.subr.bf16.mxu1 %v14238_v16 }
 0x581   :  { %2997 = vmatpush1.bf16.msra.mxu1 %v8876_v52 }
 0x582   :  { %2998 = vmatprep.subr.bf16.mxu1 %v14238_v16 }
 0x585   :  { %2999 = vmatpush1.bf16.msra.mxu1 %v8877_v45 }
 0x586   :  { %3004 = vmatprep.subr.bf16.mxu1 %v14238_v16 }
 0x589   :  { %3005 = vmatpush2.bf16.msra.mxu1 %v8878_v12 }
 0x58a   :  { %3006 = vmatprep.subr.bf16.mxu1 %v14238_v16 }
 0x58d   :  { %3007 = vmatpush2.bf16.msra.mxu1 %v8879_v61 }
 0x58e   :  { %3008 = vmatprep.subr.bf16.mxu1 %v14238_v16 }
 0x591   :  { %3009 = vmatpush2.bf16.msra.mxu1 %v8880_v0 }
 0x592   :  { %3010 = vmatprep.subr.bf16.mxu1 %v14238_v16 }
 0x595   :  { %3011 = vmatpush2.bf16.msra.mxu1 %v8881_v51 }
 0x596   :  { %3012 = vmatprep.subr.bf16.mxu1 %v14238_v16 }
 0x599   :  { %3013 = vmatpush2.bf16.msra.mxu1 %v8882_v4 }
 0x59a   :  { %3014 = vmatprep.subr.bf16.mxu1 %v14238_v16 }
 0x59d   :  { %3015 = vmatpush2.bf16.msra.mxu1 %v8883_v15 }
 0x614   :  { %v8557_v3 = vpop.f32.mrf.mxu0 }
 0x616   :  { %v8558_v34 = vpop.f32.mrf.mxu0 }
 0x617   :  { %v8559_v29 = vadd.f32 %v8558_v34, %v8557_v3 }
 0x618   :  { %v8560_v19 = vpop.f32.mrf.mxu0 }
 0x61a   :  { %v8561_v28 = vpop.f32.mrf.mxu0 }
 0x61b   :  { %v8562_v54 = vadd.f32 %v8561_v28, %v8560_v19 }
 0x61c   :  { %v8563_v6 = vpop.f32.mrf.mxu0 }
 0x61e   :  { %v8564_v58 = vpop.f32.mrf.mxu0 }
 0x61f   :  { %v8565_v35 = vadd.f32 %v8564_v58, %v8563_v6 }
 0x620   :  { %v8566_v31 = vpop.f32.mrf.mxu0 }
 0x622   :  { %v8567_v11 = vpop.f32.mrf.mxu0 }
 0x623   :  { %v8568_v10 = vadd.f32 %v8567_v11, %v8566_v31 }
 0x628   :  { %v8529_v38 = vpop.f32.mrf.mxu1 }
 0x62a   :  { %v8530_v32 = vpop.f32.mrf.mxu1 }
 0x62b   :  { %v8531_v22 = vadd.f32 %v8530_v32, %v8529_v38 }
 0x62c   :  { %v8532_v2 = vpop.f32.mrf.mxu1 }
 0x62d   :  { %v12660_v14 = vadd.f32 %v8559_v29, %v8531_v22 }
 0x62e   :  { %v8533_v24 = vpop.f32.mrf.mxu1 }
 0x62f   :  { %v8534_v7 = vadd.f32 %v8533_v24, %v8532_v2  ;;  %v2717_v48 = vrot.slane %v12660_v14, 6  ;;  %v2751_v36 = vrot.slane %v12660_v14, 2  ;;  %v2762_v26 = vrot.slane %v12660_v14, 3 }
 0x630   :  { %v8535_v50 = vpop.f32.mrf.mxu1  ;;  %v2727_v1 = vrot.slane %v12660_v14, 7  ;;  %v2738_v20 = vrot.slane %v12660_v14, 1  ;;  %v2703_v17 = vrot.slane %v12660_v14, 5 }
 0x631   :  { %v12667_v18 = vadd.f32 %v8562_v54, %v8534_v7  ;;  %v2721_v59 = vsel %vm543_vm3, 0.0, %v2717_v48 }
 0x632   :  { %v8536_v9 = vpop.f32.mrf.mxu1  ;;  %v2731_v39 = vsel %vm541_vm2, 0.0, %v2727_v1 }
 0x633   :  { %v8537_v46 = vadd.f32 %v8536_v9, %v8535_v50  ;;  %v8794_v40 = vpack.i.bf16 %v12667_v18, %v12660_v14  ;;  %v2752_v49 = vrot.slane %v12667_v18, 2  ;;  %v2718_v21 = vrot.slane %v12667_v18, 6 }
 0x634   :  { %v8538_v63 = vpop.f32.mrf.mxu1  ;;  %v2763_v56 = vrot.slane %v12667_v18, 3  ;;  %v2728_v23 = vrot.slane %v12667_v18, 7  ;;  %v2739_v8 = vrot.slane %v12667_v18, 1  ;;  %v2704_v33 = vrot.slane %v12667_v18, 5 }
 0x635   :  { %v12684_v62 = vadd.f32 %v8565_v35, %v8537_v46  ;;  %8795 = vrot.lane.b32.xlu1 %v8794_v40, %s9964_s9  ;;  %v2753_v57 = vsel %vm2750_vm7, %v2751_v36, %v2752_v49  ;;  %v2755_v25 = vsel %vm2750_vm7, %v2752_v49, 0.0  ;;  %v2719_v60 = vsel %vm543_vm3, %v2717_v48, %v2718_v21 }
 0x636   :  { %v8539_v42 = vpop.f32.mrf.mxu1  ;;  %v8804_v41 = vpack.i.bf16 %v2755_v25, %v2753_v57  ;;  %v8799_v53 = vpack.i.bf16 %v2719_v60, %v2721_v59  ;;  %v2764_v5 = vsel %vm2761_vm8, %v2762_v26, %v2763_v56  ;;  %v2766_v44 = vsel %vm2761_vm8, %v2763_v56, 0.0 }
 0x637   :  { %v8540_v47 = vadd.f32 %v8539_v42, %v8538_v63  ;;  %v2729_v43 = vsel %vm541_vm2, %v2727_v1, %v2728_v23  ;;  %v2722_v13 = vrot.slane %v12684_v62, 6  ;;  %v8814_v55 = vpack.i.bf16 %v2766_v44, %v2764_v5 }
 0x638   :  { %8805 = vrot.lane.b32.xlu0 %v8804_v41, %s9956_s5  ;;  %v2740_v27 = vsel %vm2737_vm9, %v2738_v20, %v2739_v8  ;;  %v8809_v30 = vpack.i.bf16 %v2729_v43, %v2731_v39  ;;  %v2756_v52 = vrot.slane %v12684_v62, 2  ;;  %v2732_v45 = vrot.slane %v12684_v62, 7 }
 0x639   :  { %v12701_v37 = vadd.f32 %v8568_v10, %v8540_v47  ;;  %8800 = vrot.lane.b32.xlu1 %v8799_v53, %s9956_s5  ;;  %v2705_v12 = vsel %vm545_vm4, %v2703_v17, %v2704_v33  ;;  %v2726_v0 = vsel %vm543_vm3, 0.0, %v2722_v13  ;;  %v2711_v28 = vrot.slane %v12684_v62, 5 }
 0x63a   :  { %v2744_v29 = vrot.slane %v12684_v62, 1  ;;  %v2767_v14 = vrot.slane %v12684_v62, 3  ;;  %v2736_v48 = vsel %vm541_vm2, 0.0, %v2732_v45  ;;  %v2743_v40 = vsel %vm2737_vm9, %v2739_v8, 0.0 }
 0x63b   :  { %v2723_v61 = vrot.slane %v12701_v37, 6  ;;  %v2757_v3 = vrot.slane %v12701_v37, 2  ;;  %v2733_v34 = vrot.slane %v12701_v37, 7  ;;  %v2768_v19 = vrot.slane %v12701_v37, 3 }
 0x63c   :  { %8815 = vrot.lane.b32.xlu0 %v8814_v55, %s9965_s8  ;;  %v2712_v6 = vrot.slane %v12701_v37, 5  ;;  %v2745_v58 = vrot.slane %v12701_v37, 1  ;;  %v8839_v10 = vpack.i.bf16 %v12701_v37, %v12684_v62  ;;  %v2708_v49 = vsel %vm545_vm4, 0.0, %v2703_v17 }
 0x63d   :  { %8810 = vrot.lane.b32.xlu1 %v8809_v30, %s9965_s8  ;;  %v2724_v38 = vsel %vm543_vm3, %v2722_v13, %v2723_v61  ;;  %v2758_v32 = vsel %vm2750_vm7, %v2756_v52, %v2757_v3  ;;  %v2760_v31 = vsel %vm2750_vm7, %v2757_v3, 0.0  ;;  %v2734_v51 = vsel %vm541_vm2, %v2732_v45, %v2733_v34 }
 0x63e   :  { %v8819_v22 = vpack.i.bf16 %v2724_v38, %v2726_v0  ;;  %v8824_v2 = vpack.i.bf16 %v2760_v31, %v2758_v32  ;;  %v12728_v24 = vsel %vm545_vm4, %v2711_v28, %v2712_v6  ;;  %v2746_v11 = vsel %vm2737_vm9, %v2744_v29, %v2745_v58 }
 0x63f   :  { %v2769_v54 = vsel %vm2761_vm8, %v2767_v14, %v2768_v19  ;;  %v2771_v7 = vsel %vm2761_vm8, %v2768_v19, 0.0  ;;  %v8829_v50 = vpack.i.bf16 %v2734_v51, %v2736_v48  ;;  %v2716_v32 = vsel %vm545_vm4, 0.0, %v2711_v28  ;;  %v12775_v48 = vld [vmem:[#allocation8 + $0x4] ss:$16 sps:$4 sm:$0xff]  }
 0x640   :  { %8820 = vrot.lane.b32.xlu0 %v8819_v22, %s9956_s5  ;;  %v8834_v35 = vpack.i.bf16 %v2771_v7, %v2769_v54  ;;  %v8884_v7 = vld [vmem:[#allocation8] ss:$16 sps:$4 sm:$0xff]   ;;  %3103 = vmatprep.subr.bf16.mxu0 %v12775_v48 }
 0x641   :  { %8825 = vrot.lane.b32.xlu1 %v8824_v2, %s9956_s5  ;;  %3104 = vmatpush1.bf16.msra.mxu0 %v8884_v7  ;;  %v187_v7 = vld [vmem:[#allocation2 + $0x40] sm:$0xff] }
 0x644   :  { %8830 = vrot.lane.b32.xlu0 %v8829_v50, %s9965_s8  ;;  %v8889_v50 = vld [vmem:[#allocation8 + $0xc] ss:$16 sps:$4 sm:$0xff]  }
 0x645   :  { %8835 = vrot.lane.b32.xlu1 %v8834_v35, %s9965_s8  ;;  %3156 = vmatprep.subr.bf16.mxu0 %v8889_v50  ;;  %v14246_v50 = vld [vmem:[#allocation35_spill] sm:$0xff] }
 0x648   :  { %8840 = vrot.lane.b32.xlu0 %v8839_v10, %s9964_s9 }
 0x6a7   :  { %v8796_v9 = vpop.permute.xlu1 %8795 }
 0x6a8   :  { %v8798_v63 = vunpack.i.h.bf16 %v8796_v9  ;;  %v8797_v56 = vunpack.i.l.bf16 %v8796_v9 }
 0x6aa   :  { %v8806_v36 = vpop.permute.xlu0 %8805 }
 0x6ab   :  { %v8801_v59 = vpop.permute.xlu1 %8800  ;;  %v8808_v26 = vunpack.i.h.bf16 %v8806_v36  ;;  %v8807_v1 = vunpack.i.l.bf16 %v8806_v36 }
 0x6ac   :  { %v8803_v4 = vunpack.i.h.bf16 %v8801_v59  ;;  %v8802_v46 = vunpack.i.l.bf16 %v8801_v59 }
 0x6ad   :  { %v2855_v25 = vsel %vm229_vm1, %v2743_v40, %v8808_v26  ;;  %v2854_v60 = vsel %vm229_vm1, %v2740_v27, %v8807_v1 }
 0x6ae   :  { %v8816_v21 = vpop.permute.xlu0 %8815  ;;  %v2840_v18 = vsel %vm229_vm1, %v2708_v49, %v8802_v46  ;;  %v2841_v8 = vsel %vm229_vm1, %v2705_v12, %v8803_v4  ;;  %v2749_v12 = vsel %vm2737_vm9, %v2745_v58, 0.0 }
 0x6af   :  { %v8818_v23 = vunpack.i.h.bf16 %v8816_v21  ;;  %v8817_v33 = vunpack.i.l.bf16 %v8816_v21  ;;  %v8811_v57 = vpop.permute.xlu1 %8810 }
 0x6b0   :  { %v8813_v15 = vunpack.i.h.bf16 %v8811_v57  ;;  %v8812_v42 = vunpack.i.l.bf16 %v8811_v57 }
 0x6b1   :  { %v2858_v41 = vsel %vm2844_vm10, %v2854_v60, %v8817_v33  ;;  %v2859_v53 = vsel %vm2844_vm10, %v2855_v25, %v8818_v23 }
 0x6b2   :  { %v2891_v5 = vpack.c.bf16 %v2859_v53, %v2858_v41  ;;  %v2845_v44 = vsel %vm2844_vm10, %v2840_v18, %v8812_v42  ;;  %v2846_v47 = vsel %vm2844_vm10, %v2841_v8, %v8813_v15  ;;  %v8821_v43 = vpop.permute.xlu0 %8820  ;;  %v8887_v8 = vld [vmem:[#allocation8 + $0x8] ss:$16 sps:$4 sm:$0xff]   ;;  %v8892_v53 = vld [vmem:[#allocation10 + $0x74] ss:$8 sps:$4 sm:$0xff]  }
 0x6b3   :  { %v2850_v13 = vsel %vm2849_vm11, %v2845_v44, %v8797_v56  ;;  %v2851_v20 = vsel %vm2849_vm11, %v2846_v47, %v8798_v63  ;;  %v8826_v17 = vpop.permute.xlu1 %8825  ;;  %v8823_v30 = vunpack.i.h.bf16 %v8821_v43  ;;  %v8822_v45 = vunpack.i.l.bf16 %v8821_v43  ;;  %v8890_v43 = vld [vmem:[#allocation10 + $0x70] ss:$8 sps:$4 sm:$0xff]  }
 0x6b4   :  { %v2890_v55 = vpack.c.bf16 %v2851_v20, %v2850_v13  ;;  %7857 = vmatprep.mubr.msk.bf16.mxu1 %vm2849_vm11, %v2891_v5  ;;  %v8828_v39 = vunpack.i.h.bf16 %v8826_v17  ;;  %v8827_v27 = vunpack.i.l.bf16 %v8826_v17  ;;  %v8895_v13 = vld [vmem:[#allocation10 + $0x64] ss:$8 sps:$4 sm:$0xff]   ;;  %v8893_v20 = vld [vmem:[#allocation10 + $0x60] ss:$8 sps:$4 sm:$0xff]   ;;  %v8898_v17 = vld [vmem:[#allocation10 + $0x54] ss:$8 sps:$4 sm:$0xff]  }
 0x6b5   :  { %v2843_v31 = vsel %vm229_vm1, %v12728_v24, %v8823_v30  ;;  %v2842_v22 = vsel %vm229_vm1, %v2716_v32, %v8822_v45  ;;  %v8904_v30 = vld [vmem:[#allocation10 + $0x34] ss:$8 sps:$4 sm:$0xff]   ;;  %v8907_v45 = vld [vmem:[#allocation10 + $0x24] ss:$8 sps:$4 sm:$0xff]  }
 0x6b6   :  { %v8831_v52 = vpop.permute.xlu0 %8830  ;;  %3017 = vmatmul.mubr.bf16.vlgmr.msra.gmra.mxu1 %v2890_v55  ;;  %v2857_v6 = vsel %vm229_vm1, %v2749_v12, %v8828_v39  ;;  %v2856_v38 = vsel %vm229_vm1, %v2746_v11, %v8827_v27  ;;  %v8896_v55 = vld [vmem:[#allocation10 + $0x50] ss:$8 sps:$4 sm:$0xff]   ;;  %v8901_v39 = vld [vmem:[#allocation10 + $0x44] ss:$8 sps:$4 sm:$0xff]   ;;  %v8899_v27 = vld [vmem:[#allocation10 + $0x40] ss:$8 sps:$4 sm:$0xff]  }
 0x6b7   :  { %v8836_v61 = vpop.permute.xlu1 %8835  ;;  %v8833_v0 = vunpack.i.h.bf16 %v8831_v52  ;;  %v8832_v3 = vunpack.i.l.bf16 %v8831_v52  ;;  %v8902_v52 = vld [vmem:[#allocation10 + $0x30] ss:$8 sps:$4 sm:$0xff]   ;;  %v8905_v12 = vld [vmem:[#allocation10 + $0x20] ss:$8 sps:$4 sm:$0xff]  }
 0x6b8   :  { %v8838_v34 = vunpack.i.h.bf16 %v8836_v61  ;;  %v8837_v19 = vunpack.i.l.bf16 %v8836_v61  ;;  %v8910_v61 = vld [vmem:[#allocation10 + $0x14] ss:$8 sps:$4 sm:$0xff]   ;;  %v14243_v32 = vld [vmem:[#allocation23_spill] sm:$0xff] }
 0x6b9   :  { %v2847_v54 = vsel %vm2844_vm10, %v2842_v22, %v8832_v3  ;;  %v2848_v11 = vsel %vm2844_vm10, %v2843_v31, %v8833_v0  ;;  %v8908_v0 = vld [vmem:[#allocation10 + $0x10] ss:$8 sps:$4 sm:$0xff]   ;;  %v8913_v3 = vld [vmem:[#allocation10 + $0x4] ss:$8 sps:$4 sm:$0xff]  }
 0x6ba   :  { %v2860_v37 = vsel %vm2844_vm10, %v2856_v38, %v8837_v19  ;;  %v2861_v58 = vsel %vm2844_vm10, %v2857_v6, %v8838_v34  ;;  %v8841_v29 = vpop.permute.xlu0 %8840  ;;  %v8911_v34 = vld [vmem:[#allocation10] ss:$8 sps:$4 sm:$0xff]   ;;  %v14244_v31 = vld [vmem:[#allocation33_spill] sm:$0xff] }
 0x6bb   :  { %v2893_v2 = vpack.c.bf16 %v2861_v58, %v2860_v37  ;;  %v8843_v14 = vunpack.i.h.bf16 %v8841_v29  ;;  %v8842_v51 = vunpack.i.l.bf16 %v8841_v29  ;;  %v195_v19 = vld [vmem:[%s14242_s18] sm:$0xff]  ;;  %v196_v6 = vld [vmem:[%s14242_s18 + $0x8] sm:$0xff]  ;;  %v804_v37 = vrot.slane %v14244_v31, %v14243_v32 }
 0x6bc   :  { %v3231_v38 = vpack.c.bf16 %v196_v6, %v195_v19  ;;  %v179_v58 = vld [vmem:[#allocation2] sm:$0xff]  ;;  %v189_v19 = vld [vmem:[#allocation2 + $0x50] sm:$0xff] }
 0x6bd   :  { %7858 = vmatprep.mubr.msk.bf16.mxu1 %vm2849_vm11, %v2893_v2  ;;  %v2852_v62 = vsel %vm2849_vm11, %v2847_v54, %v8842_v51  ;;  %v2853_v28 = vsel %vm2849_vm11, %v2848_v11, %v8843_v14  ;;  %v833_v29 = vmul.f32 %v804_v37, %v179_v58  ;;  %v183_v2 = vld [vmem:[#allocation2 + $0x20] sm:$0xff]  ;;  %v8976_v6 = vld [vmem:[#allocation11 + $0x30] ss:$8 sps:$4 sm:$0xff]  }
 0x6be   :  { %v2892_v24 = vpack.c.bf16 %v2853_v28, %v2852_v62  ;;  %v837_v54 = vmul.f32 %v804_v37, %v183_v2  ;;  %v14245_v62 = vld [vmem:[#allocation24_spill] sm:$0xff] }
 0x6bf   :  { %v820_v28 = vrot.slane %v14244_v31, %v14245_v62  ;;  %v8981_v58 = vld [vmem:[#allocation11 + $0x24] ss:$8 sps:$4 sm:$0xff]  }
 0x6c0   :  { %3025 = vmatmul.mubr.bf16.gmra.mxu1 %v2892_v24 }
 0x6c1   :  { %3405 = vmatprep.mubr.bf16.mxu1 %v14238_v16 }
 0x776   :  { %v3018_v35 = vpop.f32.mrf.mxu1 }
 0x777   :  { %v7859_v10 = vmul.f32 -1.442695, %v3018_v35  ;;  %v824_v35 = vrot.slane %v14246_v50, %v14245_v62 }
 0x778   :  { %v3020_v9 = vpop.f32.mrf.mxu1 }
 0x779   :  { %9656 = vpow2.f32 %v7859_v10  ;;  %v8964_v10 = vld [vmem:[#allocation11 + $0x70] ss:$8 sps:$4 sm:$0xff]   ;;  %v8966_v9 = vld [vmem:[#allocation11 + $0x74] ss:$8 sps:$4 sm:$0xff]  }
 0x77a   :  { %v3021_v36 = vpop.f32.mrf.mxu1 }
 0x77b   :  { %v7860_v59 = vmul.f32 -1.442695, %v3021_v36 }
 0x77c   :  { %v3023_v26 = vpop.f32.mrf.mxu1 }
 0x77d   :  { %9658 = vpow2.f32 %v7860_v59  ;;  %v188_v59 = vld [vmem:[#allocation2 + $0x48] sm:$0xff] }
 0x77e   :  { %v8969_v26 = vld [vmem:[#allocation11 + $0x64] ss:$8 sps:$4 sm:$0xff]  }
 0x780   :  { %v3026_v1 = vpop.f32.mrf.mxu1 }
 0x781   :  { %v7861_v4 = vmul.f32 -1.442695, %v3026_v1  ;;  %v841_v1 = vmul.f32 %v820_v28, %v187_v7  ;;  %v8979_v7 = vld [vmem:[#allocation11 + $0x20] ss:$8 sps:$4 sm:$0xff]  }
 0x782   :  { %v3028_v46 = vpop.f32.mrf.mxu1 }
 0x783   :  { %9660 = vpow2.f32 %v7861_v4  ;;  %v191_v46 = vld [vmem:[#allocation2 + $0x60] sm:$0xff] }
 0x784   :  { %v3029_v40 = vpop.f32.mrf.mxu1 }
 0x785   :  { %v7862_v49 = vmul.f32 -1.442695, %v3029_v40  ;;  %v8967_v40 = vld [vmem:[#allocation11 + $0x60] ss:$8 sps:$4 sm:$0xff]  }
 0x786   :  { %v9657_v21 = vpop.eup %9656  ;;  %v3031_v63 = vpop.f32.mrf.mxu1 }
 0x787   :  { %9662 = vpow2.f32 %v7862_v49  ;;  %v3045_v56 = vadd.f32 1.0, %v9657_v21  ;;  %v842_v21 = vmul.f32 %v824_v35, %v188_v59  ;;  %v8972_v63 = vld [vmem:[#allocation11 + $0x54] ss:$8 sps:$4 sm:$0xff]  }
 0x789   :  { %9664 = vrcp.f32 %v3045_v56 }
 0x78a   :  { %v9659_v23 = vpop.eup %9658 }
 0x78b   :  { %v3046_v33 = vadd.f32 1.0, %v9659_v23  ;;  %v192_v23 = vld [vmem:[#allocation2 + $0x68] sm:$0xff] }
 0x78d   :  { %9666 = vrcp.f32 %v3046_v33  ;;  %v14247_v33 = vld [vmem:[#allocation34_spill] sm:$0xff] }
 0x790   :  { %v9661_v57 = vpop.eup %9660 }
 0x791   :  { %v3047_v25 = vadd.f32 1.0, %v9661_v57  ;;  %v812_v57 = vrot.slane %v14247_v33, %v14243_v32 }
 0x793   :  { %9668 = vrcp.f32 %v3047_v25 }
 0x794   :  { %v9663_v60 = vpop.eup %9662 }
 0x795   :  { %v3048_v15 = vadd.f32 1.0, %v9663_v60  ;;  %v845_v60 = vmul.f32 %v820_v28, %v191_v46  ;;  %v193_v28 = vld [vmem:[#allocation2 + $0x70] sm:$0xff] }
 0x796   :  { %v9665_v42 = vpop.eup %9664 }
 0x797   :  { %9670 = vrcp.f32 %v3048_v15 }
 0x79a   :  { %v9667_v18 = vpop.eup %9666 }
 0x79b   :  { %v3061_v41 = vpack.c.bf16 %v9667_v18, %v9665_v42  ;;  %v181_v42 = vld [vmem:[#allocation2 + $0x10] sm:$0xff] }
 0x79c   :  { %v8970_v18 = vld [vmem:[#allocation11 + $0x50] ss:$8 sps:$4 sm:$0xff]  }
 0x79d   :  { %7867 = vmatmul.mubr.msk.bf16.vlgmr.msra.gmra.mxu0 %vm2458_vm6, %v3061_v41 }
 0x79e   :  { %3131 = vmatprep.mubr.bf16.mxu0 %v14238_v16  ;;  %3157 = vmatpush1.bf16.msra.mxu0 %v8887_v8  ;;  %v14248_v8 = vld [vmem:[#allocation36_spill] sm:$0xff] }
 0x79f   :  { %3312 = vmatprep.subr.bf16.mxu0 %v8892_v53 }
 0x7a0   :  { %v9669_v5 = vpop.eup %9668 }
 0x7a4   :  { %v9671_v44 = vpop.eup %9670 }
 0x7a5   :  { %v3062_v47 = vpack.c.bf16 %v9671_v44, %v9669_v5  ;;  %v846_v5 = vmul.f32 %v824_v35, %v192_v23  ;;  %v8975_v44 = vld [vmem:[#allocation11 + $0x44] ss:$8 sps:$4 sm:$0xff]  }
 0x7a7   :  { %7868 = vmatmul.mubr.msk.bf16.gmra.mxu0 %vm2458_vm6, %v3062_v47 }
 0x7a8   :  { %3174 = vmatprep.mubr.bf16.mxu0 %v14238_v16 }
 0x7af   :  { %7869 = vmatmul.mubr.msk.bf16.vlgmr.msra.gmra.mxu0 %vm2458_vm6, %v3061_v41  ;;  %v816_v41 = vrot.slane %v14248_v8, %v14243_v32 }
 0x7b0   :  { %3313 = vmatpush1.bf16.msra.mxu0 %v8890_v43  ;;  %3184 = vmatprep.mubr.bf16.mxu0 %v14238_v16  ;;  %v182_v43 = vld [vmem:[#allocation2 + $0x18] sm:$0xff] }
 0x7b1   :  { %3314 = vmatprep.subr.bf16.mxu0 %v8895_v13 }
 0x7b4   :  { %3315 = vmatpush1.bf16.msra.mxu0 %v8893_v20  ;;  %v835_v20 = vmul.f32 %v812_v57, %v181_v42  ;;  %v8993_v42 = vld [vmem:[#allocation11 + $0xe4] ss:$8 sps:$4 sm:$0xff]  }
 0x7b5   :  { %3316 = vmatprep.subr.bf16.mxu0 %v8898_v17 }
 0x7b7   :  { %7870 = vmatmul.mubr.msk.bf16.gmra.mxu0 %vm2458_vm6, %v3062_v47 }
 0x7b8   :  { %3317 = vmatpush1.bf16.msra.mxu0 %v8896_v55  ;;  %3344 = vmatprep.mubr.bf16.mxu0 %v14238_v16  ;;  %v185_v55 = vld [vmem:[#allocation2 + $0x30] sm:$0xff] }
 0x7b9   :  { %3318 = vmatprep.subr.bf16.mxu0 %v8901_v39  ;;  %v8973_v39 = vld [vmem:[#allocation11 + $0x40] ss:$8 sps:$4 sm:$0xff]  }
 0x7bc   :  { %3319 = vmatpush1.bf16.msra.mxu0 %v8899_v27 }
 0x7bd   :  { %3320 = vmatprep.subr.bf16.mxu0 %v8904_v30  ;;  %v836_v30 = vmul.f32 %v816_v41, %v182_v43  ;;  %v9002_v43 = vld [vmem:[#allocation11 + $0xb4] ss:$8 sps:$4 sm:$0xff]  }
 0x7c0   :  { %3321 = vmatpush1.bf16.msra.mxu0 %v8902_v52  ;;  %v8978_v52 = vld [vmem:[#allocation11 + $0x34] ss:$8 sps:$4 sm:$0xff]  }
 0x7c1   :  { %3322 = vmatprep.subr.bf16.mxu0 %v8907_v45 }
 0x7c4   :  { %3323 = vmatpush1.bf16.msra.mxu0 %v8905_v12  ;;  %v186_v12 = vld [vmem:[#allocation2 + $0x38] sm:$0xff] }
 0x7c5   :  { %3324 = vmatprep.subr.bf16.mxu0 %v8910_v61  ;;  %v828_v61 = vrot.slane %v14247_v33, %v14245_v62  ;;  %v840_v37 = vmul.f32 %v816_v41, %v186_v12  ;;  %v8994_v41 = vld [vmem:[#allocation11 + $0xd0] ss:$8 sps:$4 sm:$0xff]  }
 0x7c8   :  { %3325 = vmatpush1.bf16.msra.mxu0 %v8908_v0 }
 0x7c9   :  { %3326 = vmatprep.subr.bf16.mxu0 %v8913_v3  ;;  %v839_v3 = vmul.f32 %v812_v57, %v185_v55  ;;  %v8985_v57 = vld [vmem:[#allocation11] ss:$8 sps:$4 sm:$0xff]   ;;  %v9000_v55 = vld [vmem:[#allocation11 + $0xb0] ss:$8 sps:$4 sm:$0xff]  }
 0x7cc   :  { %3327 = vmatpush1.bf16.msra.mxu0 %v8911_v34 }
 0x7cd   :  { %4026 = vmatprep.subr.bf16.mxu0 %v8966_v9  ;;  %v8984_v9 = vld [vmem:[#allocation11 + $0x14] ss:$8 sps:$4 sm:$0xff]  }
 0x7cf   :  { %3345 = vmatmul.mubr.bf16.vlgmr.msra.gmra.mxu0 %v3231_v38  ;;  %v832_v38 = vrot.slane %v14248_v8, %v14245_v62  ;;  %v8996_v8 = vld [vmem:[#allocation11 + $0xd4] ss:$8 sps:$4 sm:$0xff]  }
 0x7d0   :  { %4027 = vmatpush1.bf16.msra.mxu0 %v8964_v10 }
 0x7d1   :  { %4028 = vmatprep.subr.bf16.mxu0 %v8969_v26  ;;  %v194_v26 = vld [vmem:[#allocation2 + $0x78] sm:$0xff] }
 0x7d4   :  { %4029 = vmatpush1.bf16.msra.mxu0 %v8967_v40  ;;  %v8982_v40 = vld [vmem:[#allocation11 + $0x10] ss:$8 sps:$4 sm:$0xff]  }
 0x7d5   :  { %4030 = vmatprep.subr.bf16.mxu0 %v8972_v63  ;;  %v848_v63 = vmul.f32 %v832_v38, %v194_v26  ;;  %v8928_v26 = vld [vmem:[#allocation11 + $0x130] ss:$8 sps:$4 sm:$0xff]  }
 0x7d8   :  { %4031 = vmatpush1.bf16.msra.mxu0 %v8970_v18  ;;  %v8991_v18 = vld [vmem:[#allocation11 + $0xe0] ss:$8 sps:$4 sm:$0xff]  }
 0x7d9   :  { %4032 = vmatprep.subr.bf16.mxu0 %v8975_v44 }
 0x7dc   :  { %4033 = vmatpush1.bf16.msra.mxu0 %v8973_v39  ;;  %v9005_v39 = vld [vmem:[#allocation11 + $0xa4] ss:$8 sps:$4 sm:$0xff]  }
 0x7dd   :  { %4034 = vmatprep.subr.bf16.mxu0 %v8978_v52 }
 0x7e0   :  { %4035 = vmatpush1.bf16.msra.mxu0 %v8976_v6  ;;  %v184_v6 = vld [vmem:[#allocation2 + $0x28] sm:$0xff] }
 0x7e1   :  { %4036 = vmatprep.subr.bf16.mxu0 %v8981_v58 }
 0x7e4   :  { %4037 = vmatpush1.bf16.msra.mxu0 %v8979_v7  ;;  %v8922_v7 = vld [vmem:[#allocation11 + $0x150] ss:$8 sps:$4 sm:$0xff]  }
 0x7e5   :  { %4038 = vmatprep.subr.bf16.mxu0 %v8984_v9 }
 0x7e8   :  { %4039 = vmatpush1.bf16.msra.mxu0 %v8982_v40  ;;  %v8934_v40 = vld [vmem:[#allocation11 + $0x110] ss:$8 sps:$4 sm:$0xff]  }
 0x85d   :  { %v3123_v22 = vpop.f32.mrf.mxu0 }
 0x85e   :  { %v12794_v14 = vmul.f32 %v3123_v22, %v833_v29  ;;  %v190_v22 = vld [vmem:[#allocation2 + $0x58] sm:$0xff] }
 0x85f   :  { %v12796_v51 = vpop.f32.mrf.mxu0  ;;  %v844_v10 = vmul.f32 %v832_v38, %v190_v22  ;;  %v8920_v38 = vld [vmem:[#allocation11 + $0x164] ss:$8 sps:$4 sm:$0xff]   ;;  %v8924_v22 = vld [vmem:[#allocation11 + $0x154] ss:$8 sps:$4 sm:$0xff]  }
 0x861   :  { %v3127_v11 = vpop.f32.mrf.mxu0 }
 0x862   :  { %v12800_v24 = vmul.f32 %v3127_v11, %v837_v54  ;;  %v843_v54 = vmul.f32 %v828_v61, %v189_v19  ;;  %v8915_v19 = vld [vmem:[#allocation11 + $0x170] ss:$8 sps:$4 sm:$0xff]  }
 0x863   :  { %v12804_v36 = vpop.f32.mrf.mxu0 }
 0x867   :  { %v3133_v4 = vpop.f32.mrf.mxu0 }
 0x868   :  { %v12806_v49 = vmul.f32 %v3133_v4, %v841_v1  ;;  %v847_v4 = vmul.f32 %v828_v61, %v193_v28  ;;  %v9003_v61 = vld [vmem:[#allocation11 + $0xa0] ss:$8 sps:$4 sm:$0xff]  }
 0x869   :  { %v3135_v56 = vpop.f32.mrf.mxu0 }
 0x86a   :  { %v12810_v25 = vmul.f32 %v3135_v56, %v842_v21  ;;  %v8987_v56 = vld [vmem:[#allocation11 + $0x4] ss:$8 sps:$4 sm:$0xff]  }
 0x86b   :  { %v3137_v15 = vpop.f32.mrf.mxu0  ;;  %4040 = vmatprep.subr.bf16.mxu0 %v8987_v56  ;;  %v8937_v56 = vld [vmem:[#allocation11 + $0x100] ss:$8 sps:$4 sm:$0xff]  }
 0x86c   :  { %v12814_v53 = vmul.f32 %v3137_v15, %v845_v60  ;;  %v8990_v60 = vld [vmem:[#allocation11 + $0xf4] ss:$8 sps:$4 sm:$0xff]   ;;  %4041 = vmatpush1.bf16.msra.mxu0 %v8985_v57  ;;  %v8988_v15 = vld [vmem:[#allocation11 + $0xf0] ss:$8 sps:$4 sm:$0xff]  }
 0x86d   :  { %v3139_v47 = vpop.f32.mrf.mxu0  ;;  %4042 = vmatprep.subr.bf16.mxu0 %v8990_v60  ;;  %v8940_v57 = vld [vmem:[#allocation11 + $0x1f0] ss:$8 sps:$4 sm:$0xff]   ;;  %v8945_v60 = vld [vmem:[#allocation11 + $0x1e4] ss:$8 sps:$4 sm:$0xff]  }
 0x86e   :  { %v12816_v13 = vmul.f32 %v3139_v47, %v846_v5  ;;  %v8999_v5 = vld [vmem:[#allocation11 + $0xc4] ss:$8 sps:$4 sm:$0xff]   ;;  %v8997_v47 = vld [vmem:[#allocation11 + $0xc0] ss:$8 sps:$4 sm:$0xff]  }
 0x86f   :  { %v3176_v17 = vpop.f32.mrf.mxu0 }
 0x870   :  { %v12818_v27 = vmul.f32 %v3176_v17, %v835_v20  ;;  %4043 = vmatpush2.bf16.msra.mxu0 %v8988_v15  ;;  %v8943_v15 = vld [vmem:[#allocation11 + $0x1e0] ss:$8 sps:$4 sm:$0xff]  }
 0x871   :  { %v3178_v45 = vpop.f32.mrf.mxu0  ;;  %4044 = vmatprep.subr.bf16.mxu0 %v8993_v42  ;;  %v8948_v42 = vld [vmem:[#allocation11 + $0x1d4] ss:$8 sps:$4 sm:$0xff]  }
 0x872   :  { %v12822_v0 = vmul.f32 %v3178_v45, %v836_v30  ;;  %v8917_v45 = vld [vmem:[#allocation11 + $0x174] ss:$8 sps:$4 sm:$0xff]  }
 0x873   :  { %v3180_v34 = vpop.f32.mrf.mxu0 }
 0x874   :  { %v12826_v31 = vmul.f32 %v3180_v34, %v839_v3  ;;  %4045 = vmatpush2.bf16.msra.mxu0 %v8991_v18  ;;  %v8914_v3 = vld [vmem:[%s13916_s11] sm:$0xff]   ;;  %v808_v34 = vrot.slane %v14246_v50, %v14243_v32  ;;  %v8921_v50 = vld [vmem:[%s13916_s11 + $0x8] sm:$0xff]   ;;  %v8946_v18 = vld [vmem:[#allocation11 + $0x1d0] ss:$8 sps:$4 sm:$0xff]  }
 0x875   :  { %v3182_v29 = vpop.f32.mrf.mxu0  ;;  %4046 = vmatprep.subr.bf16.mxu0 %v8996_v8  ;;  %v8951_v8 = vld [vmem:[#allocation11 + $0x1c4] ss:$8 sps:$4 sm:$0xff]  }
 0x876   :  { %v12828_v2 = vmul.f32 %v3182_v29, %v840_v37  ;;  %v180_v37 = vld [vmem:[#allocation2 + $0x8] sm:$0xff]  ;;  %v838_v58 = vmul.f32 %v808_v34, %v184_v6 }
 0x877   :  { %v3186_v11 = vpop.f32.mrf.mxu0  ;;  %v8918_v29 = vld [vmem:[#allocation11 + $0x160] ss:$8 sps:$4 sm:$0xff]  }
 0x878   :  { %v12830_v35 = vmul.f32 %v3186_v11, %v843_v54  ;;  %4047 = vmatpush2.bf16.msra.mxu0 %v8994_v41  ;;  %v834_v54 = vmul.f32 %v808_v34, %v180_v37  ;;  %v12846_v11 = vmul.f32 %v12804_v36, %v838_v58  ;;  %v8925_v36 = vld [vmem:[#allocation11 + $0x140] ss:$8 sps:$4 sm:$0xff]   ;;  %v9011_v34 = vld [vmem:[#allocation11 + $0x84] ss:$8 sps:$4 sm:$0xff]  }
 0x879   :  { %v3188_v59 = vpop.f32.mrf.mxu0  ;;  %4048 = vmatprep.subr.bf16.mxu0 %v8999_v5  ;;  %v8949_v41 = vld [vmem:[#allocation11 + $0x1c0] ss:$8 sps:$4 sm:$0xff]   ;;  %v8954_v5 = vld [vmem:[#allocation11 + $0x1b4] ss:$8 sps:$4 sm:$0xff]  }
 0x87a   :  { %v12832_v1 = vmul.f32 %v3188_v59, %v844_v10  ;;  %v12852_v28 = vmul.f32 %v12796_v51, %v834_v54  ;;  %v8927_v10 = vld [vmem:[#allocation11 + $0x144] ss:$8 sps:$4 sm:$0xff]   ;;  %v8930_v59 = vld [vmem:[#allocation11 + $0x134] ss:$8 sps:$4 sm:$0xff]   ;;  %v8931_v51 = vld [vmem:[#allocation11 + $0x120] ss:$8 sps:$4 sm:$0xff]  }
 0x87b   :  { %v3190_v46 = vpop.f32.mrf.mxu0 }
 0x87c   :  { %v12834_v21 = vmul.f32 %v3190_v46, %v847_v4  ;;  %4049 = vmatpush2.bf16.msra.mxu0 %v8997_v47  ;;  %v3525_v9 = vpack.c.bf16 %v12846_v11, %v12852_v28  ;;  %v8933_v4 = vld [vmem:[#allocation11 + $0x124] ss:$8 sps:$4 sm:$0xff]   ;;  %v8936_v46 = vld [vmem:[#allocation11 + $0x114] ss:$8 sps:$4 sm:$0xff]  }
 0x87d   :  { %v3192_v23 = vpop.f32.mrf.mxu0  ;;  %4050 = vmatprep.subr.bf16.mxu0 %v9002_v43  ;;  %v8957_v47 = vld [vmem:[#allocation11 + $0x1a4] ss:$8 sps:$4 sm:$0xff]   ;;  %v8955_v43 = vld [vmem:[#allocation11 + $0x1a0] ss:$8 sps:$4 sm:$0xff]  }
 0x87e   :  { %v12836_v33 = vmul.f32 %v3192_v23, %v848_v63  ;;  %v8939_v63 = vld [vmem:[#allocation11 + $0x104] ss:$8 sps:$4 sm:$0xff]   ;;  %v8942_v23 = vld [vmem:[#allocation11 + $0x1f4] ss:$8 sps:$4 sm:$0xff]  }
 0x880   :  { %4051 = vmatpush2.bf16.msra.mxu0 %v9000_v55  ;;  %v8963_v55 = vld [vmem:[#allocation11 + $0x184] ss:$8 sps:$4 sm:$0xff]  }
 0x881   :  { %4052 = vmatprep.subr.bf16.mxu0 %v9005_v39  ;;  %v8961_v39 = vld [vmem:[#allocation11 + $0x180] ss:$8 sps:$4 sm:$0xff]  }
 0x884   :  { %4053 = vmatpush2.bf16.msra.mxu0 %v9003_v61  ;;  %v3530_v61 = vpack.c.bf16 %v12814_v53, %v12806_v49 }
 0x88f   :  { %v3346_v44 = vpop.f32.mrf.mxu0 }
 0x891   :  { %v3348_v20 = vpop.f32.mrf.mxu0 }
 0x893   :  { %v3350_v17 = vpop.f32.mrf.mxu0 }
 0x894   :  { %v3355_v12 = vpack.c.bf16 %v3350_v17, %v3346_v44  ;;  %v8952_v44 = vld [vmem:[#allocation11 + $0x1b0] ss:$8 sps:$4 sm:$0xff]  }
 0x895   :  { %v3352_v30 = vpop.f32.mrf.mxu0  ;;  %v8958_v17 = vld [vmem:[#allocation11 + $0x190] ss:$8 sps:$4 sm:$0xff]  }
 0x896   :  { %v3356_v52 = vpack.c.bf16 %v3352_v30, %v3348_v20  ;;  %v8960_v20 = vld [vmem:[#allocation11 + $0x194] ss:$8 sps:$4 sm:$0xff]   ;;  %v3524_v30 = vpack.c.bf16 %v12800_v24, %v12794_v14 }
 0x898   :  { %3387 = vmatprep.subr.bf16.mxu1 %v3356_v52  ;;  %v3531_v52 = vpack.c.bf16 %v12816_v13, %v12810_v25 }
 0x899   :  { %3388 = vmatpush1.bf16.msra.mxu1 %v3355_v12  ;;  %v9008_v12 = vld [vmem:[#allocation11 + $0x94] ss:$8 sps:$4 sm:$0xff]  }
 0x89a   :  { %4079 = vmatprep.subr.bf16.mxu1 %v8917_v45  ;;  %v9006_v45 = vld [vmem:[#allocation11 + $0x90] ss:$8 sps:$4 sm:$0xff]   ;;  %4054 = vmatprep.subr.bf16.mxu0 %v9008_v12 }
 0x89b   :  { %4055 = vmatpush2.bf16.msra.mxu0 %v9006_v45 }
 0x89c   :  { %7889 = vmatmul.mubr.msk.bf16.vlgmr.msra.gmra.mxu1 %vm2458_vm6, %v8914_v3  ;;  %v9009_v3 = vld [vmem:[#allocation11 + $0x80] ss:$8 sps:$4 sm:$0xff]   ;;  %4056 = vmatprep.subr.bf16.mxu0 %v9011_v34 }
 0x89d   :  { %4080 = vmatpush1.bf16.msra.mxu1 %v8915_v19  ;;  %3415 = vmatprep.mubr.bf16.mxu1 %v14238_v16  ;;  %v9014_v19 = vld [vmem:[#allocation11 + $0x274] ss:$8 sps:$4 sm:$0xff]  }
 0x89e   :  { %4081 = vmatprep.subr.bf16.mxu1 %v8920_v38 }
 0x89f   :  { %4057 = vmatpush2.bf16.msra.mxu0 %v9009_v3  ;;  %v9018_v3 = vld [vmem:[#allocation11 + $0x250] ss:$8 sps:$4 sm:$0xff]  }
 0x8a0   :  { %4132 = vmatprep.subr.bf16.mxu0 %v9014_v19 }
 0x8a1   :  { %4082 = vmatpush1.bf16.msra.mxu1 %v8918_v29 }
 0x8a2   :  { %4083 = vmatprep.subr.bf16.mxu1 %v8924_v22 }
 0x8a4   :  { %7890 = vmatmul.mubr.msk.bf16.gmra.mxu1 %vm2458_vm6, %v8921_v50 }
 0x8a5   :  { %4084 = vmatpush1.bf16.msra.mxu1 %v8922_v7  ;;  %4111 = vmatprep.mubr.bf16.mxu1 %v3525_v9 }
 0x8a6   :  { %4085 = vmatprep.subr.bf16.mxu1 %v8927_v10 }
 0x8a9   :  { %4086 = vmatpush1.bf16.msra.mxu1 %v8925_v36 }
 0x8aa   :  { %4087 = vmatprep.subr.bf16.mxu1 %v8930_v59 }
 0x8ad   :  { %4088 = vmatpush1.bf16.msra.mxu1 %v8928_v26 }
 0x8ae   :  { %4089 = vmatprep.subr.bf16.mxu1 %v8933_v4  ;;  %v9012_v4 = vld [vmem:[#allocation11 + $0x270] ss:$8 sps:$4 sm:$0xff]  }
 0x8b1   :  { %4090 = vmatpush1.bf16.msra.mxu1 %v8931_v51 }
 0x8b2   :  { %4091 = vmatprep.subr.bf16.mxu1 %v8936_v46 }
 0x8b5   :  { %4092 = vmatpush1.bf16.msra.mxu1 %v8934_v40 }
 0x8b6   :  { %4093 = vmatprep.subr.bf16.mxu1 %v8939_v63 }
 0x8b9   :  { %4094 = vmatpush1.bf16.msra.mxu1 %v8937_v56 }
 0x8ba   :  { %4095 = vmatprep.subr.bf16.mxu1 %v8942_v23  ;;  %v9017_v23 = vld [vmem:[#allocation11 + $0x264] ss:$8 sps:$4 sm:$0xff]  }
 0x8bd   :  { %4096 = vmatpush2.bf16.msra.mxu1 %v8940_v57 }
 0x8be   :  { %4097 = vmatprep.subr.bf16.mxu1 %v8945_v60 }
 0x8c1   :  { %4098 = vmatpush2.bf16.msra.mxu1 %v8943_v15 }
 0x8c2   :  { %4099 = vmatprep.subr.bf16.mxu1 %v8948_v42 }
 0x8c5   :  { %4100 = vmatpush2.bf16.msra.mxu1 %v8946_v18 }
 0x8c6   :  { %4101 = vmatprep.subr.bf16.mxu1 %v8951_v8 }
 0x8c9   :  { %4102 = vmatpush2.bf16.msra.mxu1 %v8949_v41 }
 0x8ca   :  { %4103 = vmatprep.subr.bf16.mxu1 %v8954_v5  ;;  %v9015_v5 = vld [vmem:[#allocation11 + $0x260] ss:$8 sps:$4 sm:$0xff]  }
 0x8cd   :  { %4104 = vmatpush2.bf16.msra.mxu1 %v8952_v44 }
 0x8ce   :  { %4105 = vmatprep.subr.bf16.mxu1 %v8957_v47  ;;  %v9020_v47 = vld [vmem:[#allocation11 + $0x254] ss:$8 sps:$4 sm:$0xff]  }
 0x8d1   :  { %4106 = vmatpush2.bf16.msra.mxu1 %v8955_v43 }
 0x8d2   :  { %4107 = vmatprep.subr.bf16.mxu1 %v8960_v20 }
 0x8d5   :  { %4108 = vmatpush2.bf16.msra.mxu1 %v8958_v17 }
 0x8d6   :  { %4109 = vmatprep.subr.bf16.mxu1 %v8963_v55 }
 0x8d9   :  { %4110 = vmatpush2.bf16.msra.mxu1 %v8961_v39 }
 0x8dc   :  { %4112 = vmatmul.mubr.bf16.vlgmr.msra.gmra.mxu1 %v3524_v30 }
 0x8dd   :  { %4121 = vmatprep.mubr.bf16.mxu1 %v3531_v52 }
 0x8e4   :  { %4122 = vmatmul.mubr.bf16.gmra.mxu1 %v3530_v61 }
 0x95c   :  { %v3407_v6 = vpop.f32.mrf.mxu1 }
 0x95d   :  { %v4539_v58 = vrot.slane %v3407_v6, 7  ;;  %v4567_v29 = vrot.slane %v3407_v6, 1 }
 0x95e   :  { %v3409_v38 = vpop.f32.mrf.mxu1 }
 0x95f   :  { %v4540_v50 = vrot.slane %v3409_v38, 7  ;;  %v4570_v7 = vrot.slane %v3409_v38, 1 }
 0x960   :  { %v3411_v37 = vpop.f32.mrf.mxu1 }
 0x961   :  { %v4541_v22 = vrot.slane %v3411_v37, 7  ;;  %v4568_v54 = vrot.slane %v3411_v37, 1  ;;  %v12867_v51 = vpack.c.bf16 %v3411_v37, %v3407_v6  ;;  %v9023_v6 = vld [vmem:[#allocation11 + $0x244] ss:$8 sps:$4 sm:$0xff]   ;;  %v3527_v37 = vpack.c.bf16 %v12828_v2, %v12822_v0 }
 0x962   :  { %v3413_v10 = vpop.f32.mrf.mxu1 }
 0x963   :  { %v4542_v9 = vsel %vm541_vm2, %v4539_v58, %v4541_v22  ;;  %v4569_v36 = vsel %vm2737_vm9, %v4567_v29, %v4568_v54  ;;  %v12865_v59 = vpack.c.bf16 %v3413_v10, %v3409_v38  ;;  %v4543_v26 = vrot.slane %v3413_v10, 7 }
 0x964   :  { %v12869_v46 = vpack.c.bf16 %v4542_v9, %v4539_v58  ;;  %v12871_v40 = vpack.c.bf16 %v4568_v54, %v4569_v36  ;;  %v4571_v63 = vrot.slane %v3413_v10, 1  ;;  %v3417_v56 = vpop.f32.mrf.mxu1  ;;  %v9024_v10 = vld [vmem:[#allocation11 + $0x230] ss:$8 sps:$4 sm:$0xff]   ;;  %v9029_v9 = vld [vmem:[#allocation11 + $0x224] ss:$8 sps:$4 sm:$0xff]  }
 0x965   :  { %v4544_v57 = vsel %vm541_vm2, %v4540_v50, %v4543_v26  ;;  %4058 = vmatprep.mubr.bf16.mxu0 %v12865_v59  ;;  %v4555_v8 = vrot.slane %v3417_v56, 7  ;;  %v4579_v41 = vrot.slane %v3417_v56, 1  ;;  %v9027_v36 = vld [vmem:[#allocation11 + $0x220] ss:$8 sps:$4 sm:$0xff]   ;;  %v9032_v26 = vld [vmem:[#allocation11 + $0x214] ss:$8 sps:$4 sm:$0xff]  }
 0x966   :  { %v4572_v60 = vsel %vm2737_vm9, %v4570_v7, %v4571_v63  ;;  %v3419_v15 = vpop.f32.mrf.mxu1  ;;  %4059 = vmatmul.mubr.bf16.vlgmr.msra.gmra.mxu0 %v12867_v51  ;;  %v12877_v42 = vpack.c.bf16 %v4544_v57, %v4540_v50  ;;  %v9021_v50 = vld [vmem:[#allocation11 + $0x240] ss:$8 sps:$4 sm:$0xff]   ;;  %v9026_v7 = vld [vmem:[#allocation11 + $0x234] ss:$8 sps:$4 sm:$0xff]   ;;  %v9036_v57 = vld [vmem:[#allocation11 + $0x2f0] ss:$8 sps:$4 sm:$0xff]  }
 0x967   :  { %v12879_v18 = vpack.c.bf16 %v4571_v63, %v4572_v60  ;;  %4133 = vmatpush1.bf16.msra.mxu0 %v9012_v4  ;;  %v4556_v43 = vrot.slane %v3419_v15, 7  ;;  %v4582_v55 = vrot.slane %v3419_v15, 1  ;;  %v9030_v4 = vld [vmem:[#allocation11 + $0x210] ss:$8 sps:$4 sm:$0xff]   ;;  %v9035_v63 = vld [vmem:[#allocation11 + $0x204] ss:$8 sps:$4 sm:$0xff]  }
 0x968   :  { %v3421_v44 = vpop.f32.mrf.mxu1  ;;  %4134 = vmatprep.subr.bf16.mxu0 %v9017_v23  ;;  %v9038_v23 = vld [vmem:[#allocation11 + $0x2f4] ss:$8 sps:$4 sm:$0xff]   ;;  %v9041_v60 = vld [vmem:[#allocation11 + $0x2e4] ss:$8 sps:$4 sm:$0xff]  }
 0x969   :  { %v4557_v20 = vrot.slane %v3421_v44, 7  ;;  %v4580_v17 = vrot.slane %v3421_v44, 1  ;;  %v12881_v39 = vpack.c.bf16 %v3421_v44, %v3417_v56  ;;  %v9033_v56 = vld [vmem:[#allocation11 + $0x200] ss:$8 sps:$4 sm:$0xff]  }
 0x96a   :  { %v3423_v30 = vpop.f32.mrf.mxu1  ;;  %v9045_v44 = vld [vmem:[#allocation11 + $0x2c0] ss:$8 sps:$4 sm:$0xff]  }
 0x96b   :  { %v4558_v52 = vsel %vm541_vm2, %v4555_v8, %v4557_v20  ;;  %v4581_v45 = vsel %vm2737_vm9, %v4579_v41, %v4580_v17  ;;  %v12885_v12 = vpack.c.bf16 %v3423_v30, %v3419_v15  ;;  %v4559_v61 = vrot.slane %v3423_v30, 7  ;;  %4135 = vmatpush1.bf16.msra.mxu0 %v9015_v5  ;;  %v9039_v15 = vld [vmem:[#allocation11 + $0x2e0] ss:$8 sps:$4 sm:$0xff]   ;;  %v9042_v41 = vld [vmem:[#allocation11 + $0x2d0] ss:$8 sps:$4 sm:$0xff]  }
 0x96c   :  { %v12887_v34 = vpack.c.bf16 %v4580_v17, %v4581_v45  ;;  %v4583_v19 = vrot.slane %v3423_v30, 1  ;;  %4136 = vmatprep.subr.bf16.mxu0 %v9020_v47  ;;  %v12889_v38 = vpack.c.bf16 %v4558_v52, %v4555_v8  ;;  %v9044_v8 = vld [vmem:[#allocation11 + $0x2d4] ss:$8 sps:$4 sm:$0xff]   ;;  %v9047_v5 = vld [vmem:[#allocation11 + $0x2c4] ss:$8 sps:$4 sm:$0xff]  }
 0x96d   :  { %v4560_v58 = vsel %vm541_vm2, %v4556_v43, %v4559_v61  ;;  %4068 = vmatprep.mubr.bf16.mxu0 %v12885_v12  ;;  %v9050_v47 = vld [vmem:[#allocation11 + $0x2b4] ss:$8 sps:$4 sm:$0xff]   ;;  %v9053_v20 = vld [vmem:[#allocation11 + $0x2a4] ss:$8 sps:$4 sm:$0xff]   ;;  %v9051_v17 = vld [vmem:[#allocation11 + $0x2a0] ss:$8 sps:$4 sm:$0xff]   ;;  %v3526_v61 = vpack.c.bf16 %v12826_v31, %v12818_v27 }
 0x96e   :  { %14249 = vst [vmem:[#allocation39_spill] sm:$0xff] %v12887_v34  ;;  %v4584_v29 = vsel %vm2737_vm9, %v4582_v55, %v4583_v19  ;;  %4069 = vmatmul.mubr.bf16.gmra.mxu0 %v12881_v39  ;;  %v12897_v22 = vpack.c.bf16 %v4560_v58, %v4556_v43  ;;  %v9048_v43 = vld [vmem:[#allocation11 + $0x2b0] ss:$8 sps:$4 sm:$0xff]   ;;  %v9056_v55 = vld [vmem:[#allocation11 + $0x294] ss:$8 sps:$4 sm:$0xff]  }
 0x96f   :  { %v12899_v54 = vpack.c.bf16 %v4583_v19, %v4584_v29  ;;  %4137 = vmatpush1.bf16.msra.mxu0 %v9018_v3  ;;  %4164 = vmatprep.mubr.bf16.mxu0 %v3527_v37  ;;  %v9054_v30 = vld [vmem:[#allocation11 + $0x290] ss:$8 sps:$4 sm:$0xff]   ;;  %v9059_v52 = vld [vmem:[#allocation11 + $0x284] ss:$8 sps:$4 sm:$0xff]   ;;  %v9057_v45 = vld [vmem:[#allocation11 + $0x280] ss:$8 sps:$4 sm:$0xff]   ;;  %v3533_v3 = vpack.c.bf16 %v12836_v33, %v12832_v1  ;;  %v3532_v19 = vpack.c.bf16 %v12834_v21, %v12830_v35 }
 0x970   :  { %4138 = vmatprep.subr.bf16.mxu0 %v9023_v6  ;;  %v9060_v6 = vld [vmem:[%s13919_s14 + $0x78] sm:$0xff]   ;;  %v9062_v58 = vld [vmem:[%s13919_s14 + $0x70] sm:$0xff]  }
 0x971   :  { %14250 = vst [vmem:[#allocation40_spill] sm:$0xff] %v12899_v54  ;;  %v9061_v37 = vld [vmem:[%s13919_s14 + $0x38] sm:$0xff]   ;;  %8569 = vmatprep.subr.bf16.mxu1 %v9060_v6  ;;  %v9063_v29 = vld [vmem:[%s13919_s14 + $0x30] sm:$0xff]  }
 0x972   :  { %8570 = vmatpush3.bf16.msra.mxu1 %v9061_v37 }
 0x973   :  { %4139 = vmatpush1.bf16.msra.mxu0 %v9021_v50  ;;  %8571 = vmatprep.subr.bf16.mxu1 %v9062_v58  ;;  %v9064_v50 = vld [vmem:[%s13919_s14 + $0x68] sm:$0xff]  }
 0x974   :  { %4140 = vmatprep.subr.bf16.mxu0 %v9026_v7  ;;  %v9065_v7 = vld [vmem:[%s13919_s14 + $0x28] sm:$0xff]  }
 0x976   :  { %8572 = vmatpush3.bf16.msra.mxu1 %v9063_v29 }
 0x977   :  { %4141 = vmatpush1.bf16.msra.mxu0 %v9024_v10  ;;  %8573 = vmatprep.subr.bf16.mxu1 %v9064_v50  ;;  %v9066_v10 = vld [vmem:[%s13919_s14 + $0x60] sm:$0xff]  }
 0x978   :  { %4142 = vmatprep.subr.bf16.mxu0 %v9029_v9  ;;  %v9067_v9 = vld [vmem:[%s13919_s14 + $0x20] sm:$0xff]  }
 0x97a   :  { %8574 = vmatpush3.bf16.msra.mxu1 %v9065_v7 }
 0x97b   :  { %4143 = vmatpush1.bf16.msra.mxu0 %v9027_v36  ;;  %8575 = vmatprep.subr.bf16.mxu1 %v9066_v10  ;;  %v9068_v36 = vld [vmem:[%s13919_s14 + $0x58] sm:$0xff]  }
 0x97c   :  { %4144 = vmatprep.subr.bf16.mxu0 %v9032_v26  ;;  %v9069_v26 = vld [vmem:[%s13919_s14 + $0x18] sm:$0xff]  }
 0x97e   :  { %8576 = vmatpush3.bf16.msra.mxu1 %v9067_v9 }
 0x97f   :  { %4145 = vmatpush1.bf16.msra.mxu0 %v9030_v4  ;;  %8577 = vmatprep.subr.bf16.mxu1 %v9068_v36  ;;  %v9070_v4 = vld [vmem:[%s13919_s14 + $0x50] sm:$0xff]  }
 0x980   :  { %4146 = vmatprep.subr.bf16.mxu0 %v9035_v63  ;;  %v9071_v63 = vld [vmem:[%s13919_s14 + $0x10] sm:$0xff]  }
 0x982   :  { %8578 = vmatpush3.bf16.msra.mxu1 %v9069_v26 }
 0x983   :  { %4147 = vmatpush1.bf16.msra.mxu0 %v9033_v56  ;;  %8579 = vmatprep.subr.bf16.mxu1 %v9070_v4  ;;  %v9072_v56 = vld [vmem:[%s13919_s14 + $0x48] sm:$0xff]  }
 0x984   :  { %4148 = vmatprep.subr.bf16.mxu0 %v9038_v23  ;;  %v9073_v23 = vld [vmem:[%s13919_s14 + $0x8] sm:$0xff]  }
 0x986   :  { %8580 = vmatpush3.bf16.msra.mxu1 %v9071_v63 }
 0x987   :  { %4149 = vmatpush2.bf16.msra.mxu0 %v9036_v57  ;;  %8581 = vmatprep.subr.bf16.mxu1 %v9072_v56  ;;  %v9074_v57 = vld [vmem:[%s13919_s14 + $0x40] sm:$0xff]  }
 0x988   :  { %4150 = vmatprep.subr.bf16.mxu0 %v9041_v60  ;;  %v9075_v60 = vld [vmem:[%s13919_s14] sm:$0xff]  }
 0x98a   :  { %8582 = vmatpush3.bf16.msra.mxu1 %v9073_v23 }
 0x98b   :  { %4151 = vmatpush2.bf16.msra.mxu0 %v9039_v15  ;;  %8583 = vmatprep.subr.bf16.mxu1 %v9074_v57 }
 0x98c   :  { %4152 = vmatprep.subr.bf16.mxu0 %v9044_v8 }
 0x98e   :  { %8584 = vmatpush3.bf16.msra.mxu1 %v9075_v60 }
 0x98f   :  { %4153 = vmatpush2.bf16.msra.mxu0 %v9042_v41  ;;  %4427 = vmatprep.subr.bf16.mxu1 %v12775_v48 }
 0x990   :  { %4154 = vmatprep.subr.bf16.mxu0 %v9047_v5 }
 0x993   :  { %4155 = vmatpush2.bf16.msra.mxu0 %v9045_v44 }
 0x994   :  { %4156 = vmatprep.subr.bf16.mxu0 %v9050_v47 }
 0x997   :  { %4157 = vmatpush2.bf16.msra.mxu0 %v9048_v43 }
 0x998   :  { %4158 = vmatprep.subr.bf16.mxu0 %v9053_v20 }
 0x99b   :  { %4159 = vmatpush2.bf16.msra.mxu0 %v9051_v17 }
 0x99c   :  { %4160 = vmatprep.subr.bf16.mxu0 %v9056_v55  ;;  %v4113_v44 = vpop.f32.mrf.mxu1  ;;  %v3534_v55 = vld [vmem:[%s13918_s13] sm:$0x3] }
 0x99e   :  { %v4115_v43 = vpop.f32.mrf.mxu1 }
 0x99f   :  { %4161 = vmatpush2.bf16.msra.mxu0 %v9054_v30 }
 0x9a0   :  { %4162 = vmatprep.subr.bf16.mxu0 %v9059_v52  ;;  %v4117_v17 = vpop.f32.mrf.mxu1  ;;  %v3543_v52 = vrot.slane %v3534_v55, %v14245_v62 }
 0x9a3   :  { %4163 = vmatpush2.bf16.msra.mxu0 %v9057_v45  ;;  %v4119_v45 = vpop.f32.mrf.mxu1 }
 0x9a5   :  { %v4123_v6 = vpop.f32.mrf.mxu1 }
 0x9a6   :  { %4165 = vmatmul.mubr.bf16.vlgmr.msra.gmra.mxu0 %v3526_v61  ;;  %v3539_v61 = vrot.slane %v3534_v55, %v14243_v32 }
 0x9a7   :  { %4174 = vmatprep.mubr.bf16.mxu0 %v3533_v3  ;;  %v4125_v9 = vpop.f32.mrf.mxu1 }
 0x9ae   :  { %4175 = vmatmul.mubr.bf16.gmra.mxu0 %v3532_v19 }
 0xa26   :  { %v4060_v15 = vpop.f32.mrf.mxu0 }
 0xa27   :  { %v4061_v37 = vadd.f32 %v4060_v15, %v3539_v61 }
 0xa28   :  { %v4062_v8 = vpop.f32.mrf.mxu0 }
 0xa29   :  { %v4063_v3 = vadd.f32 %v4062_v8, %v3543_v52  ;;  %v4114_v36 = vadd.f32 %v4113_v44, %v4061_v37  ;;  %v4127_v8 = vpop.f32.mrf.mxu1 }
 0xa2a   :  { %v4064_v41 = vpop.f32.mrf.mxu0 }
 0xa2b   :  { %v4065_v19 = vadd.f32 %v4064_v41, %v3539_v61  ;;  %v4116_v7 = vadd.f32 %v4115_v43, %v4063_v3  ;;  %v4129_v37 = vpop.f32.mrf.mxu1 }
 0xa2c   :  { %v4066_v5 = vpop.f32.mrf.mxu0 }
 0xa2d   :  { %v4067_v29 = vadd.f32 %v4066_v5, %v3543_v52  ;;  %v4118_v10 = vadd.f32 %v4117_v17, %v4065_v19 }
 0xa2e   :  { %v4070_v47 = vpop.f32.mrf.mxu0 }
 0xa2f   :  { %v4120_v56 = vadd.f32 %v4119_v45, %v4067_v29  ;;  %v4071_v41 = vadd.f32 %v4070_v47, %v3539_v61 }
 0xa30   :  { %v4072_v20 = vpop.f32.mrf.mxu0 }
 0xa31   :  { %v4073_v60 = vadd.f32 %v4072_v20, %v3543_v52  ;;  %v4124_v45 = vadd.f32 %v4123_v6, %v4071_v41  ;;  %v9078_v6 = vld [vmem:[%s13922_s17 + $0x74] ss:$8 sps:$4 sm:$0xff]   ;;  %v9094_v41 = vld [vmem:[%s13922_s17 + $0x20] ss:$8 sps:$4 sm:$0xff]  }
 0xa32   :  { %v4074_v30 = vpop.f32.mrf.mxu0  ;;  %5983 = vmatprep.subr.bf16.mxu0 %v9078_v6 }
 0xa33   :  { %v4075_v55 = vadd.f32 %v4074_v30, %v3539_v61  ;;  %v4126_v44 = vadd.f32 %v4125_v9, %v4073_v60  ;;  %v9090_v60 = vld [vmem:[%s13922_s17 + $0x34] ss:$8 sps:$4 sm:$0xff]  }
 0xa34   :  { %v4076_v48 = vpop.f32.mrf.mxu0 }
 0xa35   :  { %v4077_v34 = vadd.f32 %v4076_v48, %v3543_v52  ;;  %v4128_v19 = vadd.f32 %v4127_v8, %v4075_v55  ;;  %v9752_v52 = vld [vmem:[#allocation8] ss:$16 sps:$4 sm:$0xff]   ;;  %v9753_v48 = vld [vmem:[#allocation8 + $0xc] ss:$16 sps:$4 sm:$0xff]  }
 0xa36   :  { %v9088_v55 = vld [vmem:[%s13922_s17 + $0x30] ss:$8 sps:$4 sm:$0xff]   ;;  %v9096_v8 = vld [vmem:[%s13922_s17 + $0x24] ss:$8 sps:$4 sm:$0xff]  }
 0xa37   :  { %v4130_v30 = vadd.f32 %v4129_v37, %v4077_v34  ;;  %v9076_v34 = vld [vmem:[%s13922_s17 + $0x70] ss:$8 sps:$4 sm:$0xff]   ;;  %v9118_v37 = vld [vmem:[%s13922_s17 + $0xe0] ss:$8 sps:$4 sm:$0xff]  }
 0xa38   :  { %5984 = vmatpush1.bf16.msra.mxu0 %v9076_v34 }
 0xa66   :  { %v4166_v58 = vpop.f32.mrf.mxu0 }
 0xa67   :  { %v4167_v23 = vadd.f32 %v4166_v58, %v4114_v36 }
 0xa68   :  { %v4168_v50 = vpop.f32.mrf.mxu0 }
 0xa69   :  { %v4169_v4 = vadd.f32 %v4168_v50, %v4116_v7  ;;  %v4185_v43 = vmax.f32 %v4167_v23, 0.0  ;;  %v9087_v23 = vld [vmem:[%s13922_s17 + $0x44] ss:$8 sps:$4 sm:$0xff]  }
 0xa6a   :  { %v4170_v26 = vpop.f32.mrf.mxu0 }
 0xa6b   :  { %v4171_v63 = vadd.f32 %v4170_v26, %v4118_v10  ;;  %v4186_v5 = vmax.f32 %v4169_v4, 0.0  ;;  %v9081_v26 = vld [vmem:[%s13922_s17 + $0x64] ss:$8 sps:$4 sm:$0xff]   ;;  %v9079_v4 = vld [vmem:[%s13922_s17 + $0x60] ss:$8 sps:$4 sm:$0xff]  }
 0xa6c   :  { %v4172_v57 = vpop.f32.mrf.mxu0  ;;  %5985 = vmatprep.subr.bf16.mxu0 %v9081_v26 }
 0xa6d   :  { %v4173_v62 = vadd.f32 %v4172_v57, %v4120_v56  ;;  %v4187_v32 = vmax.f32 %v4171_v63, 0.0  ;;  %v9084_v63 = vld [vmem:[%s13922_s17 + $0x54] ss:$8 sps:$4 sm:$0xff]   ;;  %5986 = vmatpush1.bf16.msra.mxu0 %v9079_v4  ;;  %v9082_v56 = vld [vmem:[%s13922_s17 + $0x50] ss:$8 sps:$4 sm:$0xff]  }
 0xa6e   :  { %v4176_v15 = vpop.f32.mrf.mxu0  ;;  %5987 = vmatprep.subr.bf16.mxu0 %v9084_v63  ;;  %v9085_v57 = vld [vmem:[%s13922_s17 + $0x40] ss:$8 sps:$4 sm:$0xff]  }
 0xa6f   :  { %v4188_v54 = vmax.f32 %v4173_v62, 0.0  ;;  %v4225_v50 = vpack.c.bf16 %v4187_v32, %v4185_v43  ;;  %v4177_v7 = vadd.f32 %v4176_v15, %v4124_v45  ;;  %v9102_v15 = vld [vmem:[%s13922_s17 + $0x14] ss:$8 sps:$4 sm:$0xff]   ;;  %v9108_v43 = vld [vmem:[%s13922_s17 + $0x4] ss:$8 sps:$4 sm:$0xff]  }
 0xa70   :  { %v4178_v17 = vpop.f32.mrf.mxu0  ;;  %v9124_v45 = vld [vmem:[%s13922_s17 + $0xd0] ss:$8 sps:$4 sm:$0xff]  }
 0xa71   :  { %v4226_v3 = vpack.c.bf16 %v4188_v54, %v4186_v5  ;;  %v4179_v29 = vadd.f32 %v4178_v17, %v4126_v44  ;;  %v4189_v9 = vmax.f32 %v4177_v7, 0.0  ;;  %5988 = vmatpush1.bf16.msra.mxu0 %v9082_v56  ;;  %v9100_v5 = vld [vmem:[%s13922_s17 + $0x10] ss:$8 sps:$4 sm:$0xff]   ;;  %v9106_v17 = vld [vmem:[%s13922_s17] ss:$8 sps:$4 sm:$0xff]  }
 0xa72   :  { %v4180_v58 = vpop.f32.mrf.mxu0  ;;  %5989 = vmatprep.subr.bf16.mxu0 %v9087_v23  ;;  %v9112_v44 = vld [vmem:[%s13922_s17 + $0xf0] ss:$8 sps:$4 sm:$0xff]  }
 0xa73   :  { %v4181_v20 = vadd.f32 %v4180_v58, %v4128_v19  ;;  %4364 = vmatprep.mubr.bf16.mxu1 %v4226_v3  ;;  %v4190_v54 = vmax.f32 %v4179_v29, 0.0  ;;  %v9114_v3 = vld [vmem:[%s13922_s17 + $0xf4] ss:$8 sps:$4 sm:$0xff]   ;;  %v9120_v19 = vld [vmem:[%s13922_s17 + $0xe4] ss:$8 sps:$4 sm:$0xff]  }
 0xa74   :  { %v4182_v47 = vpop.f32.mrf.mxu0  ;;  %4365 = vmatmul.mubr.bf16.vlgmr.msra.gmra.mxu1 %v4225_v50  ;;  %v9126_v50 = vld [vmem:[%s13922_s17 + $0xd4] ss:$8 sps:$4 sm:$0xff]   ;;  %v9132_v58 = vld [vmem:[%s13922_s17 + $0xc4] ss:$8 sps:$4 sm:$0xff]   ;;  %v9130_v29 = vld [vmem:[%s13922_s17 + $0xc0] ss:$8 sps:$4 sm:$0xff]  }
 0xa75   :  { %v4183_v61 = vadd.f32 %v4182_v47, %v4130_v30  ;;  %4428 = vmatpush1.bf16.msra.mxu1 %v9752_v52  ;;  %v4191_v62 = vmax.f32 %v4181_v20, 0.0  ;;  %5990 = vmatpush1.bf16.msra.mxu0 %v9085_v57  ;;  %v9138_v20 = vld [vmem:[%s13922_s17 + $0xb4] ss:$8 sps:$4 sm:$0xff]   ;;  %v9136_v30 = vld [vmem:[%s13922_s17 + $0xb0] ss:$8 sps:$4 sm:$0xff]  }
 0xa76   :  { %4480 = vmatprep.subr.bf16.mxu1 %v9753_v48  ;;  %5991 = vmatprep.subr.bf16.mxu0 %v9090_v60  ;;  %v7987_v47 = vld [vmem:[%s13920_s15] ss:$0 sm:$0xff] }
 0xa77   :  { %v4192_v10 = vmax.f32 %v4183_v61, 0.0  ;;  %v4227_v32 = vpack.c.bf16 %v4191_v62, %v4189_v9 }
 0xa79   :  { %v4228_v36 = vpack.c.bf16 %v4192_v10, %v4190_v54  ;;  %5992 = vmatpush1.bf16.msra.mxu0 %v9088_v55 }
 0xa7a   :  { %5993 = vmatprep.subr.bf16.mxu0 %v9096_v8 }
 0xa7b   :  { %4372 = vmatprep.mubr.bf16.mxu1 %v4228_v36 }
 0xa7c   :  { %4373 = vmatmul.mubr.bf16.gmra.mxu1 %v4227_v32 }
 0xa7d   :  { %4445 = vmatprep.mubr.bf16.mxu1 %v14238_v16  ;;  %5994 = vmatpush1.bf16.msra.mxu0 %v9094_v41 }
 0xa7e   :  { %5995 = vmatprep.subr.bf16.mxu0 %v9102_v15 }
 0xa81   :  { %5996 = vmatpush1.bf16.msra.mxu0 %v9100_v5 }
 0xa82   :  { %5997 = vmatprep.subr.bf16.mxu0 %v9108_v43 }
 0xa85   :  { %5998 = vmatpush1.bf16.msra.mxu0 %v9106_v17 }
 0xa86   :  { %5999 = vmatprep.subr.bf16.mxu0 %v9114_v3 }
 0xa89   :  { %6000 = vmatpush2.bf16.msra.mxu0 %v9112_v44 }
 0xa8a   :  { %6001 = vmatprep.subr.bf16.mxu0 %v9120_v19 }
 0xa8d   :  { %6002 = vmatpush2.bf16.msra.mxu0 %v9118_v37 }
 0xa8e   :  { %6003 = vmatprep.subr.bf16.mxu0 %v9126_v50 }
 0xa91   :  { %6004 = vmatpush2.bf16.msra.mxu0 %v9124_v45  ;;  %v9093_v45 = vld [vmem:[%s13922_s17 + $0x174] ss:$8 sps:$4 sm:$0xff]  }
 0xa92   :  { %6005 = vmatprep.subr.bf16.mxu0 %v9132_v58  ;;  %v9754_v58 = vld [vmem:[#allocation8 + $0x8] ss:$16 sps:$4 sm:$0xff]  }
 0xa95   :  { %6006 = vmatpush2.bf16.msra.mxu0 %v9130_v29 }
 0xa96   :  { %6007 = vmatprep.subr.bf16.mxu0 %v9138_v20 }
 0xa99   :  { %6008 = vmatpush2.bf16.msra.mxu0 %v9136_v30 }
 0xb34   :  { %v8585_v7 = vpop.f32.mrf.mxu1 }
 0xb36   :  { %v8586_v61 = vpop.f32.mrf.mxu1 }
 0xb37   :  { %v8587_v52 = vadd.f32 %v8586_v61, %v8585_v7  ;;  %v9091_v7 = vld [vmem:[%s13922_s17 + $0x170] ss:$8 sps:$4 sm:$0xff]   ;;  %v9097_v61 = vld [vmem:[%s13922_s17 + $0x160] ss:$8 sps:$4 sm:$0xff]  }
 0xb38   :  { %v8588_v62 = vpop.f32.mrf.mxu1 }
 0xb39   :  { %v4367_v48 = vadd.f32 %v8587_v52, %v7987_v47  ;;  %v9105_v52 = vld [vmem:[%s13922_s17 + $0x154] ss:$8 sps:$4 sm:$0xff]  }
 0xb3a   :  { %v8589_v54 = vpop.f32.mrf.mxu1 }
 0xb3b   :  { %v8004_v10 = vmul.f32 -1.442695, %v4367_v48  ;;  %v8590_v9 = vadd.f32 %v8589_v54, %v8588_v62  ;;  %v9103_v62 = vld [vmem:[%s13922_s17 + $0x150] ss:$8 sps:$4 sm:$0xff]   ;;  %v9109_v48 = vld [vmem:[%s13922_s17 + $0x140] ss:$8 sps:$4 sm:$0xff]  }
 0xb3c   :  { %v8591_v36 = vpop.f32.mrf.mxu1  ;;  %v9117_v54 = vld [vmem:[%s13922_s17 + $0x134] ss:$8 sps:$4 sm:$0xff]  }
 0xb3d   :  { %9672 = vpow2.f32 %v8004_v10  ;;  %v4370_v32 = vadd.f32 %v8590_v9, %v7987_v47  ;;  %v9115_v10 = vld [vmem:[%s13922_s17 + $0x130] ss:$8 sps:$4 sm:$0xff]   ;;  %v9123_v9 = vld [vmem:[%s13922_s17 + $0x124] ss:$8 sps:$4 sm:$0xff]  }
 0xb3e   :  { %v8592_v34 = vpop.f32.mrf.mxu1 }
 0xb3f   :  { %v8005_v6 = vmul.f32 -1.442695, %v4370_v32  ;;  %v8593_v26 = vadd.f32 %v8592_v34, %v8591_v36  ;;  %v9121_v36 = vld [vmem:[%s13922_s17 + $0x120] ss:$8 sps:$4 sm:$0xff]   ;;  %v9129_v32 = vld [vmem:[%s13922_s17 + $0x114] ss:$8 sps:$4 sm:$0xff]  }
 0xb40   :  { %v8594_v4 = vpop.f32.mrf.mxu1  ;;  %v9127_v34 = vld [vmem:[%s13922_s17 + $0x110] ss:$8 sps:$4 sm:$0xff]  }
 0xb41   :  { %9674 = vpow2.f32 %v8005_v6  ;;  %v4375_v63 = vadd.f32 %v8593_v26, %v7987_v47  ;;  %v9135_v6 = vld [vmem:[%s13922_s17 + $0x104] ss:$8 sps:$4 sm:$0xff]   ;;  %v9133_v26 = vld [vmem:[%s13922_s17 + $0x100] ss:$8 sps:$4 sm:$0xff]  }
 0xb42   :  { %v8595_v56 = vpop.f32.mrf.mxu1 }
 0xb43   :  { %v8006_v23 = vmul.f32 -1.442695, %v4375_v63  ;;  %v8596_v57 = vadd.f32 %v8595_v56, %v8594_v4  ;;  %v9141_v4 = vld [vmem:[%s13922_s17 + $0x1f4] ss:$8 sps:$4 sm:$0xff]   ;;  %v9139_v63 = vld [vmem:[%s13922_s17 + $0x1f0] ss:$8 sps:$4 sm:$0xff]  }
 0xb44   :  { %v9142_v56 = vld [vmem:[%s13922_s17 + $0xa0] ss:$8 sps:$4 sm:$0xff]  }
 0xb45   :  { %9676 = vpow2.f32 %v8006_v23  ;;  %v4378_v60 = vadd.f32 %v8596_v57, %v7987_v47  ;;  %v9099_v47 = vld [vmem:[%s13922_s17 + $0x164] ss:$8 sps:$4 sm:$0xff]   ;;  %v9145_v57 = vld [vmem:[%s13922_s17 + $0x1e0] ss:$8 sps:$4 sm:$0xff]  }
 0xb46   :  { %v9144_v23 = vld [vmem:[%s13922_s17 + $0xa4] ss:$8 sps:$4 sm:$0xff]  }
 0xb47   :  { %v8007_v55 = vmul.f32 -1.442695, %v4378_v60  ;;  %v9147_v60 = vld [vmem:[%s13922_s17 + $0x1e4] ss:$8 sps:$4 sm:$0xff]   ;;  %6009 = vmatprep.subr.bf16.mxu0 %v9144_v23 }
 0xb48   :  { %6010 = vmatpush2.bf16.msra.mxu0 %v9142_v56 }
 0xb49   :  { %9678 = vpow2.f32 %v8007_v55  ;;  %v9148_v55 = vld [vmem:[%s13922_s17 + $0x90] ss:$8 sps:$4 sm:$0xff]  }
 0xb4a   :  { %v9673_v8 = vpop.eup %9672 }
 0xb4b   :  { %v4393_v41 = vadd.f32 1.0, %v9673_v8  ;;  %v9150_v8 = vld [vmem:[%s13922_s17 + $0x94] ss:$8 sps:$4 sm:$0xff]  }
 0xb4c   :  { %6011 = vmatprep.subr.bf16.mxu0 %v9150_v8  ;;  %v14251_v8 = vmov 0 }
 0xb4d   :  { %9680 = vrcp.f32 %v4393_v41  ;;  %v9151_v41 = vld [vmem:[%s13922_s17 + $0x1d0] ss:$8 sps:$4 sm:$0xff]   ;;  %6012 = vmatpush2.bf16.msra.mxu0 %v9148_v55  ;;  %v14252_v8 = vsel %vm13203_vm14, 4294967295, %v14251_v8 }
 0xb4e   :  { %v9675_v15 = vpop.eup %9674  ;;  %14253 = vst [vmem:[#allocation43_spill] sm:$0xff] %v14252_v8 }
 0xb4f   :  { %v4394_v5 = vadd.f32 1.0, %v9675_v15  ;;  %v9153_v15 = vld [vmem:[%s13922_s17 + $0x1d4] ss:$8 sps:$4 sm:$0xff]  }
 0xb51   :  { %9682 = vrcp.f32 %v4394_v5  ;;  %v9156_v5 = vld [vmem:[%s13922_s17 + $0x84] ss:$8 sps:$4 sm:$0xff]  }
 0xb52   :  { %v9677_v43 = vpop.eup %9676  ;;  %6013 = vmatprep.subr.bf16.mxu0 %v9156_v5 }
 0xb53   :  { %v4395_v17 = vadd.f32 1.0, %v9677_v43  ;;  %v9159_v43 = vld [vmem:[%s13922_s17 + $0x1c4] ss:$8 sps:$4 sm:$0xff]  }
 0xb55   :  { %9684 = vrcp.f32 %v4395_v17  ;;  %v9154_v17 = vld [vmem:[%s13922_s17 + $0x80] ss:$8 sps:$4 sm:$0xff]  }
 0xb56   :  { %v9679_v3 = vpop.eup %9678  ;;  %6014 = vmatpush2.bf16.msra.mxu0 %v9154_v17 }
 0xb57   :  { %v4396_v44 = vadd.f32 1.0, %v9679_v3  ;;  %v9157_v3 = vld [vmem:[%s13922_s17 + $0x1c0] ss:$8 sps:$4 sm:$0xff]  }
 0xb59   :  { %9686 = vrcp.f32 %v4396_v44  ;;  %v9160_v44 = vld [vmem:[%s13922_s17 + $0x1b0] ss:$8 sps:$4 sm:$0xff]  }
 0xb5a   :  { %v9681_v19 = vpop.eup %9680 }
 0xb5e   :  { %v9683_v37 = vpop.eup %9682 }
 0xb5f   :  { %v4405_v50 = vpack.c.bf16 %v9683_v37, %v9681_v19  ;;  %v9162_v19 = vld [vmem:[%s13922_s17 + $0x1b4] ss:$8 sps:$4 sm:$0xff]  }
 0xb60   :  { %v9165_v37 = vld [vmem:[%s13922_s17 + $0x274] ss:$8 sps:$4 sm:$0xff]  }
 0xb61   :  { %8008 = vmatmul.mubr.msk.bf16.vlgmr.msra.gmra.mxu1 %vm2458_vm6, %v4405_v50  ;;  %6089 = vmatprep.subr.bf16.mxu0 %v9165_v37 }
 0xb62   :  { %4455 = vmatprep.mubr.bf16.mxu1 %v14238_v16  ;;  %4481 = vmatpush1.bf16.msra.mxu1 %v9754_v58  ;;  %v9685_v29 = vpop.eup %9684  ;;  %v9172_v58 = vld [vmem:[%s13922_s17 + $0x190] ss:$8 sps:$4 sm:$0xff]  }
 0xb63   :  { %6036 = vmatprep.subr.bf16.mxu1 %v9093_v45  ;;  %v9166_v45 = vld [vmem:[%s13922_s17 + $0x1a0] ss:$8 sps:$4 sm:$0xff]  }
 0xb66   :  { %v9687_v20 = vpop.eup %9686 }
 0xb67   :  { %v4406_v30 = vpack.c.bf16 %v9687_v20, %v9685_v29  ;;  %v9174_v29 = vld [vmem:[%s13922_s17 + $0x194] ss:$8 sps:$4 sm:$0xff]   ;;  %v9180_v20 = vld [vmem:[%s13922_s17 + $0x184] ss:$8 sps:$4 sm:$0xff]  }
 0xb69   :  { %8009 = vmatmul.mubr.msk.bf16.gmra.mxu1 %vm2458_vm6, %v4406_v30 }
 0xb6a   :  { %4498 = vmatprep.mubr.bf16.mxu1 %v14238_v16 }
 0xb71   :  { %8010 = vmatmul.mubr.msk.bf16.vlgmr.msra.gmra.mxu1 %vm2458_vm6, %v4405_v50  ;;  %v9168_v50 = vld [vmem:[%s13922_s17 + $0x1a4] ss:$8 sps:$4 sm:$0xff]  }
 0xb72   :  { %4508 = vmatprep.mubr.bf16.mxu1 %v14238_v16  ;;  %6037 = vmatpush1.bf16.msra.mxu1 %v9091_v7  ;;  %v9111_v16 = vld [vmem:[%s13922_s17 + $0x144] ss:$8 sps:$4 sm:$0xff]   ;;  %v9189_v7 = vld [vmem:[%s13922_s17 + $0x374] ss:$8 sps:$4 sm:$0xff]  }
 0xb73   :  { %6038 = vmatprep.subr.bf16.mxu1 %v9099_v47 }
 0xb76   :  { %6039 = vmatpush1.bf16.msra.mxu1 %v9097_v61 }
 0xb77   :  { %6040 = vmatprep.subr.bf16.mxu1 %v9105_v52 }
 0xb79   :  { %8011 = vmatmul.mubr.msk.bf16.gmra.mxu1 %vm2458_vm6, %v4406_v30  ;;  %v9178_v30 = vld [vmem:[%s13922_s17 + $0x180] ss:$8 sps:$4 sm:$0xff]  }
 0xb7a   :  { %6041 = vmatpush1.bf16.msra.mxu1 %v9103_v62 }
 0xb7b   :  { %6042 = vmatprep.subr.bf16.mxu1 %v9111_v16 }
 0xb7e   :  { %6043 = vmatpush1.bf16.msra.mxu1 %v9109_v48 }
 0xb7f   :  { %6044 = vmatprep.subr.bf16.mxu1 %v9117_v54 }
 0xb82   :  { %6045 = vmatpush1.bf16.msra.mxu1 %v9115_v10 }
 0xb83   :  { %6046 = vmatprep.subr.bf16.mxu1 %v9123_v9 }
 0xb86   :  { %6047 = vmatpush1.bf16.msra.mxu1 %v9121_v36 }
 0xb87   :  { %6048 = vmatprep.subr.bf16.mxu1 %v9129_v32 }
 0xb8a   :  { %6049 = vmatpush1.bf16.msra.mxu1 %v9127_v34 }
 0xb8b   :  { %6050 = vmatprep.subr.bf16.mxu1 %v9135_v6 }
 0xb8e   :  { %6051 = vmatpush1.bf16.msra.mxu1 %v9133_v26 }
 0xb8f   :  { %6052 = vmatprep.subr.bf16.mxu1 %v9141_v4 }
 0xb92   :  { %6053 = vmatpush2.bf16.msra.mxu1 %v9139_v63 }
 0xb93   :  { %6054 = vmatprep.subr.bf16.mxu1 %v9147_v60 }
 0xb96   :  { %6055 = vmatpush2.bf16.msra.mxu1 %v9145_v57 }
 0xb97   :  { %6056 = vmatprep.subr.bf16.mxu1 %v9153_v15 }
 0xb9a   :  { %6057 = vmatpush2.bf16.msra.mxu1 %v9151_v41 }
 0xb9b   :  { %6058 = vmatprep.subr.bf16.mxu1 %v9159_v43 }
 0xb9e   :  { %6059 = vmatpush2.bf16.msra.mxu1 %v9157_v3 }
 0xb9f   :  { %6060 = vmatprep.subr.bf16.mxu1 %v9162_v19 }
 0xba2   :  { %6061 = vmatpush2.bf16.msra.mxu1 %v9160_v44  ;;  %v9171_v44 = vld [vmem:[%s13922_s17 + $0x264] ss:$8 sps:$4 sm:$0xff]  }
 0xba3   :  { %6062 = vmatprep.subr.bf16.mxu1 %v9168_v50 }
 0xba6   :  { %6063 = vmatpush2.bf16.msra.mxu1 %v9166_v45 }
 0xba7   :  { %6064 = vmatprep.subr.bf16.mxu1 %v9174_v29 }
 0xbaa   :  { %6065 = vmatpush2.bf16.msra.mxu1 %v9172_v58 }
 0xbab   :  { %6066 = vmatprep.subr.bf16.mxu1 %v9180_v20  ;;  %v9169_v20 = vld [vmem:[%s13922_s17 + $0x260] ss:$8 sps:$4 sm:$0xff]  }
 0xbae   :  { %6067 = vmatpush2.bf16.msra.mxu1 %v9178_v30 }
 0xbaf   :  { %6142 = vmatprep.subr.bf16.mxu1 %v9189_v7 }
 0xc21   :  { %v4447_v47 = vpop.f32.mrf.mxu1 }
 0xc22   :  { %v13171_v61 = vmul.f32 %v4447_v47, %v12794_v14 }
 0xc23   :  { %v4449_v52 = vpop.f32.mrf.mxu1 }
 0xc24   :  { %v13174_v62 = vmul.f32 %v4449_v52, %v12852_v28  ;;  %v4759_v54 = vrot.slane %v13171_v61, 1  ;;  %v4703_v28 = vrot.slane %v13171_v61, 7  ;;  %v9177_v52 = vld [vmem:[%s13922_s17 + $0x254] ss:$8 sps:$4 sm:$0xff]  }
 0xc25   :  { %v4451_v16 = vpop.f32.mrf.mxu1 }
 0xc26   :  { %v13177_v48 = vmul.f32 %v4451_v16, %v12800_v24  ;;  %v4704_v34 = vrot.slane %v13174_v62, 7  ;;  %v4762_v24 = vrot.slane %v13174_v62, 1 }
 0xc27   :  { %v4453_v10 = vpop.f32.mrf.mxu1 }
 0xc28   :  { %v4707_v9 = vrot.slane %v13177_v48, 7  ;;  %v4760_v36 = vrot.slane %v13177_v48, 1  ;;  %v5003_v32 = vpack.c.bf16 %v13177_v48, %v13171_v61  ;;  %v13185_v14 = vmul.f32 %v4453_v10, %v12846_v11  ;;  %v9273_v61 = vld [vmem:[%s13922_s17 + $0x454] ss:$8 sps:$4 sm:$0xff]   ;;  %v9268_v48 = vld [vmem:[%s13922_s17 + $0x390] ss:$8 sps:$4 sm:$0xff]  }
 0xc29   :  { %v4457_v6 = vpop.f32.mrf.mxu1 }
 0xc2a   :  { %v4761_v26 = vsel %vm2737_vm9, %v4759_v54, %v4760_v36  ;;  %v4709_v4 = vrot.slane %v13185_v14, 7  ;;  %v4763_v63 = vrot.slane %v13185_v14, 1  ;;  %v4708_v56 = vsel %vm541_vm2, %v4703_v28, %v4707_v9 }
 0xc2b   :  { %v13195_v23 = vpack.c.bf16 %v4760_v36, %v4761_v26  ;;  %v13198_v11 = vmul.f32 %v4457_v6, %v12806_v49  ;;  %v4459_v57 = vpop.f32.mrf.mxu1  ;;  %v9163_v49 = vld [vmem:[%s13922_s17 + $0x270] ss:$8 sps:$4 sm:$0xff]   ;;  %v8210_v43 = vpack.c.bf16 %v4708_v56, %v4703_v28 }
 0xc2c   :  { %v4764_v60 = vsel %vm2737_vm9, %v4762_v24, %v4763_v63  ;;  %v4710_v55 = vsel %vm541_vm2, %v4704_v34, %v4709_v4  ;;  %v13213_v17 = vmul.f32 %v4459_v57, %v12810_v25 }
 0xc2d   :  { %v13207_v41 = vpack.c.bf16 %v4763_v63, %v4764_v60  ;;  %v4461_v15 = vpop.f32.mrf.mxu1  ;;  %v8206_v5 = vpack.c.bf16 %v4710_v55, %v4704_v34  ;;  %v4783_v19 = vrot.slane %v13198_v11, 1  ;;  %v4735_v58 = vrot.slane %v13198_v11, 7  ;;  %v9183_v55 = vld [vmem:[%s13922_s17 + $0x244] ss:$8 sps:$4 sm:$0xff]  }
 0xc2e   :  { %v13216_v3 = vmul.f32 %v4461_v15, %v12814_v53  ;;  %v4786_v30 = vrot.slane %v13213_v17, 1  ;;  %v4736_v16 = vrot.slane %v13213_v17, 7 }
 0xc2f   :  { %v4463_v37 = vpop.f32.mrf.mxu1  ;;  %8207 = vmatprep.mubr.msk.bf16.mxu0 %vm13203_vm14, %v8206_v5 }
 0xc30   :  { %v4739_v50 = vrot.slane %v13216_v3, 7  ;;  %v4784_v45 = vrot.slane %v13216_v3, 1  ;;  %v13227_v25 = vmul.f32 %v4463_v37, %v12816_v13  ;;  %8211 = vmatmul.mubr.msk.bf16.vlgmr.msra.gmra.mxu0 %vm13203_vm14, %v8210_v43  ;;  %v5015_v53 = vpack.c.bf16 %v13216_v3, %v13198_v11  ;;  %v9282_v11 = vld [vmem:[%s13922_s17 + $0x434] ss:$8 sps:$4 sm:$0xff]   ;;  %v9283_v3 = vld [vmem:[%s13922_s17 + $0x570] ss:$8 sps:$4 sm:$0xff]  }
 0xc31   :  { %6090 = vmatpush1.bf16.msra.mxu0 %v9163_v49  ;;  %v4500_v29 = vpop.f32.mrf.mxu1 }
 0xc32   :  { %v4785_v7 = vsel %vm2737_vm9, %v4783_v19, %v4784_v45  ;;  %v4741_v13 = vrot.slane %v13227_v25, 7  ;;  %v4787_v47 = vrot.slane %v13227_v25, 1  ;;  %6091 = vmatprep.subr.bf16.mxu0 %v9171_v44  ;;  %v13248_v10 = vmul.f32 %v4500_v29, %v12818_v27  ;;  %v9175_v27 = vld [vmem:[%s13922_s17 + $0x250] ss:$8 sps:$4 sm:$0xff]  }
 0xc33   :  { %v13245_v54 = vpack.c.bf16 %v4784_v45, %v4785_v7  ;;  %v4502_v9 = vpop.f32.mrf.mxu1  ;;  %v4740_v28 = vsel %vm541_vm2, %v4735_v58, %v4739_v50  ;;  %v9181_v50 = vld [vmem:[%s13922_s17 + $0x240] ss:$8 sps:$4 sm:$0xff]  }
 0xc34   :  { %v4788_v36 = vsel %vm2737_vm9, %v4786_v30, %v4787_v47  ;;  %v13255_v6 = vmul.f32 %v4502_v9, %v12822_v0  ;;  %v4742_v26 = vsel %vm541_vm2, %v4736_v16, %v4741_v13  ;;  %v4765_v56 = vrot.slane %v13248_v10, 1  ;;  %v9186_v30 = vld [vmem:[%s13922_s17 + $0x234] ss:$8 sps:$4 sm:$0xff]  }
 0xc35   :  { %v13252_v34 = vpack.c.bf16 %v4787_v47, %v4788_v36  ;;  %6092 = vmatpush1.bf16.msra.mxu0 %v9169_v20  ;;  %v4504_v24 = vpop.f32.mrf.mxu1  ;;  %v8214_v63 = vpack.c.bf16 %v4742_v26, %v4736_v16  ;;  %v8218_v60 = vpack.c.bf16 %v4740_v28, %v4735_v58  ;;  %v5004_v0 = vpack.c.bf16 %v13185_v14, %v13174_v62 }
 0xc36   :  { %v13259_v4 = vmul.f32 %v4504_v24, %v12826_v31  ;;  %6093 = vmatprep.subr.bf16.mxu0 %v9177_v52  ;;  %v4705_v43 = vrot.slane %v13248_v10, 7  ;;  %v4706_v62 = vrot.slane %v13255_v6, 7  ;;  %v4768_v44 = vrot.slane %v13255_v6, 1  ;;  %v9184_v24 = vld [vmem:[%s13922_s17 + $0x230] ss:$8 sps:$4 sm:$0xff]  }
 0xc37   :  { %v4506_v57 = vpop.f32.mrf.mxu1  ;;  %8215 = vmatprep.mubr.msk.bf16.mxu0 %vm13203_vm14, %v8214_v63 }
 0xc38   :  { %v4711_v31 = vrot.slane %v13259_v4, 7  ;;  %v4766_v15 = vrot.slane %v13259_v4, 1  ;;  %v5005_v5 = vpack.c.bf16 %v13259_v4, %v13248_v10  ;;  %v13275_v49 = vmul.f32 %v4506_v57, %v12828_v2  ;;  %8219 = vmatmul.mubr.msk.bf16.gmra.mxu0 %vm13203_vm14, %v8218_v60  ;;  %v9294_v10 = vld [vmem:[%s13922_s17 + $0x414] ss:$8 sps:$4 sm:$0xff]   ;;  %v9295_v4 = vld [vmem:[%s13922_s17 + $0x550] ss:$8 sps:$4 sm:$0xff]  }
 0xc39   :  { %v4510_v14 = vpop.f32.mrf.mxu1  ;;  %6094 = vmatpush1.bf16.msra.mxu0 %v9175_v27  ;;  %6121 = vmatprep.mubr.bf16.mxu0 %v5004_v0 }
 0xc3a   :  { %v4767_v19 = vsel %vm2737_vm9, %v4765_v56, %v4766_v15  ;;  %v4713_v37 = vrot.slane %v13275_v49, 7  ;;  %v4769_v2 = vrot.slane %v13275_v49, 1  ;;  %v4712_v45 = vsel %vm541_vm2, %v4705_v43, %v4711_v31  ;;  %6095 = vmatprep.subr.bf16.mxu0 %v9183_v55  ;;  %v9190_v31 = vld [vmem:[%s13922_s17 + $0x220] ss:$8 sps:$4 sm:$0xff]  }
 0xc3b   :  { %v13291_v58 = vpack.c.bf16 %v4766_v15, %v4767_v19  ;;  %v13294_v29 = vmul.f32 %v4510_v14, %v12830_v35  ;;  %v4512_v20 = vpop.f32.mrf.mxu1  ;;  %v9187_v35 = vld [vmem:[%s13922_s17 + $0x370] ss:$8 sps:$4 sm:$0xff]   ;;  %v8226_v36 = vpack.c.bf16 %v4712_v45, %v4705_v43 }
 0xc3c   :  { %v4770_v7 = vsel %vm2737_vm9, %v4768_v44, %v4769_v2  ;;  %v4714_v13 = vsel %vm541_vm2, %v4706_v62, %v4713_v37  ;;  %v13304_v52 = vmul.f32 %v4512_v20, %v12832_v1  ;;  %v9195_v1 = vld [vmem:[%s13922_s17 + $0x364] ss:$8 sps:$4 sm:$0xff]   ;;  %v9201_v44 = vld [vmem:[%s13922_s17 + $0x354] ss:$8 sps:$4 sm:$0xff]  }
 0xc3d   :  { %v13301_v47 = vpack.c.bf16 %v4769_v2, %v4770_v7  ;;  %v4514_v16 = vpop.f32.mrf.mxu1  ;;  %v8222_v9 = vpack.c.bf16 %v4714_v13, %v4706_v62  ;;  %6096 = vmatpush1.bf16.msra.mxu0 %v9181_v50  ;;  %v4789_v26 = vrot.slane %v13294_v29, 1  ;;  %v4737_v0 = vrot.slane %v13294_v29, 7  ;;  %v9198_v37 = vld [vmem:[%s13922_s17 + $0x214] ss:$8 sps:$4 sm:$0xff]   ;;  %v9199_v7 = vld [vmem:[%s13922_s17 + $0x350] ss:$8 sps:$4 sm:$0xff]  }
 0xc3e   :  { %v13310_v28 = vmul.f32 %v4514_v16, %v12834_v21  ;;  %6097 = vmatprep.subr.bf16.mxu0 %v9186_v30  ;;  %v9192_v21 = vld [vmem:[%s13922_s17 + $0x224] ss:$8 sps:$4 sm:$0xff]   ;;  %v4738_v55 = vrot.slane %v13304_v52, 7  ;;  %v4792_v15 = vrot.slane %v13304_v52, 1  ;;  %v9196_v13 = vld [vmem:[%s13922_s17 + $0x210] ss:$8 sps:$4 sm:$0xff]  }
 0xc3f   :  { %v4516_v63 = vpop.f32.mrf.mxu1  ;;  %8223 = vmatprep.mubr.msk.bf16.mxu1 %vm13203_vm14, %v8222_v9  ;;  %v9207_v9 = vld [vmem:[%s13922_s17 + $0x344] ss:$8 sps:$4 sm:$0xff]  }
 0xc40   :  { %v4743_v27 = vrot.slane %v13310_v28, 7  ;;  %v4790_v56 = vrot.slane %v13310_v28, 1  ;;  %v13327_v57 = vmul.f32 %v4516_v63, %v12836_v33  ;;  %8227 = vmatmul.mubr.msk.bf16.vlgmr.msra.gmra.mxu1 %vm13203_vm14, %v8226_v36  ;;  %v5017_v60 = vpack.c.bf16 %v13310_v28, %v13294_v29  ;;  %v9193_v33 = vld [vmem:[%s13922_s17 + $0x360] ss:$8 sps:$4 sm:$0xff]   ;;  %v9204_v36 = vld [vmem:[%s13922_s17 + $0x204] ss:$8 sps:$4 sm:$0xff]  }
 0xc41   :  { %6143 = vmatpush1.bf16.msra.mxu1 %v9187_v35  ;;  %6098 = vmatpush1.bf16.msra.mxu0 %v9184_v24  ;;  %v5006_v35 = vpack.c.bf16 %v13275_v49, %v13255_v6  ;;  %v9205_v24 = vld [vmem:[%s13922_s17 + $0x340] ss:$8 sps:$4 sm:$0xff]   ;;  %v9213_v6 = vld [vmem:[%s13922_s17 + $0x334] ss:$8 sps:$4 sm:$0xff]   ;;  %v9208_v63 = vld [vmem:[%s13922_s17 + $0x2f0] ss:$8 sps:$4 sm:$0xff]  }
 0xc42   :  { %v4791_v43 = vsel %vm2737_vm9, %v4789_v26, %v4790_v56  ;;  %v4745_v62 = vrot.slane %v13327_v57, 7  ;;  %v4793_v14 = vrot.slane %v13327_v57, 1  ;;  %6144 = vmatprep.subr.bf16.mxu1 %v9195_v1  ;;  %6099 = vmatprep.subr.bf16.mxu0 %v9192_v21  ;;  %v4744_v2 = vsel %vm541_vm2, %v4737_v0, %v4743_v27  ;;  %v9202_v1 = vld [vmem:[%s13922_s17 + $0x200] ss:$8 sps:$4 sm:$0xff]   ;;  %v9210_v49 = vld [vmem:[%s13922_s17 + $0x2f4] ss:$8 sps:$4 sm:$0xff]  }
 0xc43   :  { %v13348_v19 = vpack.c.bf16 %v4790_v56, %v4791_v43  ;;  %v8234_v16 = vpack.c.bf16 %v4744_v2, %v4737_v0  ;;  %v9211_v26 = vld [vmem:[%s13922_s17 + $0x330] ss:$8 sps:$4 sm:$0xff]   ;;  %v9219_v21 = vld [vmem:[%s13922_s17 + $0x324] ss:$8 sps:$4 sm:$0xff]   ;;  %v9217_v56 = vld [vmem:[%s13922_s17 + $0x320] ss:$8 sps:$4 sm:$0xff]  }
 0xc44   :  { %v4794_v50 = vsel %vm2737_vm9, %v4792_v15, %v4793_v14  ;;  %v4746_v45 = vsel %vm541_vm2, %v4738_v55, %v4745_v62  ;;  %v9216_v27 = vld [vmem:[%s13922_s17 + $0x2e4] ss:$8 sps:$4 sm:$0xff]   ;;  %v9214_v0 = vld [vmem:[%s13922_s17 + $0x2e0] ss:$8 sps:$4 sm:$0xff]   ;;  %v9220_v15 = vld [vmem:[%s13922_s17 + $0x2d0] ss:$8 sps:$4 sm:$0xff]  }
 0xc45   :  { %v13356_v20 = vpack.c.bf16 %v4793_v14, %v4794_v50  ;;  %6145 = vmatpush1.bf16.msra.mxu1 %v9193_v33  ;;  %v8230_v30 = vpack.c.bf16 %v4746_v45, %v4738_v55  ;;  %6100 = vmatpush1.bf16.msra.mxu0 %v9190_v31  ;;  %v9225_v55 = vld [vmem:[%s13922_s17 + $0x314] ss:$8 sps:$4 sm:$0xff]   ;;  %v9223_v33 = vld [vmem:[%s13922_s17 + $0x310] ss:$8 sps:$4 sm:$0xff]   ;;  %v9231_v43 = vld [vmem:[%s13922_s17 + $0x304] ss:$8 sps:$4 sm:$0xff]  }
 0xc46   :  { %6146 = vmatprep.subr.bf16.mxu1 %v9201_v44  ;;  %6101 = vmatprep.subr.bf16.mxu0 %v9198_v37  ;;  %v9222_v31 = vld [vmem:[%s13922_s17 + $0x2d4] ss:$8 sps:$4 sm:$0xff]   ;;  %v9228_v62 = vld [vmem:[%s13922_s17 + $0x2c4] ss:$8 sps:$4 sm:$0xff]   ;;  %v9229_v14 = vld [vmem:[%s13922_s17 + $0x300] ss:$8 sps:$4 sm:$0xff]  }
 0xc47   :  { %8231 = vmatprep.mubr.msk.bf16.mxu1 %vm13203_vm14, %v8230_v30  ;;  %v9226_v44 = vld [vmem:[%s13922_s17 + $0x2c0] ss:$8 sps:$4 sm:$0xff]   ;;  %v9237_v37 = vld [vmem:[%s13922_s17 + $0x3f4] ss:$8 sps:$4 sm:$0xff]   ;;  %v9235_v50 = vld [vmem:[%s13922_s17 + $0x3f0] ss:$8 sps:$4 sm:$0xff]  }
 0xc48   :  { %8235 = vmatmul.mubr.msk.bf16.gmra.mxu1 %vm13203_vm14, %v8234_v16  ;;  %v9234_v2 = vld [vmem:[%s13922_s17 + $0x2b4] ss:$8 sps:$4 sm:$0xff]   ;;  %v9232_v45 = vld [vmem:[%s13922_s17 + $0x2b0] ss:$8 sps:$4 sm:$0xff]   ;;  %v9243_v30 = vld [vmem:[%s13922_s17 + $0x3e4] ss:$8 sps:$4 sm:$0xff]  }
 0xc49   :  { %6147 = vmatpush1.bf16.msra.mxu1 %v9199_v7  ;;  %6174 = vmatprep.mubr.bf16.mxu1 %v5006_v35  ;;  %v9240_v7 = vld [vmem:[%s13922_s17 + $0x2a4] ss:$8 sps:$4 sm:$0xff]   ;;  %v9238_v16 = vld [vmem:[%s13922_s17 + $0x2a0] ss:$8 sps:$4 sm:$0xff]   ;;  %v9246_v35 = vld [vmem:[%s13922_s17 + $0x294] ss:$8 sps:$4 sm:$0xff]  }
 0xc4a   :  { %6102 = vmatpush1.bf16.msra.mxu0 %v9196_v13  ;;  %6148 = vmatprep.subr.bf16.mxu1 %v9207_v9  ;;  %v9241_v13 = vld [vmem:[%s13922_s17 + $0x3e0] ss:$8 sps:$4 sm:$0xff]   ;;  %v9249_v9 = vld [vmem:[%s13922_s17 + $0x3d4] ss:$8 sps:$4 sm:$0xff]  }
 0xc4b   :  { %6103 = vmatprep.subr.bf16.mxu0 %v9204_v36  ;;  %v9247_v36 = vld [vmem:[%s13922_s17 + $0x3d0] ss:$8 sps:$4 sm:$0xff]   ;;  %v9309_v29 = vld [vmem:[%s13922_s17 + $0x534] ss:$8 sps:$4 sm:$0xff]  }
 0xc4c   :  { %v9306_v28 = vld [vmem:[%s13922_s17 + $0x4f4] ss:$8 sps:$4 sm:$0xff]  }
 0xc4d   :  { %6149 = vmatpush1.bf16.msra.mxu1 %v9205_v24  ;;  %v9244_v24 = vld [vmem:[%s13922_s17 + $0x290] ss:$8 sps:$4 sm:$0xff]  }
 0xc4e   :  { %6104 = vmatpush1.bf16.msra.mxu0 %v9202_v1  ;;  %6150 = vmatprep.subr.bf16.mxu1 %v9213_v6  ;;  %v9255_v1 = vld [vmem:[%s13922_s17 + $0x3c4] ss:$8 sps:$4 sm:$0xff]  }
 0xc4f   :  { %6105 = vmatprep.subr.bf16.mxu0 %v9210_v49  ;;  %v9252_v6 = vld [vmem:[%s13922_s17 + $0x284] ss:$8 sps:$4 sm:$0xff]   ;;  %v9253_v49 = vld [vmem:[%s13922_s17 + $0x3c0] ss:$8 sps:$4 sm:$0xff]  }
 0xc51   :  { %6151 = vmatpush1.bf16.msra.mxu1 %v9211_v26  ;;  %v9250_v26 = vld [vmem:[%s13922_s17 + $0x280] ss:$8 sps:$4 sm:$0xff]  }
 0xc52   :  { %6106 = vmatpush2.bf16.msra.mxu0 %v9208_v63  ;;  %6152 = vmatprep.subr.bf16.mxu1 %v9219_v21  ;;  %v9258_v63 = vld [vmem:[%s13922_s17 + $0x3b4] ss:$8 sps:$4 sm:$0xff]  }
 0xc53   :  { %6107 = vmatprep.subr.bf16.mxu0 %v9216_v27  ;;  %v9261_v21 = vld [vmem:[%s13922_s17 + $0x474] ss:$8 sps:$4 sm:$0xff]   ;;  %v9256_v27 = vld [vmem:[%s13922_s17 + $0x3b0] ss:$8 sps:$4 sm:$0xff]  }
 0xc55   :  { %6153 = vmatpush1.bf16.msra.mxu1 %v9217_v56  ;;  %v9259_v56 = vld [vmem:[%s13922_s17 + $0x470] ss:$8 sps:$4 sm:$0xff]  }
 0xc56   :  { %6108 = vmatpush2.bf16.msra.mxu0 %v9214_v0  ;;  %6154 = vmatprep.subr.bf16.mxu1 %v9225_v55  ;;  %v9264_v0 = vld [vmem:[%s13922_s17 + $0x3a4] ss:$8 sps:$4 sm:$0xff]  }
 0xc57   :  { %6109 = vmatprep.subr.bf16.mxu0 %v9222_v31  ;;  %v9267_v55 = vld [vmem:[%s13922_s17 + $0x464] ss:$8 sps:$4 sm:$0xff]   ;;  %v5016_v31 = vpack.c.bf16 %v13227_v25, %v13213_v17  ;;  %v14254_v17 = vmov 0 }
 0xc58   :  { %v14255_v17 = vsel %vm13521_vm15, 4294967295, %v14254_v17  ;;  %v9276_v25 = vld [vmem:[%s13922_s17 + $0x384] ss:$8 sps:$4 sm:$0xff]  }
 0xc59   :  { %6155 = vmatpush1.bf16.msra.mxu1 %v9223_v33  ;;  %v9262_v33 = vld [vmem:[%s13922_s17 + $0x3a0] ss:$8 sps:$4 sm:$0xff]   ;;  %14256 = vst [vmem:[#allocation41_spill] sm:$0xff] %v14255_v17 }
 0xc5a   :  { %6110 = vmatpush2.bf16.msra.mxu0 %v9220_v15  ;;  %6156 = vmatprep.subr.bf16.mxu1 %v9231_v43  ;;  %v9265_v15 = vld [vmem:[%s13922_s17 + $0x460] ss:$8 sps:$4 sm:$0xff]   ;;  %v9270_v43 = vld [vmem:[%s13922_s17 + $0x394] ss:$8 sps:$4 sm:$0xff]  }
 0xc5b   :  { %6111 = vmatprep.subr.bf16.mxu0 %v9228_v62  ;;  %v9279_v62 = vld [vmem:[%s13922_s17 + $0x444] ss:$8 sps:$4 sm:$0xff]  }
 0xc5d   :  { %6157 = vmatpush1.bf16.msra.mxu1 %v9229_v14  ;;  %v9274_v14 = vld [vmem:[%s13922_s17 + $0x380] ss:$8 sps:$4 sm:$0xff]  }
 0xc5e   :  { %6112 = vmatpush2.bf16.msra.mxu0 %v9226_v44  ;;  %6158 = vmatprep.subr.bf16.mxu1 %v9237_v37  ;;  %v9277_v44 = vld [vmem:[%s13922_s17 + $0x440] ss:$8 sps:$4 sm:$0xff]   ;;  %v9285_v37 = vld [vmem:[%s13922_s17 + $0x574] ss:$8 sps:$4 sm:$0xff]  }
 0xc5f   :  { %6113 = vmatprep.subr.bf16.mxu0 %v9234_v2  ;;  %v5018_v2 = vpack.c.bf16 %v13327_v57, %v13304_v52  ;;  %v9297_v52 = vld [vmem:[%s13922_s17 + $0x554] ss:$8 sps:$4 sm:$0xff]   ;;  %v9303_v57 = vld [vmem:[%s13922_s17 + $0x544] ss:$8 sps:$4 sm:$0xff]  }
 0xc61   :  { %6159 = vmatpush2.bf16.msra.mxu1 %v9235_v50  ;;  %v9288_v50 = vld [vmem:[%s13922_s17 + $0x424] ss:$8 sps:$4 sm:$0xff]  }
 0xc62   :  { %6114 = vmatpush2.bf16.msra.mxu0 %v9232_v45  ;;  %6160 = vmatprep.subr.bf16.mxu1 %v9243_v30  ;;  %v9289_v45 = vld [vmem:[%s13922_s17 + $0x560] ss:$8 sps:$4 sm:$0xff]  }
 0xc63   :  { %6115 = vmatprep.subr.bf16.mxu0 %v9240_v7  ;;  %v9286_v30 = vld [vmem:[%s13922_s17 + $0x420] ss:$8 sps:$4 sm:$0xff]   ;;  %v9300_v7 = vld [vmem:[%s13922_s17 + $0x404] ss:$8 sps:$4 sm:$0xff]  }
 0xc65   :  { %6161 = vmatpush2.bf16.msra.mxu1 %v9241_v13  ;;  %v9301_v13 = vld [vmem:[%s13922_s17 + $0x540] ss:$8 sps:$4 sm:$0xff]  }
 0xc66   :  { %6116 = vmatpush2.bf16.msra.mxu0 %v9238_v16  ;;  %6162 = vmatprep.subr.bf16.mxu1 %v9249_v9  ;;  %v9298_v16 = vld [vmem:[%s13922_s17 + $0x400] ss:$8 sps:$4 sm:$0xff]   ;;  %v9315_v9 = vld [vmem:[%s13922_s17 + $0x524] ss:$8 sps:$4 sm:$0xff]  }
 0xc67   :  { %6117 = vmatprep.subr.bf16.mxu0 %v9246_v35  ;;  %v9312_v35 = vld [vmem:[%s13922_s17 + $0x4e4] ss:$8 sps:$4 sm:$0xff]  }
 0xc69   :  { %6163 = vmatpush2.bf16.msra.mxu1 %v9247_v36  ;;  %v9313_v36 = vld [vmem:[%s13922_s17 + $0x520] ss:$8 sps:$4 sm:$0xff]  }
 0xc6a   :  { %6118 = vmatpush2.bf16.msra.mxu0 %v9244_v24  ;;  %6164 = vmatprep.subr.bf16.mxu1 %v9255_v1  ;;  %v9310_v24 = vld [vmem:[%s13922_s17 + $0x4e0] ss:$8 sps:$4 sm:$0xff]   ;;  %v9321_v1 = vld [vmem:[%s13922_s17 + $0x514] ss:$8 sps:$4 sm:$0xff]  }
 0xc6b   :  { %6119 = vmatprep.subr.bf16.mxu0 %v9252_v6  ;;  %v9318_v6 = vld [vmem:[%s13922_s17 + $0x4d4] ss:$8 sps:$4 sm:$0xff]  }
 0xc6d   :  { %6165 = vmatpush2.bf16.msra.mxu1 %v9253_v49  ;;  %v9319_v49 = vld [vmem:[%s13922_s17 + $0x510] ss:$8 sps:$4 sm:$0xff]  }
 0xc6e   :  { %6120 = vmatpush2.bf16.msra.mxu0 %v9250_v26  ;;  %6166 = vmatprep.subr.bf16.mxu1 %v9258_v63  ;;  %v9316_v26 = vld [vmem:[%s13922_s17 + $0x4d0] ss:$8 sps:$4 sm:$0xff]   ;;  %v9327_v63 = vld [vmem:[%s13922_s17 + $0x504] ss:$8 sps:$4 sm:$0xff]  }
 0xc6f   :  { %6195 = vmatprep.subr.bf16.mxu0 %v9261_v21  ;;  %v9324_v21 = vld [vmem:[%s13922_s17 + $0x4c4] ss:$8 sps:$4 sm:$0xff]  }
 0xc71   :  { %6122 = vmatmul.mubr.bf16.vlgmr.msra.gmra.mxu0 %v5003_v32  ;;  %6167 = vmatpush2.bf16.msra.mxu1 %v9256_v27  ;;  %v9271_v32 = vld [vmem:[%s13922_s17 + $0x450] ss:$8 sps:$4 sm:$0xff]   ;;  %v9325_v27 = vld [vmem:[%s13922_s17 + $0x500] ss:$8 sps:$4 sm:$0xff]  }
 0xc72   :  { %6131 = vmatprep.mubr.bf16.mxu0 %v5016_v31  ;;  %6196 = vmatpush1.bf16.msra.mxu0 %v9259_v56  ;;  %v9322_v56 = vld [vmem:[%s13922_s17 + $0x4c0] ss:$8 sps:$4 sm:$0xff]   ;;  %v9331_v31 = vld [vmem:[%s13922_s17 + $0x5f0] ss:$8 sps:$4 sm:$0xff]  }
 0xc73   :  { %6168 = vmatprep.subr.bf16.mxu1 %v9264_v0  ;;  %6197 = vmatprep.subr.bf16.mxu0 %v9267_v55  ;;  %v9333_v0 = vld [vmem:[%s13922_s17 + $0x5f4] ss:$8 sps:$4 sm:$0xff]  }
 0xc74   :  { %v9330_v55 = vld [vmem:[%s13922_s17 + $0x4b4] ss:$8 sps:$4 sm:$0xff]  }
 0xc75   :  { %6169 = vmatpush2.bf16.msra.mxu1 %v9262_v33  ;;  %v9328_v33 = vld [vmem:[%s13922_s17 + $0x4b0] ss:$8 sps:$4 sm:$0xff]  }
 0xc76   :  { %6198 = vmatpush1.bf16.msra.mxu0 %v9265_v15  ;;  %6170 = vmatprep.subr.bf16.mxu1 %v9270_v43  ;;  %v9339_v15 = vld [vmem:[%s13922_s17 + $0x5e4] ss:$8 sps:$4 sm:$0xff]  }
 0xc77   :  { %6199 = vmatprep.subr.bf16.mxu0 %v9273_v61  ;;  %v9336_v43 = vld [vmem:[%s13922_s17 + $0x4a4] ss:$8 sps:$4 sm:$0xff]   ;;  %v9337_v61 = vld [vmem:[%s13922_s17 + $0x5e0] ss:$8 sps:$4 sm:$0xff]  }
 0xc79   :  { %6132 = vmatmul.mubr.bf16.gmra.mxu0 %v5015_v53  ;;  %6171 = vmatpush2.bf16.msra.mxu1 %v9268_v48  ;;  %v9291_v53 = vld [vmem:[%s13922_s17 + $0x564] ss:$8 sps:$4 sm:$0xff]   ;;  %v9334_v48 = vld [vmem:[%s13922_s17 + $0x4a0] ss:$8 sps:$4 sm:$0xff]  }
 0xc7a   :  { %6200 = vmatpush1.bf16.msra.mxu0 %v9271_v32  ;;  %8238 = vmatprep.mubr.msk.bf16.mxu0 %vm13521_vm15, %v13207_v41  ;;  %v9280_v41 = vld [vmem:[%s13922_s17 + $0x430] ss:$8 sps:$4 sm:$0xff]   ;;  %v9345_v32 = vld [vmem:[%s13922_s17 + $0x5d4] ss:$8 sps:$4 sm:$0xff]  }
 0xc7b   :  { %6172 = vmatprep.subr.bf16.mxu1 %v9276_v25  ;;  %6201 = vmatprep.subr.bf16.mxu0 %v9279_v62  ;;  %v9342_v25 = vld [vmem:[%s13922_s17 + $0x494] ss:$8 sps:$4 sm:$0xff]   ;;  %v9343_v62 = vld [vmem:[%s13922_s17 + $0x5d0] ss:$8 sps:$4 sm:$0xff]  }
 0xc7d   :  { %6173 = vmatpush2.bf16.msra.mxu1 %v9274_v14  ;;  %v9340_v14 = vld [vmem:[%s13922_s17 + $0x490] ss:$8 sps:$4 sm:$0xff]  }
 0xc7e   :  { %6202 = vmatpush1.bf16.msra.mxu0 %v9277_v44  ;;  %6248 = vmatprep.subr.bf16.mxu1 %v9285_v37  ;;  %v9351_v44 = vld [vmem:[%s13922_s17 + $0x5c4] ss:$8 sps:$4 sm:$0xff]  }
 0xc7f   :  { %6203 = vmatprep.subr.bf16.mxu0 %v9282_v11  ;;  %v9348_v37 = vld [vmem:[%s13922_s17 + $0x484] ss:$8 sps:$4 sm:$0xff]   ;;  %v9349_v11 = vld [vmem:[%s13922_s17 + $0x5c0] ss:$8 sps:$4 sm:$0xff]  }
 0xc80   :  { %6175 = vmatmul.mubr.bf16.vlgmr.msra.gmra.mxu1 %v5005_v5  ;;  %v9292_v5 = vld [vmem:[%s13922_s17 + $0x410] ss:$8 sps:$4 sm:$0xff]  }
 0xc81   :  { %6184 = vmatprep.mubr.bf16.mxu1 %v5018_v2  ;;  %6249 = vmatpush1.bf16.msra.mxu1 %v9283_v3  ;;  %v9346_v3 = vld [vmem:[%s13922_s17 + $0x480] ss:$8 sps:$4 sm:$0xff]   ;;  %v9352_v2 = vld [vmem:[%s13922_s17 + $0x5b0] ss:$8 sps:$4 sm:$0xff]  }
 0xc82   :  { %6204 = vmatpush1.bf16.msra.mxu0 %v9280_v41  ;;  %6250 = vmatprep.subr.bf16.mxu1 %v9291_v53  ;;  %v9354_v41 = vld [vmem:[%s13922_s17 + $0x5b4] ss:$8 sps:$4 sm:$0xff]  }
 0xc83   :  { %6205 = vmatprep.subr.bf16.mxu0 %v9288_v50  ;;  %v9357_v53 = vld [vmem:[#allocation13 + $0x74] ss:$8 sps:$4 sm:$0xff]   ;;  %v9355_v50 = vld [vmem:[#allocation13 + $0x70] ss:$8 sps:$4 sm:$0xff]  }
 0xc85   :  { %6251 = vmatpush1.bf16.msra.mxu1 %v9289_v45  ;;  %v9360_v45 = vld [vmem:[%s13922_s17 + $0x5a4] ss:$8 sps:$4 sm:$0xff]  }
 0xc86   :  { %6206 = vmatpush1.bf16.msra.mxu0 %v9286_v30  ;;  %6252 = vmatprep.subr.bf16.mxu1 %v9297_v52  ;;  %v9363_v30 = vld [vmem:[#allocation13 + $0x64] ss:$8 sps:$4 sm:$0xff]   ;;  %v9358_v52 = vld [vmem:[%s13922_s17 + $0x5a0] ss:$8 sps:$4 sm:$0xff]  }
 0xc87   :  { %6207 = vmatprep.subr.bf16.mxu0 %v9294_v10  ;;  %v9361_v10 = vld [vmem:[#allocation13 + $0x60] ss:$8 sps:$4 sm:$0xff]  }
 0xc88   :  { %6185 = vmatmul.mubr.bf16.gmra.mxu1 %v5017_v60  ;;  %v9304_v60 = vld [vmem:[%s13922_s17 + $0x4f0] ss:$8 sps:$4 sm:$0xff]  }
 0xc89   :  { %6253 = vmatpush1.bf16.msra.mxu1 %v9295_v4  ;;  %8250 = vmatprep.mubr.msk.bf16.mxu1 %vm13521_vm15, %v13301_v47  ;;  %v9307_v47 = vld [vmem:[%s13922_s17 + $0x530] ss:$8 sps:$4 sm:$0xff]   ;;  %v9366_v4 = vld [vmem:[%s13922_s17 + $0x594] ss:$8 sps:$4 sm:$0xff]  }
 0xc8a   :  { %6208 = vmatpush1.bf16.msra.mxu0 %v9292_v5  ;;  %6254 = vmatprep.subr.bf16.mxu1 %v9303_v57  ;;  %v9369_v5 = vld [vmem:[#allocation13 + $0x54] ss:$8 sps:$4 sm:$0xff]   ;;  %v9367_v57 = vld [vmem:[#allocation13 + $0x50] ss:$8 sps:$4 sm:$0xff]  }
 0xc8b   :  { %6209 = vmatprep.subr.bf16.mxu0 %v9300_v7  ;;  %v9375_v7 = vld [vmem:[#allocation13 + $0x44] ss:$8 sps:$4 sm:$0xff]  }
 0xc8d   :  { %6255 = vmatpush1.bf16.msra.mxu1 %v9301_v13  ;;  %v9370_v13 = vld [vmem:[%s13922_s17 + $0x580] ss:$8 sps:$4 sm:$0xff]  }
 0xc8e   :  { %6210 = vmatpush1.bf16.msra.mxu0 %v9298_v16  ;;  %6256 = vmatprep.subr.bf16.mxu1 %v9309_v29  ;;  %v9373_v16 = vld [vmem:[#allocation13 + $0x40] ss:$8 sps:$4 sm:$0xff]   ;;  %v9381_v29 = vld [vmem:[#allocation13 + $0x174] ss:$8 sps:$4 sm:$0xff]  }
 0xc8f   :  { %6211 = vmatprep.subr.bf16.mxu0 %v9306_v28  ;;  %v9378_v28 = vld [vmem:[#allocation13 + $0x34] ss:$8 sps:$4 sm:$0xff]  }
 0xc91   :  { %6257 = vmatpush1.bf16.msra.mxu1 %v9307_v47  ;;  %v9379_v47 = vld [vmem:[#allocation13 + $0x170] ss:$8 sps:$4 sm:$0xff]  }
 0xc92   :  { %6212 = vmatpush2.bf16.msra.mxu0 %v9304_v60  ;;  %6258 = vmatprep.subr.bf16.mxu1 %v9315_v9  ;;  %v9376_v60 = vld [vmem:[#allocation13 + $0x30] ss:$8 sps:$4 sm:$0xff]   ;;  %v9384_v9 = vld [vmem:[#allocation13 + $0x24] ss:$8 sps:$4 sm:$0xff]  }
 0xc93   :  { %6213 = vmatprep.subr.bf16.mxu0 %v9312_v35  ;;  %v9382_v35 = vld [vmem:[#allocation13 + $0x20] ss:$8 sps:$4 sm:$0xff]  }
 0xc95   :  { %6259 = vmatpush1.bf16.msra.mxu1 %v9313_v36  ;;  %v9393_v36 = vld [vmem:[#allocation13 + $0x154] ss:$8 sps:$4 sm:$0xff]  }
 0xc96   :  { %6214 = vmatpush2.bf16.msra.mxu0 %v9310_v24  ;;  %6260 = vmatprep.subr.bf16.mxu1 %v9321_v1  ;;  %v9390_v24 = vld [vmem:[#allocation13 + $0x14] ss:$8 sps:$4 sm:$0xff]   ;;  %v9391_v1 = vld [vmem:[#allocation13 + $0x150] ss:$8 sps:$4 sm:$0xff]  }
 0xc97   :  { %6215 = vmatprep.subr.bf16.mxu0 %v9318_v6  ;;  %v9388_v6 = vld [vmem:[#allocation13 + $0x10] ss:$8 sps:$4 sm:$0xff]  }
 0xc99   :  { %6261 = vmatpush1.bf16.msra.mxu1 %v9319_v49  ;;  %v9399_v49 = vld [vmem:[#allocation13 + $0x144] ss:$8 sps:$4 sm:$0xff]  }
 0xc9a   :  { %6216 = vmatpush2.bf16.msra.mxu0 %v9316_v26  ;;  %6262 = vmatprep.subr.bf16.mxu1 %v9327_v63  ;;  %v9394_v26 = vld [vmem:[#allocation13] ss:$8 sps:$4 sm:$0xff]   ;;  %v9405_v63 = vld [vmem:[#allocation13 + $0x134] ss:$8 sps:$4 sm:$0xff]  }
 0xc9b   :  { %6217 = vmatprep.subr.bf16.mxu0 %v9324_v21  ;;  %v9402_v21 = vld [vmem:[#allocation13 + $0xf4] ss:$8 sps:$4 sm:$0xff]  }
 0xc9d   :  { %6263 = vmatpush1.bf16.msra.mxu1 %v9325_v27  ;;  %v9403_v27 = vld [vmem:[#allocation13 + $0x130] ss:$8 sps:$4 sm:$0xff]  }
 0xc9e   :  { %6218 = vmatpush2.bf16.msra.mxu0 %v9322_v56  ;;  %6264 = vmatprep.subr.bf16.mxu1 %v9333_v0  ;;  %v9400_v56 = vld [vmem:[#allocation13 + $0xf0] ss:$8 sps:$4 sm:$0xff]   ;;  %v9411_v0 = vld [vmem:[#allocation13 + $0x124] ss:$8 sps:$4 sm:$0xff]  }
 0xc9f   :  { %6219 = vmatprep.subr.bf16.mxu0 %v9330_v55  ;;  %v9408_v55 = vld [vmem:[#allocation13 + $0xe4] ss:$8 sps:$4 sm:$0xff]  }
 0xca1   :  { %6265 = vmatpush2.bf16.msra.mxu1 %v9331_v31  ;;  %v9406_v31 = vld [vmem:[#allocation13 + $0xe0] ss:$8 sps:$4 sm:$0xff]  }
 0xca2   :  { %6220 = vmatpush2.bf16.msra.mxu0 %v9328_v33  ;;  %6266 = vmatprep.subr.bf16.mxu1 %v9339_v15  ;;  %v9414_v33 = vld [vmem:[#allocation13 + $0xd4] ss:$8 sps:$4 sm:$0xff]   ;;  %v9415_v15 = vld [vmem:[#allocation13 + $0x110] ss:$8 sps:$4 sm:$0xff]  }
 0xca3   :  { %6221 = vmatprep.subr.bf16.mxu0 %v9336_v43  ;;  %v9412_v43 = vld [vmem:[#allocation13 + $0xd0] ss:$8 sps:$4 sm:$0xff]  }
 0xca5   :  { %6267 = vmatpush2.bf16.msra.mxu1 %v9337_v61  ;;  %v9423_v61 = vld [vmem:[#allocation13 + $0x104] ss:$8 sps:$4 sm:$0xff]  }
 0xca6   :  { %6222 = vmatpush2.bf16.msra.mxu0 %v9334_v48  ;;  %6268 = vmatprep.subr.bf16.mxu1 %v9345_v32  ;;  %v9420_v48 = vld [vmem:[#allocation13 + $0xc4] ss:$8 sps:$4 sm:$0xff]   ;;  %v9421_v32 = vld [vmem:[#allocation13 + $0x100] ss:$8 sps:$4 sm:$0xff]  }
 0xca7   :  { %6223 = vmatprep.subr.bf16.mxu0 %v9342_v25  ;;  %v9418_v25 = vld [vmem:[#allocation13 + $0xc0] ss:$8 sps:$4 sm:$0xff]  }
 0xca9   :  { %6269 = vmatpush2.bf16.msra.mxu1 %v9343_v62  ;;  %v9429_v62 = vld [vmem:[#allocation13 + $0x1f4] ss:$8 sps:$4 sm:$0xff]  }
 0xcaa   :  { %6224 = vmatpush2.bf16.msra.mxu0 %v9340_v14  ;;  %6270 = vmatprep.subr.bf16.mxu1 %v9351_v44  ;;  %v9426_v14 = vld [vmem:[#allocation13 + $0xb4] ss:$8 sps:$4 sm:$0xff]   ;;  %v9427_v44 = vld [vmem:[#allocation13 + $0x1f0] ss:$8 sps:$4 sm:$0xff]  }
 0xcab   :  { %6225 = vmatprep.subr.bf16.mxu0 %v9348_v37  ;;  %v9424_v37 = vld [vmem:[#allocation13 + $0xb0] ss:$8 sps:$4 sm:$0xff]  }
 0xcad   :  { %6271 = vmatpush2.bf16.msra.mxu1 %v9349_v11  ;;  %v9435_v11 = vld [vmem:[#allocation13 + $0x1e4] ss:$8 sps:$4 sm:$0xff]  }
 0xcae   :  { %6226 = vmatpush2.bf16.msra.mxu0 %v9346_v3  ;;  %6272 = vmatprep.subr.bf16.mxu1 %v9354_v41  ;;  %v9432_v3 = vld [vmem:[#allocation13 + $0xa4] ss:$8 sps:$4 sm:$0xff]   ;;  %v9433_v41 = vld [vmem:[#allocation13 + $0x1e0] ss:$8 sps:$4 sm:$0xff]  }
 0xcaf   :  { %6781 = vmatprep.subr.bf16.mxu0 %v9357_v53  ;;  %v9430_v53 = vld [vmem:[#allocation13 + $0xa0] ss:$8 sps:$4 sm:$0xff]  }
 0xcb1   :  { %8241 = vmatmul.mubr.msk.bf16.vlgmr.msra.gmra.mxu0 %vm13521_vm15, %v13195_v23  ;;  %6273 = vmatpush2.bf16.msra.mxu1 %v9352_v2  ;;  %v9364_v23 = vld [vmem:[%s13922_s17 + $0x590] ss:$8 sps:$4 sm:$0xff]   ;;  %v9441_v2 = vld [vmem:[#allocation13 + $0x1d4] ss:$8 sps:$4 sm:$0xff]  }
 0xcb2   :  { %8244 = vmatprep.mubr.msk.bf16.mxu0 %vm13521_vm15, %v13252_v34  ;;  %6782 = vmatpush1.bf16.msra.mxu0 %v9355_v50  ;;  %v9372_v34 = vld [vmem:[%s13922_s17 + $0x584] ss:$8 sps:$4 sm:$0xff]   ;;  %v9438_v50 = vld [vmem:[#allocation13 + $0x94] ss:$8 sps:$4 sm:$0xff]  }
 0xcb3   :  { %6274 = vmatprep.subr.bf16.mxu1 %v9360_v45  ;;  %6783 = vmatprep.subr.bf16.mxu0 %v9363_v30  ;;  %v9439_v45 = vld [vmem:[#allocation13 + $0x1d0] ss:$8 sps:$4 sm:$0xff]  }
 0xcb4   :  { %v9436_v30 = vld [vmem:[#allocation13 + $0x90] ss:$8 sps:$4 sm:$0xff]  }
 0xcb5   :  { %6275 = vmatpush2.bf16.msra.mxu1 %v9358_v52  ;;  %v9447_v52 = vld [vmem:[#allocation13 + $0x1c4] ss:$8 sps:$4 sm:$0xff]  }
 0xcb6   :  { %6784 = vmatpush1.bf16.msra.mxu0 %v9361_v10  ;;  %6276 = vmatprep.subr.bf16.mxu1 %v9366_v4  ;;  %v9444_v10 = vld [vmem:[#allocation13 + $0x84] ss:$8 sps:$4 sm:$0xff]   ;;  %v9445_v4 = vld [vmem:[#allocation13 + $0x1c0] ss:$8 sps:$4 sm:$0xff]  }
 0xcb7   :  { %6785 = vmatprep.subr.bf16.mxu0 %v9369_v5  ;;  %v9442_v5 = vld [vmem:[#allocation13 + $0x80] ss:$8 sps:$4 sm:$0xff]  }
 0xcb9   :  { %8247 = vmatmul.mubr.msk.bf16.gmra.mxu0 %vm13521_vm15, %v13245_v54  ;;  %6277 = vmatpush2.bf16.msra.mxu1 %v9364_v23  ;;  %v9387_v54 = vld [vmem:[#allocation13 + $0x164] ss:$8 sps:$4 sm:$0xff]   ;;  %v9450_v23 = vld [vmem:[#allocation13 + $0x1b4] ss:$8 sps:$4 sm:$0xff]  }
 0xcba   :  { %6786 = vmatpush1.bf16.msra.mxu0 %v9367_v57  ;;  %8359 = vmatprep.mubr.msk.bf16.mxu0 %vm13203_vm14, %v12877_v42  ;;  %v9385_v42 = vld [vmem:[#allocation13 + $0x160] ss:$8 sps:$4 sm:$0xff]   ;;  %v9453_v57 = vld [vmem:[#allocation13 + $0x274] ss:$8 sps:$4 sm:$0xff]  }
 0xcbb   :  { %6278 = vmatprep.subr.bf16.mxu1 %v9372_v34  ;;  %6787 = vmatprep.subr.bf16.mxu0 %v9375_v7  ;;  %v9448_v34 = vld [vmem:[#allocation13 + $0x1b0] ss:$8 sps:$4 sm:$0xff]  }
 0xcbc   :  { %v9451_v7 = vld [vmem:[#allocation13 + $0x270] ss:$8 sps:$4 sm:$0xff]  }
 0xcbd   :  { %6279 = vmatpush2.bf16.msra.mxu1 %v9370_v13  ;;  %v9456_v13 = vld [vmem:[#allocation13 + $0x1a4] ss:$8 sps:$4 sm:$0xff]  }
 0xcbe   :  { %6788 = vmatpush1.bf16.msra.mxu0 %v9373_v16  ;;  %6834 = vmatprep.subr.bf16.mxu1 %v9381_v29  ;;  %v9459_v16 = vld [vmem:[#allocation13 + $0x264] ss:$8 sps:$4 sm:$0xff]   ;;  %v9454_v29 = vld [vmem:[#allocation13 + $0x1a0] ss:$8 sps:$4 sm:$0xff]  }
 0xcbf   :  { %6789 = vmatprep.subr.bf16.mxu0 %v9378_v28  ;;  %v9457_v28 = vld [vmem:[#allocation13 + $0x260] ss:$8 sps:$4 sm:$0xff]  }
 0xcc0   :  { %8253 = vmatmul.mubr.msk.bf16.vlgmr.msra.gmra.mxu1 %vm13521_vm15, %v13291_v58  ;;  %v9396_v58 = vld [vmem:[#allocation13 + $0x4] ss:$8 sps:$4 sm:$0xff]  }
 0xcc1   :  { %8256 = vmatprep.mubr.msk.bf16.mxu1 %vm13521_vm15, %v13356_v20  ;;  %6835 = vmatpush1.bf16.msra.mxu1 %v9379_v47  ;;  %v9397_v20 = vld [vmem:[#allocation13 + $0x140] ss:$8 sps:$4 sm:$0xff]   ;;  %v9462_v47 = vld [vmem:[#allocation13 + $0x194] ss:$8 sps:$4 sm:$0xff]  }
 0xcc2   :  { %6790 = vmatpush1.bf16.msra.mxu0 %v9376_v60  ;;  %6836 = vmatprep.subr.bf16.mxu1 %v9387_v54  ;;  %v9465_v60 = vld [vmem:[#allocation13 + $0x254] ss:$8 sps:$4 sm:$0xff]   ;;  %v9460_v54 = vld [vmem:[#allocation13 + $0x190] ss:$8 sps:$4 sm:$0xff]  }
 0xcc3   :  { %6791 = vmatprep.subr.bf16.mxu0 %v9384_v9  ;;  %v9463_v9 = vld [vmem:[#allocation13 + $0x250] ss:$8 sps:$4 sm:$0xff]  }
 0xcc5   :  { %6837 = vmatpush1.bf16.msra.mxu1 %v9385_v42  ;;  %v9468_v42 = vld [vmem:[#allocation13 + $0x184] ss:$8 sps:$4 sm:$0xff]  }
 0xcc6   :  { %6792 = vmatpush1.bf16.msra.mxu0 %v9382_v35  ;;  %6838 = vmatprep.subr.bf16.mxu1 %v9393_v36  ;;  %v9469_v35 = vld [vmem:[#allocation13 + $0x240] ss:$8 sps:$4 sm:$0xff]   ;;  %v9474_v36 = vld [vmem:[#allocation13 + $0x234] ss:$8 sps:$4 sm:$0xff]  }
 0xcc7   :  { %6793 = vmatprep.subr.bf16.mxu0 %v9390_v24  ;;  %v9472_v24 = vld [vmem:[#allocation13 + $0x230] ss:$8 sps:$4 sm:$0xff]  }
 0xcc8   :  { %8259 = vmatmul.mubr.msk.bf16.gmra.mxu1 %vm13521_vm15, %v13348_v19  ;;  %v9409_v19 = vld [vmem:[#allocation13 + $0x120] ss:$8 sps:$4 sm:$0xff]  }
 0xcc9   :  { %6839 = vmatpush1.bf16.msra.mxu1 %v9391_v1  ;;  %6866 = vmatprep.mubr.bf16.mxu1 %v12865_v59  ;;  %v9417_v59 = vld [vmem:[#allocation13 + $0x114] ss:$8 sps:$4 sm:$0xff]   ;;  %v9477_v1 = vld [vmem:[#allocation13 + $0x224] ss:$8 sps:$4 sm:$0xff]  }
 0xcca   :  { %6794 = vmatpush1.bf16.msra.mxu0 %v9388_v6  ;;  %6840 = vmatprep.subr.bf16.mxu1 %v9399_v49  ;;  %v9480_v6 = vld [vmem:[#allocation13 + $0x214] ss:$8 sps:$4 sm:$0xff]   ;;  %v9478_v49 = vld [vmem:[#allocation13 + $0x210] ss:$8 sps:$4 sm:$0xff]  }
 0xccb   :  { %6795 = vmatprep.subr.bf16.mxu0 %v9396_v58  ;;  %v9481_v58 = vld [vmem:[#allocation13 + $0x200] ss:$8 sps:$4 sm:$0xff]  }
 0xccd   :  { %6841 = vmatpush1.bf16.msra.mxu1 %v9397_v20  ;;  %v9486_v20 = vld [vmem:[#allocation13 + $0x2f4] ss:$8 sps:$4 sm:$0xff]  }
 0xcce   :  { %6796 = vmatpush1.bf16.msra.mxu0 %v9394_v26  ;;  %6842 = vmatprep.subr.bf16.mxu1 %v9405_v63  ;;  %v9484_v26 = vld [vmem:[#allocation13 + $0x2f0] ss:$8 sps:$4 sm:$0xff]   ;;  %v9492_v63 = vld [vmem:[#allocation13 + $0x2d4] ss:$8 sps:$4 sm:$0xff]  }
 0xccf   :  { %6797 = vmatprep.subr.bf16.mxu0 %v9402_v21  ;;  %v9490_v21 = vld [vmem:[#allocation13 + $0x2d0] ss:$8 sps:$4 sm:$0xff]  }
 0xcd1   :  { %6843 = vmatpush1.bf16.msra.mxu1 %v9403_v27  ;;  %v9495_v27 = vld [vmem:[#allocation13 + $0x2c4] ss:$8 sps:$4 sm:$0xff]  }
 0xcd2   :  { %6798 = vmatpush2.bf16.msra.mxu0 %v9400_v56  ;;  %6844 = vmatprep.subr.bf16.mxu1 %v9411_v0  ;;  %v9493_v56 = vld [vmem:[#allocation13 + $0x2c0] ss:$8 sps:$4 sm:$0xff]   ;;  %v9496_v0 = vld [vmem:[#allocation13 + $0x2b0] ss:$8 sps:$4 sm:$0xff]  }
 0xcd3   :  { %6799 = vmatprep.subr.bf16.mxu0 %v9408_v55  ;;  %v9501_v55 = vld [vmem:[#allocation13 + $0x2a4] ss:$8 sps:$4 sm:$0xff]  }
 0xcd5   :  { %6845 = vmatpush1.bf16.msra.mxu1 %v9409_v19  ;;  %v9499_v19 = vld [vmem:[#allocation13 + $0x2a0] ss:$8 sps:$4 sm:$0xff]  }
 0xcd6   :  { %6800 = vmatpush2.bf16.msra.mxu0 %v9406_v31  ;;  %6846 = vmatprep.subr.bf16.mxu1 %v9417_v59  ;;  %v9504_v31 = vld [vmem:[#allocation13 + $0x294] ss:$8 sps:$4 sm:$0xff]   ;;  %v9502_v59 = vld [vmem:[#allocation13 + $0x290] ss:$8 sps:$4 sm:$0xff]  }
 0xcd7   :  { %6801 = vmatprep.subr.bf16.mxu0 %v9414_v33  ;;  %v9507_v33 = vld [vmem:[#allocation13 + $0x284] ss:$8 sps:$4 sm:$0xff]  }
 0xcd9   :  { %6847 = vmatpush1.bf16.msra.mxu1 %v9415_v15  ;;  %v9505_v15 = vld [vmem:[#allocation13 + $0x280] ss:$8 sps:$4 sm:$0xff]  }
 0xcda   :  { %6802 = vmatpush2.bf16.msra.mxu0 %v9412_v43  ;;  %6848 = vmatprep.subr.bf16.mxu1 %v9423_v61  ;;  %v14257_v43 = vld [vmem:[#allocation40_spill] sm:$0xff]  ;;  %v14258_v61 = vld [vmem:[#allocation39_spill] sm:$0xff] }
 0xcdb   :  { %6803 = vmatprep.subr.bf16.mxu0 %v9420_v48  ;;  %v9508_v48 = vld [vmem:[#allocation14 + $0x170] ss:$8 sps:$4 sm:$0xff]  }
 0xcdd   :  { %6849 = vmatpush1.bf16.msra.mxu1 %v9421_v32  ;;  %v9510_v32 = vld [vmem:[#allocation14 + $0x174] ss:$8 sps:$4 sm:$0xff]  }
 0xcde   :  { %6804 = vmatpush2.bf16.msra.mxu0 %v9418_v25  ;;  %6850 = vmatprep.subr.bf16.mxu1 %v9429_v62  ;;  %v9511_v25 = vld [vmem:[#allocation14 + $0x70] ss:$8 sps:$4 sm:$0xff]   ;;  %v9513_v62 = vld [vmem:[#allocation14 + $0x74] ss:$8 sps:$4 sm:$0xff]  }
 0xcdf   :  { %6805 = vmatprep.subr.bf16.mxu0 %v9426_v14  ;;  %v9514_v14 = vld [vmem:[#allocation14 + $0x160] ss:$8 sps:$4 sm:$0xff]  }
 0xce1   :  { %6851 = vmatpush2.bf16.msra.mxu1 %v9427_v44  ;;  %v9516_v44 = vld [vmem:[#allocation14 + $0x164] ss:$8 sps:$4 sm:$0xff]  }
 0xce2   :  { %6806 = vmatpush2.bf16.msra.mxu0 %v9424_v37  ;;  %6852 = vmatprep.subr.bf16.mxu1 %v9435_v11  ;;  %v9519_v37 = vld [vmem:[#allocation14 + $0x64] ss:$8 sps:$4 sm:$0xff]   ;;  %v9520_v11 = vld [vmem:[#allocation14 + $0x150] ss:$8 sps:$4 sm:$0xff]  }
 0xce3   :  { %6807 = vmatprep.subr.bf16.mxu0 %v9432_v3  ;;  %v9522_v3 = vld [vmem:[#allocation14 + $0x154] ss:$8 sps:$4 sm:$0xff]  }
 0xce5   :  { %6853 = vmatpush2.bf16.msra.mxu1 %v9433_v41  ;;  %v9523_v41 = vld [vmem:[#allocation14 + $0x50] ss:$8 sps:$4 sm:$0xff]  }
 0xce6   :  { %6808 = vmatpush2.bf16.msra.mxu0 %v9430_v53  ;;  %6854 = vmatprep.subr.bf16.mxu1 %v9441_v2  ;;  %v9525_v53 = vld [vmem:[#allocation14 + $0x54] ss:$8 sps:$4 sm:$0xff]   ;;  %v9526_v2 = vld [vmem:[#allocation14 + $0x140] ss:$8 sps:$4 sm:$0xff]  }
 0xce7   :  { %6809 = vmatprep.subr.bf16.mxu0 %v9438_v50  ;;  %v9528_v50 = vld [vmem:[#allocation14 + $0x144] ss:$8 sps:$4 sm:$0xff]  }
 0xce9   :  { %6855 = vmatpush2.bf16.msra.mxu1 %v9439_v45  ;;  %v9529_v45 = vld [vmem:[#allocation14 + $0x40] ss:$8 sps:$4 sm:$0xff]  }
 0xcea   :  { %6810 = vmatpush2.bf16.msra.mxu0 %v9436_v30  ;;  %6856 = vmatprep.subr.bf16.mxu1 %v9447_v52  ;;  %v9531_v30 = vld [vmem:[#allocation14 + $0x44] ss:$8 sps:$4 sm:$0xff]   ;;  %v9532_v52 = vld [vmem:[#allocation14 + $0x130] ss:$8 sps:$4 sm:$0xff]  }
 0xceb   :  { %6811 = vmatprep.subr.bf16.mxu0 %v9444_v10  ;;  %v9534_v10 = vld [vmem:[#allocation14 + $0x134] ss:$8 sps:$4 sm:$0xff]  }
 0xced   :  { %6857 = vmatpush2.bf16.msra.mxu1 %v9445_v4  ;;  %v9537_v4 = vld [vmem:[#allocation14 + $0x34] ss:$8 sps:$4 sm:$0xff]  }
 0xcee   :  { %6812 = vmatpush2.bf16.msra.mxu0 %v9442_v5  ;;  %6858 = vmatprep.subr.bf16.mxu1 %v9450_v23  ;;  %v9540_v5 = vld [vmem:[#allocation14 + $0x124] ss:$8 sps:$4 sm:$0xff]   ;;  %v9535_v23 = vld [vmem:[#allocation14 + $0x30] ss:$8 sps:$4 sm:$0xff]  }
 0xcef   :  { %6887 = vmatprep.subr.bf16.mxu0 %v9453_v57  ;;  %v9543_v57 = vld [vmem:[#allocation14 + $0x24] ss:$8 sps:$4 sm:$0xff]  }
 0xcf1   :  { %8363 = vmatmul.mubr.msk.bf16.vlgmr.msra.gmra.mxu0 %vm13203_vm14, %v12869_v46  ;;  %6859 = vmatpush2.bf16.msra.mxu1 %v9448_v34  ;;  %v9471_v46 = vld [vmem:[#allocation13 + $0x244] ss:$8 sps:$4 sm:$0xff]   ;;  %v9538_v34 = vld [vmem:[#allocation14 + $0x120] ss:$8 sps:$4 sm:$0xff]  }
 0xcf2   :  { %8367 = vmatprep.mubr.msk.bf16.mxu0 %vm13203_vm14, %v12897_v22  ;;  %6888 = vmatpush1.bf16.msra.mxu0 %v9451_v7  ;;  %v9466_v22 = vld [vmem:[#allocation13 + $0x180] ss:$8 sps:$4 sm:$0xff]   ;;  %v9546_v7 = vld [vmem:[#allocation14 + $0x114] ss:$8 sps:$4 sm:$0xff]  }
 0xcf3   :  { %6860 = vmatprep.subr.bf16.mxu1 %v9456_v13  ;;  %6889 = vmatprep.subr.bf16.mxu0 %v9459_v16  ;;  %v9541_v13 = vld [vmem:[#allocation14 + $0x20] ss:$8 sps:$4 sm:$0xff]   ;;  %v9549_v16 = vld [vmem:[#allocation14 + $0x14] ss:$8 sps:$4 sm:$0xff]  }
 0xcf5   :  { %6861 = vmatpush2.bf16.msra.mxu1 %v9454_v29  ;;  %v9544_v29 = vld [vmem:[#allocation14 + $0x110] ss:$8 sps:$4 sm:$0xff]  }
 0xcf6   :  { %6890 = vmatpush1.bf16.msra.mxu0 %v9457_v28  ;;  %6862 = vmatprep.subr.bf16.mxu1 %v9462_v47  ;;  %v9552_v28 = vld [vmem:[#allocation14 + $0x104] ss:$8 sps:$4 sm:$0xff]   ;;  %v9547_v47 = vld [vmem:[#allocation14 + $0x10] ss:$8 sps:$4 sm:$0xff]  }
 0xcf7   :  { %6891 = vmatprep.subr.bf16.mxu0 %v9465_v60  ;;  %v9555_v60 = vld [vmem:[#allocation14 + $0x4] ss:$8 sps:$4 sm:$0xff]  }
 0xcf9   :  { %8371 = vmatmul.mubr.msk.bf16.gmra.mxu0 %vm13203_vm14, %v12889_v38  ;;  %6863 = vmatpush2.bf16.msra.mxu1 %v9460_v54  ;;  %v9475_v38 = vld [vmem:[#allocation13 + $0x220] ss:$8 sps:$4 sm:$0xff]  }
 0xcfa   :  { %6892 = vmatpush1.bf16.msra.mxu0 %v9463_v9  ;;  %8374 = vmatprep.mubr.msk.bf16.mxu0 %vm13521_vm15, %v12879_v18  ;;  %v9483_v18 = vld [vmem:[#allocation13 + $0x204] ss:$8 sps:$4 sm:$0xff]   ;;  %v9550_v54 = vld [vmem:[#allocation14 + $0x100] ss:$8 sps:$4 sm:$0xff]   ;;  %v9558_v9 = vld [vmem:[#allocation14 + $0x1f4] ss:$8 sps:$4 sm:$0xff]  }
 0xcfb   :  { %6864 = vmatprep.subr.bf16.mxu1 %v9468_v42  ;;  %6893 = vmatprep.subr.bf16.mxu0 %v9471_v46  ;;  %v9553_v42 = vld [vmem:[#allocation14] ss:$8 sps:$4 sm:$0xff]   ;;  %v9561_v46 = vld [vmem:[#allocation14 + $0xf4] ss:$8 sps:$4 sm:$0xff]  }
 0xcfd   :  { %6865 = vmatpush2.bf16.msra.mxu1 %v9466_v22  ;;  %v9556_v22 = vld [vmem:[#allocation14 + $0x1f0] ss:$8 sps:$4 sm:$0xff]  }
 0xcfe   :  { %6894 = vmatpush1.bf16.msra.mxu0 %v9469_v35  ;;  %7624 = vmatprep.subr.bf16.mxu1 %v9513_v62  ;;  %v9564_v35 = vld [vmem:[#allocation14 + $0x1e4] ss:$8 sps:$4 sm:$0xff]  }
 0xcff   :  { %6895 = vmatprep.subr.bf16.mxu0 %v9474_v36  ;;  %v9559_v36 = vld [vmem:[#allocation14 + $0xf0] ss:$8 sps:$4 sm:$0xff]  }
 0xd00   :  { %6867 = vmatmul.mubr.bf16.vlgmr.msra.gmra.mxu1 %v12867_v51  ;;  %v9489_v51 = vld [vmem:[#allocation13 + $0x2e4] ss:$8 sps:$4 sm:$0xff]   ;;  %v6070_v62 = vpop.f32.mrf.mxu1 }
 0xd01   :  { %6876 = vmatprep.mubr.bf16.mxu1 %v12885_v12  ;;  %v9487_v12 = vld [vmem:[#allocation13 + $0x2e0] ss:$8 sps:$4 sm:$0xff]   ;;  %7625 = vmatpush1.bf16.msra.mxu1 %v9511_v25  ;;  %v9600_v25 = vld [vmem:[#allocation14 + $0x184] ss:$8 sps:$4 sm:$0xff]  }
 0xd02   :  { %6896 = vmatpush1.bf16.msra.mxu0 %v9472_v24  ;;  %7626 = vmatprep.subr.bf16.mxu1 %v9519_v37  ;;  %v9567_v24 = vld [vmem:[#allocation14 + $0xe4] ss:$8 sps:$4 sm:$0xff]   ;;  %v9606_v37 = vld [vmem:[#allocation14 + $0x274] ss:$8 sps:$4 sm:$0xff]  }
 0xd03   :  { %6897 = vmatprep.subr.bf16.mxu0 %v9477_v1  ;;  %v9562_v1 = vld [vmem:[#allocation14 + $0x1e0] ss:$8 sps:$4 sm:$0xff]  }
 0xd06   :  { %6898 = vmatpush1.bf16.msra.mxu0 %v9475_v38  ;;  %v9570_v38 = vld [vmem:[#allocation14 + $0x1d4] ss:$8 sps:$4 sm:$0xff]  }
 0xd07   :  { %6899 = vmatprep.subr.bf16.mxu0 %v9480_v6  ;;  %v9565_v6 = vld [vmem:[#allocation14 + $0xe0] ss:$8 sps:$4 sm:$0xff]  }
 0xd08   :  { %6877 = vmatmul.mubr.bf16.gmra.mxu1 %v12881_v39  ;;  %v9498_v39 = vld [vmem:[#allocation13 + $0x2b4] ss:$8 sps:$4 sm:$0xff]  }
 0xd0a   :  { %6900 = vmatpush1.bf16.msra.mxu0 %v9478_v49  ;;  %v9573_v49 = vld [vmem:[#allocation14 + $0xd4] ss:$8 sps:$4 sm:$0xff]  }
 0xd0b   :  { %6901 = vmatprep.subr.bf16.mxu0 %v9483_v18  ;;  %v9568_v18 = vld [vmem:[#allocation14 + $0x1d0] ss:$8 sps:$4 sm:$0xff]  }
 0xd0e   :  { %6902 = vmatpush1.bf16.msra.mxu0 %v9481_v58  ;;  %v9576_v58 = vld [vmem:[#allocation14 + $0x1c4] ss:$8 sps:$4 sm:$0xff]  }
 0xd0f   :  { %6903 = vmatprep.subr.bf16.mxu0 %v9486_v20  ;;  %v9571_v20 = vld [vmem:[#allocation14 + $0xd0] ss:$8 sps:$4 sm:$0xff]  }
 0xd12   :  { %6904 = vmatpush2.bf16.msra.mxu0 %v9484_v26  ;;  %v9579_v26 = vld [vmem:[#allocation14 + $0xc4] ss:$8 sps:$4 sm:$0xff]  }
 0xd13   :  { %6905 = vmatprep.subr.bf16.mxu0 %v9489_v51  ;;  %v9574_v51 = vld [vmem:[#allocation14 + $0x1c0] ss:$8 sps:$4 sm:$0xff]  }
 0xd16   :  { %6906 = vmatpush2.bf16.msra.mxu0 %v9487_v12  ;;  %v9577_v12 = vld [vmem:[#allocation14 + $0xc0] ss:$8 sps:$4 sm:$0xff]  }
 0xd17   :  { %6907 = vmatprep.subr.bf16.mxu0 %v9492_v63  ;;  %v9580_v63 = vld [vmem:[#allocation14 + $0x1b0] ss:$8 sps:$4 sm:$0xff]  }
 0xd1a   :  { %6908 = vmatpush2.bf16.msra.mxu0 %v9490_v21  ;;  %v9582_v21 = vld [vmem:[#allocation14 + $0x1b4] ss:$8 sps:$4 sm:$0xff]  }
 0xd1b   :  { %6909 = vmatprep.subr.bf16.mxu0 %v9495_v27  ;;  %v13768_v27 = vpop.f32.mrf.mxu0 }
 0xd1e   :  { %6910 = vmatpush2.bf16.msra.mxu0 %v9493_v56  ;;  %v9583_v56 = vld [vmem:[#allocation14 + $0xb0] ss:$8 sps:$4 sm:$0xff]  }
 0xd1f   :  { %6911 = vmatprep.subr.bf16.mxu0 %v9498_v39  ;;  %v9585_v39 = vld [vmem:[#allocation14 + $0xb4] ss:$8 sps:$4 sm:$0xff]  }
 0xd22   :  { %6912 = vmatpush2.bf16.msra.mxu0 %v9496_v0  ;;  %v13770_v0 = vpop.f32.mrf.mxu0 }
 0xd23   :  { %6913 = vmatprep.subr.bf16.mxu0 %v9501_v55  ;;  %v9586_v55 = vld [vmem:[#allocation14 + $0x1a0] ss:$8 sps:$4 sm:$0xff]  }
 0xd26   :  { %6914 = vmatpush2.bf16.msra.mxu0 %v9499_v19  ;;  %v9588_v19 = vld [vmem:[#allocation14 + $0x1a4] ss:$8 sps:$4 sm:$0xff]  }
 0xd27   :  { %6915 = vmatprep.subr.bf16.mxu0 %v9504_v31  ;;  %v9589_v31 = vld [vmem:[#allocation14 + $0xa0] ss:$8 sps:$4 sm:$0xff]  }
 0xd2a   :  { %6916 = vmatpush2.bf16.msra.mxu0 %v9502_v59  ;;  %v9591_v59 = vld [vmem:[#allocation14 + $0xa4] ss:$8 sps:$4 sm:$0xff]  }
 0xd2b   :  { %6917 = vmatprep.subr.bf16.mxu0 %v9507_v33  ;;  %v9594_v33 = vld [vmem:[#allocation14 + $0x194] ss:$8 sps:$4 sm:$0xff]  }
 0xd2e   :  { %6918 = vmatpush2.bf16.msra.mxu0 %v9505_v15  ;;  %v13772_v15 = vpop.f32.mrf.mxu0 }
 0xd2f   :  { %7677 = vmatprep.subr.bf16.mxu0 %v9510_v32 }
 0xd30   :  { %v13774_v32 = vpop.f32.mrf.mxu0 }
 0xd31   :  { %8377 = vmatmul.mubr.msk.bf16.vlgmr.msra.gmra.mxu0 %vm13521_vm15, %v12871_v40  ;;  %v9517_v40 = vld [vmem:[#allocation14 + $0x60] ss:$8 sps:$4 sm:$0xff]  }
 0xd32   :  { %8380 = vmatprep.mubr.msk.bf16.mxu0 %vm13521_vm15, %v14257_v43  ;;  %7678 = vmatpush1.bf16.msra.mxu0 %v9508_v48  ;;  %v9592_v43 = vld [vmem:[#allocation14 + $0x190] ss:$8 sps:$4 sm:$0xff]   ;;  %v9597_v48 = vld [vmem:[#allocation14 + $0x94] ss:$8 sps:$4 sm:$0xff]  }
 0xd33   :  { %7679 = vmatprep.subr.bf16.mxu0 %v9516_v44  ;;  %7627 = vmatpush1.bf16.msra.mxu1 %v9517_v40  ;;  %v9601_v44 = vld [vmem:[#allocation14 + $0x80] ss:$8 sps:$4 sm:$0xff]   ;;  %v9603_v40 = vld [vmem:[#allocation14 + $0x84] ss:$8 sps:$4 sm:$0xff]  }
 0xd34   :  { %7628 = vmatprep.subr.bf16.mxu1 %v9525_v53 }
 0xd36   :  { %7680 = vmatpush1.bf16.msra.mxu0 %v9514_v14  ;;  %v9598_v14 = vld [vmem:[#allocation14 + $0x180] ss:$8 sps:$4 sm:$0xff]  }
 0xd37   :  { %7681 = vmatprep.subr.bf16.mxu0 %v9522_v3  ;;  %7629 = vmatpush1.bf16.msra.mxu1 %v9523_v41  ;;  %v6072_v3 = vpop.f32.mrf.mxu1 }
 0xd38   :  { %7630 = vmatprep.subr.bf16.mxu1 %v9531_v30 }
 0xd39   :  { %8383 = vmatmul.mubr.msk.bf16.gmra.mxu0 %vm13521_vm15, %v14258_v61  ;;  %v9595_v61 = vld [vmem:[#allocation14 + $0x90] ss:$8 sps:$4 sm:$0xff]   ;;  %v6074_v53 = vpop.f32.mrf.mxu1 }
 0xd3a   :  { %7682 = vmatpush1.bf16.msra.mxu0 %v9520_v11  ;;  %v13776_v11 = vpop.f32.mrf.mxu0 }
 0xd3b   :  { %7683 = vmatprep.subr.bf16.mxu0 %v9528_v50  ;;  %7631 = vmatpush1.bf16.msra.mxu1 %v9529_v45  ;;  %v6076_v50 = vpop.f32.mrf.mxu1 }
 0xd3c   :  { %7632 = vmatprep.subr.bf16.mxu1 %v9537_v4  ;;  %v13778_v41 = vpop.f32.mrf.mxu0 }
 0xd3d   :  { %v6080_v30 = vpop.f32.mrf.mxu1 }
 0xd3e   :  { %7684 = vmatpush1.bf16.msra.mxu0 %v9526_v2  ;;  %v13780_v2 = vpop.f32.mrf.mxu0 }
 0xd3f   :  { %7685 = vmatprep.subr.bf16.mxu0 %v9534_v10  ;;  %7633 = vmatpush1.bf16.msra.mxu1 %v9535_v23  ;;  %v6082_v10 = vpop.f32.mrf.mxu1 }
 0xd40   :  { %7634 = vmatprep.subr.bf16.mxu1 %v9543_v57  ;;  %v13782_v45 = vpop.f32.mrf.mxu0 }
 0xd42   :  { %7686 = vmatpush1.bf16.msra.mxu0 %v9532_v52  ;;  %v6123_v52 = vpop.f32.mrf.mxu0 }
 0xd43   :  { %7687 = vmatprep.subr.bf16.mxu0 %v9540_v5  ;;  %7635 = vmatpush1.bf16.msra.mxu1 %v9541_v13  ;;  %v13784_v5 = vpop.f32.mrf.mxu1 }
 0xd44   :  { %7636 = vmatprep.subr.bf16.mxu1 %v9549_v16  ;;  %v6125_v4 = vpop.f32.mrf.mxu0 }
 0xd45   :  { %v13786_v57 = vpop.f32.mrf.mxu1 }
 0xd46   :  { %7688 = vmatpush1.bf16.msra.mxu0 %v9538_v34  ;;  %v6127_v23 = vpop.f32.mrf.mxu0 }
 0xd47   :  { %7689 = vmatprep.subr.bf16.mxu0 %v9546_v7  ;;  %7637 = vmatpush1.bf16.msra.mxu1 %v9547_v47  ;;  %v6176_v7 = vpop.f32.mrf.mxu1 }
 0xd48   :  { %7638 = vmatprep.subr.bf16.mxu1 %v9555_v60  ;;  %v6129_v34 = vpop.f32.mrf.mxu0 }
 0xd49   :  { %v6178_v16 = vpop.f32.mrf.mxu1 }
 0xd4a   :  { %7690 = vmatpush1.bf16.msra.mxu0 %v9544_v29  ;;  %v6133_v13 = vpop.f32.mrf.mxu0 }
 0xd4b   :  { %7691 = vmatprep.subr.bf16.mxu0 %v9552_v28  ;;  %7639 = vmatpush1.bf16.msra.mxu1 %v9553_v42  ;;  %v6180_v28 = vpop.f32.mrf.mxu1 }
 0xd4c   :  { %7640 = vmatprep.subr.bf16.mxu1 %v9561_v46  ;;  %v13788_v29 = vpop.f32.mrf.mxu0 }
 0xd4d   :  { %v6182_v60 = vpop.f32.mrf.mxu1 }
 0xd4e   :  { %7692 = vmatpush1.bf16.msra.mxu0 %v9550_v54  ;;  %v13790_v47 = vpop.f32.mrf.mxu0 }
 0xd4f   :  { %7693 = vmatprep.subr.bf16.mxu0 %v9558_v9  ;;  %7641 = vmatpush2.bf16.msra.mxu1 %v9559_v36  ;;  %v6186_v9 = vpop.f32.mrf.mxu1 }
 0xd50   :  { %7642 = vmatprep.subr.bf16.mxu1 %v9567_v24  ;;  %v13792_v54 = vpop.f32.mrf.mxu0 }
 0xd51   :  { %v13794_v46 = vpop.f32.mrf.mxu1 }
 0xd52   :  { %7694 = vmatpush2.bf16.msra.mxu0 %v9556_v22 }
 0xd53   :  { %7695 = vmatprep.subr.bf16.mxu0 %v9564_v35  ;;  %7643 = vmatpush2.bf16.msra.mxu1 %v9565_v6  ;;  %v13796_v35 = vpop.f32.mrf.mxu1 }
 0xd54   :  { %7644 = vmatprep.subr.bf16.mxu1 %v9573_v49 }
 0xd55   :  { %v13798_v24 = vpop.f32.mrf.mxu1 }
 0xd56   :  { %7696 = vmatpush2.bf16.msra.mxu0 %v9562_v1  ;;  %14259 = vst [vmem:[#allocation28_spill] sm:$0xff] %v13798_v24 }
 0xd57   :  { %7697 = vmatprep.subr.bf16.mxu0 %v9570_v38  ;;  %7645 = vmatpush2.bf16.msra.mxu1 %v9571_v20 }
 0xd58   :  { %7646 = vmatprep.subr.bf16.mxu1 %v9579_v26 }
 0xd5a   :  { %7698 = vmatpush2.bf16.msra.mxu0 %v9568_v18 }
 0xd5b   :  { %7699 = vmatprep.subr.bf16.mxu0 %v9576_v58  ;;  %7647 = vmatpush2.bf16.msra.mxu1 %v9577_v12 }
 0xd5c   :  { %7648 = vmatprep.subr.bf16.mxu1 %v9585_v39 }
 0xd5e   :  { %7700 = vmatpush2.bf16.msra.mxu0 %v9574_v51 }
 0xd5f   :  { %7701 = vmatprep.subr.bf16.mxu0 %v9582_v21  ;;  %7649 = vmatpush2.bf16.msra.mxu1 %v9583_v56 }
 0xd60   :  { %7650 = vmatprep.subr.bf16.mxu1 %v9591_v59 }
 0xd62   :  { %7702 = vmatpush2.bf16.msra.mxu0 %v9580_v63 }
 0xd63   :  { %7703 = vmatprep.subr.bf16.mxu0 %v9588_v19  ;;  %7651 = vmatpush2.bf16.msra.mxu1 %v9589_v31 }
 0xd64   :  { %7652 = vmatprep.subr.bf16.mxu1 %v9597_v48  ;;  %v6073_v48 = vadd.f32 %v6072_v3, %v13770_v0 }
 0xd66   :  { %7704 = vmatpush2.bf16.msra.mxu0 %v9586_v55 }
 0xd67   :  { %7705 = vmatprep.subr.bf16.mxu0 %v9594_v33  ;;  %7653 = vmatpush2.bf16.msra.mxu1 %v9595_v61 }
 0xd68   :  { %7654 = vmatprep.subr.bf16.mxu1 %v9603_v40  ;;  %v6126_v40 = vadd.f32 %v6125_v4, %v6073_v48 }
 0xd6a   :  { %7706 = vmatpush2.bf16.msra.mxu0 %v9592_v43  ;;  %v6071_v43 = vadd.f32 %v6070_v62, %v13768_v27 }
 0xd6b   :  { %7707 = vmatprep.subr.bf16.mxu0 %v9600_v25  ;;  %7655 = vmatpush2.bf16.msra.mxu1 %v9601_v44  ;;  %v6075_v44 = vadd.f32 %v6074_v53, %v13772_v15  ;;  %v6940_v15 = vld [vmem:[%s13924_s19] sm:$0x3]  ;;  %v6083_v53 = vadd.f32 %v6082_v10, %v13778_v41 }
 0xd6c   :  { %7730 = vmatprep.subr.bf16.mxu1 %v9606_v37  ;;  %v6124_v25 = vadd.f32 %v6123_v52, %v6071_v43 }
 0xd6d   :  { %v6128_v8 = vadd.f32 %v6127_v23, %v6075_v44  ;;  %v6136_v41 = vadd.f32 %v13788_v29, %v6083_v53 }
 0xd6e   :  { %7708 = vmatpush2.bf16.msra.mxu0 %v9598_v14  ;;  %v6177_v37 = vadd.f32 %v6176_v7, %v6124_v25 }
 0xd6f   :  { %v6181_v27 = vadd.f32 %v6180_v28, %v6128_v8  ;;  %v6087_v8 = vadd.f32 %v13786_v57, %v13782_v45 }
 0xd71   :  { %v6229_v42 = vpop.f32.mrf.mxu0 }
 0xd73   :  { %v6231_v22 = vpop.f32.mrf.mxu0 }
 0xd75   :  { %v6233_v36 = vpop.f32.mrf.mxu0 }
 0xd76   :  { %v6234_v4 = vadd.f32 %v6233_v36, %v6181_v27  ;;  %v6140_v36 = vadd.f32 %v13792_v54, %v6087_v8 }
 0xd77   :  { %v6235_v1 = vpop.f32.mrf.mxu0 }
 0xd79   :  { %v6239_v6 = vpop.f32.mrf.mxu0 }
 0xd7b   :  { %v13800_v18 = vpop.f32.mrf.mxu0 }
 0xd7d   :  { %v13802_v20 = vpop.f32.mrf.mxu0 }
 0xd7e   :  { %14260 = vst [vmem:[#allocation45_spill] sm:$0xff] %v13802_v20 }
 0xd7f   :  { %v13804_v51 = vpop.f32.mrf.mxu0 }
 0xd80   :  { %v6282_v38 = vpop.f32.mrf.mxu1  ;;  %14261 = vst [vmem:[#allocation25_spill] sm:$0xff] %v13804_v51  ;;  %v6179_v51 = vadd.f32 %v6178_v16, %v6126_v40 }
 0xd82   :  { %v6284_v49 = vpop.f32.mrf.mxu1  ;;  %v6232_v62 = vadd.f32 %v6231_v22, %v6179_v51  ;;  %v14266_v51 = vld [vmem:[#allocation24_spill] sm:$0xff] }
 0xd84   :  { %v6286_v58 = vpop.f32.mrf.mxu1  ;;  %v6285_v23 = vadd.f32 %v6284_v49, %v6232_v62 }
 0xd86   :  { %v6288_v26 = vpop.f32.mrf.mxu1 }
 0xd87   :  { %v14271_v40 = vld [vmem:[#allocation25_spill] sm:$0xff] }
 0xd88   :  { %v6292_v12 = vpop.f32.mrf.mxu1 }
 0xd8a   :  { %v13806_v21 = vpop.f32.mrf.mxu1 }
 0xd8b   :  { %14262 = vst [vmem:[#allocation46_spill] sm:$0xff] %v13806_v21  ;;  %v6081_v21 = vadd.f32 %v6080_v30, %v13776_v11 }
 0xd8c   :  { %v13808_v39 = vpop.f32.mrf.mxu1 }
 0xd8d   :  { %14263 = vst [vmem:[#allocation26_spill] sm:$0xff] %v13808_v39  ;;  %v6230_v39 = vadd.f32 %v6229_v42, %v6177_v37  ;;  %v6134_v52 = vadd.f32 %v6133_v13, %v6081_v21  ;;  %v14265_v42 = vld [vmem:[#allocation23_spill] sm:$0xff] }
 0xd8e   :  { %v13810_v19 = vpop.f32.mrf.mxu1  ;;  %v13828_v22 = vrot.slane %v6940_v15, %v14265_v42 }
 0xd8f   :  { %14264 = vst [vmem:[#allocation48_spill] sm:$0xff] %v13810_v19  ;;  %v6077_v19 = vadd.f32 %v6076_v50, %v13774_v32  ;;  %v6283_v20 = vadd.f32 %v6282_v38, %v6230_v39  ;;  %v6085_v32 = vadd.f32 %v13784_v5, %v13780_v2  ;;  %v6187_v50 = vadd.f32 %v6186_v9, %v6134_v52 }
 0xd90   :  { %v6189_v9 = vadd.f32 %v13794_v46, %v6136_v41  ;;  %v14268_v46 = vld [vmem:[#allocation28_spill] sm:$0xff] }
 0xd91   :  { %v6130_v3 = vadd.f32 %v6129_v34, %v6077_v19  ;;  %v6287_v34 = vadd.f32 %v6286_v58, %v6234_v4  ;;  %v6138_v10 = vadd.f32 %v13790_v47, %v6085_v32  ;;  %v6240_v38 = vadd.f32 %v6239_v6, %v6187_v50 }
 0xd92   :  { %v6242_v6 = vadd.f32 %v13800_v18, %v6189_v9  ;;  %v14269_v43 = vld [vmem:[#allocation46_spill] sm:$0xff] }
 0xd93   :  { %v6183_v11 = vadd.f32 %v6182_v60, %v6130_v3  ;;  %v6191_v49 = vadd.f32 %v13796_v35, %v6138_v10  ;;  %v6293_v29 = vadd.f32 %v6292_v12, %v6240_v38 }
 0xd94   :  { %v14270_v48 = vld [vmem:[#allocation26_spill] sm:$0xff] }
 0xd95   :  { %v6236_v2 = vadd.f32 %v6235_v1, %v6183_v11 }
 0xd96   :  { %v14272_v53 = vld [vmem:[#allocation48_spill] sm:$0xff] }
 0xd97   :  { %v6289_v58 = vadd.f32 %v6288_v26, %v6236_v2 }
 0xdb1   :  { %v6815_v63 = vpop.f32.mrf.mxu0 }
 0xdb2   :  { %v6816_v7 = vadd.f32 %v6815_v63, %v6283_v20  ;;  %v13836_v63 = vrot.slane %v6940_v15, %v14266_v51 }
 0xdb3   :  { %v6817_v56 = vpop.f32.mrf.mxu0 }
 0xdb4   :  { %v6818_v13 = vadd.f32 %v6817_v56, %v6285_v23  ;;  %v14267_v56 = vld [vmem:[#allocation45_spill] sm:$0xff] }
 0xdb5   :  { %v6819_v55 = vpop.f32.mrf.mxu0  ;;  %v6244_v39 = vadd.f32 %v14267_v56, %v6191_v49 }
 0xdb6   :  { %v6820_v45 = vadd.f32 %v6819_v55, %v6287_v34 }
 0xdb7   :  { %v6821_v31 = vpop.f32.mrf.mxu0  ;;  %v6297_v25 = vadd.f32 %v14270_v48, %v6244_v39  ;;  %v9604_v39 = vld [vmem:[#allocation14 + $0x270] ss:$8 sps:$4 sm:$0xff]  }
 0xdb8   :  { %v6822_v55 = vadd.f32 %v6821_v31, %v6289_v58 }
 0xdb9   :  { %v6825_v33 = vpop.f32.mrf.mxu0 }
 0xdba   :  { %v6826_v35 = vadd.f32 %v6825_v33, %v6293_v29 }
 0xdbb   :  { %v13814_v14 = vpop.f32.mrf.mxu0 }
 0xdbd   :  { %v6829_v24 = vpop.f32.mrf.mxu0 }
 0xdbe   :  { %v6830_v52 = vadd.f32 %v6829_v24, %v6297_v25 }
 0xdbf   :  { %v6831_v30 = vpop.f32.mrf.mxu0 }
 0xdc0   :  { %v6868_v59 = vpop.f32.mrf.mxu1 }
 0xdc1   :  { %v6869_v16 = vadd.f32 %v6868_v59, %v6816_v7  ;;  %v6193_v59 = vadd.f32 %v14268_v46, %v6140_v36 }
 0xdc2   :  { %v6870_v61 = vpop.f32.mrf.mxu1 }
 0xdc3   :  { %v6871_v57 = vadd.f32 %v6870_v61, %v6818_v13  ;;  %v6295_v61 = vadd.f32 %v14269_v43, %v6242_v6  ;;  %v6246_v37 = vadd.f32 %v14271_v40, %v6193_v59  ;;  %v9609_v59 = vld [vmem:[#allocation14 + $0x264] ss:$8 sps:$4 sm:$0xff]  }
 0xdc4   :  { %v6872_v17 = vpop.f32.mrf.mxu1 }
 0xdc5   :  { %v6873_v21 = vadd.f32 %v6872_v17, %v6820_v45  ;;  %v6828_v3 = vadd.f32 %v13814_v14, %v6295_v61  ;;  %v6299_v4 = vadd.f32 %v14272_v53, %v6246_v37 }
 0xdc6   :  { %v6874_v0 = vpop.f32.mrf.mxu1 }
 0xdc7   :  { %v6875_v12 = vadd.f32 %v6874_v0, %v6822_v55  ;;  %v6832_v14 = vadd.f32 %v6831_v30, %v6299_v4  ;;  %v9615_v4 = vld [vmem:[#allocation14 + $0x244] ss:$8 sps:$4 sm:$0xff]  }
 0xdc8   :  { %v6878_v28 = vpop.f32.mrf.mxu1 }
 0xdc9   :  { %v6879_v27 = vadd.f32 %v6878_v28, %v6826_v35 }
 0xdca   :  { %v6880_v47 = vpop.f32.mrf.mxu1 }
 0xdcb   :  { %v6881_v0 = vadd.f32 %v6880_v47, %v6828_v3 }
 0xdcc   :  { %v6882_v18 = vpop.f32.mrf.mxu1 }
 0xdcd   :  { %v6883_v32 = vadd.f32 %v6882_v18, %v6830_v52 }
 0xdce   :  { %v6884_v34 = vpop.f32.mrf.mxu1 }
 0xdcf   :  { %v6885_v45 = vadd.f32 %v6884_v34, %v6832_v14  ;;  %v9624_v34 = vld [vmem:[#allocation14 + $0x214] ss:$8 sps:$4 sm:$0xff]   ;;  %v9628_v14 = vld [vmem:[#allocation14 + $0x2f0] ss:$8 sps:$4 sm:$0xff]  }
 0xdf1   :  { %v6921_v5 = vpop.f32.mrf.mxu0 }
 0xdf2   :  { %v6922_v60 = vadd.f32 %v6921_v5, %v6869_v16 }
 0xdf3   :  { %v6923_v20 = vpop.f32.mrf.mxu0 }
 0xdf4   :  { %v6952_v54 = vadd.f32 %v13828_v22, %v6922_v60  ;;  %v6924_v1 = vadd.f32 %v6923_v20, %v6871_v57 }
 0xdf5   :  { %v6925_v19 = vpop.f32.mrf.mxu0 }
 0xdf6   :  { %v6926_v26 = vadd.f32 %v6925_v19, %v6873_v21  ;;  %v6953_v17 = vadd.f32 %v13836_v63, %v6924_v1  ;;  %v6960_v62 = vmax.f32 %v6952_v54, 0.0 }
 0xdf7   :  { %v6927_v44 = vpop.f32.mrf.mxu0 }
 0xdf8   :  { %v6954_v31 = vadd.f32 %v13828_v22, %v6926_v26  ;;  %v6928_v33 = vadd.f32 %v6927_v44, %v6875_v12  ;;  %v6961_v8 = vmax.f32 %v6953_v17, 0.0  ;;  %v7000_v13 = vrot.slane %v6960_v62, 1  ;;  %v9607_v12 = vld [vmem:[#allocation14 + $0x260] ss:$8 sps:$4 sm:$0xff]  }
 0xdf9   :  { %v6931_v15 = vpop.f32.mrf.mxu0  ;;  %v6972_v2 = vrot.slane %v6960_v62, 7 }
 0xdfa   :  { %v6962_v23 = vmax.f32 %v6954_v31, 0.0  ;;  %v6932_v7 = vadd.f32 %v6931_v15, %v6879_v27  ;;  %v6955_v11 = vadd.f32 %v13836_v63, %v6928_v33  ;;  %v6973_v57 = vrot.slane %v6961_v8, 7  ;;  %v9612_v27 = vld [vmem:[#allocation14 + $0x254] ss:$8 sps:$4 sm:$0xff]   ;;  %v9610_v15 = vld [vmem:[#allocation14 + $0x250] ss:$8 sps:$4 sm:$0xff]  }
 0xdfb   :  { %v6933_v50 = vpop.f32.mrf.mxu0  ;;  %v7003_v17 = vrot.slane %v6961_v8, 1 }
 0xdfc   :  { %v6974_v16 = vrot.slane %v6962_v23, 7  ;;  %v7001_v28 = vrot.slane %v6962_v23, 1  ;;  %v6956_v41 = vadd.f32 %v13828_v22, %v6932_v7  ;;  %v6963_v24 = vmax.f32 %v6955_v11, 0.0  ;;  %v9621_v11 = vld [vmem:[#allocation14 + $0x224] ss:$8 sps:$4 sm:$0xff]  }
 0xdfd   :  { %v6934_v10 = vadd.f32 %v6933_v50, %v6881_v0  ;;  %v6935_v36 = vpop.f32.mrf.mxu0  ;;  %v7122_v1 = vpack.c.bf16 %v6962_v23, %v6960_v62  ;;  %v9613_v0 = vld [vmem:[#allocation14 + $0x240] ss:$8 sps:$4 sm:$0xff]  }
 0xdfe   :  { %v7002_v5 = vsel %vm2737_vm9, %v7000_v13, %v7001_v28  ;;  %v6936_v38 = vadd.f32 %v6935_v36, %v6883_v32  ;;  %v6976_v9 = vrot.slane %v6963_v24, 7  ;;  %v6975_v58 = vsel %vm541_vm2, %v6972_v2, %v6974_v16  ;;  %v9618_v32 = vld [vmem:[#allocation14 + $0x234] ss:$8 sps:$4 sm:$0xff]   ;;  %v9619_v50 = vld [vmem:[#allocation14 + $0x220] ss:$8 sps:$4 sm:$0xff]  }
 0xdff   :  { %v13852_v60 = vpack.c.bf16 %v7001_v28, %v7002_v5  ;;  %v6937_v49 = vpop.f32.mrf.mxu0  ;;  %v6964_v20 = vmax.f32 %v6956_v41, 0.0  ;;  %v6957_v29 = vadd.f32 %v13836_v63, %v6934_v10  ;;  %v7123_v47 = vpack.c.bf16 %v6963_v24, %v6961_v8  ;;  %v9616_v8 = vld [vmem:[#allocation14 + $0x230] ss:$8 sps:$4 sm:$0xff]   ;;  %v9627_v16 = vld [vmem:[#allocation14 + $0x204] ss:$8 sps:$4 sm:$0xff]  }
 0xe00   :  { %v6958_v30 = vadd.f32 %v13828_v22, %v6936_v38  ;;  %v6938_v21 = vadd.f32 %v6937_v49, %v6885_v45  ;;  %v6977_v54 = vsel %vm541_vm2, %v6973_v57, %v6976_v9  ;;  %v8486_v55 = vpack.c.bf16 %v6975_v58, %v6972_v2  ;;  %v9622_v13 = vld [vmem:[#allocation14 + $0x210] ss:$8 sps:$4 sm:$0xff]   ;;  %v9625_v28 = vld [vmem:[#allocation14 + $0x200] ss:$8 sps:$4 sm:$0xff]   ;;  %v9630_v41 = vld [vmem:[#allocation14 + $0x2f4] ss:$8 sps:$4 sm:$0xff]  }
 0xe01   :  { %v8482_v56 = vpack.c.bf16 %v6977_v54, %v6973_v57  ;;  %v13858_v19 = vmax.f32 %v6957_v29, 0.0  ;;  %7709 = vmatprep.mubr.bf16.mxu0 %v7123_v47  ;;  %v7012_v35 = vrot.slane %v6964_v20, 1  ;;  %v7004_v61 = vrot.slane %v6963_v24, 1  ;;  %v9633_v24 = vld [vmem:[#allocation14 + $0x2e4] ss:$8 sps:$4 sm:$0xff]  }
 0xe02   :  { %v6966_v6 = vmax.f32 %v6958_v30, 0.0  ;;  %v6959_v46 = vadd.f32 %v13836_v63, %v6938_v21  ;;  %7710 = vmatmul.mubr.bf16.vlgmr.msra.gmra.mxu0 %v7122_v1  ;;  %v6988_v25 = vrot.slane %v6964_v20, 7  ;;  %v9631_v10 = vld [vmem:[#allocation14 + $0x2e0] ss:$8 sps:$4 sm:$0xff]   ;;  %v9636_v36 = vld [vmem:[#allocation14 + $0x2d4] ss:$8 sps:$4 sm:$0xff]  }
 0xe03   :  { %8483 = vmatprep.mubr.msk.bf16.mxu1 %vm13203_vm14, %v8482_v56  ;;  %v6989_v44 = vrot.slane %v13858_v19, 7  ;;  %v7005_v3 = vsel %vm2737_vm9, %v7003_v17, %v7004_v61  ;;  %v9634_v2 = vld [vmem:[#allocation14 + $0x2d0] ss:$8 sps:$4 sm:$0xff]   ;;  %v9639_v5 = vld [vmem:[#allocation14 + $0x2c4] ss:$8 sps:$4 sm:$0xff]   ;;  %v7015_v47 = vrot.slane %v13858_v19, 1 }
 0xe04   :  { %v6990_v26 = vrot.slane %v6966_v6, 7  ;;  %v7013_v43 = vrot.slane %v6966_v6, 1  ;;  %v13863_v48 = vmax.f32 %v6959_v46, 0.0  ;;  %8487 = vmatmul.mubr.msk.bf16.vlgmr.msra.gmra.mxu1 %vm13203_vm14, %v8486_v55  ;;  %v7128_v52 = vpack.c.bf16 %v6966_v6, %v6964_v20  ;;  %v9637_v38 = vld [vmem:[#allocation14 + $0x2c0] ss:$8 sps:$4 sm:$0xff]  }
 0xe05   :  { %7731 = vmatpush1.bf16.msra.mxu1 %v9604_v39  ;;  %v8497_v23 = vpack.c.bf16 %v7004_v61, %v7005_v3  ;;  %v9642_v45 = vld [vmem:[#allocation14 + $0x2b4] ss:$8 sps:$4 sm:$0xff]   ;;  %v9640_v57 = vld [vmem:[#allocation14 + $0x2b0] ss:$8 sps:$4 sm:$0xff]   ;;  %v9645_v9 = vld [vmem:[#allocation14 + $0x2a4] ss:$8 sps:$4 sm:$0xff]  }
 0xe06   :  { %v7014_v63 = vsel %vm2737_vm9, %v7012_v35, %v7013_v43  ;;  %v6992_v40 = vrot.slane %v13863_v48, 7  ;;  %7732 = vmatprep.subr.bf16.mxu1 %v9609_v59  ;;  %v7129_v37 = vpack.c.bf16 %v13863_v48, %v13858_v19  ;;  %v6991_v18 = vsel %vm541_vm2, %v6988_v25, %v6990_v26  ;;  %v9643_v49 = vld [vmem:[#allocation14 + $0x2a0] ss:$8 sps:$4 sm:$0xff]   ;;  %v9648_v58 = vld [vmem:[#allocation14 + $0x294] ss:$8 sps:$4 sm:$0xff]  }
 0xe07   :  { %v13873_v62 = vpack.c.bf16 %v7013_v43, %v7014_v63  ;;  %v8494_v53 = vpack.c.bf16 %v6991_v18, %v6988_v25  ;;  %v9646_v20 = vld [vmem:[#allocation14 + $0x290] ss:$8 sps:$4 sm:$0xff]   ;;  %v9651_v29 = vld [vmem:[#allocation14 + $0x284] ss:$8 sps:$4 sm:$0xff]   ;;  %v7016_v30 = vrot.slane %v13863_v48, 1 }
 0xe08   :  { %7719 = vmatprep.mubr.bf16.mxu0 %v7129_v37  ;;  %v6993_v31 = vsel %vm541_vm2, %v6989_v44, %v6992_v40  ;;  %v9649_v21 = vld [vmem:[#allocation14 + $0x280] ss:$8 sps:$4 sm:$0xff]  }
 0xe09   :  { %7733 = vmatpush1.bf16.msra.mxu1 %v9607_v12  ;;  %v8490_v33 = vpack.c.bf16 %v6993_v31, %v6989_v44  ;;  %v7017_v54 = vsel %vm2737_vm9, %v7015_v47, %v7016_v30  ;;  %v7132_v35 = vld [vmem:[%s13925_s20] sm:$0x3]  ;;  %s9967_s20 = smov [#allocation16]  }
 0xe0a   :  { %7734 = vmatprep.subr.bf16.mxu1 %v9612_v27  ;;  %7720 = vmatmul.mubr.bf16.gmra.mxu0 %v7128_v52  ;;  %v8503_v1 = vpack.c.bf16 %v7016_v30, %v7017_v54  ;;  %v7141_v22 = vrot.slane %v7132_v35, %v14266_v51  ;;  %s7804_s6 = sshll.u32 %s9967_s20, 4  ;;  %s7805_s6 = int_to_ptr.vmem [resolvable:$true] %s7804_s6 }
 0xe0b   :  { %8491 = vmatprep.mubr.msk.bf16.mxu1 %vm13203_vm14, %v8490_v33  ;;  %s9915_s2 = scalar_lea.vmem %s7805_s6, 1024  ;;  %p9920_p13 = scmp.lt.s32.totalorder %s7805_s6, %s7805_s6 }
 0xe0c   :  { %8495 = vmatmul.mubr.msk.bf16.gmra.mxu1 %vm13203_vm14, %v8494_v53  ;;  %p9916_p12 = scmp.ne.s32.totalorder %s7805_s6, %s9915_s2  ;;  %p9921_p0 = scmp.lt.s32.totalorder %s9915_s2, %s9915_s2 }
 0xe0d   :  { %7735 = vmatpush1.bf16.msra.mxu1 %v9610_v15  ;;  %8498 = vmatprep.mubr.msk.bf16.mxu1 %vm13521_vm15, %v8497_v23 }
 0xe0e   :  { %7736 = vmatprep.subr.bf16.mxu1 %v9615_v4  ;;  %p9922_p1 = por %p9921_p0, %p9920_p13 }
 0xe10   :  { %p9923_p2 = pnand %p9922_p1, %p9916_p12 }
 0xe11   :  { %7737 = vmatpush1.bf16.msra.mxu1 %v9613_v0 }
 0xe12   :  { %7738 = vmatprep.subr.bf16.mxu1 %v9618_v32 }
 0xe15   :  { %7739 = vmatpush1.bf16.msra.mxu1 %v9616_v8 }
 0xe16   :  { %7740 = vmatprep.subr.bf16.mxu1 %v9621_v11 }
 0xe19   :  { %7741 = vmatpush1.bf16.msra.mxu1 %v9619_v50 }
 0xe1a   :  { %7742 = vmatprep.subr.bf16.mxu1 %v9624_v34 }
 0xe1d   :  { %7743 = vmatpush1.bf16.msra.mxu1 %v9622_v13 }
 0xe1e   :  { %7744 = vmatprep.subr.bf16.mxu1 %v9627_v16 }
 0xe21   :  { %7745 = vmatpush1.bf16.msra.mxu1 %v9625_v28 }
 0xe22   :  { %7746 = vmatprep.subr.bf16.mxu1 %v9630_v41 }
 0xe25   :  { %7747 = vmatpush2.bf16.msra.mxu1 %v9628_v14 }
 0xe26   :  { %7748 = vmatprep.subr.bf16.mxu1 %v9633_v24 }
 0xe29   :  { %7749 = vmatpush2.bf16.msra.mxu1 %v9631_v10 }
 0xe2a   :  { %7750 = vmatprep.subr.bf16.mxu1 %v9636_v36 }
 0xe2d   :  { %7751 = vmatpush2.bf16.msra.mxu1 %v9634_v2 }
 0xe2e   :  { %7752 = vmatprep.subr.bf16.mxu1 %v9639_v5 }
 0xe31   :  { %7753 = vmatpush2.bf16.msra.mxu1 %v9637_v38 }
 0xe32   :  { %7754 = vmatprep.subr.bf16.mxu1 %v9642_v45 }
 0xe35   :  { %7755 = vmatpush2.bf16.msra.mxu1 %v9640_v57 }
 0xe36   :  { %7756 = vmatprep.subr.bf16.mxu1 %v9645_v9 }
 0xe39   :  { %7757 = vmatpush2.bf16.msra.mxu1 %v9643_v49 }
 0xe3a   :  { %7758 = vmatprep.subr.bf16.mxu1 %v9648_v58 }
 0xe3d   :  { %7759 = vmatpush2.bf16.msra.mxu1 %v9646_v20 }
 0xe3e   :  { %7760 = vmatprep.subr.bf16.mxu1 %v9651_v29 }
 0xe41   :  { %7761 = vmatpush2.bf16.msra.mxu1 %v9649_v21 }
 0xe44   :  { %8501 = vmatmul.mubr.msk.bf16.vlgmr.msra.gmra.mxu1 %vm13521_vm15, %v13852_v60  ;;  %v7137_v60 = vrot.slane %v7132_v35, %v14265_v42 }
 0xe45   :  { %8504 = vmatprep.mubr.msk.bf16.mxu1 %vm13521_vm15, %v8503_v1 }
 0xe4c   :  { %8507 = vmatmul.mubr.msk.bf16.gmra.mxu1 %vm13521_vm15, %v13873_v62 }
 0xec2   :  { %v7711_v19 = vpop.f32.mrf.mxu0 }
 0xec4   :  { %v7658_v6 = vpop.f32.mrf.mxu1  ;;  %v7713_v59 = vpop.f32.mrf.mxu0 }
 0xec5   :  { %v7659_v48 = vadd.f32 %v7658_v6, %v7137_v60 }
 0xec6   :  { %v7660_v56 = vpop.f32.mrf.mxu1  ;;  %v7715_v43 = vpop.f32.mrf.mxu0 }
 0xec7   :  { %v7661_v12 = vadd.f32 %v7660_v56, %v7141_v22  ;;  %v7712_v44 = vadd.f32 %v7711_v19, %v7659_v48 }
 0xec8   :  { %v7662_v39 = vpop.f32.mrf.mxu1  ;;  %v7717_v25 = vpop.f32.mrf.mxu0 }
 0xec9   :  { %v7663_v17 = vadd.f32 %v7662_v39, %v7137_v60  ;;  %v7714_v62 = vadd.f32 %v7713_v59, %v7661_v12 }
 0xeca   :  { %v7664_v55 = vpop.f32.mrf.mxu1  ;;  %v7721_v40 = vpop.f32.mrf.mxu0 }
 0xecb   :  { %v7665_v27 = vadd.f32 %v7664_v55, %v7141_v22  ;;  %v7716_v42 = vadd.f32 %v7715_v43, %v7663_v17 }
 0xecc   :  { %v7668_v46 = vpop.f32.mrf.mxu1  ;;  %v7723_v15 = vpop.f32.mrf.mxu0 }
 0xecd   :  { %v7669_v3 = vadd.f32 %v7668_v46, %v7137_v60  ;;  %v7718_v7 = vadd.f32 %v7717_v25, %v7665_v27 }
 0xece   :  { %v7670_v26 = vpop.f32.mrf.mxu1  ;;  %v7725_v34 = vpop.f32.mrf.mxu0 }
 0xecf   :  { %v7671_v51 = vadd.f32 %v7670_v26, %v7141_v22  ;;  %v7722_v50 = vadd.f32 %v7721_v40, %v7669_v3 }
 0xed0   :  { %v7672_v61 = vpop.f32.mrf.mxu1  ;;  %v7727_v5 = vpop.f32.mrf.mxu0 }
 0xed1   :  { %v7673_v32 = vadd.f32 %v7672_v61, %v7137_v60  ;;  %v7724_v14 = vadd.f32 %v7723_v15, %v7671_v51 }
 0xed2   :  { %v7674_v63 = vpop.f32.mrf.mxu1 }
 0xed3   :  { %v7675_v16 = vadd.f32 %v7674_v63, %v7141_v22  ;;  %v7726_v2 = vadd.f32 %v7725_v34, %v7673_v32 }
 0xed5   :  { %v7728_v9 = vadd.f32 %v7727_v5, %v7675_v16 }
 0xf04   :  { %v7764_v37 = vpop.f32.mrf.mxu1 }
 0xf05   :  { %v7765_v18 = vadd.f32 %v7764_v37, %v7712_v44 }
 0xf06   :  { %v7766_v31 = vpop.f32.mrf.mxu1 }
 0xf07   :  { %v7783_v52 = vmax.f32 %v7765_v18, 0.0  ;;  %v7767_v33 = vadd.f32 %v7766_v31, %v7714_v62 }
 0xf08   :  { %v7768_v53 = vpop.f32.mrf.mxu1 }
 0xf09   :  { %7791 = vst [vmem:[#allocation16] sm:$0xff] %v7783_v52  ;;  %v7784_v4 = vmax.f32 %v7767_v33, 0.0  ;;  %v7769_v23 = vadd.f32 %v7768_v53, %v7716_v42 }
 0xf0a   :  { %v7770_v0 = vpop.f32.mrf.mxu1 }
 0xf0b   :  { %7792 = vst [vmem:[#allocation16 + $0x8] sm:$0xff] %v7784_v4  ;;  %v7785_v8 = vmax.f32 %v7769_v23, 0.0  ;;  %v7771_v11 = vadd.f32 %v7770_v0, %v7718_v7 }
 0xf0c   :  { %v7774_v13 = vpop.f32.mrf.mxu1 }
 0xf0d   :  { %7793 = vst [vmem:[#allocation16 + $0x10] sm:$0xff] %v7785_v8  ;;  %v7786_v28 = vmax.f32 %v7771_v11, 0.0  ;;  %v7775_v41 = vadd.f32 %v7774_v13, %v7722_v50 }
 0xf0e   :  { %v7776_v24 = vpop.f32.mrf.mxu1 }
 0xf0f   :  { %7794 = vst [vmem:[#allocation16 + $0x18] sm:$0xff] %v7786_v28  ;;  %v7787_v10 = vmax.f32 %v7775_v41, 0.0  ;;  %v7777_v36 = vadd.f32 %v7776_v24, %v7724_v14 }
 0xf10   :  { %v7778_v38 = vpop.f32.mrf.mxu1 }
 0xf11   :  { %7795 = vst [vmem:[#allocation16 + $0x20] sm:$0xff] %v7787_v10  ;;  %v7788_v45 = vmax.f32 %v7777_v36, 0.0  ;;  %v7779_v57 = vadd.f32 %v7778_v38, %v7726_v2 }
 0xf12   :  { %v7780_v49 = vpop.f32.mrf.mxu1 }
 0xf13   :  { %7796 = vst [vmem:[#allocation16 + $0x28] sm:$0xff] %v7788_v45  ;;  %v7789_v58 = vmax.f32 %v7779_v57, 0.0  ;;  %v7781_v20 = vadd.f32 %v7780_v49, %v7728_v9 }
 0xf15   :  { %7797 = vst [vmem:[#allocation16 + $0x30] sm:$0xff] %v7789_v58  ;;  %v7790_v29 = vmax.f32 %v7781_v20, 0.0 }
 0xf17   :  { %7798 = vst [vmem:[#allocation16 + $0x38] sm:$0xff] %v7790_v29 }
 0xf18   :  { %9926 = shalt.err (!%p9923_p2)
}
 0xf19   :  { %7810 = dma.vmem_to_hbm [thread:$0]  %s7805_s6, 1024, %s13926_s21, [#allocation4], %s14015_s0, %s14015_s0, %s14014_s24  }
 0xf1a   :  { %9945 = dma.done.wait [#allocation4], 1024  }
 0xf1b   :  { %9946 = vsyncadd [#allocation4], 4294966272 }
 0xf1c   :  { %7814 = vsyncpa [#allocation3], 1 }
 0xf1d   :  { %7815 = vsyncpa [#allocation6], 1 }
 0xf1e   :  { %7816 = vsyncpa [#allocation9], 1 }
 0xf1f   :  { %7817 = vsyncpa [#allocation12], 1 }
 0xf20   :  { %7818 = vsyncpa [#allocation15], 1 }
 0xf21   :  { %7819 = vsyncpa [#allocation4], 1 }

</bundles_post_ra>
